<compile_context>
chip_gen: v6e
topology: v6e:2x2x1
jax: 0.10.0
libtpu: 0.0.40
codegen_flags: <defaults>
</compile_context>

<pallas_src>
import functools

import jax
import jax.numpy as jnp
from jax.experimental import pallas as pl
from jax.experimental.pallas import tpu as pltpu


def _round_up(x, m):
    return (x + m - 1) // m * m


# --------------------------------------------------------------------- kernels

def _matmul_bn_relu_kernel(x_ref, w_ref, s_ref, b_ref, o_ref):
    # x: (tile_m, K) bf16 im2col patches, w: (K, Cout) bf16, s/b: (1, Cout) f32.
    y = jnp.dot(x_ref[...], w_ref[...], preferred_element_type=jnp.float32)
    o_ref[...] = jnp.maximum(y * s_ref[...] + b_ref[...], 0.0)


def _maxpool_kernel(x_ref, o_ref, *, Ho, Wo):
    # x: (1, Ho+1, 2, Wo+1, 2, C) parity-reshaped, -inf padded input for one image.
    # Window tap (di, dj) of the 3x3 stride-2 pool (padded row = 2*oh + di) is the
    # unit-stride slice [di//2 : di//2+Ho, di%2, dj//2 : dj//2+Wo, dj%2].
    res = None
    for di in range(3):
        for dj in range(3):
            v = x_ref[0, di // 2:di // 2 + Ho, di % 2,
                      dj // 2:dj // 2 + Wo, dj % 2, :]
            res = v if res is None else jnp.maximum(res, v)
    o_ref[0] = res


def _block_kernel(*refs, stride, has_ds, Ho, Wo):
    """Fused ResNet basic block for ONE image of the batch grid.

    conv3x3(stride)+BN+ReLU -> conv3x3(1)+BN -> (+ shortcut / 1x1-downsample) -> ReLU.
    The intermediate activation stays in the VMEM scratch hpad_ref; matmuls run
    bf16 x bf16 -> f32 on the MXU; BN / residual / ReLU epilogues are f32.
    """
    if has_ds:
        (x_ref, w1_ref, s1_ref, b1_ref, w2_ref, s2_ref, b2_ref,
         wd_ref, sd_ref, bd_ref, o_ref, hpad_ref) = refs
    else:
        (x_ref, w1_ref, s1_ref, b1_ref, w2_ref, s2_ref, b2_ref,
         o_ref, hpad_ref) = refs
        wd_ref = sd_ref = bd_ref = None

    M = Ho * Wo
    Cin = x_ref.shape[-1]
    Cmid = w1_ref.shape[-1]
    Cout = w2_ref.shape[-1]

    def in_tap(di, dj):
        # stride 1: padded input (1, Ho+2, Wo+2, Cin), tap row = oh + di.
        # stride 2: parity-reshaped padded input (1, Ho+1, 2, Wo+1, 2, Cin),
        #           tap row = 2*oh + di -> (q, p) = (oh + di//2, di%2).
        if stride == 1:
            v = x_ref[0, di:di + Ho, dj:dj + Wo, :]
        else:
            v = x_ref[0, di // 2:di // 2 + Ho, di % 2,
                      dj // 2:dj // 2 + Wo, dj % 2, :]
        return v.reshape(M, Cin).astype(jnp.bfloat16)

    # ---- conv1 (3x3, stride) + BN + ReLU: accumulate the 9 taps on the MXU.
    acc = jnp.zeros((M, Cmid), jnp.float32)
    for t in range(9):
        di, dj = divmod(t, 3)
        acc = acc + jnp.dot(in_tap(di, dj), w1_ref[t],
                            preferred_element_type=jnp.float32)
    h = jnp.maximum(acc * s1_ref[...] + b1_ref[...], 0.0)

    # ---- stash the zero-padded intermediate in VMEM (never written back to HBM).
    hpad_ref[...] = jnp.zeros_like(hpad_ref)
    hpad_ref[1:1 + Ho, 1:1 + Wo, :] = h.reshape(Ho, Wo, Cmid)

    # ---- conv2 (3x3, stride 1) + BN.
    acc2 = jnp.zeros((M, Cout), jnp.float32)
    for t in range(9):
        di, dj = divmod(t, 3)
        a = hpad_ref[di:di + Ho, dj:dj + Wo, :].reshape(M, Cmid).astype(jnp.bfloat16)
        acc2 = acc2 + jnp.dot(a, w2_ref[t], preferred_element_type=jnp.float32)
    y = acc2 * s2_ref[...] + b2_ref[...]

    # ---- shortcut.
    if has_ds:
        # 1x1 stride-2 conv + BN on the unpadded input: padded coord (2oh+1, 2ow+1).
        xs = x_ref[0, 0:Ho, 1, 0:Wo, 1, :].reshape(M, Cin).astype(jnp.bfloat16)
        ident = (jnp.dot(xs, wd_ref[...], preferred_element_type=jnp.float32)
                 * sd_ref[...] + bd_ref[...])
    elif stride == 1:
        ident = x_ref[0, 1:1 + Ho, 1:1 + Wo, :].reshape(M, Cout)
    else:  # stride-2 identity shortcut (unused by ResNet-18; kept for completeness)
        ident = x_ref[0, 0:Ho, 1, 0:Wo, 1, :].reshape(M, Cout)

    o_ref[0] = jnp.maximum(y + ident, 0.0)


def _mean_std_kernel(x_ref, mean_ref, std_ref):
    # x: (1, HW, C); spatial mean + unbiased std (ddof=1, matches torch.std default).
    x = x_ref[...]
    hw = x.shape[1]
    mean = jnp.mean(x, axis=1, keepdims=True)                  # (1, 1, C)
    diff = x - mean
    var = jnp.sum(diff * diff, axis=1, keepdims=True) / (hw - 1)
    mean_ref[...] = mean
    std_ref[...] = jnp.sqrt(var)


# --------------------------------------------------------------------- wrappers

_PARALLEL_1D = pltpu.CompilerParams(dimension_semantics=("parallel",))


def conv1_bn_relu(x, w, scale, bias):
    """7x7/2 pad-3 conv + folded BN + ReLU via im2col + M-tiled bf16 MXU matmul."""
    N, H, W, Cin = x.shape
    Cout, _, kh, kw = w.shape
    stride, pad = 2, 3
    Ho = (H + 2 * pad - kh) // stride + 1
    Wo = (W + 2 * pad - kw) // stride + 1

    xp = jnp.pad(x, ((0, 0), (pad, pad), (pad, pad), (0, 0)))
    cols = []
    for i in range(kh):
        for j in range(kw):
            cols.append(xp[:, i:i + stride * Ho:stride, j:j + stride * Wo:stride, :])
    K = kh * kw * Cin
    patches = jnp.concatenate(cols, axis=-1).reshape(N * Ho * Wo, K)

    M = N * Ho * Wo
    Kp = _round_up(K, 128)                          # fill the MXU contraction dim
    tile_m = 256 if M >= 256 else _round_up(M, 8)
    Mp = _round_up(M, tile_m)

    patches = jnp.pad(patches, ((0, Mp - M), (0, Kp - K))).astype(jnp.bfloat16)
    wmat = jnp.transpose(w, (2, 3, 1, 0)).reshape(K, Cout)
    wmat = jnp.pad(wmat, ((0, Kp - K), (0, 0))).astype(jnp.bfloat16)
    s2 = scale.reshape(1, Cout).astype(jnp.float32)
    b2 = bias.reshape(1, Cout).astype(jnp.float32)

    out = pl.pallas_call(
        _matmul_bn_relu_kernel,
        grid=(Mp // tile_m,),
        in_specs=[pl.BlockSpec((tile_m, Kp), lambda i: (i, 0)),
                  pl.BlockSpec((Kp, Cout), lambda i: (0, 0)),
                  pl.BlockSpec((1, Cout), lambda i: (0, 0)),
                  pl.BlockSpec((1, Cout), lambda i: (0, 0))],
        out_specs=pl.BlockSpec((tile_m, Cout), lambda i: (i, 0)),
        out_shape=jax.ShapeDtypeStruct((Mp, Cout), jnp.float32),
        compiler_params=_PARALLEL_1D,
    )(patches, wmat, s2, b2)
    return out[:M].reshape(N, Ho, Wo, Cout)


def _parity_pad(x, pad_value, Ho, Wo):
    """Pad NHWC by 1 on top/left and up to height/width 2*(Ho+1)/2*(Wo+1), then
    reshape (free, row-major) to the parity layout (N, Ho+1, 2, Wo+1, 2, C)."""
    N, H, W, C = x.shape
    Hp, Wp = 2 * (Ho + 1), 2 * (Wo + 1)
    xp = jnp.pad(x, ((0, 0), (1, Hp - H - 1), (1, Wp - W - 1), (0, 0)),
                 constant_values=pad_value)
    return xp.reshape(N, Ho + 1, 2, Wo + 1, 2, C)


def maxpool_3x3_s2_p1(x):
    """MaxPool2d(kernel=3, stride=2, padding=1); reads each activation once."""
    N, H, W, C = x.shape
    Ho = (H + 2 - 3) // 2 + 1
    Wo = (W + 2 - 3) // 2 + 1
    x6 = _parity_pad(x, -jnp.inf, Ho, Wo)
    return pl.pallas_call(
        functools.partial(_maxpool_kernel, Ho=Ho, Wo=Wo),
        grid=(N,),
        in_specs=[pl.BlockSpec((1, Ho + 1, 2, Wo + 1, 2, C),
                               lambda n: (n, 0, 0, 0, 0, 0))],
        out_specs=pl.BlockSpec((1, Ho, Wo, C), lambda n: (n, 0, 0, 0)),
        out_shape=jax.ShapeDtypeStruct((N, Ho, Wo, C), x.dtype),
        compiler_params=_PARALLEL_1D,
    )(x6)


def basic_block(x, p, blk, *, stride, downsample=False):
    """One fused ResNet basic block (both 3x3 convs + BN + shortcut + ReLUs)."""
    N, H, W, Cin = x.shape
    w1, s1, b1 = p[f'{blk}_c1_w'], p[f'{blk}_bn1_s'], p[f'{blk}_bn1_b']
    w2, s2, b2 = p[f'{blk}_c2_w'], p[f'{blk}_bn2_s'], p[f'{blk}_bn2_b']
    Cmid = w1.shape[0]
    Cout = w2.shape[0]
    Ho = (H + 2 - 3) // stride + 1
    Wo = (W + 2 - 3) // stride + 1
    M = Ho * Wo

    w1m = jnp.transpose(w1, (2, 3, 1, 0)).reshape(9, Cin, Cmid).astype(jnp.bfloat16)
    w2m = jnp.transpose(w2, (2, 3, 1, 0)).reshape(9, Cmid, Cout).astype(jnp.bfloat16)
    s1m = s1.reshape(1, Cmid).astype(jnp.float32)
    b1m = b1.reshape(1, Cmid).astype(jnp.float32)
    s2m = s2.reshape(1, Cout).astype(jnp.float32)
    b2m = b2.reshape(1, Cout).astype(jnp.float32)

    if stride == 1:
        x_in = jnp.pad(x, ((0, 0), (1, 1), (1, 1), (0, 0)))
        x_spec = pl.BlockSpec((1, H + 2, W + 2, Cin), lambda n: (n, 0, 0, 0))
    else:
        x_in = _parity_pad(x, 0.0, Ho, Wo)
        x_spec = pl.BlockSpec((1, Ho + 1, 2, Wo + 1, 2, Cin),
                              lambda n: (n, 0, 0, 0, 0, 0))

    args = [x_in, w1m, s1m, b1m, w2m, s2m, b2m]
    in_specs = [x_spec,
                pl.BlockSpec((9, Cin, Cmid), lambda n: (0, 0, 0)),
                pl.BlockSpec((1, Cmid), lambda n: (0, 0)),
                pl.BlockSpec((1, Cmid), lambda n: (0, 0)),
                pl.BlockSpec((9, Cmid, Cout), lambda n: (0, 0, 0)),
                pl.BlockSpec((1, Cout), lambda n: (0, 0)),
                pl.BlockSpec((1, Cout), lambda n: (0, 0))]
    if downsample:
        wdm = jnp.transpose(p[f'{blk}_ds_w'].reshape(Cout, Cin)).astype(jnp.bfloat16)
        sdm = p[f'{blk}_dsbn_s'].reshape(1, Cout).astype(jnp.float32)
        bdm = p[f'{blk}_dsbn_b'].reshape(1, Cout).astype(jnp.float32)
        args += [wdm, sdm, bdm]
        in_specs += [pl.BlockSpec((Cin, Cout), lambda n: (0, 0)),
                     pl.BlockSpec((1, Cout), lambda n: (0, 0)),
                     pl.BlockSpec((1, Cout), lambda n: (0, 0))]

    out = pl.pallas_call(
        functools.partial(_block_kernel, stride=stride, has_ds=downsample,
                          Ho=Ho, Wo=Wo),
        grid=(N,),
        in_specs=in_specs,
        out_specs=pl.BlockSpec((1, M, Cout), lambda n: (n, 0, 0)),
        out_shape=jax.ShapeDtypeStruct((N, M, Cout), jnp.float32),
        scratch_shapes=[pltpu.VMEM((Ho + 2, Wo + 2, Cmid), jnp.float32)],
        compiler_params=_PARALLEL_1D,
    )(*args)
    return out.reshape(N, Ho, Wo, Cout)


def global_mean_std_pool(x):
    """adaptive_avg_pool2d(x, 1) and global_std_pool2d(x) -> two (N, C, 1, 1)."""
    N, H, W, C = x.shape
    xr = x.reshape(N, H * W, C)
    mean, std = pl.pallas_call(
        _mean_std_kernel,
        grid=(N,),
        in_specs=[pl.BlockSpec((1, H * W, C), lambda n: (n, 0, 0))],
        out_specs=(pl.BlockSpec((1, 1, C), lambda n: (n, 0, 0)),
                   pl.BlockSpec((1, 1, C), lambda n: (n, 0, 0))),
        out_shape=(jax.ShapeDtypeStruct((N, 1, C), jnp.float32),
                   jax.ShapeDtypeStruct((N, 1, C), jnp.float32)),
        compiler_params=_PARALLEL_1D,
    )(xr)
    return mean.reshape(N, C, 1, 1), std.reshape(N, C, 1, 1)


# --------------------------------------------------------------------- parameters

def init_params(key):
    keys = iter(jax.random.split(key, 64))

    def conv_w(cout, cin, k):
        fan_in = cin * k * k
        return jax.random.normal(next(keys), (cout, cin, k, k), jnp.float32) * (2.0 / fan_in) ** 0.5

    def bn(c):
        gamma = 1.0 + 0.1 * jax.random.normal(next(keys), (c,), jnp.float32)
        beta = 0.1 * jax.random.normal(next(keys), (c,), jnp.float32)
        rmean = 0.1 * jax.random.normal(next(keys), (c,), jnp.float32)
        rvar = 1.0 + 0.1 * jnp.abs(jax.random.normal(next(keys), (c,), jnp.float32))
        eps = 1e-5
        scale = gamma / jnp.sqrt(rvar + eps)
        bias = beta - rmean * scale
        return scale, bias

    p = {}
    p['conv1_w'] = conv_w(64, 3, 7)
    p['bn1_s'], p['bn1_b'] = bn(64)
    for blk, cin, cout in [('l1b0', 64, 64), ('l1b1', 64, 64),
                           ('l2b0', 64, 128), ('l2b1', 128, 128)]:
        p[f'{blk}_c1_w'] = conv_w(cout, cin, 3)
        p[f'{blk}_bn1_s'], p[f'{blk}_bn1_b'] = bn(cout)
        p[f'{blk}_c2_w'] = conv_w(cout, cout, 3)
        p[f'{blk}_bn2_s'], p[f'{blk}_bn2_b'] = bn(cout)
    p['l2b0_ds_w'] = conv_w(128, 64, 1)
    p['l2b0_dsbn_s'], p['l2b0_dsbn_b'] = bn(128)
    return p


# --------------------------------------------------------------------- forward

def resnet18_lp_forward(x_nchw, p):
    """Returns (features_mean, features_std), each (N, 128, 1, 1) float32."""
    x = jnp.transpose(x_nchw.astype(jnp.float32), (0, 2, 3, 1))   # NCHW -> NHWC

    x = conv1_bn_relu(x, p['conv1_w'], p['bn1_s'], p['bn1_b'])    # conv1 + bn1 + relu
    x = maxpool_3x3_s2_p1(x)                                      # maxpool 3x3/2 pad 1

    x = basic_block(x, p, 'l1b0', stride=1)                       # layer1
    x = basic_block(x, p, 'l1b1', stride=1)
    x = basic_block(x, p, 'l2b0', stride=2, downsample=True)      # layer2
    x = basic_block(x, p, 'l2b1', stride=1)

    return global_mean_std_pool(x)


# ------------------------------------------------------- pure-JAX reference (check)

def _reference_forward(x_nchw, p):
    x = jnp.transpose(x_nchw.astype(jnp.float32), (0, 2, 3, 1))

    def conv(x, w, stride, pad):
        return jax.lax.conv_general_dilated(
            x, jnp.transpose(w, (2, 3, 1, 0)), (stride, stride),
            ((pad, pad), (pad, pad)), dimension_numbers=("NHWC", "HWIO", "NHWC"))

    def bn(x, s, b):
        return x * s.reshape(1, 1, 1, -1) + b.reshape(1, 1, 1, -1)

    x = jax.nn.relu(bn(conv(x, p['conv1_w'], 2, 3), p['bn1_s'], p['bn1_b']))
    x = jax.lax.reduce_window(x, -jnp.inf, jax.lax.max, (1, 3, 3, 1), (1, 2, 2, 1),
                              ((0, 0), (1, 1), (1, 1), (0, 0)))

    def block(x, blk, stride, has_ds):
        if has_ds:
            idn = bn(conv(x, p[f'{blk}_ds_w'], stride, 0),
                     p[f'{blk}_dsbn_s'], p[f'{blk}_dsbn_b'])
        else:
            idn = x
        y = jax.nn.relu(bn(conv(x, p[f'{blk}_c1_w'], stride, 1),
                           p[f'{blk}_bn1_s'], p[f'{blk}_bn1_b']))
        y = bn(conv(y, p[f'{blk}_c2_w'], 1, 1), p[f'{blk}_bn2_s'], p[f'{blk}_bn2_b'])
        return jax.nn.relu(y + idn)

    x = block(x, 'l1b0', 1, False)
    x = block(x, 'l1b1', 1, False)
    x = block(x, 'l2b0', 2, True)
    x = block(x, 'l2b1', 1, False)

    N, _, _, C = x.shape
    mean = jnp.mean(x, axis=(1, 2)).reshape(N, C, 1, 1)
    std = jnp.std(x.reshape(N, -1, C), axis=1, ddof=1).reshape(N, C, 1, 1)
    return mean, std


# --------------------------------------------------------------------- main

if __name__ == "__main__":
    key = jax.random.PRNGKey(0)
    k_par, k_in = jax.random.split(key)
    params = init_params(k_par)
    x = jax.random.normal(k_in, (2, 3, 32, 32), jnp.float32)   # NCHW like PyTorch

    fwd = jax.jit(resnet18_lp_forward)
    feat_mean, feat_std = fwd(x, params)
    jax.block_until_ready((feat_mean, feat_std))

    assert feat_mean.shape == (2, 128, 1, 1), feat_mean.shape
    assert feat_std.shape == (2, 128, 1, 1), feat_std.shape
    assert bool(jnp.all(jnp.isfinite(feat_mean))) and bool(jnp.all(jnp.isfinite(feat_std)))

    # correctness vs pure-JAX/XLA reference (loose tolerance: MXU matmuls run in bf16).
    ref_mean, ref_std = _reference_forward(x, params)
    ok_m = bool(jnp.all(jnp.abs(feat_mean - ref_mean) <= 0.1 + 0.1 * jnp.abs(ref_mean)))
    ok_s = bool(jnp.all(jnp.abs(feat_std - ref_std) <= 0.1 + 0.1 * jnp.abs(ref_std)))
    assert ok_m and ok_s, "Pallas output deviates from pure-JAX reference"

    print("KERNEL_OK")
</pallas_src>

<mosaic_0001>
module attributes {stable_mosaic.version = 11 : i64} {
  func.func @_matmul_bn_relu_kernel(%arg0: i32, %arg1: memref<256x256xbf16, #tpu.memory_space<vmem>>, %arg2: memref<256x64xbf16, #tpu.memory_space<vmem>>, %arg3: memref<1x64xf32, #tpu.memory_space<vmem>>, %arg4: memref<1x64xf32, #tpu.memory_space<vmem>>, %arg5: memref<256x64xf32, #tpu.memory_space<vmem>>) attributes {dimension_semantics = [#tpu.dimension_semantics<parallel>], iteration_bounds = array<i64: 2>, scalar_prefetch = 0 : i64, scratch_operands = 0 : i64, tpu.core_type = #tpu.core_type<tc>, window_params = [{transform_indices = @transform_0, window_bounds = array<i64: 256, 256>}, {pipeline_mode = #tpu.pipeline_mode<synchronous>, transform_indices = @transform_1, window_bounds = array<i64: 256, 64>}, {pipeline_mode = #tpu.pipeline_mode<synchronous>, transform_indices = @transform_2, window_bounds = array<i64: 1, 64>}, {pipeline_mode = #tpu.pipeline_mode<synchronous>, transform_indices = @transform_3, window_bounds = array<i64: 1, 64>}, {transform_indices = @transform_4, window_bounds = array<i64: 256, 64>}]} {
    %c0 = arith.constant 0 : index
    %c0_0 = arith.constant 0 : index
    %0 = vector.load %arg1[%c0, %c0_0] : memref<256x256xbf16, #tpu.memory_space<vmem>>, vector<256x256xbf16>
    %c0_1 = arith.constant 0 : index
    %c0_2 = arith.constant 0 : index
    %1 = vector.load %arg2[%c0_1, %c0_2] : memref<256x64xbf16, #tpu.memory_space<vmem>>, vector<256x64xbf16>
    %cst = arith.constant dense<0.000000e+00> : vector<256x64xf32>
    %2 = tpu.matmul %0, %1, %cst {dimension_numbers = #tpu.dot_dimension_numbers<[1], [0], [0], [1], [0, 0, 1, 1], [], []>} : vector<256x256xbf16>, vector<256x64xbf16>, vector<256x64xf32> -> vector<256x64xf32>
    %c0_3 = arith.constant 0 : index
    %c0_4 = arith.constant 0 : index
    %3 = vector.load %arg3[%c0_3, %c0_4] : memref<1x64xf32, #tpu.memory_space<vmem>>, vector<1x64xf32>
    %4 = vector.broadcast %3 : vector<1x64xf32> to vector<256x64xf32>
    %5 = arith.mulf %2, %4 : vector<256x64xf32>
    %c0_5 = arith.constant 0 : index
    %c0_6 = arith.constant 0 : index
    %6 = vector.load %arg4[%c0_5, %c0_6] : memref<1x64xf32, #tpu.memory_space<vmem>>, vector<1x64xf32>
    %7 = vector.broadcast %6 : vector<1x64xf32> to vector<256x64xf32>
    %8 = arith.addf %5, %7 : vector<256x64xf32>
    %cst_7 = arith.constant 0.000000e+00 : f32
    %9 = vector.broadcast %cst_7 : f32 to vector<256x64xf32>
    %10 = arith.maximumf %8, %9 : vector<256x64xf32>
    %c0_8 = arith.constant 0 : index
    %c0_9 = arith.constant 0 : index
    %11 = vector.load %arg5[%c0_8, %c0_9] : memref<256x64xf32, #tpu.memory_space<vmem>>, vector<256x64xf32>
    tpu.vector_store %arg5[%c0_8, %c0_9], %10 {strides = array<i32>} : memref<256x64xf32, #tpu.memory_space<vmem>>, vector<256x64xf32>,
    return
  }
  func.func @transform_0(%arg0: i32) -> (i32, i32) {
    %c0_i32 = arith.constant 0 : i32
    %c0_i32_0 = arith.constant 0 : i32
    return %arg0, %c0_i32 : i32, i32
  }
  func.func @transform_1(%arg0: i32) -> (i32, i32) {
    %c0_i32 = arith.constant 0 : i32
    %c0_i32_0 = arith.constant 0 : i32
    %c0_i32_1 = arith.constant 0 : i32
    return %c0_i32, %c0_i32_0 : i32, i32
  }
  func.func @transform_2(%arg0: i32) -> (i32, i32) {
    %c0_i32 = arith.constant 0 : i32
    %c0_i32_0 = arith.constant 0 : i32
    %c0_i32_1 = arith.constant 0 : i32
    return %c0_i32, %c0_i32_0 : i32, i32
  }
  func.func @transform_3(%arg0: i32) -> (i32, i32) {
    %c0_i32 = arith.constant 0 : i32
    %c0_i32_0 = arith.constant 0 : i32
    %c0_i32_1 = arith.constant 0 : i32
    return %c0_i32, %c0_i32_0 : i32, i32
  }
  func.func @transform_4(%arg0: i32) -> (i32, i32) {
    %c0_i32 = arith.constant 0 : i32
    %c0_i32_0 = arith.constant 0 : i32
    return %arg0, %c0_i32 : i32, i32
  }
}

module attributes {stable_mosaic.version = 11 : i64} {
  func.func @_maxpool_kernel(%arg0: i32, %arg1: memref<1x9x2x9x2x64xf32, #tpu.memory_space<vmem>>, %arg2: memref<1x8x8x64xf32, #tpu.memory_space<vmem>>) attributes {dimension_semantics = [#tpu.dimension_semantics<parallel>], iteration_bounds = array<i64: 2>, scalar_prefetch = 0 : i64, scratch_operands = 0 : i64, tpu.core_type = #tpu.core_type<tc>, window_params = [{transform_indices = @transform_0, window_bounds = array<i64: 1, 9, 2, 9, 2, 64>}, {transform_indices = @transform_1, window_bounds = array<i64: 1, 8, 8, 64>}]} {
    %c0 = arith.constant 0 : index
    %c0_0 = arith.constant 0 : index
    %c0_1 = arith.constant 0 : index
    %c0_2 = arith.constant 0 : index
    %c0_3 = arith.constant 0 : index
    %c0_4 = arith.constant 0 : index
    %0 = vector.load %arg1[%c0, %c0_0, %c0_1, %c0_2, %c0_3, %c0_4] : memref<1x9x2x9x2x64xf32, #tpu.memory_space<vmem>>, vector<1x8x1x8x1x64xf32>
    %1 = vector.shape_cast %0 : vector<1x8x1x8x1x64xf32> to vector<8x8x64xf32>
    %c0_5 = arith.constant 0 : index
    %c0_6 = arith.constant 0 : index
    %c0_7 = arith.constant 0 : index
    %c0_8 = arith.constant 0 : index
    %c1 = arith.constant 1 : index
    %c0_9 = arith.constant 0 : index
    %2 = vector.load %arg1[%c0_5, %c0_6, %c0_7, %c0_8, %c1, %c0_9] : memref<1x9x2x9x2x64xf32, #tpu.memory_space<vmem>>, vector<1x8x1x8x1x64xf32>
    %3 = vector.shape_cast %2 : vector<1x8x1x8x1x64xf32> to vector<8x8x64xf32>
    %4 = arith.maximumf %1, %3 : vector<8x8x64xf32>
    %c0_10 = arith.constant 0 : index
    %c0_11 = arith.constant 0 : index
    %c0_12 = arith.constant 0 : index
    %c1_13 = arith.constant 1 : index
    %c0_14 = arith.constant 0 : index
    %c0_15 = arith.constant 0 : index
    %5 = vector.load %arg1[%c0_10, %c0_11, %c0_12, %c1_13, %c0_14, %c0_15] : memref<1x9x2x9x2x64xf32, #tpu.memory_space<vmem>>, vector<1x8x1x8x1x64xf32>
    %6 = vector.shape_cast %5 : vector<1x8x1x8x1x64xf32> to vector<8x8x64xf32>
    %7 = arith.maximumf %4, %6 : vector<8x8x64xf32>
    %c0_16 = arith.constant 0 : index
    %c0_17 = arith.constant 0 : index
    %c1_18 = arith.constant 1 : index
    %c0_19 = arith.constant 0 : index
    %c0_20 = arith.constant 0 : index
    %c0_21 = arith.constant 0 : index
    %8 = vector.load %arg1[%c0_16, %c0_17, %c1_18, %c0_19, %c0_20, %c0_21] : memref<1x9x2x9x2x64xf32, #tpu.memory_space<vmem>>, vector<1x8x1x8x1x64xf32>
    %9 = vector.shape_cast %8 : vector<1x8x1x8x1x64xf32> to vector<8x8x64xf32>
    %10 = arith.maximumf %7, %9 : vector<8x8x64xf32>
    %c0_22 = arith.constant 0 : index
    %c0_23 = arith.constant 0 : index
    %c1_24 = arith.constant 1 : index
    %c0_25 = arith.constant 0 : index
    %c1_26 = arith.constant 1 : index
    %c0_27 = arith.constant 0 : index
    %11 = vector.load %arg1[%c0_22, %c0_23, %c1_24, %c0_25, %c1_26, %c0_27] : memref<1x9x2x9x2x64xf32, #tpu.memory_space<vmem>>, vector<1x8x1x8x1x64xf32>
    %12 = vector.shape_cast %11 : vector<1x8x1x8x1x64xf32> to vector<8x8x64xf32>
    %13 = arith.maximumf %10, %12 : vector<8x8x64xf32>
    %c0_28 = arith.constant 0 : index
    %c0_29 = arith.constant 0 : index
    %c1_30 = arith.constant 1 : index
    %c1_31 = arith.constant 1 : index
    %c0_32 = arith.constant 0 : index
    %c0_33 = arith.constant 0 : index
    %14 = vector.load %arg1[%c0_28, %c0_29, %c1_30, %c1_31, %c0_32, %c0_33] : memref<1x9x2x9x2x64xf32, #tpu.memory_space<vmem>>, vector<1x8x1x8x1x64xf32>
    %15 = vector.shape_cast %14 : vector<1x8x1x8x1x64xf32> to vector<8x8x64xf32>
    %16 = arith.maximumf %13, %15 : vector<8x8x64xf32>
    %c0_34 = arith.constant 0 : index
    %c1_35 = arith.constant 1 : index
    %c0_36 = arith.constant 0 : index
    %c0_37 = arith.constant 0 : index
    %c0_38 = arith.constant 0 : index
    %c0_39 = arith.constant 0 : index
    %17 = vector.load %arg1[%c0_34, %c1_35, %c0_36, %c0_37, %c0_38, %c0_39] : memref<1x9x2x9x2x64xf32, #tpu.memory_space<vmem>>, vector<1x8x1x8x1x64xf32>
    %18 = vector.shape_cast %17 : vector<1x8x1x8x1x64xf32> to vector<8x8x64xf32>
    %19 = arith.maximumf %16, %18 : vector<8x8x64xf32>
    %c0_40 = arith.constant 0 : index
    %c1_41 = arith.constant 1 : index
    %c0_42 = arith.constant 0 : index
    %c0_43 = arith.constant 0 : index
    %c1_44 = arith.constant 1 : index
    %c0_45 = arith.constant 0 : index
    %20 = vector.load %arg1[%c0_40, %c1_41, %c0_42, %c0_43, %c1_44, %c0_45] : memref<1x9x2x9x2x64xf32, #tpu.memory_space<vmem>>, vector<1x8x1x8x1x64xf32>
    %21 = vector.shape_cast %20 : vector<1x8x1x8x1x64xf32> to vector<8x8x64xf32>
    %22 = arith.maximumf %19, %21 : vector<8x8x64xf32>
    %c0_46 = arith.constant 0 : index
    %c1_47 = arith.constant 1 : index
    %c0_48 = arith.constant 0 : index
    %c1_49 = arith.constant 1 : index
    %c0_50 = arith.constant 0 : index
    %c0_51 = arith.constant 0 : index
    %23 = vector.load %arg1[%c0_46, %c1_47, %c0_48, %c1_49, %c0_50, %c0_51] : memref<1x9x2x9x2x64xf32, #tpu.memory_space<vmem>>, vector<1x8x1x8x1x64xf32>
    %24 = vector.shape_cast %23 : vector<1x8x1x8x1x64xf32> to vector<8x8x64xf32>
    %25 = arith.maximumf %22, %24 : vector<8x8x64xf32>
    %c0_52 = arith.constant 0 : index
    %c0_53 = arith.constant 0 : index
    %c0_54 = arith.constant 0 : index
    %c0_55 = arith.constant 0 : index
    %26 = vector.load %arg2[%c0_52, %c0_53, %c0_54, %c0_55] : memref<1x8x8x64xf32, #tpu.memory_space<vmem>>, vector<1x8x8x64xf32>
    %27 = vector.shape_cast %26 : vector<1x8x8x64xf32> to vector<8x8x64xf32>
    %28 = vector.shape_cast %25 : vector<8x8x64xf32> to vector<1x8x8x64xf32>
    tpu.vector_store %arg2[%c0_52, %c0_53, %c0_54, %c0_55], %28 {strides = array<i32>} : memref<1x8x8x64xf32, #tpu.memory_space<vmem>>, vector<1x8x8x64xf32>,
    return
  }
  func.func @transform_0(%arg0: i32) -> (i32, i32, i32, i32, i32, i32) {
    %c0_i32 = arith.constant 0 : i32
    %c0_i32_0 = arith.constant 0 : i32
    %c0_i32_1 = arith.constant 0 : i32
    %c0_i32_2 = arith.constant 0 : i32
    %c0_i32_3 = arith.constant 0 : i32
    %c0_i32_4 = arith.constant 0 : i32
    return %arg0, %c0_i32, %c0_i32_0, %c0_i32_1, %c0_i32_2, %c0_i32_3 : i32, i32, i32, i32, i32, i32
  }
  func.func @transform_1(%arg0: i32) -> (i32, i32, i32, i32) {
    %c0_i32 = arith.constant 0 : i32
    %c0_i32_0 = arith.constant 0 : i32
    %c0_i32_1 = arith.constant 0 : i32
    %c0_i32_2 = arith.constant 0 : i32
    return %arg0, %c0_i32, %c0_i32_0, %c0_i32_1 : i32, i32, i32, i32
  }
}

module attributes {stable_mosaic.version = 11 : i64} {
  func.func @_block_kernel(%arg0: i32, %arg1: memref<1x10x10x64xf32, #tpu.memory_space<vmem>>, %arg2: memref<9x64x64xbf16, #tpu.memory_space<vmem>>, %arg3: memref<1x64xf32, #tpu.memory_space<vmem>>, %arg4: memref<1x64xf32, #tpu.memory_space<vmem>>, %arg5: memref<9x64x64xbf16, #tpu.memory_space<vmem>>, %arg6: memref<1x64xf32, #tpu.memory_space<vmem>>, %arg7: memref<1x64xf32, #tpu.memory_space<vmem>>, %arg8: memref<1x64x64xf32, #tpu.memory_space<vmem>>, %arg9: memref<10x10x64xf32, #tpu.memory_space<vmem>>) attributes {dimension_semantics = [#tpu.dimension_semantics<parallel>], iteration_bounds = array<i64: 2>, scalar_prefetch = 0 : i64, scratch_operands = 1 : i64, tpu.core_type = #tpu.core_type<tc>, window_params = [{transform_indices = @transform_0, window_bounds = array<i64: 1, 10, 10, 64>}, {pipeline_mode = #tpu.pipeline_mode<synchronous>, transform_indices = @transform_1, window_bounds = array<i64: 9, 64, 64>}, {pipeline_mode = #tpu.pipeline_mode<synchronous>, transform_indices = @transform_2, window_bounds = array<i64: 1, 64>}, {pipeline_mode = #tpu.pipeline_mode<synchronous>, transform_indices = @transform_3, window_bounds = array<i64: 1, 64>}, {pipeline_mode = #tpu.pipeline_mode<synchronous>, transform_indices = @transform_4, window_bounds = array<i64: 9, 64, 64>}, {pipeline_mode = #tpu.pipeline_mode<synchronous>, transform_indices = @transform_5, window_bounds = array<i64: 1, 64>}, {pipeline_mode = #tpu.pipeline_mode<synchronous>, transform_indices = @transform_6, window_bounds = array<i64: 1, 64>}, {transform_indices = @transform_7, window_bounds = array<i64: 1, 64, 64>}]} {
    %cst = arith.constant 0.000000e+00 : f32
    %0 = vector.broadcast %cst : f32 to vector<64x64xf32>
    %c0 = arith.constant 0 : index
    %c0_0 = arith.constant 0 : index
    %c0_1 = arith.constant 0 : index
    %c0_2 = arith.constant 0 : index
    %1 = vector.load %arg1[%c0, %c0_0, %c0_1, %c0_2] : memref<1x10x10x64xf32, #tpu.memory_space<vmem>>, vector<1x8x8x64xf32>
    %2 = vector.shape_cast %1 : vector<1x8x8x64xf32> to vector<8x8x64xf32>
    %3 = vector.shape_cast %2 : vector<8x8x64xf32> to vector<64x64xf32>
    %4 = arith.truncf %3 : vector<64x64xf32> to vector<64x64xbf16>
    %c0_3 = arith.constant 0 : index
    %c0_4 = arith.constant 0 : index
    %c0_5 = arith.constant 0 : index
    %5 = vector.load %arg2[%c0_3, %c0_4, %c0_5] : memref<9x64x64xbf16, #tpu.memory_space<vmem>>, vector<1x64x64xbf16>
    %6 = vector.shape_cast %5 : vector<1x64x64xbf16> to vector<64x64xbf16>
    %cst_6 = arith.constant dense<0.000000e+00> : vector<64x64xf32>
    %7 = tpu.matmul %4, %6, %cst_6 {dimension_numbers = #tpu.dot_dimension_numbers<[1], [0], [0], [1], [0, 0, 1, 1], [], []>} : vector<64x64xbf16>, vector<64x64xbf16>, vector<64x64xf32> -> vector<64x64xf32>
    %8 = arith.addf %0, %7 : vector<64x64xf32>
    %c0_7 = arith.constant 0 : index
    %c0_8 = arith.constant 0 : index
    %c1 = arith.constant 1 : index
    %c0_9 = arith.constant 0 : index
    %9 = vector.load %arg1[%c0_7, %c0_8, %c1, %c0_9] : memref<1x10x10x64xf32, #tpu.memory_space<vmem>>, vector<1x8x8x64xf32>
    %10 = vector.shape_cast %9 : vector<1x8x8x64xf32> to vector<8x8x64xf32>
    %11 = vector.shape_cast %10 : vector<8x8x64xf32> to vector<64x64xf32>
    %12 = arith.truncf %11 : vector<64x64xf32> to vector<64x64xbf16>
    %c1_10 = arith.constant 1 : index
    %c0_11 = arith.constant 0 : index
    %c0_12 = arith.constant 0 : index
    %13 = vector.load %arg2[%c1_10, %c0_11, %c0_12] : memref<9x64x64xbf16, #tpu.memory_space<vmem>>, vector<1x64x64xbf16>
    %14 = vector.shape_cast %13 : vector<1x64x64xbf16> to vector<64x64xbf16>
    %cst_13 = arith.constant dense<0.000000e+00> : vector<64x64xf32>
    %15 = tpu.matmul %12, %14, %cst_13 {dimension_numbers = #tpu.dot_dimension_numbers<[1], [0], [0], [1], [0, 0, 1, 1], [], []>} : vector<64x64xbf16>, vector<64x64xbf16>, vector<64x64xf32> -> vector<64x64xf32>
    %16 = arith.addf %8, %15 : vector<64x64xf32>
    %c0_14 = arith.constant 0 : index
    %c0_15 = arith.constant 0 : index
    %c2 = arith.constant 2 : index
    %c0_16 = arith.constant 0 : index
    %17 = vector.load %arg1[%c0_14, %c0_15, %c2, %c0_16] : memref<1x10x10x64xf32, #tpu.memory_space<vmem>>, vector<1x8x8x64xf32>
    %18 = vector.shape_cast %17 : vector<1x8x8x64xf32> to vector<8x8x64xf32>
    %19 = vector.shape_cast %18 : vector<8x8x64xf32> to vector<64x64xf32>
    %20 = arith.truncf %19 : vector<64x64xf32> to vector<64x64xbf16>
    %c2_17 = arith.constant 2 : index
    %c0_18 = arith.constant 0 : index
    %c0_19 = arith.constant 0 : index
    %21 = vector.load %arg2[%c2_17, %c0_18, %c0_19] : memref<9x64x64xbf16, #tpu.memory_space<vmem>>, vector<1x64x64xbf16>
    %22 = vector.shape_cast %21 : vector<1x64x64xbf16> to vector<64x64xbf16>
    %cst_20 = arith.constant dense<0.000000e+00> : vector<64x64xf32>
    %23 = tpu.matmul %20, %22, %cst_20 {dimension_numbers = #tpu.dot_dimension_numbers<[1], [0], [0], [1], [0, 0, 1, 1], [], []>} : vector<64x64xbf16>, vector<64x64xbf16>, vector<64x64xf32> -> vector<64x64xf32>
    %24 = arith.addf %16, %23 : vector<64x64xf32>
    %c0_21 = arith.constant 0 : index
    %c1_22 = arith.constant 1 : index
    %c0_23 = arith.constant 0 : index
    %c0_24 = arith.constant 0 : index
    %25 = vector.load %arg1[%c0_21, %c1_22, %c0_23, %c0_24] : memref<1x10x10x64xf32, #tpu.memory_space<vmem>>, vector<1x8x8x64xf32>
    %26 = vector.shape_cast %25 : vector<1x8x8x64xf32> to vector<8x8x64xf32>
    %27 = vector.shape_cast %26 : vector<8x8x64xf32> to vector<64x64xf32>
    %28 = arith.truncf %27 : vector<64x64xf32> to vector<64x64xbf16>
    %c3 = arith.constant 3 : index
    %c0_25 = arith.constant 0 : index
    %c0_26 = arith.constant 0 : index
    %29 = vector.load %arg2[%c3, %c0_25, %c0_26] : memref<9x64x64xbf16, #tpu.memory_space<vmem>>, vector<1x64x64xbf16>
    %30 = vector.shape_cast %29 : vector<1x64x64xbf16> to vector<64x64xbf16>
    %cst_27 = arith.constant dense<0.000000e+00> : vector<64x64xf32>
    %31 = tpu.matmul %28, %30, %cst_27 {dimension_numbers = #tpu.dot_dimension_numbers<[1], [0], [0], [1], [0, 0, 1, 1], [], []>} : vector<64x64xbf16>, vector<64x64xbf16>, vector<64x64xf32> -> vector<64x64xf32>
    %32 = arith.addf %24, %31 : vector<64x64xf32>
    %c0_28 = arith.constant 0 : index
    %c1_29 = arith.constant 1 : index
    %c1_30 = arith.constant 1 : index
    %c0_31 = arith.constant 0 : index
    %33 = vector.load %arg1[%c0_28, %c1_29, %c1_30, %c0_31] : memref<1x10x10x64xf32, #tpu.memory_space<vmem>>, vector<1x8x8x64xf32>
    %34 = vector.shape_cast %33 : vector<1x8x8x64xf32> to vector<8x8x64xf32>
    %35 = vector.shape_cast %34 : vector<8x8x64xf32> to vector<64x64xf32>
    %36 = arith.truncf %35 : vector<64x64xf32> to vector<64x64xbf16>
    %c4 = arith.constant 4 : index
    %c0_32 = arith.constant 0 : index
    %c0_33 = arith.constant 0 : index
    %37 = vector.load %arg2[%c4, %c0_32, %c0_33] : memref<9x64x64xbf16, #tpu.memory_space<vmem>>, vector<1x64x64xbf16>
    %38 = vector.shape_cast %37 : vector<1x64x64xbf16> to vector<64x64xbf16>
    %cst_34 = arith.constant dense<0.000000e+00> : vector<64x64xf32>
    %39 = tpu.matmul %36, %38, %cst_34 {dimension_numbers = #tpu.dot_dimension_numbers<[1], [0], [0], [1], [0, 0, 1, 1], [], []>} : vector<64x64xbf16>, vector<64x64xbf16>, vector<64x64xf32> -> vector<64x64xf32>
    %40 = arith.addf %32, %39 : vector<64x64xf32>
    %c0_35 = arith.constant 0 : index
    %c1_36 = arith.constant 1 : index
    %c2_37 = arith.constant 2 : index
    %c0_38 = arith.constant 0 : index
    %41 = vector.load %arg1[%c0_35, %c1_36, %c2_37, %c0_38] : memref<1x10x10x64xf32, #tpu.memory_space<vmem>>, vector<1x8x8x64xf32>
    %42 = vector.shape_cast %41 : vector<1x8x8x64xf32> to vector<8x8x64xf32>
    %43 = vector.shape_cast %42 : vector<8x8x64xf32> to vector<64x64xf32>
    %44 = arith.truncf %43 : vector<64x64xf32> to vector<64x64xbf16>
    %c5 = arith.constant 5 : index
    %c0_39 = arith.constant 0 : index
    %c0_40 = arith.constant 0 : index
    %45 = vector.load %arg2[%c5, %c0_39, %c0_40] : memref<9x64x64xbf16, #tpu.memory_space<vmem>>, vector<1x64x64xbf16>
    %46 = vector.shape_cast %45 : vector<1x64x64xbf16> to vector<64x64xbf16>
    %cst_41 = arith.constant dense<0.000000e+00> : vector<64x64xf32>
    %47 = tpu.matmul %44, %46, %cst_41 {dimension_numbers = #tpu.dot_dimension_numbers<[1], [0], [0], [1], [0, 0, 1, 1], [], []>} : vector<64x64xbf16>, vector<64x64xbf16>, vector<64x64xf32> -> vector<64x64xf32>
    %48 = arith.addf %40, %47 : vector<64x64xf32>
    %c0_42 = arith.constant 0 : index
    %c2_43 = arith.constant 2 : index
    %c0_44 = arith.constant 0 : index
    %c0_45 = arith.constant 0 : index
    %49 = vector.load %arg1[%c0_42, %c2_43, %c0_44, %c0_45] : memref<1x10x10x64xf32, #tpu.memory_space<vmem>>, vector<1x8x8x64xf32>
    %50 = vector.shape_cast %49 : vector<1x8x8x64xf32> to vector<8x8x64xf32>
    %51 = vector.shape_cast %50 : vector<8x8x64xf32> to vector<64x64xf32>
    %52 = arith.truncf %51 : vector<64x64xf32> to vector<64x64xbf16>
    %c6 = arith.constant 6 : index
    %c0_46 = arith.constant 0 : index
    %c0_47 = arith.constant 0 : index
    %53 = vector.load %arg2[%c6, %c0_46, %c0_47] : memref<9x64x64xbf16, #tpu.memory_space<vmem>>, vector<1x64x64xbf16>
    %54 = vector.shape_cast %53 : vector<1x64x64xbf16> to vector<64x64xbf16>
    %cst_48 = arith.constant dense<0.000000e+00> : vector<64x64xf32>
    %55 = tpu.matmul %52, %54, %cst_48 {dimension_numbers = #tpu.dot_dimension_numbers<[1], [0], [0], [1], [0, 0, 1, 1], [], []>} : vector<64x64xbf16>, vector<64x64xbf16>, vector<64x64xf32> -> vector<64x64xf32>
    %56 = arith.addf %48, %55 : vector<64x64xf32>
    %c0_49 = arith.constant 0 : index
    %c2_50 = arith.constant 2 : index
    %c1_51 = arith.constant 1 : index
    %c0_52 = arith.constant 0 : index
    %57 = vector.load %arg1[%c0_49, %c2_50, %c1_51, %c0_52] : memref<1x10x10x64xf32, #tpu.memory_space<vmem>>, vector<1x8x8x64xf32>
    %58 = vector.shape_cast %57 : vector<1x8x8x64xf32> to vector<8x8x64xf32>
    %59 = vector.shape_cast %58 : vector<8x8x64xf32> to vector<64x64xf32>
    %60 = arith.truncf %59 : vector<64x64xf32> to vector<64x64xbf16>
    %c7 = arith.constant 7 : index
    %c0_53 = arith.constant 0 : index
    %c0_54 = arith.constant 0 : index
    %61 = vector.load %arg2[%c7, %c0_53, %c0_54] : memref<9x64x64xbf16, #tpu.memory_space<vmem>>, vector<1x64x64xbf16>
    %62 = vector.shape_cast %61 : vector<1x64x64xbf16> to vector<64x64xbf16>
    %cst_55 = arith.constant dense<0.000000e+00> : vector<64x64xf32>
    %63 = tpu.matmul %60, %62, %cst_55 {dimension_numbers = #tpu.dot_dimension_numbers<[1], [0], [0], [1], [0, 0, 1, 1], [], []>} : vector<64x64xbf16>, vector<64x64xbf16>, vector<64x64xf32> -> vector<64x64xf32>
    %64 = arith.addf %56, %63 : vector<64x64xf32>
    %c0_56 = arith.constant 0 : index
    %c2_57 = arith.constant 2 : index
    %c2_58 = arith.constant 2 : index
    %c0_59 = arith.constant 0 : index
    %65 = vector.load %arg1[%c0_56, %c2_57, %c2_58, %c0_59] : memref<1x10x10x64xf32, #tpu.memory_space<vmem>>, vector<1x8x8x64xf32>
    %66 = vector.shape_cast %65 : vector<1x8x8x64xf32> to vector<8x8x64xf32>
    %67 = vector.shape_cast %66 : vector<8x8x64xf32> to vector<64x64xf32>
    %68 = arith.truncf %67 : vector<64x64xf32> to vector<64x64xbf16>
    %c8 = arith.constant 8 : index
    %c0_60 = arith.constant 0 : index
    %c0_61 = arith.constant 0 : index
    %69 = vector.load %arg2[%c8, %c0_60, %c0_61] : memref<9x64x64xbf16, #tpu.memory_space<vmem>>, vector<1x64x64xbf16>
    %70 = vector.shape_cast %69 : vector<1x64x64xbf16> to vector<64x64xbf16>
    %cst_62 = arith.constant dense<0.000000e+00> : vector<64x64xf32>
    %71 = tpu.matmul %68, %70, %cst_62 {dimension_numbers = #tpu.dot_dimension_numbers<[1], [0], [0], [1], [0, 0, 1, 1], [], []>} : vector<64x64xbf16>, vector<64x64xbf16>, vector<64x64xf32> -> vector<64x64xf32>
    %72 = arith.addf %64, %71 : vector<64x64xf32>
    %c0_63 = arith.constant 0 : index
    %c0_64 = arith.constant 0 : index
    %73 = vector.load %arg3[%c0_63, %c0_64] : memref<1x64xf32, #tpu.memory_space<vmem>>, vector<1x64xf32>
    %74 = vector.broadcast %73 : vector<1x64xf32> to vector<64x64xf32>
    %75 = arith.mulf %72, %74 : vector<64x64xf32>
    %c0_65 = arith.constant 0 : index
    %c0_66 = arith.constant 0 : index
    %76 = vector.load %arg4[%c0_65, %c0_66] : memref<1x64xf32, #tpu.memory_space<vmem>>, vector<1x64xf32>
    %77 = vector.broadcast %76 : vector<1x64xf32> to vector<64x64xf32>
    %78 = arith.addf %75, %77 : vector<64x64xf32>
    %cst_67 = arith.constant 0.000000e+00 : f32
    %79 = vector.broadcast %cst_67 : f32 to vector<64x64xf32>
    %80 = arith.maximumf %78, %79 : vector<64x64xf32>
    %cst_68 = arith.constant 0.000000e+00 : f32
    %81 = vector.broadcast %cst_68 : f32 to vector<10x10x64xf32>
    %c0_69 = arith.constant 0 : index
    %c0_70 = arith.constant 0 : index
    %c0_71 = arith.constant 0 : index
    %82 = vector.load %arg9[%c0_69, %c0_70, %c0_71] : memref<10x10x64xf32, #tpu.memory_space<vmem>>, vector<10x10x64xf32>
    tpu.vector_store %arg9[%c0_69, %c0_70, %c0_71], %81 {strides = array<i32>} : memref<10x10x64xf32, #tpu.memory_space<vmem>>, vector<10x10x64xf32>,
    %83 = vector.shape_cast %80 : vector<64x64xf32> to vector<8x8x64xf32>
    %c1_72 = arith.constant 1 : index
    %c1_73 = arith.constant 1 : index
    %c0_74 = arith.constant 0 : index
    %84 = vector.load %arg9[%c1_72, %c1_73, %c0_74] : memref<10x10x64xf32, #tpu.memory_space<vmem>>, vector<8x8x64xf32>
    tpu.vector_store %arg9[%c1_72, %c1_73, %c0_74], %83 {strides = array<i32>} : memref<10x10x64xf32, #tpu.memory_space<vmem>>, vector<8x8x64xf32>,
    %cst_75 = arith.constant 0.000000e+00 : f32
    %85 = vector.broadcast %cst_75 : f32 to vector<64x64xf32>
    %c0_76 = arith.constant 0 : index
    %c0_77 = arith.constant 0 : index
    %c0_78 = arith.constant 0 : index
    %86 = vector.load %arg9[%c0_76, %c0_77, %c0_78] : memref<10x10x64xf32, #tpu.memory_space<vmem>>, vector<8x8x64xf32>
    %87 = vector.shape_cast %86 : vector<8x8x64xf32> to vector<64x64xf32>
    %88 = arith.truncf %87 : vector<64x64xf32> to vector<64x64xbf16>
    %c0_79 = arith.constant 0 : index
    %c0_80 = arith.constant 0 : index
    %c0_81 = arith.constant 0 : index
    %89 = vector.load %arg5[%c0_79, %c0_80, %c0_81] : memref<9x64x64xbf16, #tpu.memory_space<vmem>>, vector<1x64x64xbf16>
    %90 = vector.shape_cast %89 : vector<1x64x64xbf16> to vector<64x64xbf16>
    %cst_82 = arith.constant dense<0.000000e+00> : vector<64x64xf32>
    %91 = tpu.matmul %88, %90, %cst_82 {dimension_numbers = #tpu.dot_dimension_numbers<[1], [0], [0], [1], [0, 0, 1, 1], [], []>} : vector<64x64xbf16>, vector<64x64xbf16>, vector<64x64xf32> -> vector<64x64xf32>
    %92 = arith.addf %85, %91 : vector<64x64xf32>
    %c0_83 = arith.constant 0 : index
    %c1_84 = arith.constant 1 : index
    %c0_85 = arith.constant 0 : index
    %93 = vector.load %arg9[%c0_83, %c1_84, %c0_85] : memref<10x10x64xf32, #tpu.memory_space<vmem>>, vector<8x8x64xf32>
    %94 = vector.shape_cast %93 : vector<8x8x64xf32> to vector<64x64xf32>
    %95 = arith.truncf %94 : vector<64x64xf32> to vector<64x64xbf16>
    %c1_86 = arith.constant 1 : index
    %c0_87 = arith.constant 0 : index
    %c0_88 = arith.constant 0 : index
    %96 = vector.load %arg5[%c1_86, %c0_87, %c0_88] : memref<9x64x64xbf16, #tpu.memory_space<vmem>>, vector<1x64x64xbf16>
    %97 = vector.shape_cast %96 : vector<1x64x64xbf16> to vector<64x64xbf16>
    %cst_89 = arith.constant dense<0.000000e+00> : vector<64x64xf32>
    %98 = tpu.matmul %95, %97, %cst_89 {dimension_numbers = #tpu.dot_dimension_numbers<[1], [0], [0], [1], [0, 0, 1, 1], [], []>} : vector<64x64xbf16>, vector<64x64xbf16>, vector<64x64xf32> -> vector<64x64xf32>
    %99 = arith.addf %92, %98 : vector<64x64xf32>
    %c0_90 = arith.constant 0 : index
    %c2_91 = arith.constant 2 : index
    %c0_92 = arith.constant 0 : index
    %100 = vector.load %arg9[%c0_90, %c2_91, %c0_92] : memref<10x10x64xf32, #tpu.memory_space<vmem>>, vector<8x8x64xf32>
    %101 = vector.shape_cast %100 : vector<8x8x64xf32> to vector<64x64xf32>
    %102 = arith.truncf %101 : vector<64x64xf32> to vector<64x64xbf16>
    %c2_93 = arith.constant 2 : index
    %c0_94 = arith.constant 0 : index
    %c0_95 = arith.constant 0 : index
    %103 = vector.load %arg5[%c2_93, %c0_94, %c0_95] : memref<9x64x64xbf16, #tpu.memory_space<vmem>>, vector<1x64x64xbf16>
    %104 = vector.shape_cast %103 : vector<1x64x64xbf16> to vector<64x64xbf16>
    %cst_96 = arith.constant dense<0.000000e+00> : vector<64x64xf32>
    %105 = tpu.matmul %102, %104, %cst_96 {dimension_numbers = #tpu.dot_dimension_numbers<[1], [0], [0], [1], [0, 0, 1, 1], [], []>} : vector<64x64xbf16>, vector<64x64xbf16>, vector<64x64xf32> -> vector<64x64xf32>
    %106 = arith.addf %99, %105 : vector<64x64xf32>
    %c1_97 = arith.constant 1 : index
    %c0_98 = arith.constant 0 : index
    %c0_99 = arith.constant 0 : index
    %107 = vector.load %arg9[%c1_97, %c0_98, %c0_99] : memref<10x10x64xf32, #tpu.memory_space<vmem>>, vector<8x8x64xf32>
    %108 = vector.shape_cast %107 : vector<8x8x64xf32> to vector<64x64xf32>
    %109 = arith.truncf %108 : vector<64x64xf32> to vector<64x64xbf16>
    %c3_100 = arith.constant 3 : index
    %c0_101 = arith.constant 0 : index
    %c0_102 = arith.constant 0 : index
    %110 = vector.load %arg5[%c3_100, %c0_101, %c0_102] : memref<9x64x64xbf16, #tpu.memory_space<vmem>>, vector<1x64x64xbf16>
    %111 = vector.shape_cast %110 : vector<1x64x64xbf16> to vector<64x64xbf16>
    %cst_103 = arith.constant dense<0.000000e+00> : vector<64x64xf32>
    %112 = tpu.matmul %109, %111, %cst_103 {dimension_numbers = #tpu.dot_dimension_numbers<[1], [0], [0], [1], [0, 0, 1, 1], [], []>} : vector<64x64xbf16>, vector<64x64xbf16>, vector<64x64xf32> -> vector<64x64xf32>
    %113 = arith.addf %106, %112 : vector<64x64xf32>
    %c1_104 = arith.constant 1 : index
    %c1_105 = arith.constant 1 : index
    %c0_106 = arith.constant 0 : index
    %114 = vector.load %arg9[%c1_104, %c1_105, %c0_106] : memref<10x10x64xf32, #tpu.memory_space<vmem>>, vector<8x8x64xf32>
    %115 = vector.shape_cast %114 : vector<8x8x64xf32> to vector<64x64xf32>
    %116 = arith.truncf %115 : vector<64x64xf32> to vector<64x64xbf16>
    %c4_107 = arith.constant 4 : index
    %c0_108 = arith.constant 0 : index
    %c0_109 = arith.constant 0 : index
    %117 = vector.load %arg5[%c4_107, %c0_108, %c0_109] : memref<9x64x64xbf16, #tpu.memory_space<vmem>>, vector<1x64x64xbf16>
    %118 = vector.shape_cast %117 : vector<1x64x64xbf16> to vector<64x64xbf16>
    %cst_110 = arith.constant dense<0.000000e+00> : vector<64x64xf32>
    %119 = tpu.matmul %116, %118, %cst_110 {dimension_numbers = #tpu.dot_dimension_numbers<[1], [0], [0], [1], [0, 0, 1, 1], [], []>} : vector<64x64xbf16>, vector<64x64xbf16>, vector<64x64xf32> -> vector<64x64xf32>
    %120 = arith.addf %113, %119 : vector<64x64xf32>
    %c1_111 = arith.constant 1 : index
    %c2_112 = arith.constant 2 : index
    %c0_113 = arith.constant 0 : index
    %121 = vector.load %arg9[%c1_111, %c2_112, %c0_113] : memref<10x10x64xf32, #tpu.memory_space<vmem>>, vector<8x8x64xf32>
    %122 = vector.shape_cast %121 : vector<8x8x64xf32> to vector<64x64xf32>
    %123 = arith.truncf %122 : vector<64x64xf32> to vector<64x64xbf16>
    %c5_114 = arith.constant 5 : index
    %c0_115 = arith.constant 0 : index
    %c0_116 = arith.constant 0 : index
    %124 = vector.load %arg5[%c5_114, %c0_115, %c0_116] : memref<9x64x64xbf16, #tpu.memory_space<vmem>>, vector<1x64x64xbf16>
    %125 = vector.shape_cast %124 : vector<1x64x64xbf16> to vector<64x64xbf16>
    %cst_117 = arith.constant dense<0.000000e+00> : vector<64x64xf32>
    %126 = tpu.matmul %123, %125, %cst_117 {dimension_numbers = #tpu.dot_dimension_numbers<[1], [0], [0], [1], [0, 0, 1, 1], [], []>} : vector<64x64xbf16>, vector<64x64xbf16>, vector<64x64xf32> -> vector<64x64xf32>
    %127 = arith.addf %120, %126 : vector<64x64xf32>
    %c2_118 = arith.constant 2 : index
    %c0_119 = arith.constant 0 : index
    %c0_120 = arith.constant 0 : index
    %128 = vector.load %arg9[%c2_118, %c0_119, %c0_120] : memref<10x10x64xf32, #tpu.memory_space<vmem>>, vector<8x8x64xf32>
    %129 = vector.shape_cast %128 : vector<8x8x64xf32> to vector<64x64xf32>
    %130 = arith.truncf %129 : vector<64x64xf32> to vector<64x64xbf16>
    %c6_121 = arith.constant 6 : index
    %c0_122 = arith.constant 0 : index
    %c0_123 = arith.constant 0 : index
    %131 = vector.load %arg5[%c6_121, %c0_122, %c0_123] : memref<9x64x64xbf16, #tpu.memory_space<vmem>>, vector<1x64x64xbf16>
    %132 = vector.shape_cast %131 : vector<1x64x64xbf16> to vector<64x64xbf16>
    %cst_124 = arith.constant dense<0.000000e+00> : vector<64x64xf32>
    %133 = tpu.matmul %130, %132, %cst_124 {dimension_numbers = #tpu.dot_dimension_numbers<[1], [0], [0], [1], [0, 0, 1, 1], [], []>} : vector<64x64xbf16>, vector<64x64xbf16>, vector<64x64xf32> -> vector<64x64xf32>
    %134 = arith.addf %127, %133 : vector<64x64xf32>
    %c2_125 = arith.constant 2 : index
    %c1_126 = arith.constant 1 : index
    %c0_127 = arith.constant 0 : index
    %135 = vector.load %arg9[%c2_125, %c1_126, %c0_127] : memref<10x10x64xf32, #tpu.memory_space<vmem>>, vector<8x8x64xf32>
    %136 = vector.shape_cast %135 : vector<8x8x64xf32> to vector<64x64xf32>
    %137 = arith.truncf %136 : vector<64x64xf32> to vector<64x64xbf16>
    %c7_128 = arith.constant 7 : index
    %c0_129 = arith.constant 0 : index
    %c0_130 = arith.constant 0 : index
    %138 = vector.load %arg5[%c7_128, %c0_129, %c0_130] : memref<9x64x64xbf16, #tpu.memory_space<vmem>>, vector<1x64x64xbf16>
    %139 = vector.shape_cast %138 : vector<1x64x64xbf16> to vector<64x64xbf16>
    %cst_131 = arith.constant dense<0.000000e+00> : vector<64x64xf32>
    %140 = tpu.matmul %137, %139, %cst_131 {dimension_numbers = #tpu.dot_dimension_numbers<[1], [0], [0], [1], [0, 0, 1, 1], [], []>} : vector<64x64xbf16>, vector<64x64xbf16>, vector<64x64xf32> -> vector<64x64xf32>
    %141 = arith.addf %134, %140 : vector<64x64xf32>
    %c2_132 = arith.constant 2 : index
    %c2_133 = arith.constant 2 : index
    %c0_134 = arith.constant 0 : index
    %142 = vector.load %arg9[%c2_132, %c2_133, %c0_134] : memref<10x10x64xf32, #tpu.memory_space<vmem>>, vector<8x8x64xf32>
    %143 = vector.shape_cast %142 : vector<8x8x64xf32> to vector<64x64xf32>
    %144 = arith.truncf %143 : vector<64x64xf32> to vector<64x64xbf16>
    %c8_135 = arith.constant 8 : index
    %c0_136 = arith.constant 0 : index
    %c0_137 = arith.constant 0 : index
    %145 = vector.load %arg5[%c8_135, %c0_136, %c0_137] : memref<9x64x64xbf16, #tpu.memory_space<vmem>>, vector<1x64x64xbf16>
    %146 = vector.shape_cast %145 : vector<1x64x64xbf16> to vector<64x64xbf16>
    %cst_138 = arith.constant dense<0.000000e+00> : vector<64x64xf32>
    %147 = tpu.matmul %144, %146, %cst_138 {dimension_numbers = #tpu.dot_dimension_numbers<[1], [0], [0], [1], [0, 0, 1, 1], [], []>} : vector<64x64xbf16>, vector<64x64xbf16>, vector<64x64xf32> -> vector<64x64xf32>
    %148 = arith.addf %141, %147 : vector<64x64xf32>
    %c0_139 = arith.constant 0 : index
    %c0_140 = arith.constant 0 : index
    %149 = vector.load %arg6[%c0_139, %c0_140] : memref<1x64xf32, #tpu.memory_space<vmem>>, vector<1x64xf32>
    %150 = vector.broadcast %149 : vector<1x64xf32> to vector<64x64xf32>
    %151 = arith.mulf %148, %150 : vector<64x64xf32>
    %c0_141 = arith.constant 0 : index
    %c0_142 = arith.constant 0 : index
    %152 = vector.load %arg7[%c0_141, %c0_142] : memref<1x64xf32, #tpu.memory_space<vmem>>, vector<1x64xf32>
    %153 = vector.broadcast %152 : vector<1x64xf32> to vector<64x64xf32>
    %154 = arith.addf %151, %153 : vector<64x64xf32>
    %c0_143 = arith.constant 0 : index
    %c1_144 = arith.constant 1 : index
    %c1_145 = arith.constant 1 : index
    %c0_146 = arith.constant 0 : index
    %155 = vector.load %arg1[%c0_143, %c1_144, %c1_145, %c0_146] : memref<1x10x10x64xf32, #tpu.memory_space<vmem>>, vector<1x8x8x64xf32>
    %156 = vector.shape_cast %155 : vector<1x8x8x64xf32> to vector<8x8x64xf32>
    %157 = vector.shape_cast %156 : vector<8x8x64xf32> to vector<64x64xf32>
    %158 = arith.addf %154, %157 : vector<64x64xf32>
    %cst_147 = arith.constant 0.000000e+00 : f32
    %159 = vector.broadcast %cst_147 : f32 to vector<64x64xf32>
    %160 = arith.maximumf %158, %159 : vector<64x64xf32>
    %c0_148 = arith.constant 0 : index
    %c0_149 = arith.constant 0 : index
    %c0_150 = arith.constant 0 : index
    %161 = vector.load %arg8[%c0_148, %c0_149, %c0_150] : memref<1x64x64xf32, #tpu.memory_space<vmem>>, vector<1x64x64xf32>
    %162 = vector.shape_cast %161 : vector<1x64x64xf32> to vector<64x64xf32>
    %163 = vector.shape_cast %160 : vector<64x64xf32> to vector<1x64x64xf32>
    tpu.vector_store %arg8[%c0_148, %c0_149, %c0_150], %163 {strides = array<i32>} : memref<1x64x64xf32, #tpu.memory_space<vmem>>, vector<1x64x64xf32>,
    return
  }
  func.func @transform_0(%arg0: i32) -> (i32, i32, i32, i32) {
    %c0_i32 = arith.constant 0 : i32
    %c0_i32_0 = arith.constant 0 : i32
    %c0_i32_1 = arith.constant 0 : i32
    %c0_i32_2 = arith.constant 0 : i32
    return %arg0, %c0_i32, %c0_i32_0, %c0_i32_1 : i32, i32, i32, i32
  }
  func.func @transform_1(%arg0: i32) -> (i32, i32, i32) {
    %c0_i32 = arith.constant 0 : i32
    %c0_i32_0 = arith.constant 0 : i32
    %c0_i32_1 = arith.constant 0 : i32
    %c0_i32_2 = arith.constant 0 : i32
    return %c0_i32, %c0_i32_0, %c0_i32_1 : i32, i32, i32
  }
  func.func @transform_2(%arg0: i32) -> (i32, i32) {
    %c0_i32 = arith.constant 0 : i32
    %c0_i32_0 = arith.constant 0 : i32
    %c0_i32_1 = arith.constant 0 : i32
    return %c0_i32, %c0_i32_0 : i32, i32
  }
  func.func @transform_3(%arg0: i32) -> (i32, i32) {
    %c0_i32 = arith.constant 0 : i32
    %c0_i32_0 = arith.constant 0 : i32
    %c0_i32_1 = arith.constant 0 : i32
    return %c0_i32, %c0_i32_0 : i32, i32
  }
  func.func @transform_4(%arg0: i32) -> (i32, i32, i32) {
    %c0_i32 = arith.constant 0 : i32
    %c0_i32_0 = arith.constant 0 : i32
    %c0_i32_1 = arith.constant 0 : i32
    %c0_i32_2 = arith.constant 0 : i32
    return %c0_i32, %c0_i32_0, %c0_i32_1 : i32, i32, i32
  }
  func.func @transform_5(%arg0: i32) -> (i32, i32) {
    %c0_i32 = arith.constant 0 : i32
    %c0_i32_0 = arith.constant 0 : i32
    %c0_i32_1 = arith.constant 0 : i32
    return %c0_i32, %c0_i32_0 : i32, i32
  }
  func.func @transform_6(%arg0: i32) -> (i32, i32) {
    %c0_i32 = arith.constant 0 : i32
    %c0_i32_0 = arith.constant 0 : i32
    %c0_i32_1 = arith.constant 0 : i32
    return %c0_i32, %c0_i32_0 : i32, i32
  }
  func.func @transform_7(%arg0: i32) -> (i32, i32, i32) {
    %c0_i32 = arith.constant 0 : i32
    %c0_i32_0 = arith.constant 0 : i32
    %c0_i32_1 = arith.constant 0 : i32
    return %arg0, %c0_i32, %c0_i32_0 : i32, i32, i32
  }
}

module attributes {stable_mosaic.version = 11 : i64} {
  func.func @_block_kernel(%arg0: i32, %arg1: memref<1x5x2x5x2x64xf32, #tpu.memory_space<vmem>>, %arg2: memref<9x64x128xbf16, #tpu.memory_space<vmem>>, %arg3: memref<1x128xf32, #tpu.memory_space<vmem>>, %arg4: memref<1x128xf32, #tpu.memory_space<vmem>>, %arg5: memref<9x128x128xbf16, #tpu.memory_space<vmem>>, %arg6: memref<1x128xf32, #tpu.memory_space<vmem>>, %arg7: memref<1x128xf32, #tpu.memory_space<vmem>>, %arg8: memref<64x128xbf16, #tpu.memory_space<vmem>>, %arg9: memref<1x128xf32, #tpu.memory_space<vmem>>, %arg10: memref<1x128xf32, #tpu.memory_space<vmem>>, %arg11: memref<1x16x128xf32, #tpu.memory_space<vmem>>, %arg12: memref<6x6x128xf32, #tpu.memory_space<vmem>>) attributes {dimension_semantics = [#tpu.dimension_semantics<parallel>], iteration_bounds = array<i64: 2>, scalar_prefetch = 0 : i64, scratch_operands = 1 : i64, tpu.core_type = #tpu.core_type<tc>, window_params = [{transform_indices = @transform_0, window_bounds = array<i64: 1, 5, 2, 5, 2, 64>}, {pipeline_mode = #tpu.pipeline_mode<synchronous>, transform_indices = @transform_1, window_bounds = array<i64: 9, 64, 128>}, {pipeline_mode = #tpu.pipeline_mode<synchronous>, transform_indices = @transform_2, window_bounds = array<i64: 1, 128>}, {pipeline_mode = #tpu.pipeline_mode<synchronous>, transform_indices = @transform_3, window_bounds = array<i64: 1, 128>}, {pipeline_mode = #tpu.pipeline_mode<synchronous>, transform_indices = @transform_4, window_bounds = array<i64: 9, 128, 128>}, {pipeline_mode = #tpu.pipeline_mode<synchronous>, transform_indices = @transform_5, window_bounds = array<i64: 1, 128>}, {pipeline_mode = #tpu.pipeline_mode<synchronous>, transform_indices = @transform_6, window_bounds = array<i64: 1, 128>}, {pipeline_mode = #tpu.pipeline_mode<synchronous>, transform_indices = @transform_7, window_bounds = array<i64: 64, 128>}, {pipeline_mode = #tpu.pipeline_mode<synchronous>, transform_indices = @transform_8, window_bounds = array<i64: 1, 128>}, {pipeline_mode = #tpu.pipeline_mode<synchronous>, transform_indices = @transform_9, window_bounds = array<i64: 1, 128>}, {transform_indices = @transform_10, window_bounds = array<i64: 1, 16, 128>}]} {
    %cst = arith.constant 0.000000e+00 : f32
    %0 = vector.broadcast %cst : f32 to vector<16x128xf32>
    %c0 = arith.constant 0 : index
    %c0_0 = arith.constant 0 : index
    %c0_1 = arith.constant 0 : index
    %c0_2 = arith.constant 0 : index
    %c0_3 = arith.constant 0 : index
    %c0_4 = arith.constant 0 : index
    %1 = vector.load %arg1[%c0, %c0_0, %c0_1, %c0_2, %c0_3, %c0_4] : memref<1x5x2x5x2x64xf32, #tpu.memory_space<vmem>>, vector<1x4x1x4x1x64xf32>
    %2 = vector.shape_cast %1 : vector<1x4x1x4x1x64xf32> to vector<4x4x64xf32>
    %3 = vector.shape_cast %2 : vector<4x4x64xf32> to vector<16x64xf32>
    %4 = arith.truncf %3 : vector<16x64xf32> to vector<16x64xbf16>
    %c0_5 = arith.constant 0 : index
    %c0_6 = arith.constant 0 : index
    %c0_7 = arith.constant 0 : index
    %5 = vector.load %arg2[%c0_5, %c0_6, %c0_7] : memref<9x64x128xbf16, #tpu.memory_space<vmem>>, vector<1x64x128xbf16>
    %6 = vector.shape_cast %5 : vector<1x64x128xbf16> to vector<64x128xbf16>
    %cst_8 = arith.constant dense<0.000000e+00> : vector<16x128xf32>
    %7 = tpu.matmul %4, %6, %cst_8 {dimension_numbers = #tpu.dot_dimension_numbers<[1], [0], [0], [1], [0, 0, 1, 1], [], []>} : vector<16x64xbf16>, vector<64x128xbf16>, vector<16x128xf32> -> vector<16x128xf32>
    %8 = arith.addf %0, %7 : vector<16x128xf32>
    %c0_9 = arith.constant 0 : index
    %c0_10 = arith.constant 0 : index
    %c0_11 = arith.constant 0 : index
    %c0_12 = arith.constant 0 : index
    %c1 = arith.constant 1 : index
    %c0_13 = arith.constant 0 : index
    %9 = vector.load %arg1[%c0_9, %c0_10, %c0_11, %c0_12, %c1, %c0_13] : memref<1x5x2x5x2x64xf32, #tpu.memory_space<vmem>>, vector<1x4x1x4x1x64xf32>
    %10 = vector.shape_cast %9 : vector<1x4x1x4x1x64xf32> to vector<4x4x64xf32>
    %11 = vector.shape_cast %10 : vector<4x4x64xf32> to vector<16x64xf32>
    %12 = arith.truncf %11 : vector<16x64xf32> to vector<16x64xbf16>
    %c1_14 = arith.constant 1 : index
    %c0_15 = arith.constant 0 : index
    %c0_16 = arith.constant 0 : index
    %13 = vector.load %arg2[%c1_14, %c0_15, %c0_16] : memref<9x64x128xbf16, #tpu.memory_space<vmem>>, vector<1x64x128xbf16>
    %14 = vector.shape_cast %13 : vector<1x64x128xbf16> to vector<64x128xbf16>
    %cst_17 = arith.constant dense<0.000000e+00> : vector<16x128xf32>
    %15 = tpu.matmul %12, %14, %cst_17 {dimension_numbers = #tpu.dot_dimension_numbers<[1], [0], [0], [1], [0, 0, 1, 1], [], []>} : vector<16x64xbf16>, vector<64x128xbf16>, vector<16x128xf32> -> vector<16x128xf32>
    %16 = arith.addf %8, %15 : vector<16x128xf32>
    %c0_18 = arith.constant 0 : index
    %c0_19 = arith.constant 0 : index
    %c0_20 = arith.constant 0 : index
    %c1_21 = arith.constant 1 : index
    %c0_22 = arith.constant 0 : index
    %c0_23 = arith.constant 0 : index
    %17 = vector.load %arg1[%c0_18, %c0_19, %c0_20, %c1_21, %c0_22, %c0_23] : memref<1x5x2x5x2x64xf32, #tpu.memory_space<vmem>>, vector<1x4x1x4x1x64xf32>
    %18 = vector.shape_cast %17 : vector<1x4x1x4x1x64xf32> to vector<4x4x64xf32>
    %19 = vector.shape_cast %18 : vector<4x4x64xf32> to vector<16x64xf32>
    %20 = arith.truncf %19 : vector<16x64xf32> to vector<16x64xbf16>
    %c2 = arith.constant 2 : index
    %c0_24 = arith.constant 0 : index
    %c0_25 = arith.constant 0 : index
    %21 = vector.load %arg2[%c2, %c0_24, %c0_25] : memref<9x64x128xbf16, #tpu.memory_space<vmem>>, vector<1x64x128xbf16>
    %22 = vector.shape_cast %21 : vector<1x64x128xbf16> to vector<64x128xbf16>
    %cst_26 = arith.constant dense<0.000000e+00> : vector<16x128xf32>
    %23 = tpu.matmul %20, %22, %cst_26 {dimension_numbers = #tpu.dot_dimension_numbers<[1], [0], [0], [1], [0, 0, 1, 1], [], []>} : vector<16x64xbf16>, vector<64x128xbf16>, vector<16x128xf32> -> vector<16x128xf32>
    %24 = arith.addf %16, %23 : vector<16x128xf32>
    %c0_27 = arith.constant 0 : index
    %c0_28 = arith.constant 0 : index
    %c1_29 = arith.constant 1 : index
    %c0_30 = arith.constant 0 : index
    %c0_31 = arith.constant 0 : index
    %c0_32 = arith.constant 0 : index
    %25 = vector.load %arg1[%c0_27, %c0_28, %c1_29, %c0_30, %c0_31, %c0_32] : memref<1x5x2x5x2x64xf32, #tpu.memory_space<vmem>>, vector<1x4x1x4x1x64xf32>
    %26 = vector.shape_cast %25 : vector<1x4x1x4x1x64xf32> to vector<4x4x64xf32>
    %27 = vector.shape_cast %26 : vector<4x4x64xf32> to vector<16x64xf32>
    %28 = arith.truncf %27 : vector<16x64xf32> to vector<16x64xbf16>
    %c3 = arith.constant 3 : index
    %c0_33 = arith.constant 0 : index
    %c0_34 = arith.constant 0 : index
    %29 = vector.load %arg2[%c3, %c0_33, %c0_34] : memref<9x64x128xbf16, #tpu.memory_space<vmem>>, vector<1x64x128xbf16>
    %30 = vector.shape_cast %29 : vector<1x64x128xbf16> to vector<64x128xbf16>
    %cst_35 = arith.constant dense<0.000000e+00> : vector<16x128xf32>
    %31 = tpu.matmul %28, %30, %cst_35 {dimension_numbers = #tpu.dot_dimension_numbers<[1], [0], [0], [1], [0, 0, 1, 1], [], []>} : vector<16x64xbf16>, vector<64x128xbf16>, vector<16x128xf32> -> vector<16x128xf32>
    %32 = arith.addf %24, %31 : vector<16x128xf32>
    %c0_36 = arith.constant 0 : index
    %c0_37 = arith.constant 0 : index
    %c1_38 = arith.constant 1 : index
    %c0_39 = arith.constant 0 : index
    %c1_40 = arith.constant 1 : index
    %c0_41 = arith.constant 0 : index
    %33 = vector.load %arg1[%c0_36, %c0_37, %c1_38, %c0_39, %c1_40, %c0_41] : memref<1x5x2x5x2x64xf32, #tpu.memory_space<vmem>>, vector<1x4x1x4x1x64xf32>
    %34 = vector.shape_cast %33 : vector<1x4x1x4x1x64xf32> to vector<4x4x64xf32>
    %35 = vector.shape_cast %34 : vector<4x4x64xf32> to vector<16x64xf32>
    %36 = arith.truncf %35 : vector<16x64xf32> to vector<16x64xbf16>
    %c4 = arith.constant 4 : index
    %c0_42 = arith.constant 0 : index
    %c0_43 = arith.constant 0 : index
    %37 = vector.load %arg2[%c4, %c0_42, %c0_43] : memref<9x64x128xbf16, #tpu.memory_space<vmem>>, vector<1x64x128xbf16>
    %38 = vector.shape_cast %37 : vector<1x64x128xbf16> to vector<64x128xbf16>
    %cst_44 = arith.constant dense<0.000000e+00> : vector<16x128xf32>
    %39 = tpu.matmul %36, %38, %cst_44 {dimension_numbers = #tpu.dot_dimension_numbers<[1], [0], [0], [1], [0, 0, 1, 1], [], []>} : vector<16x64xbf16>, vector<64x128xbf16>, vector<16x128xf32> -> vector<16x128xf32>
    %40 = arith.addf %32, %39 : vector<16x128xf32>
    %c0_45 = arith.constant 0 : index
    %c0_46 = arith.constant 0 : index
    %c1_47 = arith.constant 1 : index
    %c1_48 = arith.constant 1 : index
    %c0_49 = arith.constant 0 : index
    %c0_50 = arith.constant 0 : index
    %41 = vector.load %arg1[%c0_45, %c0_46, %c1_47, %c1_48, %c0_49, %c0_50] : memref<1x5x2x5x2x64xf32, #tpu.memory_space<vmem>>, vector<1x4x1x4x1x64xf32>
    %42 = vector.shape_cast %41 : vector<1x4x1x4x1x64xf32> to vector<4x4x64xf32>
    %43 = vector.shape_cast %42 : vector<4x4x64xf32> to vector<16x64xf32>
    %44 = arith.truncf %43 : vector<16x64xf32> to vector<16x64xbf16>
    %c5 = arith.constant 5 : index
    %c0_51 = arith.constant 0 : index
    %c0_52 = arith.constant 0 : index
    %45 = vector.load %arg2[%c5, %c0_51, %c0_52] : memref<9x64x128xbf16, #tpu.memory_space<vmem>>, vector<1x64x128xbf16>
    %46 = vector.shape_cast %45 : vector<1x64x128xbf16> to vector<64x128xbf16>
    %cst_53 = arith.constant dense<0.000000e+00> : vector<16x128xf32>
    %47 = tpu.matmul %44, %46, %cst_53 {dimension_numbers = #tpu.dot_dimension_numbers<[1], [0], [0], [1], [0, 0, 1, 1], [], []>} : vector<16x64xbf16>, vector<64x128xbf16>, vector<16x128xf32> -> vector<16x128xf32>
    %48 = arith.addf %40, %47 : vector<16x128xf32>
    %c0_54 = arith.constant 0 : index
    %c1_55 = arith.constant 1 : index
    %c0_56 = arith.constant 0 : index
    %c0_57 = arith.constant 0 : index
    %c0_58 = arith.constant 0 : index
    %c0_59 = arith.constant 0 : index
    %49 = vector.load %arg1[%c0_54, %c1_55, %c0_56, %c0_57, %c0_58, %c0_59] : memref<1x5x2x5x2x64xf32, #tpu.memory_space<vmem>>, vector<1x4x1x4x1x64xf32>
    %50 = vector.shape_cast %49 : vector<1x4x1x4x1x64xf32> to vector<4x4x64xf32>
    %51 = vector.shape_cast %50 : vector<4x4x64xf32> to vector<16x64xf32>
    %52 = arith.truncf %51 : vector<16x64xf32> to vector<16x64xbf16>
    %c6 = arith.constant 6 : index
    %c0_60 = arith.constant 0 : index
    %c0_61 = arith.constant 0 : index
    %53 = vector.load %arg2[%c6, %c0_60, %c0_61] : memref<9x64x128xbf16, #tpu.memory_space<vmem>>, vector<1x64x128xbf16>
    %54 = vector.shape_cast %53 : vector<1x64x128xbf16> to vector<64x128xbf16>
    %cst_62 = arith.constant dense<0.000000e+00> : vector<16x128xf32>
    %55 = tpu.matmul %52, %54, %cst_62 {dimension_numbers = #tpu.dot_dimension_numbers<[1], [0], [0], [1], [0, 0, 1, 1], [], []>} : vector<16x64xbf16>, vector<64x128xbf16>, vector<16x128xf32> -> vector<16x128xf32>
    %56 = arith.addf %48, %55 : vector<16x128xf32>
    %c0_63 = arith.constant 0 : index
    %c1_64 = arith.constant 1 : index
    %c0_65 = arith.constant 0 : index
    %c0_66 = arith.constant 0 : index
    %c1_67 = arith.constant 1 : index
    %c0_68 = arith.constant 0 : index
    %57 = vector.load %arg1[%c0_63, %c1_64, %c0_65, %c0_66, %c1_67, %c0_68] : memref<1x5x2x5x2x64xf32, #tpu.memory_space<vmem>>, vector<1x4x1x4x1x64xf32>
    %58 = vector.shape_cast %57 : vector<1x4x1x4x1x64xf32> to vector<4x4x64xf32>
    %59 = vector.shape_cast %58 : vector<4x4x64xf32> to vector<16x64xf32>
    %60 = arith.truncf %59 : vector<16x64xf32> to vector<16x64xbf16>
    %c7 = arith.constant 7 : index
    %c0_69 = arith.constant 0 : index
    %c0_70 = arith.constant 0 : index
    %61 = vector.load %arg2[%c7, %c0_69, %c0_70] : memref<9x64x128xbf16, #tpu.memory_space<vmem>>, vector<1x64x128xbf16>
    %62 = vector.shape_cast %61 : vector<1x64x128xbf16> to vector<64x128xbf16>
    %cst_71 = arith.constant dense<0.000000e+00> : vector<16x128xf32>
    %63 = tpu.matmul %60, %62, %cst_71 {dimension_numbers = #tpu.dot_dimension_numbers<[1], [0], [0], [1], [0, 0, 1, 1], [], []>} : vector<16x64xbf16>, vector<64x128xbf16>, vector<16x128xf32> -> vector<16x128xf32>
    %64 = arith.addf %56, %63 : vector<16x128xf32>
    %c0_72 = arith.constant 0 : index
    %c1_73 = arith.constant 1 : index
    %c0_74 = arith.constant 0 : index
    %c1_75 = arith.constant 1 : index
    %c0_76 = arith.constant 0 : index
    %c0_77 = arith.constant 0 : index
    %65 = vector.load %arg1[%c0_72, %c1_73, %c0_74, %c1_75, %c0_76, %c0_77] : memref<1x5x2x5x2x64xf32, #tpu.memory_space<vmem>>, vector<1x4x1x4x1x64xf32>
    %66 = vector.shape_cast %65 : vector<1x4x1x4x1x64xf32> to vector<4x4x64xf32>
    %67 = vector.shape_cast %66 : vector<4x4x64xf32> to vector<16x64xf32>
    %68 = arith.truncf %67 : vector<16x64xf32> to vector<16x64xbf16>
    %c8 = arith.constant 8 : index
    %c0_78 = arith.constant 0 : index
    %c0_79 = arith.constant 0 : index
    %69 = vector.load %arg2[%c8, %c0_78, %c0_79] : memref<9x64x128xbf16, #tpu.memory_space<vmem>>, vector<1x64x128xbf16>
    %70 = vector.shape_cast %69 : vector<1x64x128xbf16> to vector<64x128xbf16>
    %cst_80 = arith.constant dense<0.000000e+00> : vector<16x128xf32>
    %71 = tpu.matmul %68, %70, %cst_80 {dimension_numbers = #tpu.dot_dimension_numbers<[1], [0], [0], [1], [0, 0, 1, 1], [], []>} : vector<16x64xbf16>, vector<64x128xbf16>, vector<16x128xf32> -> vector<16x128xf32>
    %72 = arith.addf %64, %71 : vector<16x128xf32>
    %c0_81 = arith.constant 0 : index
    %c0_82 = arith.constant 0 : index
    %73 = vector.load %arg3[%c0_81, %c0_82] : memref<1x128xf32, #tpu.memory_space<vmem>>, vector<1x128xf32>
    %74 = vector.broadcast %73 : vector<1x128xf32> to vector<16x128xf32>
    %75 = arith.mulf %72, %74 : vector<16x128xf32>
    %c0_83 = arith.constant 0 : index
    %c0_84 = arith.constant 0 : index
    %76 = vector.load %arg4[%c0_83, %c0_84] : memref<1x128xf32, #tpu.memory_space<vmem>>, vector<1x128xf32>
    %77 = vector.broadcast %76 : vector<1x128xf32> to vector<16x128xf32>
    %78 = arith.addf %75, %77 : vector<16x128xf32>
    %cst_85 = arith.constant 0.000000e+00 : f32
    %79 = vector.broadcast %cst_85 : f32 to vector<16x128xf32>
    %80 = arith.maximumf %78, %79 : vector<16x128xf32>
    %cst_86 = arith.constant 0.000000e+00 : f32
    %81 = vector.broadcast %cst_86 : f32 to vector<6x6x128xf32>
    %c0_87 = arith.constant 0 : index
    %c0_88 = arith.constant 0 : index
    %c0_89 = arith.constant 0 : index
    %82 = vector.load %arg12[%c0_87, %c0_88, %c0_89] : memref<6x6x128xf32, #tpu.memory_space<vmem>>, vector<6x6x128xf32>
    tpu.vector_store %arg12[%c0_87, %c0_88, %c0_89], %81 {strides = array<i32>} : memref<6x6x128xf32, #tpu.memory_space<vmem>>, vector<6x6x128xf32>,
    %83 = vector.shape_cast %80 : vector<16x128xf32> to vector<4x4x128xf32>
    %c1_90 = arith.constant 1 : index
    %c1_91 = arith.constant 1 : index
    %c0_92 = arith.constant 0 : index
    %84 = vector.load %arg12[%c1_90, %c1_91, %c0_92] : memref<6x6x128xf32, #tpu.memory_space<vmem>>, vector<4x4x128xf32>
    tpu.vector_store %arg12[%c1_90, %c1_91, %c0_92], %83 {strides = array<i32>} : memref<6x6x128xf32, #tpu.memory_space<vmem>>, vector<4x4x128xf32>,
    %cst_93 = arith.constant 0.000000e+00 : f32
    %85 = vector.broadcast %cst_93 : f32 to vector<16x128xf32>
    %c0_94 = arith.constant 0 : index
    %c0_95 = arith.constant 0 : index
    %c0_96 = arith.constant 0 : index
    %86 = vector.load %arg12[%c0_94, %c0_95, %c0_96] : memref<6x6x128xf32, #tpu.memory_space<vmem>>, vector<4x4x128xf32>
    %87 = vector.shape_cast %86 : vector<4x4x128xf32> to vector<16x128xf32>
    %88 = arith.truncf %87 : vector<16x128xf32> to vector<16x128xbf16>
    %c0_97 = arith.constant 0 : index
    %c0_98 = arith.constant 0 : index
    %c0_99 = arith.constant 0 : index
    %89 = vector.load %arg5[%c0_97, %c0_98, %c0_99] : memref<9x128x128xbf16, #tpu.memory_space<vmem>>, vector<1x128x128xbf16>
    %90 = vector.shape_cast %89 : vector<1x128x128xbf16> to vector<128x128xbf16>
    %cst_100 = arith.constant dense<0.000000e+00> : vector<16x128xf32>
    %91 = tpu.matmul %88, %90, %cst_100 {dimension_numbers = #tpu.dot_dimension_numbers<[1], [0], [0], [1], [0, 0, 1, 1], [], []>} : vector<16x128xbf16>, vector<128x128xbf16>, vector<16x128xf32> -> vector<16x128xf32>
    %92 = arith.addf %85, %91 : vector<16x128xf32>
    %c0_101 = arith.constant 0 : index
    %c1_102 = arith.constant 1 : index
    %c0_103 = arith.constant 0 : index
    %93 = vector.load %arg12[%c0_101, %c1_102, %c0_103] : memref<6x6x128xf32, #tpu.memory_space<vmem>>, vector<4x4x128xf32>
    %94 = vector.shape_cast %93 : vector<4x4x128xf32> to vector<16x128xf32>
    %95 = arith.truncf %94 : vector<16x128xf32> to vector<16x128xbf16>
    %c1_104 = arith.constant 1 : index
    %c0_105 = arith.constant 0 : index
    %c0_106 = arith.constant 0 : index
    %96 = vector.load %arg5[%c1_104, %c0_105, %c0_106] : memref<9x128x128xbf16, #tpu.memory_space<vmem>>, vector<1x128x128xbf16>
    %97 = vector.shape_cast %96 : vector<1x128x128xbf16> to vector<128x128xbf16>
    %cst_107 = arith.constant dense<0.000000e+00> : vector<16x128xf32>
    %98 = tpu.matmul %95, %97, %cst_107 {dimension_numbers = #tpu.dot_dimension_numbers<[1], [0], [0], [1], [0, 0, 1, 1], [], []>} : vector<16x128xbf16>, vector<128x128xbf16>, vector<16x128xf32> -> vector<16x128xf32>
    %99 = arith.addf %92, %98 : vector<16x128xf32>
    %c0_108 = arith.constant 0 : index
    %c2_109 = arith.constant 2 : index
    %c0_110 = arith.constant 0 : index
    %100 = vector.load %arg12[%c0_108, %c2_109, %c0_110] : memref<6x6x128xf32, #tpu.memory_space<vmem>>, vector<4x4x128xf32>
    %101 = vector.shape_cast %100 : vector<4x4x128xf32> to vector<16x128xf32>
    %102 = arith.truncf %101 : vector<16x128xf32> to vector<16x128xbf16>
    %c2_111 = arith.constant 2 : index
    %c0_112 = arith.constant 0 : index
    %c0_113 = arith.constant 0 : index
    %103 = vector.load %arg5[%c2_111, %c0_112, %c0_113] : memref<9x128x128xbf16, #tpu.memory_space<vmem>>, vector<1x128x128xbf16>
    %104 = vector.shape_cast %103 : vector<1x128x128xbf16> to vector<128x128xbf16>
    %cst_114 = arith.constant dense<0.000000e+00> : vector<16x128xf32>
    %105 = tpu.matmul %102, %104, %cst_114 {dimension_numbers = #tpu.dot_dimension_numbers<[1], [0], [0], [1], [0, 0, 1, 1], [], []>} : vector<16x128xbf16>, vector<128x128xbf16>, vector<16x128xf32> -> vector<16x128xf32>
    %106 = arith.addf %99, %105 : vector<16x128xf32>
    %c1_115 = arith.constant 1 : index
    %c0_116 = arith.constant 0 : index
    %c0_117 = arith.constant 0 : index
    %107 = vector.load %arg12[%c1_115, %c0_116, %c0_117] : memref<6x6x128xf32, #tpu.memory_space<vmem>>, vector<4x4x128xf32>
    %108 = vector.shape_cast %107 : vector<4x4x128xf32> to vector<16x128xf32>
    %109 = arith.truncf %108 : vector<16x128xf32> to vector<16x128xbf16>
    %c3_118 = arith.constant 3 : index
    %c0_119 = arith.constant 0 : index
    %c0_120 = arith.constant 0 : index
    %110 = vector.load %arg5[%c3_118, %c0_119, %c0_120] : memref<9x128x128xbf16, #tpu.memory_space<vmem>>, vector<1x128x128xbf16>
    %111 = vector.shape_cast %110 : vector<1x128x128xbf16> to vector<128x128xbf16>
    %cst_121 = arith.constant dense<0.000000e+00> : vector<16x128xf32>
    %112 = tpu.matmul %109, %111, %cst_121 {dimension_numbers = #tpu.dot_dimension_numbers<[1], [0], [0], [1], [0, 0, 1, 1], [], []>} : vector<16x128xbf16>, vector<128x128xbf16>, vector<16x128xf32> -> vector<16x128xf32>
    %113 = arith.addf %106, %112 : vector<16x128xf32>
    %c1_122 = arith.constant 1 : index
    %c1_123 = arith.constant 1 : index
    %c0_124 = arith.constant 0 : index
    %114 = vector.load %arg12[%c1_122, %c1_123, %c0_124] : memref<6x6x128xf32, #tpu.memory_space<vmem>>, vector<4x4x128xf32>
    %115 = vector.shape_cast %114 : vector<4x4x128xf32> to vector<16x128xf32>
    %116 = arith.truncf %115 : vector<16x128xf32> to vector<16x128xbf16>
    %c4_125 = arith.constant 4 : index
    %c0_126 = arith.constant 0 : index
    %c0_127 = arith.constant 0 : index
    %117 = vector.load %arg5[%c4_125, %c0_126, %c0_127] : memref<9x128x128xbf16, #tpu.memory_space<vmem>>, vector<1x128x128xbf16>
    %118 = vector.shape_cast %117 : vector<1x128x128xbf16> to vector<128x128xbf16>
    %cst_128 = arith.constant dense<0.000000e+00> : vector<16x128xf32>
    %119 = tpu.matmul %116, %118, %cst_128 {dimension_numbers = #tpu.dot_dimension_numbers<[1], [0], [0], [1], [0, 0, 1, 1], [], []>} : vector<16x128xbf16>, vector<128x128xbf16>, vector<16x128xf32> -> vector<16x128xf32>
    %120 = arith.addf %113, %119 : vector<16x128xf32>
    %c1_129 = arith.constant 1 : index
    %c2_130 = arith.constant 2 : index
    %c0_131 = arith.constant 0 : index
    %121 = vector.load %arg12[%c1_129, %c2_130, %c0_131] : memref<6x6x128xf32, #tpu.memory_space<vmem>>, vector<4x4x128xf32>
    %122 = vector.shape_cast %121 : vector<4x4x128xf32> to vector<16x128xf32>
    %123 = arith.truncf %122 : vector<16x128xf32> to vector<16x128xbf16>
    %c5_132 = arith.constant 5 : index
    %c0_133 = arith.constant 0 : index
    %c0_134 = arith.constant 0 : index
    %124 = vector.load %arg5[%c5_132, %c0_133, %c0_134] : memref<9x128x128xbf16, #tpu.memory_space<vmem>>, vector<1x128x128xbf16>
    %125 = vector.shape_cast %124 : vector<1x128x128xbf16> to vector<128x128xbf16>
    %cst_135 = arith.constant dense<0.000000e+00> : vector<16x128xf32>
    %126 = tpu.matmul %123, %125, %cst_135 {dimension_numbers = #tpu.dot_dimension_numbers<[1], [0], [0], [1], [0, 0, 1, 1], [], []>} : vector<16x128xbf16>, vector<128x128xbf16>, vector<16x128xf32> -> vector<16x128xf32>
    %127 = arith.addf %120, %126 : vector<16x128xf32>
    %c2_136 = arith.constant 2 : index
    %c0_137 = arith.constant 0 : index
    %c0_138 = arith.constant 0 : index
    %128 = vector.load %arg12[%c2_136, %c0_137, %c0_138] : memref<6x6x128xf32, #tpu.memory_space<vmem>>, vector<4x4x128xf32>
    %129 = vector.shape_cast %128 : vector<4x4x128xf32> to vector<16x128xf32>
    %130 = arith.truncf %129 : vector<16x128xf32> to vector<16x128xbf16>
    %c6_139 = arith.constant 6 : index
    %c0_140 = arith.constant 0 : index
    %c0_141 = arith.constant 0 : index
    %131 = vector.load %arg5[%c6_139, %c0_140, %c0_141] : memref<9x128x128xbf16, #tpu.memory_space<vmem>>, vector<1x128x128xbf16>
    %132 = vector.shape_cast %131 : vector<1x128x128xbf16> to vector<128x128xbf16>
    %cst_142 = arith.constant dense<0.000000e+00> : vector<16x128xf32>
    %133 = tpu.matmul %130, %132, %cst_142 {dimension_numbers = #tpu.dot_dimension_numbers<[1], [0], [0], [1], [0, 0, 1, 1], [], []>} : vector<16x128xbf16>, vector<128x128xbf16>, vector<16x128xf32> -> vector<16x128xf32>
    %134 = arith.addf %127, %133 : vector<16x128xf32>
    %c2_143 = arith.constant 2 : index
    %c1_144 = arith.constant 1 : index
    %c0_145 = arith.constant 0 : index
    %135 = vector.load %arg12[%c2_143, %c1_144, %c0_145] : memref<6x6x128xf32, #tpu.memory_space<vmem>>, vector<4x4x128xf32>
    %136 = vector.shape_cast %135 : vector<4x4x128xf32> to vector<16x128xf32>
    %137 = arith.truncf %136 : vector<16x128xf32> to vector<16x128xbf16>
    %c7_146 = arith.constant 7 : index
    %c0_147 = arith.constant 0 : index
    %c0_148 = arith.constant 0 : index
    %138 = vector.load %arg5[%c7_146, %c0_147, %c0_148] : memref<9x128x128xbf16, #tpu.memory_space<vmem>>, vector<1x128x128xbf16>
    %139 = vector.shape_cast %138 : vector<1x128x128xbf16> to vector<128x128xbf16>
    %cst_149 = arith.constant dense<0.000000e+00> : vector<16x128xf32>
    %140 = tpu.matmul %137, %139, %cst_149 {dimension_numbers = #tpu.dot_dimension_numbers<[1], [0], [0], [1], [0, 0, 1, 1], [], []>} : vector<16x128xbf16>, vector<128x128xbf16>, vector<16x128xf32> -> vector<16x128xf32>
    %141 = arith.addf %134, %140 : vector<16x128xf32>
    %c2_150 = arith.constant 2 : index
    %c2_151 = arith.constant 2 : index
    %c0_152 = arith.constant 0 : index
    %142 = vector.load %arg12[%c2_150, %c2_151, %c0_152] : memref<6x6x128xf32, #tpu.memory_space<vmem>>, vector<4x4x128xf32>
    %143 = vector.shape_cast %142 : vector<4x4x128xf32> to vector<16x128xf32>
    %144 = arith.truncf %143 : vector<16x128xf32> to vector<16x128xbf16>
    %c8_153 = arith.constant 8 : index
    %c0_154 = arith.constant 0 : index
    %c0_155 = arith.constant 0 : index
    %145 = vector.load %arg5[%c8_153, %c0_154, %c0_155] : memref<9x128x128xbf16, #tpu.memory_space<vmem>>, vector<1x128x128xbf16>
    %146 = vector.shape_cast %145 : vector<1x128x128xbf16> to vector<128x128xbf16>
    %cst_156 = arith.constant dense<0.000000e+00> : vector<16x128xf32>
    %147 = tpu.matmul %144, %146, %cst_156 {dimension_numbers = #tpu.dot_dimension_numbers<[1], [0], [0], [1], [0, 0, 1, 1], [], []>} : vector<16x128xbf16>, vector<128x128xbf16>, vector<16x128xf32> -> vector<16x128xf32>
    %148 = arith.addf %141, %147 : vector<16x128xf32>
    %c0_157 = arith.constant 0 : index
    %c0_158 = arith.constant 0 : index
    %149 = vector.load %arg6[%c0_157, %c0_158] : memref<1x128xf32, #tpu.memory_space<vmem>>, vector<1x128xf32>
    %150 = vector.broadcast %149 : vector<1x128xf32> to vector<16x128xf32>
    %151 = arith.mulf %148, %150 : vector<16x128xf32>
    %c0_159 = arith.constant 0 : index
    %c0_160 = arith.constant 0 : index
    %152 = vector.load %arg7[%c0_159, %c0_160] : memref<1x128xf32, #tpu.memory_space<vmem>>, vector<1x128xf32>
    %153 = vector.broadcast %152 : vector<1x128xf32> to vector<16x128xf32>
    %154 = arith.addf %151, %153 : vector<16x128xf32>
    %c0_161 = arith.constant 0 : index
    %c0_162 = arith.constant 0 : index
    %c1_163 = arith.constant 1 : index
    %c0_164 = arith.constant 0 : index
    %c1_165 = arith.constant 1 : index
    %c0_166 = arith.constant 0 : index
    %155 = vector.load %arg1[%c0_161, %c0_162, %c1_163, %c0_164, %c1_165, %c0_166] : memref<1x5x2x5x2x64xf32, #tpu.memory_space<vmem>>, vector<1x4x1x4x1x64xf32>
    %156 = vector.shape_cast %155 : vector<1x4x1x4x1x64xf32> to vector<4x4x64xf32>
    %157 = vector.shape_cast %156 : vector<4x4x64xf32> to vector<16x64xf32>
    %158 = arith.truncf %157 : vector<16x64xf32> to vector<16x64xbf16>
    %c0_167 = arith.constant 0 : index
    %c0_168 = arith.constant 0 : index
    %159 = vector.load %arg8[%c0_167, %c0_168] : memref<64x128xbf16, #tpu.memory_space<vmem>>, vector<64x128xbf16>
    %cst_169 = arith.constant dense<0.000000e+00> : vector<16x128xf32>
    %160 = tpu.matmul %158, %159, %cst_169 {dimension_numbers = #tpu.dot_dimension_numbers<[1], [0], [0], [1], [0, 0, 1, 1], [], []>} : vector<16x64xbf16>, vector<64x128xbf16>, vector<16x128xf32> -> vector<16x128xf32>
    %c0_170 = arith.constant 0 : index
    %c0_171 = arith.constant 0 : index
    %161 = vector.load %arg9[%c0_170, %c0_171] : memref<1x128xf32, #tpu.memory_space<vmem>>, vector<1x128xf32>
    %162 = vector.broadcast %161 : vector<1x128xf32> to vector<16x128xf32>
    %163 = arith.mulf %160, %162 : vector<16x128xf32>
    %c0_172 = arith.constant 0 : index
    %c0_173 = arith.constant 0 : index
    %164 = vector.load %arg10[%c0_172, %c0_173] : memref<1x128xf32, #tpu.memory_space<vmem>>, vector<1x128xf32>
    %165 = vector.broadcast %164 : vector<1x128xf32> to vector<16x128xf32>
    %166 = arith.addf %163, %165 : vector<16x128xf32>
    %167 = arith.addf %154, %166 : vector<16x128xf32>
    %cst_174 = arith.constant 0.000000e+00 : f32
    %168 = vector.broadcast %cst_174 : f32 to vector<16x128xf32>
    %169 = arith.maximumf %167, %168 : vector<16x128xf32>
    %c0_175 = arith.constant 0 : index
    %c0_176 = arith.constant 0 : index
    %c0_177 = arith.constant 0 : index
    %170 = vector.load %arg11[%c0_175, %c0_176, %c0_177] : memref<1x16x128xf32, #tpu.memory_space<vmem>>, vector<1x16x128xf32>
    %171 = vector.shape_cast %170 : vector<1x16x128xf32> to vector<16x128xf32>
    %172 = vector.shape_cast %169 : vector<16x128xf32> to vector<1x16x128xf32>
    tpu.vector_store %arg11[%c0_175, %c0_176, %c0_177], %172 {strides = array<i32>} : memref<1x16x128xf32, #tpu.memory_space<vmem>>, vector<1x16x128xf32>,
    return
  }
  func.func @transform_0(%arg0: i32) -> (i32, i32, i32, i32, i32, i32) {
    %c0_i32 = arith.constant 0 : i32
    %c0_i32_0 = arith.constant 0 : i32
    %c0_i32_1 = arith.constant 0 : i32
    %c0_i32_2 = arith.constant 0 : i32
    %c0_i32_3 = arith.constant 0 : i32
    %c0_i32_4 = arith.constant 0 : i32
    return %arg0, %c0_i32, %c0_i32_0, %c0_i32_1, %c0_i32_2, %c0_i32_3 : i32, i32, i32, i32, i32, i32
  }
  func.func @transform_1(%arg0: i32) -> (i32, i32, i32) {
    %c0_i32 = arith.constant 0 : i32
    %c0_i32_0 = arith.constant 0 : i32
    %c0_i32_1 = arith.constant 0 : i32
    %c0_i32_2 = arith.constant 0 : i32
    return %c0_i32, %c0_i32_0, %c0_i32_1 : i32, i32, i32
  }
  func.func @transform_2(%arg0: i32) -> (i32, i32) {
    %c0_i32 = arith.constant 0 : i32
    %c0_i32_0 = arith.constant 0 : i32
    %c0_i32_1 = arith.constant 0 : i32
    return %c0_i32, %c0_i32_0 : i32, i32
  }
  func.func @transform_3(%arg0: i32) -> (i32, i32) {
    %c0_i32 = arith.constant 0 : i32
    %c0_i32_0 = arith.constant 0 : i32
    %c0_i32_1 = arith.constant 0 : i32
    return %c0_i32, %c0_i32_0 : i32, i32
  }
  func.func @transform_4(%arg0: i32) -> (i32, i32, i32) {
    %c0_i32 = arith.constant 0 : i32
    %c0_i32_0 = arith.constant 0 : i32
    %c0_i32_1 = arith.constant 0 : i32
    %c0_i32_2 = arith.constant 0 : i32
    return %c0_i32, %c0_i32_0, %c0_i32_1 : i32, i32, i32
  }
  func.func @transform_5(%arg0: i32) -> (i32, i32) {
    %c0_i32 = arith.constant 0 : i32
    %c0_i32_0 = arith.constant 0 : i32
    %c0_i32_1 = arith.constant 0 : i32
    return %c0_i32, %c0_i32_0 : i32, i32
  }
  func.func @transform_6(%arg0: i32) -> (i32, i32) {
    %c0_i32 = arith.constant 0 : i32
    %c0_i32_0 = arith.constant 0 : i32
    %c0_i32_1 = arith.constant 0 : i32
    return %c0_i32, %c0_i32_0 : i32, i32
  }
  func.func @transform_7(%arg0: i32) -> (i32, i32) {
    %c0_i32 = arith.constant 0 : i32
    %c0_i32_0 = arith.constant 0 : i32
    %c0_i32_1 = arith.constant 0 : i32
    return %c0_i32, %c0_i32_0 : i32, i32
  }
  func.func @transform_8(%arg0: i32) -> (i32, i32) {
    %c0_i32 = arith.constant 0 : i32
    %c0_i32_0 = arith.constant 0 : i32
    %c0_i32_1 = arith.constant 0 : i32
    return %c0_i32, %c0_i32_0 : i32, i32
  }
  func.func @transform_9(%arg0: i32) -> (i32, i32) {
    %c0_i32 = arith.constant 0 : i32
    %c0_i32_0 = arith.constant 0 : i32
    %c0_i32_1 = arith.constant 0 : i32
    return %c0_i32, %c0_i32_0 : i32, i32
  }
  func.func @transform_10(%arg0: i32) -> (i32, i32, i32) {
    %c0_i32 = arith.constant 0 : i32
    %c0_i32_0 = arith.constant 0 : i32
    %c0_i32_1 = arith.constant 0 : i32
    return %arg0, %c0_i32, %c0_i32_0 : i32, i32, i32
  }
}

module attributes {stable_mosaic.version = 11 : i64} {
  func.func @_mean_std_kernel(%arg0: i32, %arg1: memref<1x16x128xf32, #tpu.memory_space<vmem>>, %arg2: memref<1x1x128xf32, #tpu.memory_space<vmem>>, %arg3: memref<1x1x128xf32, #tpu.memory_space<vmem>>) attributes {dimension_semantics = [#tpu.dimension_semantics<parallel>], iteration_bounds = array<i64: 2>, scalar_prefetch = 0 : i64, scratch_operands = 0 : i64, tpu.core_type = #tpu.core_type<tc>, window_params = [{transform_indices = @transform_0, window_bounds = array<i64: 1, 16, 128>}, {transform_indices = @transform_1, window_bounds = array<i64: 1, 1, 128>}, {transform_indices = @transform_2, window_bounds = array<i64: 1, 1, 128>}]} {
    %c0 = arith.constant 0 : index
    %c0_0 = arith.constant 0 : index
    %c0_1 = arith.constant 0 : index
    %0 = vector.load %arg1[%c0, %c0_0, %c0_1] : memref<1x16x128xf32, #tpu.memory_space<vmem>>, vector<1x16x128xf32>
    %cst = arith.constant dense<0.000000e+00> : vector<1x128xf32>
    %1 = vector.multi_reduction <add>, %0, %cst [1] : vector<1x16x128xf32> to vector<1x128xf32>
    %2 = vector.shape_cast %1 : vector<1x128xf32> to vector<1x1x128xf32>
    %cst_2 = arith.constant 1.600000e+01 : f32
    %3 = vector.broadcast %cst_2 : f32 to vector<1x1x128xf32>
    %4 = arith.divf %2, %3 : vector<1x1x128xf32>
    %5 = vector.broadcast %4 : vector<1x1x128xf32> to vector<1x16x128xf32>
    %6 = arith.subf %0, %5 : vector<1x16x128xf32>
    %7 = arith.mulf %6, %6 : vector<1x16x128xf32>
    %cst_3 = arith.constant dense<0.000000e+00> : vector<1x128xf32>
    %8 = vector.multi_reduction <add>, %7, %cst_3 [1] : vector<1x16x128xf32> to vector<1x128xf32>
    %9 = vector.shape_cast %8 : vector<1x128xf32> to vector<1x1x128xf32>
    %cst_4 = arith.constant 1.500000e+01 : f32
    %10 = vector.broadcast %cst_4 : f32 to vector<1x1x128xf32>
    %11 = arith.divf %9, %10 : vector<1x1x128xf32>
    %c0_5 = arith.constant 0 : index
    %c0_6 = arith.constant 0 : index
    %c0_7 = arith.constant 0 : index
    %12 = vector.load %arg2[%c0_5, %c0_6, %c0_7] : memref<1x1x128xf32, #tpu.memory_space<vmem>>, vector<1x1x128xf32>
    tpu.vector_store %arg2[%c0_5, %c0_6, %c0_7], %4 {strides = array<i32>} : memref<1x1x128xf32, #tpu.memory_space<vmem>>, vector<1x1x128xf32>,
    %13 = math.sqrt %11 : vector<1x1x128xf32>
    %c0_8 = arith.constant 0 : index
    %c0_9 = arith.constant 0 : index
    %c0_10 = arith.constant 0 : index
    %14 = vector.load %arg3[%c0_8, %c0_9, %c0_10] : memref<1x1x128xf32, #tpu.memory_space<vmem>>, vector<1x1x128xf32>
    tpu.vector_store %arg3[%c0_8, %c0_9, %c0_10], %13 {strides = array<i32>} : memref<1x1x128xf32, #tpu.memory_space<vmem>>, vector<1x1x128xf32>,
    return
  }
  func.func @transform_0(%arg0: i32) -> (i32, i32, i32) {
    %c0_i32 = arith.constant 0 : i32
    %c0_i32_0 = arith.constant 0 : i32
    %c0_i32_1 = arith.constant 0 : i32
    return %arg0, %c0_i32, %c0_i32_0 : i32, i32, i32
  }
  func.func @transform_1(%arg0: i32) -> (i32, i32, i32) {
    %c0_i32 = arith.constant 0 : i32
    %c0_i32_0 = arith.constant 0 : i32
    %c0_i32_1 = arith.constant 0 : i32
    return %arg0, %c0_i32, %c0_i32_0 : i32, i32, i32
  }
  func.func @transform_2(%arg0: i32) -> (i32, i32, i32) {
    %c0_i32 = arith.constant 0 : i32
    %c0_i32_0 = arith.constant 0 : i32
    %c0_i32_1 = arith.constant 0 : i32
    return %arg0, %c0_i32, %c0_i32_0 : i32, i32, i32
  }
}

module attributes {stable_mosaic.version = 11 : i64} {
  func.func @_block_kernel(%arg0: i32, %arg1: memref<1x6x6x128xf32, #tpu.memory_space<vmem>>, %arg2: memref<9x128x128xbf16, #tpu.memory_space<vmem>>, %arg3: memref<1x128xf32, #tpu.memory_space<vmem>>, %arg4: memref<1x128xf32, #tpu.memory_space<vmem>>, %arg5: memref<9x128x128xbf16, #tpu.memory_space<vmem>>, %arg6: memref<1x128xf32, #tpu.memory_space<vmem>>, %arg7: memref<1x128xf32, #tpu.memory_space<vmem>>, %arg8: memref<1x16x128xf32, #tpu.memory_space<vmem>>, %arg9: memref<6x6x128xf32, #tpu.memory_space<vmem>>) attributes {dimension_semantics = [#tpu.dimension_semantics<parallel>], iteration_bounds = array<i64: 2>, scalar_prefetch = 0 : i64, scratch_operands = 1 : i64, tpu.core_type = #tpu.core_type<tc>, window_params = [{transform_indices = @transform_0, window_bounds = array<i64: 1, 6, 6, 128>}, {pipeline_mode = #tpu.pipeline_mode<synchronous>, transform_indices = @transform_1, window_bounds = array<i64: 9, 128, 128>}, {pipeline_mode = #tpu.pipeline_mode<synchronous>, transform_indices = @transform_2, window_bounds = array<i64: 1, 128>}, {pipeline_mode = #tpu.pipeline_mode<synchronous>, transform_indices = @transform_3, window_bounds = array<i64: 1, 128>}, {pipeline_mode = #tpu.pipeline_mode<synchronous>, transform_indices = @transform_4, window_bounds = array<i64: 9, 128, 128>}, {pipeline_mode = #tpu.pipeline_mode<synchronous>, transform_indices = @transform_5, window_bounds = array<i64: 1, 128>}, {pipeline_mode = #tpu.pipeline_mode<synchronous>, transform_indices = @transform_6, window_bounds = array<i64: 1, 128>}, {transform_indices = @transform_7, window_bounds = array<i64: 1, 16, 128>}]} {
    %cst = arith.constant 0.000000e+00 : f32
    %0 = vector.broadcast %cst : f32 to vector<16x128xf32>
    %c0 = arith.constant 0 : index
    %c0_0 = arith.constant 0 : index
    %c0_1 = arith.constant 0 : index
    %c0_2 = arith.constant 0 : index
    %1 = vector.load %arg1[%c0, %c0_0, %c0_1, %c0_2] : memref<1x6x6x128xf32, #tpu.memory_space<vmem>>, vector<1x4x4x128xf32>
    %2 = vector.shape_cast %1 : vector<1x4x4x128xf32> to vector<4x4x128xf32>
    %3 = vector.shape_cast %2 : vector<4x4x128xf32> to vector<16x128xf32>
    %4 = arith.truncf %3 : vector<16x128xf32> to vector<16x128xbf16>
    %c0_3 = arith.constant 0 : index
    %c0_4 = arith.constant 0 : index
    %c0_5 = arith.constant 0 : index
    %5 = vector.load %arg2[%c0_3, %c0_4, %c0_5] : memref<9x128x128xbf16, #tpu.memory_space<vmem>>, vector<1x128x128xbf16>
    %6 = vector.shape_cast %5 : vector<1x128x128xbf16> to vector<128x128xbf16>
    %cst_6 = arith.constant dense<0.000000e+00> : vector<16x128xf32>
    %7 = tpu.matmul %4, %6, %cst_6 {dimension_numbers = #tpu.dot_dimension_numbers<[1], [0], [0], [1], [0, 0, 1, 1], [], []>} : vector<16x128xbf16>, vector<128x128xbf16>, vector<16x128xf32> -> vector<16x128xf32>
    %8 = arith.addf %0, %7 : vector<16x128xf32>
    %c0_7 = arith.constant 0 : index
    %c0_8 = arith.constant 0 : index
    %c1 = arith.constant 1 : index
    %c0_9 = arith.constant 0 : index
    %9 = vector.load %arg1[%c0_7, %c0_8, %c1, %c0_9] : memref<1x6x6x128xf32, #tpu.memory_space<vmem>>, vector<1x4x4x128xf32>
    %10 = vector.shape_cast %9 : vector<1x4x4x128xf32> to vector<4x4x128xf32>
    %11 = vector.shape_cast %10 : vector<4x4x128xf32> to vector<16x128xf32>
    %12 = arith.truncf %11 : vector<16x128xf32> to vector<16x128xbf16>
    %c1_10 = arith.constant 1 : index
    %c0_11 = arith.constant 0 : index
    %c0_12 = arith.constant 0 : index
    %13 = vector.load %arg2[%c1_10, %c0_11, %c0_12] : memref<9x128x128xbf16, #tpu.memory_space<vmem>>, vector<1x128x128xbf16>
    %14 = vector.shape_cast %13 : vector<1x128x128xbf16> to vector<128x128xbf16>
    %cst_13 = arith.constant dense<0.000000e+00> : vector<16x128xf32>
    %15 = tpu.matmul %12, %14, %cst_13 {dimension_numbers = #tpu.dot_dimension_numbers<[1], [0], [0], [1], [0, 0, 1, 1], [], []>} : vector<16x128xbf16>, vector<128x128xbf16>, vector<16x128xf32> -> vector<16x128xf32>
    %16 = arith.addf %8, %15 : vector<16x128xf32>
    %c0_14 = arith.constant 0 : index
    %c0_15 = arith.constant 0 : index
    %c2 = arith.constant 2 : index
    %c0_16 = arith.constant 0 : index
    %17 = vector.load %arg1[%c0_14, %c0_15, %c2, %c0_16] : memref<1x6x6x128xf32, #tpu.memory_space<vmem>>, vector<1x4x4x128xf32>
    %18 = vector.shape_cast %17 : vector<1x4x4x128xf32> to vector<4x4x128xf32>
    %19 = vector.shape_cast %18 : vector<4x4x128xf32> to vector<16x128xf32>
    %20 = arith.truncf %19 : vector<16x128xf32> to vector<16x128xbf16>
    %c2_17 = arith.constant 2 : index
    %c0_18 = arith.constant 0 : index
    %c0_19 = arith.constant 0 : index
    %21 = vector.load %arg2[%c2_17, %c0_18, %c0_19] : memref<9x128x128xbf16, #tpu.memory_space<vmem>>, vector<1x128x128xbf16>
    %22 = vector.shape_cast %21 : vector<1x128x128xbf16> to vector<128x128xbf16>
    %cst_20 = arith.constant dense<0.000000e+00> : vector<16x128xf32>
    %23 = tpu.matmul %20, %22, %cst_20 {dimension_numbers = #tpu.dot_dimension_numbers<[1], [0], [0], [1], [0, 0, 1, 1], [], []>} : vector<16x128xbf16>, vector<128x128xbf16>, vector<16x128xf32> -> vector<16x128xf32>
    %24 = arith.addf %16, %23 : vector<16x128xf32>
    %c0_21 = arith.constant 0 : index
    %c1_22 = arith.constant 1 : index
    %c0_23 = arith.constant 0 : index
    %c0_24 = arith.constant 0 : index
    %25 = vector.load %arg1[%c0_21, %c1_22, %c0_23, %c0_24] : memref<1x6x6x128xf32, #tpu.memory_space<vmem>>, vector<1x4x4x128xf32>
    %26 = vector.shape_cast %25 : vector<1x4x4x128xf32> to vector<4x4x128xf32>
    %27 = vector.shape_cast %26 : vector<4x4x128xf32> to vector<16x128xf32>
    %28 = arith.truncf %27 : vector<16x128xf32> to vector<16x128xbf16>
    %c3 = arith.constant 3 : index
    %c0_25 = arith.constant 0 : index
    %c0_26 = arith.constant 0 : index
    %29 = vector.load %arg2[%c3, %c0_25, %c0_26] : memref<9x128x128xbf16, #tpu.memory_space<vmem>>, vector<1x128x128xbf16>
    %30 = vector.shape_cast %29 : vector<1x128x128xbf16> to vector<128x128xbf16>
    %cst_27 = arith.constant dense<0.000000e+00> : vector<16x128xf32>
    %31 = tpu.matmul %28, %30, %cst_27 {dimension_numbers = #tpu.dot_dimension_numbers<[1], [0], [0], [1], [0, 0, 1, 1], [], []>} : vector<16x128xbf16>, vector<128x128xbf16>, vector<16x128xf32> -> vector<16x128xf32>
    %32 = arith.addf %24, %31 : vector<16x128xf32>
    %c0_28 = arith.constant 0 : index
    %c1_29 = arith.constant 1 : index
    %c1_30 = arith.constant 1 : index
    %c0_31 = arith.constant 0 : index
    %33 = vector.load %arg1[%c0_28, %c1_29, %c1_30, %c0_31] : memref<1x6x6x128xf32, #tpu.memory_space<vmem>>, vector<1x4x4x128xf32>
    %34 = vector.shape_cast %33 : vector<1x4x4x128xf32> to vector<4x4x128xf32>
    %35 = vector.shape_cast %34 : vector<4x4x128xf32> to vector<16x128xf32>
    %36 = arith.truncf %35 : vector<16x128xf32> to vector<16x128xbf16>
    %c4 = arith.constant 4 : index
    %c0_32 = arith.constant 0 : index
    %c0_33 = arith.constant 0 : index
    %37 = vector.load %arg2[%c4, %c0_32, %c0_33] : memref<9x128x128xbf16, #tpu.memory_space<vmem>>, vector<1x128x128xbf16>
    %38 = vector.shape_cast %37 : vector<1x128x128xbf16> to vector<128x128xbf16>
    %cst_34 = arith.constant dense<0.000000e+00> : vector<16x128xf32>
    %39 = tpu.matmul %36, %38, %cst_34 {dimension_numbers = #tpu.dot_dimension_numbers<[1], [0], [0], [1], [0, 0, 1, 1], [], []>} : vector<16x128xbf16>, vector<128x128xbf16>, vector<16x128xf32> -> vector<16x128xf32>
    %40 = arith.addf %32, %39 : vector<16x128xf32>
    %c0_35 = arith.constant 0 : index
    %c1_36 = arith.constant 1 : index
    %c2_37 = arith.constant 2 : index
    %c0_38 = arith.constant 0 : index
    %41 = vector.load %arg1[%c0_35, %c1_36, %c2_37, %c0_38] : memref<1x6x6x128xf32, #tpu.memory_space<vmem>>, vector<1x4x4x128xf32>
    %42 = vector.shape_cast %41 : vector<1x4x4x128xf32> to vector<4x4x128xf32>
    %43 = vector.shape_cast %42 : vector<4x4x128xf32> to vector<16x128xf32>
    %44 = arith.truncf %43 : vector<16x128xf32> to vector<16x128xbf16>
    %c5 = arith.constant 5 : index
    %c0_39 = arith.constant 0 : index
    %c0_40 = arith.constant 0 : index
    %45 = vector.load %arg2[%c5, %c0_39, %c0_40] : memref<9x128x128xbf16, #tpu.memory_space<vmem>>, vector<1x128x128xbf16>
    %46 = vector.shape_cast %45 : vector<1x128x128xbf16> to vector<128x128xbf16>
    %cst_41 = arith.constant dense<0.000000e+00> : vector<16x128xf32>
    %47 = tpu.matmul %44, %46, %cst_41 {dimension_numbers = #tpu.dot_dimension_numbers<[1], [0], [0], [1], [0, 0, 1, 1], [], []>} : vector<16x128xbf16>, vector<128x128xbf16>, vector<16x128xf32> -> vector<16x128xf32>
    %48 = arith.addf %40, %47 : vector<16x128xf32>
    %c0_42 = arith.constant 0 : index
    %c2_43 = arith.constant 2 : index
    %c0_44 = arith.constant 0 : index
    %c0_45 = arith.constant 0 : index
    %49 = vector.load %arg1[%c0_42, %c2_43, %c0_44, %c0_45] : memref<1x6x6x128xf32, #tpu.memory_space<vmem>>, vector<1x4x4x128xf32>
    %50 = vector.shape_cast %49 : vector<1x4x4x128xf32> to vector<4x4x128xf32>
    %51 = vector.shape_cast %50 : vector<4x4x128xf32> to vector<16x128xf32>
    %52 = arith.truncf %51 : vector<16x128xf32> to vector<16x128xbf16>
    %c6 = arith.constant 6 : index
    %c0_46 = arith.constant 0 : index
    %c0_47 = arith.constant 0 : index
    %53 = vector.load %arg2[%c6, %c0_46, %c0_47] : memref<9x128x128xbf16, #tpu.memory_space<vmem>>, vector<1x128x128xbf16>
    %54 = vector.shape_cast %53 : vector<1x128x128xbf16> to vector<128x128xbf16>
    %cst_48 = arith.constant dense<0.000000e+00> : vector<16x128xf32>
    %55 = tpu.matmul %52, %54, %cst_48 {dimension_numbers = #tpu.dot_dimension_numbers<[1], [0], [0], [1], [0, 0, 1, 1], [], []>} : vector<16x128xbf16>, vector<128x128xbf16>, vector<16x128xf32> -> vector<16x128xf32>
    %56 = arith.addf %48, %55 : vector<16x128xf32>
    %c0_49 = arith.constant 0 : index
    %c2_50 = arith.constant 2 : index
    %c1_51 = arith.constant 1 : index
    %c0_52 = arith.constant 0 : index
    %57 = vector.load %arg1[%c0_49, %c2_50, %c1_51, %c0_52] : memref<1x6x6x128xf32, #tpu.memory_space<vmem>>, vector<1x4x4x128xf32>
    %58 = vector.shape_cast %57 : vector<1x4x4x128xf32> to vector<4x4x128xf32>
    %59 = vector.shape_cast %58 : vector<4x4x128xf32> to vector<16x128xf32>
    %60 = arith.truncf %59 : vector<16x128xf32> to vector<16x128xbf16>
    %c7 = arith.constant 7 : index
    %c0_53 = arith.constant 0 : index
    %c0_54 = arith.constant 0 : index
    %61 = vector.load %arg2[%c7, %c0_53, %c0_54] : memref<9x128x128xbf16, #tpu.memory_space<vmem>>, vector<1x128x128xbf16>
    %62 = vector.shape_cast %61 : vector<1x128x128xbf16> to vector<128x128xbf16>
    %cst_55 = arith.constant dense<0.000000e+00> : vector<16x128xf32>
    %63 = tpu.matmul %60, %62, %cst_55 {dimension_numbers = #tpu.dot_dimension_numbers<[1], [0], [0], [1], [0, 0, 1, 1], [], []>} : vector<16x128xbf16>, vector<128x128xbf16>, vector<16x128xf32> -> vector<16x128xf32>
    %64 = arith.addf %56, %63 : vector<16x128xf32>
    %c0_56 = arith.constant 0 : index
    %c2_57 = arith.constant 2 : index
    %c2_58 = arith.constant 2 : index
    %c0_59 = arith.constant 0 : index
    %65 = vector.load %arg1[%c0_56, %c2_57, %c2_58, %c0_59] : memref<1x6x6x128xf32, #tpu.memory_space<vmem>>, vector<1x4x4x128xf32>
    %66 = vector.shape_cast %65 : vector<1x4x4x128xf32> to vector<4x4x128xf32>
    %67 = vector.shape_cast %66 : vector<4x4x128xf32> to vector<16x128xf32>
    %68 = arith.truncf %67 : vector<16x128xf32> to vector<16x128xbf16>
    %c8 = arith.constant 8 : index
    %c0_60 = arith.constant 0 : index
    %c0_61 = arith.constant 0 : index
    %69 = vector.load %arg2[%c8, %c0_60, %c0_61] : memref<9x128x128xbf16, #tpu.memory_space<vmem>>, vector<1x128x128xbf16>
    %70 = vector.shape_cast %69 : vector<1x128x128xbf16> to vector<128x128xbf16>
    %cst_62 = arith.constant dense<0.000000e+00> : vector<16x128xf32>
    %71 = tpu.matmul %68, %70, %cst_62 {dimension_numbers = #tpu.dot_dimension_numbers<[1], [0], [0], [1], [0, 0, 1, 1], [], []>} : vector<16x128xbf16>, vector<128x128xbf16>, vector<16x128xf32> -> vector<16x128xf32>
    %72 = arith.addf %64, %71 : vector<16x128xf32>
    %c0_63 = arith.constant 0 : index
    %c0_64 = arith.constant 0 : index
    %73 = vector.load %arg3[%c0_63, %c0_64] : memref<1x128xf32, #tpu.memory_space<vmem>>, vector<1x128xf32>
    %74 = vector.broadcast %73 : vector<1x128xf32> to vector<16x128xf32>
    %75 = arith.mulf %72, %74 : vector<16x128xf32>
    %c0_65 = arith.constant 0 : index
    %c0_66 = arith.constant 0 : index
    %76 = vector.load %arg4[%c0_65, %c0_66] : memref<1x128xf32, #tpu.memory_space<vmem>>, vector<1x128xf32>
    %77 = vector.broadcast %76 : vector<1x128xf32> to vector<16x128xf32>
    %78 = arith.addf %75, %77 : vector<16x128xf32>
    %cst_67 = arith.constant 0.000000e+00 : f32
    %79 = vector.broadcast %cst_67 : f32 to vector<16x128xf32>
    %80 = arith.maximumf %78, %79 : vector<16x128xf32>
    %cst_68 = arith.constant 0.000000e+00 : f32
    %81 = vector.broadcast %cst_68 : f32 to vector<6x6x128xf32>
    %c0_69 = arith.constant 0 : index
    %c0_70 = arith.constant 0 : index
    %c0_71 = arith.constant 0 : index
    %82 = vector.load %arg9[%c0_69, %c0_70, %c0_71] : memref<6x6x128xf32, #tpu.memory_space<vmem>>, vector<6x6x128xf32>
    tpu.vector_store %arg9[%c0_69, %c0_70, %c0_71], %81 {strides = array<i32>} : memref<6x6x128xf32, #tpu.memory_space<vmem>>, vector<6x6x128xf32>,
    %83 = vector.shape_cast %80 : vector<16x128xf32> to vector<4x4x128xf32>
    %c1_72 = arith.constant 1 : index
    %c1_73 = arith.constant 1 : index
    %c0_74 = arith.constant 0 : index
    %84 = vector.load %arg9[%c1_72, %c1_73, %c0_74] : memref<6x6x128xf32, #tpu.memory_space<vmem>>, vector<4x4x128xf32>
    tpu.vector_store %arg9[%c1_72, %c1_73, %c0_74], %83 {strides = array<i32>} : memref<6x6x128xf32, #tpu.memory_space<vmem>>, vector<4x4x128xf32>,
    %cst_75 = arith.constant 0.000000e+00 : f32
    %85 = vector.broadcast %cst_75 : f32 to vector<16x128xf32>
    %c0_76 = arith.constant 0 : index
    %c0_77 = arith.constant 0 : index
    %c0_78 = arith.constant 0 : index
    %86 = vector.load %arg9[%c0_76, %c0_77, %c0_78] : memref<6x6x128xf32, #tpu.memory_space<vmem>>, vector<4x4x128xf32>
    %87 = vector.shape_cast %86 : vector<4x4x128xf32> to vector<16x128xf32>
    %88 = arith.truncf %87 : vector<16x128xf32> to vector<16x128xbf16>
    %c0_79 = arith.constant 0 : index
    %c0_80 = arith.constant 0 : index
    %c0_81 = arith.constant 0 : index
    %89 = vector.load %arg5[%c0_79, %c0_80, %c0_81] : memref<9x128x128xbf16, #tpu.memory_space<vmem>>, vector<1x128x128xbf16>
    %90 = vector.shape_cast %89 : vector<1x128x128xbf16> to vector<128x128xbf16>
    %cst_82 = arith.constant dense<0.000000e+00> : vector<16x128xf32>
    %91 = tpu.matmul %88, %90, %cst_82 {dimension_numbers = #tpu.dot_dimension_numbers<[1], [0], [0], [1], [0, 0, 1, 1], [], []>} : vector<16x128xbf16>, vector<128x128xbf16>, vector<16x128xf32> -> vector<16x128xf32>
    %92 = arith.addf %85, %91 : vector<16x128xf32>
    %c0_83 = arith.constant 0 : index
    %c1_84 = arith.constant 1 : index
    %c0_85 = arith.constant 0 : index
    %93 = vector.load %arg9[%c0_83, %c1_84, %c0_85] : memref<6x6x128xf32, #tpu.memory_space<vmem>>, vector<4x4x128xf32>
    %94 = vector.shape_cast %93 : vector<4x4x128xf32> to vector<16x128xf32>
    %95 = arith.truncf %94 : vector<16x128xf32> to vector<16x128xbf16>
    %c1_86 = arith.constant 1 : index
    %c0_87 = arith.constant 0 : index
    %c0_88 = arith.constant 0 : index
    %96 = vector.load %arg5[%c1_86, %c0_87, %c0_88] : memref<9x128x128xbf16, #tpu.memory_space<vmem>>, vector<1x128x128xbf16>
    %97 = vector.shape_cast %96 : vector<1x128x128xbf16> to vector<128x128xbf16>
    %cst_89 = arith.constant dense<0.000000e+00> : vector<16x128xf32>
    %98 = tpu.matmul %95, %97, %cst_89 {dimension_numbers = #tpu.dot_dimension_numbers<[1], [0], [0], [1], [0, 0, 1, 1], [], []>} : vector<16x128xbf16>, vector<128x128xbf16>, vector<16x128xf32> -> vector<16x128xf32>
    %99 = arith.addf %92, %98 : vector<16x128xf32>
    %c0_90 = arith.constant 0 : index
    %c2_91 = arith.constant 2 : index
    %c0_92 = arith.constant 0 : index
    %100 = vector.load %arg9[%c0_90, %c2_91, %c0_92] : memref<6x6x128xf32, #tpu.memory_space<vmem>>, vector<4x4x128xf32>
    %101 = vector.shape_cast %100 : vector<4x4x128xf32> to vector<16x128xf32>
    %102 = arith.truncf %101 : vector<16x128xf32> to vector<16x128xbf16>
    %c2_93 = arith.constant 2 : index
    %c0_94 = arith.constant 0 : index
    %c0_95 = arith.constant 0 : index
    %103 = vector.load %arg5[%c2_93, %c0_94, %c0_95] : memref<9x128x128xbf16, #tpu.memory_space<vmem>>, vector<1x128x128xbf16>
    %104 = vector.shape_cast %103 : vector<1x128x128xbf16> to vector<128x128xbf16>
    %cst_96 = arith.constant dense<0.000000e+00> : vector<16x128xf32>
    %105 = tpu.matmul %102, %104, %cst_96 {dimension_numbers = #tpu.dot_dimension_numbers<[1], [0], [0], [1], [0, 0, 1, 1], [], []>} : vector<16x128xbf16>, vector<128x128xbf16>, vector<16x128xf32> -> vector<16x128xf32>
    %106 = arith.addf %99, %105 : vector<16x128xf32>
    %c1_97 = arith.constant 1 : index
    %c0_98 = arith.constant 0 : index
    %c0_99 = arith.constant 0 : index
    %107 = vector.load %arg9[%c1_97, %c0_98, %c0_99] : memref<6x6x128xf32, #tpu.memory_space<vmem>>, vector<4x4x128xf32>
    %108 = vector.shape_cast %107 : vector<4x4x128xf32> to vector<16x128xf32>
    %109 = arith.truncf %108 : vector<16x128xf32> to vector<16x128xbf16>
    %c3_100 = arith.constant 3 : index
    %c0_101 = arith.constant 0 : index
    %c0_102 = arith.constant 0 : index
    %110 = vector.load %arg5[%c3_100, %c0_101, %c0_102] : memref<9x128x128xbf16, #tpu.memory_space<vmem>>, vector<1x128x128xbf16>
    %111 = vector.shape_cast %110 : vector<1x128x128xbf16> to vector<128x128xbf16>
    %cst_103 = arith.constant dense<0.000000e+00> : vector<16x128xf32>
    %112 = tpu.matmul %109, %111, %cst_103 {dimension_numbers = #tpu.dot_dimension_numbers<[1], [0], [0], [1], [0, 0, 1, 1], [], []>} : vector<16x128xbf16>, vector<128x128xbf16>, vector<16x128xf32> -> vector<16x128xf32>
    %113 = arith.addf %106, %112 : vector<16x128xf32>
    %c1_104 = arith.constant 1 : index
    %c1_105 = arith.constant 1 : index
    %c0_106 = arith.constant 0 : index
    %114 = vector.load %arg9[%c1_104, %c1_105, %c0_106] : memref<6x6x128xf32, #tpu.memory_space<vmem>>, vector<4x4x128xf32>
    %115 = vector.shape_cast %114 : vector<4x4x128xf32> to vector<16x128xf32>
    %116 = arith.truncf %115 : vector<16x128xf32> to vector<16x128xbf16>
    %c4_107 = arith.constant 4 : index
    %c0_108 = arith.constant 0 : index
    %c0_109 = arith.constant 0 : index
    %117 = vector.load %arg5[%c4_107, %c0_108, %c0_109] : memref<9x128x128xbf16, #tpu.memory_space<vmem>>, vector<1x128x128xbf16>
    %118 = vector.shape_cast %117 : vector<1x128x128xbf16> to vector<128x128xbf16>
    %cst_110 = arith.constant dense<0.000000e+00> : vector<16x128xf32>
    %119 = tpu.matmul %116, %118, %cst_110 {dimension_numbers = #tpu.dot_dimension_numbers<[1], [0], [0], [1], [0, 0, 1, 1], [], []>} : vector<16x128xbf16>, vector<128x128xbf16>, vector<16x128xf32> -> vector<16x128xf32>
    %120 = arith.addf %113, %119 : vector<16x128xf32>
    %c1_111 = arith.constant 1 : index
    %c2_112 = arith.constant 2 : index
    %c0_113 = arith.constant 0 : index
    %121 = vector.load %arg9[%c1_111, %c2_112, %c0_113] : memref<6x6x128xf32, #tpu.memory_space<vmem>>, vector<4x4x128xf32>
    %122 = vector.shape_cast %121 : vector<4x4x128xf32> to vector<16x128xf32>
    %123 = arith.truncf %122 : vector<16x128xf32> to vector<16x128xbf16>
    %c5_114 = arith.constant 5 : index
    %c0_115 = arith.constant 0 : index
    %c0_116 = arith.constant 0 : index
    %124 = vector.load %arg5[%c5_114, %c0_115, %c0_116] : memref<9x128x128xbf16, #tpu.memory_space<vmem>>, vector<1x128x128xbf16>
    %125 = vector.shape_cast %124 : vector<1x128x128xbf16> to vector<128x128xbf16>
    %cst_117 = arith.constant dense<0.000000e+00> : vector<16x128xf32>
    %126 = tpu.matmul %123, %125, %cst_117 {dimension_numbers = #tpu.dot_dimension_numbers<[1], [0], [0], [1], [0, 0, 1, 1], [], []>} : vector<16x128xbf16>, vector<128x128xbf16>, vector<16x128xf32> -> vector<16x128xf32>
    %127 = arith.addf %120, %126 : vector<16x128xf32>
    %c2_118 = arith.constant 2 : index
    %c0_119 = arith.constant 0 : index
    %c0_120 = arith.constant 0 : index
    %128 = vector.load %arg9[%c2_118, %c0_119, %c0_120] : memref<6x6x128xf32, #tpu.memory_space<vmem>>, vector<4x4x128xf32>
    %129 = vector.shape_cast %128 : vector<4x4x128xf32> to vector<16x128xf32>
    %130 = arith.truncf %129 : vector<16x128xf32> to vector<16x128xbf16>
    %c6_121 = arith.constant 6 : index
    %c0_122 = arith.constant 0 : index
    %c0_123 = arith.constant 0 : index
    %131 = vector.load %arg5[%c6_121, %c0_122, %c0_123] : memref<9x128x128xbf16, #tpu.memory_space<vmem>>, vector<1x128x128xbf16>
    %132 = vector.shape_cast %131 : vector<1x128x128xbf16> to vector<128x128xbf16>
    %cst_124 = arith.constant dense<0.000000e+00> : vector<16x128xf32>
    %133 = tpu.matmul %130, %132, %cst_124 {dimension_numbers = #tpu.dot_dimension_numbers<[1], [0], [0], [1], [0, 0, 1, 1], [], []>} : vector<16x128xbf16>, vector<128x128xbf16>, vector<16x128xf32> -> vector<16x128xf32>
    %134 = arith.addf %127, %133 : vector<16x128xf32>
    %c2_125 = arith.constant 2 : index
    %c1_126 = arith.constant 1 : index
    %c0_127 = arith.constant 0 : index
    %135 = vector.load %arg9[%c2_125, %c1_126, %c0_127] : memref<6x6x128xf32, #tpu.memory_space<vmem>>, vector<4x4x128xf32>
    %136 = vector.shape_cast %135 : vector<4x4x128xf32> to vector<16x128xf32>
    %137 = arith.truncf %136 : vector<16x128xf32> to vector<16x128xbf16>
    %c7_128 = arith.constant 7 : index
    %c0_129 = arith.constant 0 : index
    %c0_130 = arith.constant 0 : index
    %138 = vector.load %arg5[%c7_128, %c0_129, %c0_130] : memref<9x128x128xbf16, #tpu.memory_space<vmem>>, vector<1x128x128xbf16>
    %139 = vector.shape_cast %138 : vector<1x128x128xbf16> to vector<128x128xbf16>
    %cst_131 = arith.constant dense<0.000000e+00> : vector<16x128xf32>
    %140 = tpu.matmul %137, %139, %cst_131 {dimension_numbers = #tpu.dot_dimension_numbers<[1], [0], [0], [1], [0, 0, 1, 1], [], []>} : vector<16x128xbf16>, vector<128x128xbf16>, vector<16x128xf32> -> vector<16x128xf32>
    %141 = arith.addf %134, %140 : vector<16x128xf32>
    %c2_132 = arith.constant 2 : index
    %c2_133 = arith.constant 2 : index
    %c0_134 = arith.constant 0 : index
    %142 = vector.load %arg9[%c2_132, %c2_133, %c0_134] : memref<6x6x128xf32, #tpu.memory_space<vmem>>, vector<4x4x128xf32>
    %143 = vector.shape_cast %142 : vector<4x4x128xf32> to vector<16x128xf32>
    %144 = arith.truncf %143 : vector<16x128xf32> to vector<16x128xbf16>
    %c8_135 = arith.constant 8 : index
    %c0_136 = arith.constant 0 : index
    %c0_137 = arith.constant 0 : index
    %145 = vector.load %arg5[%c8_135, %c0_136, %c0_137] : memref<9x128x128xbf16, #tpu.memory_space<vmem>>, vector<1x128x128xbf16>
    %146 = vector.shape_cast %145 : vector<1x128x128xbf16> to vector<128x128xbf16>
    %cst_138 = arith.constant dense<0.000000e+00> : vector<16x128xf32>
    %147 = tpu.matmul %144, %146, %cst_138 {dimension_numbers = #tpu.dot_dimension_numbers<[1], [0], [0], [1], [0, 0, 1, 1], [], []>} : vector<16x128xbf16>, vector<128x128xbf16>, vector<16x128xf32> -> vector<16x128xf32>
    %148 = arith.addf %141, %147 : vector<16x128xf32>
    %c0_139 = arith.constant 0 : index
    %c0_140 = arith.constant 0 : index
    %149 = vector.load %arg6[%c0_139, %c0_140] : memref<1x128xf32, #tpu.memory_space<vmem>>, vector<1x128xf32>
    %150 = vector.broadcast %149 : vector<1x128xf32> to vector<16x128xf32>
    %151 = arith.mulf %148, %150 : vector<16x128xf32>
    %c0_141 = arith.constant 0 : index
    %c0_142 = arith.constant 0 : index
    %152 = vector.load %arg7[%c0_141, %c0_142] : memref<1x128xf32, #tpu.memory_space<vmem>>, vector<1x128xf32>
    %153 = vector.broadcast %152 : vector<1x128xf32> to vector<16x128xf32>
    %154 = arith.addf %151, %153 : vector<16x128xf32>
    %c0_143 = arith.constant 0 : index
    %c1_144 = arith.constant 1 : index
    %c1_145 = arith.constant 1 : index
    %c0_146 = arith.constant 0 : index
    %155 = vector.load %arg1[%c0_143, %c1_144, %c1_145, %c0_146] : memref<1x6x6x128xf32, #tpu.memory_space<vmem>>, vector<1x4x4x128xf32>
    %156 = vector.shape_cast %155 : vector<1x4x4x128xf32> to vector<4x4x128xf32>
    %157 = vector.shape_cast %156 : vector<4x4x128xf32> to vector<16x128xf32>
    %158 = arith.addf %154, %157 : vector<16x128xf32>
    %cst_147 = arith.constant 0.000000e+00 : f32
    %159 = vector.broadcast %cst_147 : f32 to vector<16x128xf32>
    %160 = arith.maximumf %158, %159 : vector<16x128xf32>
    %c0_148 = arith.constant 0 : index
    %c0_149 = arith.constant 0 : index
    %c0_150 = arith.constant 0 : index
    %161 = vector.load %arg8[%c0_148, %c0_149, %c0_150] : memref<1x16x128xf32, #tpu.memory_space<vmem>>, vector<1x16x128xf32>
    %162 = vector.shape_cast %161 : vector<1x16x128xf32> to vector<16x128xf32>
    %163 = vector.shape_cast %160 : vector<16x128xf32> to vector<1x16x128xf32>
    tpu.vector_store %arg8[%c0_148, %c0_149, %c0_150], %163 {strides = array<i32>} : memref<1x16x128xf32, #tpu.memory_space<vmem>>, vector<1x16x128xf32>,
    return
  }
  func.func @transform_0(%arg0: i32) -> (i32, i32, i32, i32) {
    %c0_i32 = arith.constant 0 : i32
    %c0_i32_0 = arith.constant 0 : i32
    %c0_i32_1 = arith.constant 0 : i32
    %c0_i32_2 = arith.constant 0 : i32
    return %arg0, %c0_i32, %c0_i32_0, %c0_i32_1 : i32, i32, i32, i32
  }
  func.func @transform_1(%arg0: i32) -> (i32, i32, i32) {
    %c0_i32 = arith.constant 0 : i32
    %c0_i32_0 = arith.constant 0 : i32
    %c0_i32_1 = arith.constant 0 : i32
    %c0_i32_2 = arith.constant 0 : i32
    return %c0_i32, %c0_i32_0, %c0_i32_1 : i32, i32, i32
  }
  func.func @transform_2(%arg0: i32) -> (i32, i32) {
    %c0_i32 = arith.constant 0 : i32
    %c0_i32_0 = arith.constant 0 : i32
    %c0_i32_1 = arith.constant 0 : i32
    return %c0_i32, %c0_i32_0 : i32, i32
  }
  func.func @transform_3(%arg0: i32) -> (i32, i32) {
    %c0_i32 = arith.constant 0 : i32
    %c0_i32_0 = arith.constant 0 : i32
    %c0_i32_1 = arith.constant 0 : i32
    return %c0_i32, %c0_i32_0 : i32, i32
  }
  func.func @transform_4(%arg0: i32) -> (i32, i32, i32) {
    %c0_i32 = arith.constant 0 : i32
    %c0_i32_0 = arith.constant 0 : i32
    %c0_i32_1 = arith.constant 0 : i32
    %c0_i32_2 = arith.constant 0 : i32
    return %c0_i32, %c0_i32_0, %c0_i32_1 : i32, i32, i32
  }
  func.func @transform_5(%arg0: i32) -> (i32, i32) {
    %c0_i32 = arith.constant 0 : i32
    %c0_i32_0 = arith.constant 0 : i32
    %c0_i32_1 = arith.constant 0 : i32
    return %c0_i32, %c0_i32_0 : i32, i32
  }
  func.func @transform_6(%arg0: i32) -> (i32, i32) {
    %c0_i32 = arith.constant 0 : i32
    %c0_i32_0 = arith.constant 0 : i32
    %c0_i32_1 = arith.constant 0 : i32
    return %c0_i32, %c0_i32_0 : i32, i32
  }
  func.func @transform_7(%arg0: i32) -> (i32, i32, i32) {
    %c0_i32 = arith.constant 0 : i32
    %c0_i32_0 = arith.constant 0 : i32
    %c0_i32_1 = arith.constant 0 : i32
    return %arg0, %c0_i32, %c0_i32_0 : i32, i32, i32
  }
}

</mosaic_0001>

<bundles_post_ra>
// kernel: resnet18_lp_forward.7
= control target key start
LH: loop header
LB: loop body
LE: loop exit
PB: predicated region body
PF: predicated region fallthrough
CT: control target
= control target key end

     0   :  { %s1181_s15 = smov 0   ;;  %s1427_s0 = inlined_call_operand.vmem [shape: bf16[512,256], index: 0, kind: input, shape index: {}]   ;;  %s1428_s1 = inlined_call_operand.vmem [shape: bf16[256,64], index: 1, kind: input, shape index: {}]   ;;  %s1429_s2 = inlined_call_operand.vmem [shape: f32[1,64], index: 2, kind: input, shape index: {}]   ;;  %s1430_s3 = inlined_call_operand.vmem [shape: f32[1,64], index: 3, kind: input, shape index: {}]   ;;  %s1431_s4 = inlined_call_operand.vmem [shape: f32[512,64], index: 4, kind: output, shape index: {}]  }
   0x1 LB: > { %s885_s16 = sadd.s32 4294967295, %s1154_s15   ;;  %p889_p0 = scmp.ge.s32.totalorder %s1154_s15, 1  ;;  %s1154_s15 = sphi %s1181_s15, %s14_s15  }
   0x2   : > { %p164_p1 = scmp.lt.s32.totalorder %s1154_s15, 3 }
   0x4   : > { %p165_p2 = pnand %p889_p0, %p164_p1 }
   0x5   : > { %s890_s19 = sshll.u32 (!%p165_p2), %s885_s16, 5 }
   0x6   : > { %168 = sbr.rel (%p165_p2) target bundleno = 308 (0x134), region = 36  ;;  %p192_p3 = scmp.lt.s32.totalorder (!%p165_p2), %s890_s19, 63 }
   0xb   : > { %v1084_v0 = vld [vmem:[%s1428_s1 + $0x78] sm:$0xff]   ;;  %v1086_v2 = vld [vmem:[%s1428_s1 + $0x70] sm:$0xff]   ;;  %v1088_v4 = vld [vmem:[%s1428_s1 + $0x68] sm:$0xff]   ;;  %s1433_s19 = smov (!%p192_p3, %s890_s19), 63  ;;  %vm796_vm0 = vcmask 523264  }
   0xc   : > { %v1085_v1 = vld [vmem:[%s1428_s1 + $0x38] sm:$0xff]   ;;  %948 = vmatprep.subr.bf16.mxu0 %v1084_v0  ;;  %1060 = vmatprep.subr.bf16.mxu1 %v1084_v0  ;;  %v1087_v3 = vld [vmem:[%s1428_s1 + $0x30] sm:$0xff]   ;;  %v1089_v5 = vld [vmem:[%s1428_s1 + $0x28] sm:$0xff]   ;;  %s947_s8 = sshll.u32 %s1433_s19, 3 }
   0xd   : > { %949 = vmatpush3.bf16.msra.mxu0 %v1085_v1  ;;  %1068 = vmatpush3.bf16.msra.mxu1 %v1085_v1  ;;  %v1090_v6 = vld [vmem:[%s1428_s1 + $0x60] sm:$0xff]   ;;  %v1092_v8 = vld [vmem:[%s1428_s1 + $0x58] sm:$0xff]   ;;  %s1224_s13 = scalar_lea.vmem %s1427_s0, %s947_s8  ;;  %v1094_v10 = vld [vmem:[%s1428_s1 + $0x50] sm:$0xff]   ;;  %s1298_s11 = scalar_lea.vmem %s1431_s4, %s947_s8 }
   0xe   : > { %950 = vmatprep.subr.bf16.mxu0 %v1086_v2  ;;  %1061 = vmatprep.subr.bf16.mxu1 %v1086_v2  ;;  %v1091_v7 = vld [vmem:[%s1428_s1 + $0x20] sm:$0xff]   ;;  %v1093_v9 = vld [vmem:[%s1428_s1 + $0x18] sm:$0xff]   ;;  %v1095_v13 = vld [vmem:[%s1428_s1 + $0x10] sm:$0xff]  }
   0xf   : > { %v1102_v11 = vld [vmem:[%s1224_s13 + $0x4] ss:$8 sps:$4 sm:$0xff]   ;;  %v1100_v18 = vld [vmem:[%s1224_s13] ss:$8 sps:$4 sm:$0xff]   ;;  %v1106_v20 = vld [vmem:[%s1224_s13 + $0x14] ss:$8 sps:$4 sm:$0xff]  }
  0x10   : > { %v1105_v12 = vld [vmem:[%s1224_s13 + $0x84] ss:$8 sps:$4 sm:$0xff]   ;;  %557 = vmatprep.mubr.bf16.mxu0 %v1102_v11  ;;  %v1103_v19 = vld [vmem:[%s1224_s13 + $0x80] ss:$8 sps:$4 sm:$0xff]   ;;  %v1108_v21 = vld [vmem:[%s1224_s13 + $0x94] ss:$8 sps:$4 sm:$0xff]  }
  0x11   : > { %951 = vmatpush3.bf16.msra.mxu0 %v1087_v3  ;;  %1069 = vmatpush3.bf16.msra.mxu1 %v1087_v3  ;;  %v1096_v14 = vld [vmem:[%s1428_s1 + $0x48] sm:$0xff]   ;;  %v1098_v16 = vld [vmem:[%s1428_s1 + $0x40] sm:$0xff]   ;;  %v1110_v22 = vld [vmem:[%s1224_s13 + $0x10] ss:$8 sps:$4 sm:$0xff]  }
  0x12   : > { %952 = vmatprep.subr.bf16.mxu0 %v1088_v4  ;;  %1062 = vmatprep.subr.bf16.mxu1 %v1088_v4  ;;  %v1097_v15 = vld [vmem:[%s1428_s1 + $0x8] sm:$0xff]   ;;  %v1099_v17 = vld [vmem:[%s1428_s1] sm:$0xff]   ;;  %v1111_v23 = vld [vmem:[%s1224_s13 + $0x90] ss:$8 sps:$4 sm:$0xff]  }
  0x13   : > { %621 = vmatprep.mubr.bf16.mxu1 %v1105_v12  ;;  %v1112_v24 = vld [vmem:[%s1224_s13 + $0x24] ss:$8 sps:$4 sm:$0xff]   ;;  %v1116_v26 = vld [vmem:[%s1224_s13 + $0x20] ss:$8 sps:$4 sm:$0xff]   ;;  %v1118_v28 = vld [vmem:[%s1224_s13 + $0x34] ss:$8 sps:$4 sm:$0xff]  }
  0x14   : > { %v1114_v25 = vld [vmem:[%s1224_s13 + $0xa4] ss:$8 sps:$4 sm:$0xff]   ;;  %v1117_v27 = vld [vmem:[%s1224_s13 + $0xa0] ss:$8 sps:$4 sm:$0xff]   ;;  %v1120_v29 = vld [vmem:[%s1224_s13 + $0xb4] ss:$8 sps:$4 sm:$0xff]  }
  0x15   : > { %953 = vmatpush3.bf16.msra.mxu0 %v1089_v5  ;;  %1070 = vmatpush3.bf16.msra.mxu1 %v1089_v5  ;;  %v1122_v30 = vld [vmem:[%s1224_s13 + $0x30] ss:$8 sps:$4 sm:$0xff]   ;;  %v1124_v32 = vld [vmem:[%s1224_s13 + $0x44] ss:$8 sps:$4 sm:$0xff]   ;;  %v1128_v34 = vld [vmem:[%s1224_s13 + $0x40] ss:$8 sps:$4 sm:$0xff]  }
  0x16   : > { %954 = vmatprep.subr.bf16.mxu0 %v1090_v6  ;;  %1063 = vmatprep.subr.bf16.mxu1 %v1090_v6  ;;  %v1123_v31 = vld [vmem:[%s1224_s13 + $0xb0] ss:$8 sps:$4 sm:$0xff]   ;;  %v1126_v33 = vld [vmem:[%s1224_s13 + $0xc4] ss:$8 sps:$4 sm:$0xff]   ;;  %v1129_v35 = vld [vmem:[%s1224_s13 + $0xc0] ss:$8 sps:$4 sm:$0xff]  }
  0x17   : > { %v1130_v36 = vld [vmem:[%s1224_s13 + $0x54] ss:$8 sps:$4 sm:$0xff]   ;;  %v1134_v38 = vld [vmem:[%s1224_s13 + $0x50] ss:$8 sps:$4 sm:$0xff]   ;;  %v1136_v40 = vld [vmem:[%s1224_s13 + $0x64] ss:$8 sps:$4 sm:$0xff]  }
  0x18   : > { %v1132_v37 = vld [vmem:[%s1224_s13 + $0xd4] ss:$8 sps:$4 sm:$0xff]   ;;  %v1135_v39 = vld [vmem:[%s1224_s13 + $0xd0] ss:$8 sps:$4 sm:$0xff]   ;;  %v1138_v41 = vld [vmem:[%s1224_s13 + $0xe4] ss:$8 sps:$4 sm:$0xff]  }
  0x19   : > { %955 = vmatpush3.bf16.msra.mxu0 %v1091_v7  ;;  %1071 = vmatpush3.bf16.msra.mxu1 %v1091_v7  ;;  %v1140_v42 = vld [vmem:[%s1224_s13 + $0x60] ss:$8 sps:$4 sm:$0xff]   ;;  %v1142_v44 = vld [vmem:[%s1224_s13 + $0x74] ss:$8 sps:$4 sm:$0xff]   ;;  %v1146_v46 = vld [vmem:[%s1224_s13 + $0x70] ss:$8 sps:$4 sm:$0xff]  }
  0x1a   : > { %956 = vmatprep.subr.bf16.mxu0 %v1092_v8  ;;  %1064 = vmatprep.subr.bf16.mxu1 %v1092_v8  ;;  %v1141_v43 = vld [vmem:[%s1224_s13 + $0xe0] ss:$8 sps:$4 sm:$0xff]   ;;  %v1144_v45 = vld [vmem:[%s1224_s13 + $0xf4] ss:$8 sps:$4 sm:$0xff]   ;;  %v1147_v47 = vld [vmem:[%s1224_s13 + $0xf0] ss:$8 sps:$4 sm:$0xff]  }
  0x1b   : > { %v1282_v51 = vld [vmem:[%s1429_s2] ss:$0 sm:$0xff] }
  0x1c   : > { %v1287_v55 = vld [vmem:[%s1430_s3] ss:$0 sm:$0xff] }
  0x1d   : > { %957 = vmatpush3.bf16.msra.mxu0 %v1093_v9  ;;  %1072 = vmatpush3.bf16.msra.mxu1 %v1093_v9 }
  0x1e   : > { %958 = vmatprep.subr.bf16.mxu0 %v1094_v10  ;;  %1065 = vmatprep.subr.bf16.mxu1 %v1094_v10 }
  0x21   : > { %959 = vmatpush3.bf16.msra.mxu0 %v1095_v13  ;;  %1073 = vmatpush3.bf16.msra.mxu1 %v1095_v13 }
  0x22   : > { %960 = vmatprep.subr.bf16.mxu0 %v1096_v14  ;;  %1066 = vmatprep.subr.bf16.mxu1 %v1096_v14 }
  0x25   : > { %961 = vmatpush3.bf16.msra.mxu0 %v1097_v15  ;;  %1074 = vmatpush3.bf16.msra.mxu1 %v1097_v15 }
  0x26   : > { %962 = vmatprep.subr.bf16.mxu0 %v1098_v16  ;;  %1067 = vmatprep.subr.bf16.mxu1 %v1098_v16 }
  0x29   : > { %963 = vmatpush3.bf16.msra.mxu0 %v1099_v17  ;;  %1075 = vmatpush3.bf16.msra.mxu1 %v1099_v17 }
  0x2c   : > { %558 = vmatmul.mubr.bf16.vlgmr.msra.gmra.mxu0 %v1100_v18  ;;  %622 = vmatmul.mubr.bf16.vlgmr.msra.gmra.mxu1 %v1103_v19 }
  0x2d   : > { %565 = vmatprep.mubr.bf16.mxu0 %v1106_v20  ;;  %629 = vmatprep.mubr.bf16.mxu1 %v1108_v21 }
  0x34   : > { %566 = vmatmul.mubr.bf16.gmra.mxu0 %v1110_v22  ;;  %630 = vmatmul.mubr.bf16.gmra.mxu1 %v1111_v23 }
  0x35   : > { %573 = vmatprep.mubr.bf16.mxu0 %v1112_v24  ;;  %637 = vmatprep.mubr.bf16.mxu1 %v1114_v25 }
  0x3c   : > { %574 = vmatmul.mubr.bf16.gmra.mxu0 %v1116_v26  ;;  %638 = vmatmul.mubr.bf16.gmra.mxu1 %v1117_v27 }
  0x3d   : > { %581 = vmatprep.mubr.bf16.mxu0 %v1118_v28  ;;  %645 = vmatprep.mubr.bf16.mxu1 %v1120_v29 }
  0x44   : > { %582 = vmatmul.mubr.bf16.gmra.mxu0 %v1122_v30  ;;  %646 = vmatmul.mubr.bf16.gmra.mxu1 %v1123_v31 }
  0x45   : > { %589 = vmatprep.mubr.bf16.mxu0 %v1124_v32  ;;  %653 = vmatprep.mubr.bf16.mxu1 %v1126_v33 }
  0x4c   : > { %590 = vmatmul.mubr.bf16.gmra.mxu0 %v1128_v34  ;;  %654 = vmatmul.mubr.bf16.gmra.mxu1 %v1129_v35 }
  0x4d   : > { %597 = vmatprep.mubr.bf16.mxu0 %v1130_v36  ;;  %661 = vmatprep.mubr.bf16.mxu1 %v1132_v37 }
  0x54   : > { %598 = vmatmul.mubr.bf16.gmra.mxu0 %v1134_v38  ;;  %662 = vmatmul.mubr.bf16.gmra.mxu1 %v1135_v39 }
  0x55   : > { %605 = vmatprep.mubr.bf16.mxu0 %v1136_v40  ;;  %669 = vmatprep.mubr.bf16.mxu1 %v1138_v41 }
  0x5c   : > { %606 = vmatmul.mubr.bf16.gmra.mxu0 %v1140_v42  ;;  %670 = vmatmul.mubr.bf16.gmra.mxu1 %v1141_v43 }
  0x5d   : > { %613 = vmatprep.mubr.bf16.mxu0 %v1142_v44  ;;  %677 = vmatprep.mubr.bf16.mxu1 %v1144_v45 }
  0x64   : > { %614 = vmatmul.mubr.bf16.gmra.mxu0 %v1146_v46  ;;  %678 = vmatmul.mubr.bf16.gmra.mxu1 %v1147_v47 }
  0xec   : > { %v964_v48 = vpop.f32.mrf.mxu0  ;;  %v1012_v49 = vpop.f32.mrf.mxu1 }
  0xee   : > { %v965_v50 = vpop.f32.mrf.mxu0  ;;  %v1013_v52 = vpop.f32.mrf.mxu1 }
  0xef   : > { %v966_v53 = vadd.f32 %v965_v50, %v964_v48  ;;  %v1014_v54 = vadd.f32 %v1013_v52, %v1012_v49 }
  0xf0   : > { %v967_v56 = vpop.f32.mrf.mxu0  ;;  %v1015_v57 = vpop.f32.mrf.mxu1 }
  0xf1   : > { %v693_v58 = vmul.f32 %v966_v53, %v1282_v51  ;;  %v709_v59 = vmul.f32 %v1014_v54, %v1282_v51 }
  0xf2   : > { %v968_v60 = vpop.f32.mrf.mxu0  ;;  %v1016_v61 = vpop.f32.mrf.mxu1 }
  0xf3   : > { %v732_v62 = vadd.f32 %v1287_v55, %v693_v58  ;;  %v748_v63 = vadd.f32 %v1287_v55, %v709_v59  ;;  %v969_v0 = vadd.f32 %v968_v60, %v967_v56  ;;  %v1017_v1 = vadd.f32 %v1016_v61, %v1015_v57 }
  0xf4   : > { %v970_v2 = vpop.f32.mrf.mxu0  ;;  %v1018_v3 = vpop.f32.mrf.mxu1 }
  0xf5   : > { %v764_v4 = vmax.f32 %v732_v62, 0.0  ;;  %v780_v5 = vmax.f32 %v748_v63, 0.0  ;;  %v694_v6 = vmul.f32 %v969_v0, %v1282_v51  ;;  %v710_v7 = vmul.f32 %v1017_v1, %v1282_v51 }
  0xf6   : > { %v971_v8 = vpop.f32.mrf.mxu0  ;;  %v1019_v9 = vpop.f32.mrf.mxu1 }
  0xf7   : > { %797 = vst.msk [vmem:[%s1298_s11] sm:$0xff] %vm796_vm0, %v764_v4  ;;  %813 = vst.msk [vmem:[%s1298_s11 + $0x80] sm:$0xff] %vm796_vm0, %v780_v5  ;;  %v733_v10 = vadd.f32 %v1287_v55, %v694_v6  ;;  %v749_v11 = vadd.f32 %v1287_v55, %v710_v7  ;;  %v972_v12 = vadd.f32 %v971_v8, %v970_v2 }
  0xf8   : > { %v1020_v13 = vadd.f32 %v1019_v9, %v1018_v3  ;;  %v973_v14 = vpop.f32.mrf.mxu0  ;;  %v1021_v15 = vpop.f32.mrf.mxu1 }
  0xf9   : > { %v765_v16 = vmax.f32 %v733_v10, 0.0  ;;  %v781_v17 = vmax.f32 %v749_v11, 0.0  ;;  %v695_v18 = vmul.f32 %v972_v12, %v1282_v51 }
  0xfa   : > { %v711_v19 = vmul.f32 %v1020_v13, %v1282_v51  ;;  %v974_v20 = vpop.f32.mrf.mxu0  ;;  %v1022_v21 = vpop.f32.mrf.mxu1 }
  0xfb   : > { %798 = vst.msk [vmem:[%s1298_s11 + $0x8] sm:$0xff] %vm796_vm0, %v765_v16  ;;  %814 = vst.msk [vmem:[%s1298_s11 + $0x88] sm:$0xff] %vm796_vm0, %v781_v17  ;;  %v734_v22 = vadd.f32 %v1287_v55, %v695_v18  ;;  %v975_v24 = vadd.f32 %v974_v20, %v973_v14  ;;  %v1023_v25 = vadd.f32 %v1022_v21, %v1021_v15 }
  0xfc   : > { %v750_v23 = vadd.f32 %v1287_v55, %v711_v19  ;;  %v976_v26 = vpop.f32.mrf.mxu0  ;;  %v1024_v27 = vpop.f32.mrf.mxu1 }
  0xfd   : > { %v766_v28 = vmax.f32 %v734_v22, 0.0  ;;  %v696_v30 = vmul.f32 %v975_v24, %v1282_v51  ;;  %v712_v31 = vmul.f32 %v1023_v25, %v1282_v51 }
  0xfe   : > { %v782_v29 = vmax.f32 %v750_v23, 0.0  ;;  %v977_v32 = vpop.f32.mrf.mxu0  ;;  %v1025_v33 = vpop.f32.mrf.mxu1 }
  0xff   : > { %799 = vst.msk [vmem:[%s1298_s11 + $0x10] sm:$0xff] %vm796_vm0, %v766_v28  ;;  %v735_v34 = vadd.f32 %v1287_v55, %v696_v30  ;;  %v751_v35 = vadd.f32 %v1287_v55, %v712_v31  ;;  %v978_v36 = vadd.f32 %v977_v32, %v976_v26  ;;  %v1026_v37 = vadd.f32 %v1025_v33, %v1024_v27 }
 0x100   : > { %815 = vst.msk [vmem:[%s1298_s11 + $0x90] sm:$0xff] %vm796_vm0, %v782_v29  ;;  %v979_v38 = vpop.f32.mrf.mxu0  ;;  %v1027_v39 = vpop.f32.mrf.mxu1 }
 0x101   : > { %v767_v40 = vmax.f32 %v735_v34, 0.0  ;;  %v783_v41 = vmax.f32 %v751_v35, 0.0  ;;  %v697_v42 = vmul.f32 %v978_v36, %v1282_v51  ;;  %v713_v43 = vmul.f32 %v1026_v37, %v1282_v51 }
 0x102   : > { %v980_v44 = vpop.f32.mrf.mxu0  ;;  %v1028_v45 = vpop.f32.mrf.mxu1 }
 0x103   : > { %800 = vst.msk [vmem:[%s1298_s11 + $0x18] sm:$0xff] %vm796_vm0, %v767_v40  ;;  %816 = vst.msk [vmem:[%s1298_s11 + $0x98] sm:$0xff] %vm796_vm0, %v783_v41  ;;  %v736_v46 = vadd.f32 %v1287_v55, %v697_v42  ;;  %v752_v47 = vadd.f32 %v1287_v55, %v713_v43  ;;  %v981_v48 = vadd.f32 %v980_v44, %v979_v38 }
 0x104   : > { %v1029_v49 = vadd.f32 %v1028_v45, %v1027_v39  ;;  %v982_v50 = vpop.f32.mrf.mxu0  ;;  %v1030_v52 = vpop.f32.mrf.mxu1 }
 0x105   : > { %v768_v53 = vmax.f32 %v736_v46, 0.0  ;;  %v784_v54 = vmax.f32 %v752_v47, 0.0  ;;  %v698_v56 = vmul.f32 %v981_v48, %v1282_v51 }
 0x106   : > { %v714_v57 = vmul.f32 %v1029_v49, %v1282_v51  ;;  %v983_v58 = vpop.f32.mrf.mxu0  ;;  %v1031_v59 = vpop.f32.mrf.mxu1 }
 0x107   : > { %801 = vst.msk [vmem:[%s1298_s11 + $0x20] sm:$0xff] %vm796_vm0, %v768_v53  ;;  %817 = vst.msk [vmem:[%s1298_s11 + $0xa0] sm:$0xff] %vm796_vm0, %v784_v54  ;;  %v737_v60 = vadd.f32 %v1287_v55, %v698_v56  ;;  %v984_v62 = vadd.f32 %v983_v58, %v982_v50  ;;  %v1032_v63 = vadd.f32 %v1031_v59, %v1030_v52 }
 0x108   : > { %v753_v61 = vadd.f32 %v1287_v55, %v714_v57  ;;  %v985_v0 = vpop.f32.mrf.mxu0  ;;  %v1033_v1 = vpop.f32.mrf.mxu1 }
 0x109   : > { %v769_v2 = vmax.f32 %v737_v60, 0.0  ;;  %v699_v4 = vmul.f32 %v984_v62, %v1282_v51  ;;  %v715_v5 = vmul.f32 %v1032_v63, %v1282_v51 }
 0x10a   : > { %v785_v3 = vmax.f32 %v753_v61, 0.0  ;;  %v986_v6 = vpop.f32.mrf.mxu0  ;;  %v1034_v7 = vpop.f32.mrf.mxu1 }
 0x10b   : > { %802 = vst.msk [vmem:[%s1298_s11 + $0x28] sm:$0xff] %vm796_vm0, %v769_v2  ;;  %v738_v8 = vadd.f32 %v1287_v55, %v699_v4  ;;  %v754_v9 = vadd.f32 %v1287_v55, %v715_v5  ;;  %v987_v10 = vadd.f32 %v986_v6, %v985_v0  ;;  %v1035_v11 = vadd.f32 %v1034_v7, %v1033_v1 }
 0x10c   : > { %818 = vst.msk [vmem:[%s1298_s11 + $0xa8] sm:$0xff] %vm796_vm0, %v785_v3  ;;  %v988_v12 = vpop.f32.mrf.mxu0  ;;  %v1036_v13 = vpop.f32.mrf.mxu1 }
 0x10d   : > { %v770_v14 = vmax.f32 %v738_v8, 0.0  ;;  %v786_v15 = vmax.f32 %v754_v9, 0.0  ;;  %v700_v16 = vmul.f32 %v987_v10, %v1282_v51  ;;  %v716_v17 = vmul.f32 %v1035_v11, %v1282_v51 }
 0x10e   : > { %v989_v18 = vpop.f32.mrf.mxu0  ;;  %v1037_v19 = vpop.f32.mrf.mxu1 }
 0x10f   : > { %803 = vst.msk [vmem:[%s1298_s11 + $0x30] sm:$0xff] %vm796_vm0, %v770_v14  ;;  %819 = vst.msk [vmem:[%s1298_s11 + $0xb0] sm:$0xff] %vm796_vm0, %v786_v15  ;;  %v739_v20 = vadd.f32 %v1287_v55, %v700_v16  ;;  %v755_v21 = vadd.f32 %v1287_v55, %v716_v17  ;;  %v990_v22 = vadd.f32 %v989_v18, %v988_v12 }
 0x110   : > { %v1038_v23 = vadd.f32 %v1037_v19, %v1036_v13  ;;  %v991_v24 = vpop.f32.mrf.mxu0  ;;  %v1039_v25 = vpop.f32.mrf.mxu1 }
 0x111   : > { %v771_v26 = vmax.f32 %v739_v20, 0.0  ;;  %v787_v27 = vmax.f32 %v755_v21, 0.0  ;;  %v701_v28 = vmul.f32 %v990_v22, %v1282_v51 }
 0x112   : > { %v717_v29 = vmul.f32 %v1038_v23, %v1282_v51  ;;  %v992_v30 = vpop.f32.mrf.mxu0  ;;  %v1040_v31 = vpop.f32.mrf.mxu1 }
 0x113   : > { %804 = vst.msk [vmem:[%s1298_s11 + $0x38] sm:$0xff] %vm796_vm0, %v771_v26  ;;  %820 = vst.msk [vmem:[%s1298_s11 + $0xb8] sm:$0xff] %vm796_vm0, %v787_v27  ;;  %v740_v32 = vadd.f32 %v1287_v55, %v701_v28  ;;  %v993_v34 = vadd.f32 %v992_v30, %v991_v24  ;;  %v1041_v35 = vadd.f32 %v1040_v31, %v1039_v25 }
 0x114   : > { %v756_v33 = vadd.f32 %v1287_v55, %v717_v29  ;;  %v994_v36 = vpop.f32.mrf.mxu0  ;;  %v1042_v37 = vpop.f32.mrf.mxu1 }
 0x115   : > { %v772_v38 = vmax.f32 %v740_v32, 0.0  ;;  %v702_v40 = vmul.f32 %v993_v34, %v1282_v51  ;;  %v718_v41 = vmul.f32 %v1041_v35, %v1282_v51 }
 0x116   : > { %v788_v39 = vmax.f32 %v756_v33, 0.0  ;;  %v995_v42 = vpop.f32.mrf.mxu0  ;;  %v1043_v43 = vpop.f32.mrf.mxu1 }
 0x117   : > { %805 = vst.msk [vmem:[%s1298_s11 + $0x40] sm:$0xff] %vm796_vm0, %v772_v38  ;;  %v741_v44 = vadd.f32 %v1287_v55, %v702_v40  ;;  %v757_v45 = vadd.f32 %v1287_v55, %v718_v41  ;;  %v996_v46 = vadd.f32 %v995_v42, %v994_v36  ;;  %v1044_v47 = vadd.f32 %v1043_v43, %v1042_v37 }
 0x118   : > { %821 = vst.msk [vmem:[%s1298_s11 + $0xc0] sm:$0xff] %vm796_vm0, %v788_v39  ;;  %v997_v48 = vpop.f32.mrf.mxu0  ;;  %v1045_v49 = vpop.f32.mrf.mxu1 }
 0x119   : > { %v773_v50 = vmax.f32 %v741_v44, 0.0  ;;  %v789_v52 = vmax.f32 %v757_v45, 0.0  ;;  %v703_v53 = vmul.f32 %v996_v46, %v1282_v51  ;;  %v719_v54 = vmul.f32 %v1044_v47, %v1282_v51 }
 0x11a   : > { %v998_v56 = vpop.f32.mrf.mxu0  ;;  %v1046_v57 = vpop.f32.mrf.mxu1 }
 0x11b   : > { %806 = vst.msk [vmem:[%s1298_s11 + $0x48] sm:$0xff] %vm796_vm0, %v773_v50  ;;  %822 = vst.msk [vmem:[%s1298_s11 + $0xc8] sm:$0xff] %vm796_vm0, %v789_v52  ;;  %v742_v58 = vadd.f32 %v1287_v55, %v703_v53  ;;  %v758_v59 = vadd.f32 %v1287_v55, %v719_v54  ;;  %v999_v60 = vadd.f32 %v998_v56, %v997_v48 }
 0x11c   : > { %v1047_v61 = vadd.f32 %v1046_v57, %v1045_v49  ;;  %v1000_v62 = vpop.f32.mrf.mxu0  ;;  %v1048_v63 = vpop.f32.mrf.mxu1 }
 0x11d   : > { %v774_v0 = vmax.f32 %v742_v58, 0.0  ;;  %v790_v1 = vmax.f32 %v758_v59, 0.0  ;;  %v704_v2 = vmul.f32 %v999_v60, %v1282_v51 }
 0x11e   : > { %v720_v3 = vmul.f32 %v1047_v61, %v1282_v51  ;;  %v1001_v4 = vpop.f32.mrf.mxu0  ;;  %v1049_v5 = vpop.f32.mrf.mxu1 }
 0x11f   : > { %807 = vst.msk [vmem:[%s1298_s11 + $0x50] sm:$0xff] %vm796_vm0, %v774_v0  ;;  %823 = vst.msk [vmem:[%s1298_s11 + $0xd0] sm:$0xff] %vm796_vm0, %v790_v1  ;;  %v743_v6 = vadd.f32 %v1287_v55, %v704_v2  ;;  %v1002_v8 = vadd.f32 %v1001_v4, %v1000_v62  ;;  %v1050_v9 = vadd.f32 %v1049_v5, %v1048_v63 }
 0x120   : > { %v759_v7 = vadd.f32 %v1287_v55, %v720_v3  ;;  %v1003_v10 = vpop.f32.mrf.mxu0  ;;  %v1051_v11 = vpop.f32.mrf.mxu1 }
 0x121   : > { %v775_v12 = vmax.f32 %v743_v6, 0.0  ;;  %v705_v14 = vmul.f32 %v1002_v8, %v1282_v51  ;;  %v721_v15 = vmul.f32 %v1050_v9, %v1282_v51 }
 0x122   : > { %v791_v13 = vmax.f32 %v759_v7, 0.0  ;;  %v1004_v16 = vpop.f32.mrf.mxu0  ;;  %v1052_v17 = vpop.f32.mrf.mxu1 }
 0x123   : > { %808 = vst.msk [vmem:[%s1298_s11 + $0x58] sm:$0xff] %vm796_vm0, %v775_v12  ;;  %v744_v18 = vadd.f32 %v1287_v55, %v705_v14  ;;  %v760_v19 = vadd.f32 %v1287_v55, %v721_v15  ;;  %v1005_v20 = vadd.f32 %v1004_v16, %v1003_v10  ;;  %v1053_v21 = vadd.f32 %v1052_v17, %v1051_v11 }
 0x124   : > { %824 = vst.msk [vmem:[%s1298_s11 + $0xd8] sm:$0xff] %vm796_vm0, %v791_v13  ;;  %v1006_v22 = vpop.f32.mrf.mxu0  ;;  %v1054_v23 = vpop.f32.mrf.mxu1 }
 0x125   : > { %v776_v24 = vmax.f32 %v744_v18, 0.0  ;;  %v792_v25 = vmax.f32 %v760_v19, 0.0  ;;  %v706_v26 = vmul.f32 %v1005_v20, %v1282_v51  ;;  %v722_v27 = vmul.f32 %v1053_v21, %v1282_v51 }
 0x126   : > { %v1007_v28 = vpop.f32.mrf.mxu0  ;;  %v1055_v29 = vpop.f32.mrf.mxu1 }
 0x127   : > { %809 = vst.msk [vmem:[%s1298_s11 + $0x60] sm:$0xff] %vm796_vm0, %v776_v24  ;;  %825 = vst.msk [vmem:[%s1298_s11 + $0xe0] sm:$0xff] %vm796_vm0, %v792_v25  ;;  %v745_v30 = vadd.f32 %v1287_v55, %v706_v26  ;;  %v761_v31 = vadd.f32 %v1287_v55, %v722_v27  ;;  %v1008_v32 = vadd.f32 %v1007_v28, %v1006_v22 }
 0x128   : > { %v1056_v33 = vadd.f32 %v1055_v29, %v1054_v23  ;;  %v1009_v34 = vpop.f32.mrf.mxu0  ;;  %v1057_v35 = vpop.f32.mrf.mxu1 }
 0x129   : > { %v777_v36 = vmax.f32 %v745_v30, 0.0  ;;  %v793_v37 = vmax.f32 %v761_v31, 0.0  ;;  %v707_v38 = vmul.f32 %v1008_v32, %v1282_v51 }
 0x12a   : > { %v723_v39 = vmul.f32 %v1056_v33, %v1282_v51  ;;  %v1010_v40 = vpop.f32.mrf.mxu0  ;;  %v1058_v41 = vpop.f32.mrf.mxu1 }
 0x12b   : > { %810 = vst.msk [vmem:[%s1298_s11 + $0x68] sm:$0xff] %vm796_vm0, %v777_v36  ;;  %826 = vst.msk [vmem:[%s1298_s11 + $0xe8] sm:$0xff] %vm796_vm0, %v793_v37  ;;  %v746_v42 = vadd.f32 %v1287_v55, %v707_v38  ;;  %v1011_v44 = vadd.f32 %v1010_v40, %v1009_v34  ;;  %v1059_v45 = vadd.f32 %v1058_v41, %v1057_v35 }
 0x12c   : > { %v762_v43 = vadd.f32 %v1287_v55, %v723_v39 }
 0x12d   : > { %v778_v46 = vmax.f32 %v746_v42, 0.0  ;;  %v708_v48 = vmul.f32 %v1011_v44, %v1282_v51  ;;  %v724_v49 = vmul.f32 %v1059_v45, %v1282_v51 }
 0x12e   : > { %v794_v47 = vmax.f32 %v762_v43, 0.0 }
 0x12f   : > { %811 = vst.msk [vmem:[%s1298_s11 + $0x70] sm:$0xff] %vm796_vm0, %v778_v46  ;;  %v747_v50 = vadd.f32 %v1287_v55, %v708_v48  ;;  %v763_v52 = vadd.f32 %v1287_v55, %v724_v49 }
 0x130   : > { %827 = vst.msk [vmem:[%s1298_s11 + $0xf0] sm:$0xff] %vm796_vm0, %v794_v47 }
 0x131   : > { %v779_v53 = vmax.f32 %v747_v50, 0.0  ;;  %v795_v54 = vmax.f32 %v763_v52, 0.0 }
 0x133   : > { %812 = vst.msk [vmem:[%s1298_s11 + $0x78] sm:$0xff] %vm796_vm0, %v779_v53  ;;  %828 = vst.msk [vmem:[%s1298_s11 + $0xf8] sm:$0xff] %vm796_vm0, %v795_v54 }
 0x134 PF: > { %s14_s15 = sadd.s32 1, %s1154_s15  }
 0x135   : > { %p11_p4 = scmp.ge.s32.totalorder %s14_s15, 4  }
 0x137   :  { %13 = sbr.rel (!%p11_p4) target bundleno = 1 (0x1), region = 66 }

// kernel: resnet18_lp_forward.9
= control target key start
LH: loop header
LB: loop body
LE: loop exit
PB: predicated region body
PF: predicated region fallthrough
CT: control target
= control target key end

     0   :  { %s3681_s24 = smov 0   ;;  %s4352_s0 = inlined_call_operand.vmem [shape: f32[2,10,10,64], index: 0, kind: input, shape index: {}]   ;;  %s4353_s1 = inlined_call_operand.vmem [shape: bf16[9,64,64], index: 1, kind: input, shape index: {}]   ;;  %s4354_s2 = inlined_call_operand.vmem [shape: f32[1,64], index: 2, kind: input, shape index: {}]   ;;  %s4355_s3 = inlined_call_operand.vmem [shape: f32[1,64], index: 3, kind: input, shape index: {}]   ;;  %s4356_s4 = inlined_call_operand.vmem [shape: bf16[9,64,64], index: 4, kind: input, shape index: {}]   ;;  %s4357_s5 = inlined_call_operand.vmem [shape: f32[1,64], index: 5, kind: input, shape index: {}]   ;;  %s4358_s6 = inlined_call_operand.vmem [shape: f32[1,64], index: 6, kind: input, shape index: {}]   ;;  %s4359_s7 = inlined_call_operand.vmem [shape: f32[2,64,64], index: 7, kind: output, shape index: {}]  }
   0x1 LB: > { %s2775_s25 = sadd.s32 4294967295, %s3638_s24   ;;  %p2779_p0 = scmp.ge.s32.totalorder %s3638_s24, 1  ;;  %s3638_s24 = sphi %s3681_s24, %s17_s24  }
   0x2   : > { %p237_p1 = scmp.lt.s32.totalorder %s3638_s24, 3 }
   0x4   : > { %p238_p2 = pnand %p2779_p0, %p237_p1 }
   0x6   : > { %241 = sbr.rel (%p238_p2) target bundleno = 594 (0x252), region = 48 }
   0xb   : > { %v3560_v0 = vld [vmem:[%s4353_s1 + $0x38] sm:$0xff]   ;;  %p269_p3 = scmp.lt.s32.totalorder %s2775_s25, 1  ;;  %v3562_v2 = vld [vmem:[%s4353_s1 + $0x30] sm:$0xff]   ;;  %v3564_v4 = vld [vmem:[%s4353_s1 + $0x28] sm:$0xff]   ;;  %vm345_vm0 = vcmask 523264   ;;  %vm1475_vm1 = vcmask 517120  }
   0xc   : > { %v3561_v1 = vld [vmem:[%s4353_s1 + $0x18] sm:$0xff]   ;;  %3262 = vmatprep.subr.bf16.mxu0 %v3560_v0  ;;  %v3563_v3 = vld [vmem:[%s4353_s1 + $0x10] sm:$0xff]   ;;  %v3565_v5 = vld [vmem:[%s4353_s1 + $0x8] sm:$0xff]  }
   0xd   : > { %s4377_s25 = smov (!%p269_p3, %s2775_s25), 1  ;;  %3278 = vmatprep.subr.bf16.mxu1 %v3561_v1  ;;  %3263 = vmatpush3.bf16.msra.mxu0 %v3560_v0  ;;  %v3566_v6 = vld [vmem:[%s4353_s1 + $0x20] sm:$0xff]   ;;  %v3568_v18 = vld [vmem:[%s4353_s1 + $0x58] sm:$0xff]   ;;  %v3570_v26 = vld [vmem:[%s4353_s1 + $0x50] sm:$0xff]  }
   0xe   : > { %3279 = vmatpush3.bf16.msra.mxu1 %v3561_v1  ;;  %3264 = vmatprep.subr.bf16.mxu0 %v3562_v2  ;;  %s3550_s13 = smul.u32 160, %s4377_s25  ;;  %v3567_v10 = vld [vmem:[%s4353_s1] sm:$0xff]   ;;  %v3569_v19 = vld [vmem:[%s4353_s1 + $0x78] sm:$0xff]   ;;  %v3571_v27 = vld [vmem:[%s4353_s1 + $0x70] sm:$0xff]   ;;  %s3117_s19 = sshll.u32 %s4377_s25, 6 }
   0xf   : > { %3280 = vmatprep.subr.bf16.mxu1 %v3563_v3  ;;  %v3572_v34 = vld [vmem:[%s4353_s1 + $0x48] sm:$0xff]   ;;  %v3574_v40 = vld [vmem:[%s4353_s1 + $0x40] sm:$0xff]   ;;  %v3576_v46 = vld [vmem:[%s4353_s1 + $0x98] sm:$0xff]   ;;  %s4314_s21 = scalar_lea.vmem %s4359_s7, %s3117_s19 }
  0x10   : > { %s3713_s18 = scalar_lea.vmem %s4352_s0, %s3550_s13  ;;  %v3573_v35 = vld [vmem:[%s4353_s1 + $0x68] sm:$0xff]   ;;  %v3575_v41 = vld [vmem:[%s4353_s1 + $0x60] sm:$0xff]   ;;  %v3577_v47 = vld [vmem:[%s4353_s1 + $0xb8] sm:$0xff]  }
  0x11   : > { %3265 = vmatpush3.bf16.msra.mxu0 %v3562_v2  ;;  %v300_v7 = vld [vmem:[%s3713_s18 + $0x1] sm:$0xff]  ;;  %v3720_v8 = vld [vmem:[%s3713_s18 + $0x11] sm:$0xff] }
  0x12   : > { %3281 = vmatpush3.bf16.msra.mxu1 %v3563_v3  ;;  %3266 = vmatprep.subr.bf16.mxu0 %v3564_v4  ;;  %v280_v9 = vld [vmem:[%s3713_s18] sm:$0xff]  ;;  %v308_v11 = vpack.c.bf16 %v3720_v8, %v300_v7  ;;  %v3728_v12 = vld [vmem:[%s3713_s18 + $0x10] sm:$0xff]  ;;  %v3580_v58 = vld [vmem:[%s4353_s1 + $0x88] sm:$0xff]  }
  0x13   : > { %3282 = vmatprep.subr.bf16.mxu1 %v3565_v5  ;;  %v3731_v13 = vld [vmem:[%s3713_s18 + $0x21] sm:$0xff]  ;;  %v288_v14 = vpack.c.bf16 %v3728_v12, %v280_v9  ;;  %v3735_v15 = vld [vmem:[%s3713_s18 + $0x31] sm:$0xff] }
  0x14   : > { %v3738_v16 = vld [vmem:[%s3713_s18 + $0x20] sm:$0xff]  ;;  %3270 = vmatprep.mubr.msk.bf16.mxu0 %vm345_vm0, %v308_v11  ;;  %v3742_v17 = vld [vmem:[%s3713_s18 + $0x30] sm:$0xff]  ;;  %v3753_v20 = vpack.c.bf16 %v3735_v15, %v3731_v13  ;;  %v3581_v60 = vld [vmem:[%s4353_s1 + $0xa8] sm:$0xff]   ;;  %v793_v1 = vpack.c.bf16 %v3731_v13, %v3720_v8 }
  0x15   : > { %3267 = vmatpush3.bf16.msra.mxu0 %v3564_v4  ;;  %3286 = vmatprep.mubr.msk.bf16.mxu1 %vm345_vm0, %v288_v14  ;;  %v3756_v21 = vld [vmem:[%s3713_s18 + $0x41] sm:$0xff]  ;;  %v3760_v22 = vpack.c.bf16 %v3742_v17, %v3738_v16  ;;  %v3763_v23 = vld [vmem:[%s3713_s18 + $0x51] sm:$0xff]  ;;  %v663_v43 = vpack.c.bf16 %v3738_v16, %v3728_v12 }
  0x16   : > { %3283 = vmatpush3.bf16.msra.mxu1 %v3565_v5  ;;  %3268 = vmatprep.subr.bf16.mxu0 %v3566_v6  ;;  %v3766_v24 = vld [vmem:[%s3713_s18 + $0x40] sm:$0xff]  ;;  %v3769_v25 = vld [vmem:[%s3713_s18 + $0x50] sm:$0xff]  ;;  %v3779_v28 = vpack.c.bf16 %v3763_v23, %v3756_v21  ;;  %v3584_v3 = vld [vmem:[%s4353_s1 + $0xd8] sm:$0xff]   ;;  %v794_v5 = vpack.c.bf16 %v3756_v21, %v3735_v15 }
  0x17   : > { %3284 = vmatprep.subr.bf16.mxu1 %v3567_v10  ;;  %v3782_v29 = vld [vmem:[%s3713_s18 + $0x61] sm:$0xff]  ;;  %v3785_v30 = vld [vmem:[%s3713_s18 + $0x71] sm:$0xff]  ;;  %v3791_v31 = vpack.c.bf16 %v3769_v25, %v3766_v24  ;;  %v664_v51 = vpack.c.bf16 %v3766_v24, %v3742_v17 }
  0x18   : > { %v286_v32 = vld [vmem:[%s3713_s18 + $0x60] sm:$0xff]  ;;  %v3797_v33 = vld [vmem:[%s3713_s18 + $0x70] sm:$0xff]  ;;  %v3811_v36 = vpack.c.bf16 %v3785_v30, %v3782_v29  ;;  %v3585_v4 = vld [vmem:[%s4353_s1 + $0xf8] sm:$0xff]   ;;  %v795_v9 = vpack.c.bf16 %v3782_v29, %v3763_v23  ;;  %v3640_v29 = vmov 0.0  }
  0x19   : > { %3269 = vmatpush3.bf16.msra.mxu0 %v3566_v6  ;;  %v524_v37 = vld [vmem:[%s3713_s18 + $0x2] sm:$0xff]  ;;  %v3815_v38 = vld [vmem:[%s3713_s18 + $0x12] sm:$0xff]  ;;  %v3818_v39 = vpack.c.bf16 %v3797_v33, %v286_v32  ;;  %v665_v56 = vpack.c.bf16 %v286_v32, %v3769_v25  ;;  %1481 = vst.msk [vmem:[#allocation2 + $0x30] sm:$0xff] %vm345_vm0, %v3640_v29  ;;  %1474 = vst.msk [vmem:[#allocation2] sm:$0xff] %vm345_vm0, %v3640_v29 }
  0x1a   : > { %3285 = vmatpush3.bf16.msra.mxu1 %v3567_v10  ;;  %3294 = vmatprep.subr.bf16.mxu0 %v3568_v18  ;;  %v532_v42 = vpack.c.bf16 %v3815_v38, %v524_v37  ;;  %v526_v44 = vld [vmem:[%s3713_s18 + $0x22] sm:$0xff]  ;;  %v3835_v45 = vld [vmem:[%s3713_s18 + $0x32] sm:$0xff]  ;;  %1482 = vst.msk [vmem:[#allocation2 + $0x38] sm:$0x3] %vm1475_vm1, %v3640_v29  ;;  %1476 = vst.msk [vmem:[#allocation2 + $0x8] sm:$0x3] %vm1475_vm1, %v3640_v29 }
  0x1b   : > { %3310 = vmatprep.subr.bf16.mxu1 %v3569_v19  ;;  %v528_v48 = vld [vmem:[%s3713_s18 + $0x42] sm:$0xff]  ;;  %v3846_v49 = vpack.c.bf16 %v3835_v45, %v526_v44  ;;  %v3850_v50 = vld [vmem:[%s3713_s18 + $0x52] sm:$0xff]  ;;  %v923_v2 = vpack.c.bf16 %v526_v44, %v3815_v38  ;;  %1477 = vst.msk [vmem:[#allocation2 + $0x10] sm:$0xff] %vm345_vm0, %v3640_v29  ;;  %1479 = vst.msk [vmem:[#allocation2 + $0x20] sm:$0xff] %vm345_vm0, %v3640_v29 }
  0x1c   : > { %3271 = vmatmul.mubr.msk.bf16.vlgmr.msra.gmra.mxu0 %vm345_vm0, %v3753_v20  ;;  %v3578_v52 = vld [vmem:[%s4353_s1 + $0x90] sm:$0xff]   ;;  %v3861_v54 = vpack.c.bf16 %v3850_v50, %v528_v48  ;;  %v530_v55 = vld [vmem:[%s3713_s18 + $0x62] sm:$0xff]  ;;  %v924_v7 = vpack.c.bf16 %v528_v48, %v3835_v45  ;;  %1478 = vst.msk [vmem:[#allocation2 + $0x18] sm:$0x3] %vm1475_vm1, %v3640_v29  ;;  %1480 = vst.msk [vmem:[#allocation2 + $0x28] sm:$0x3] %vm1475_vm1, %v3640_v29 }
  0x1d   : > { %3287 = vmatmul.mubr.msk.bf16.vlgmr.msra.gmra.mxu1 %vm345_vm0, %v3760_v22  ;;  %3295 = vmatpush3.bf16.msra.mxu0 %v3568_v18  ;;  %v3579_v53 = vld [vmem:[%s4353_s1 + $0xb0] sm:$0xff]   ;;  %v3875_v59 = vld [vmem:[%s3713_s18 + $0x80] sm:$0xff]  ;;  %v3588_v11 = vld [vmem:[%s4353_s1 + $0xc8] sm:$0xff]   ;;  %v925_v12 = vpack.c.bf16 %v530_v55, %v3850_v50  ;;  %1483 = vst.msk [vmem:[#allocation2 + $0x40] sm:$0xff] %vm345_vm0, %v3640_v29 }
  0x1e   : > { %3311 = vmatpush3.bf16.msra.mxu1 %v3569_v19  ;;  %3296 = vmatprep.subr.bf16.mxu0 %v3570_v26  ;;  %v3869_v57 = vld [vmem:[%s3713_s18 + $0x72] sm:$0xff]  ;;  %v666_v62 = vpack.c.bf16 %v3875_v59, %v3797_v33  ;;  %v3582_v63 = vld [vmem:[%s4353_s1 + $0x80] sm:$0xff]   ;;  %v3589_v14 = vld [vmem:[%s4353_s1 + $0xe8] sm:$0xff]   ;;  %1484 = vst.msk [vmem:[#allocation2 + $0x48] sm:$0x3] %vm1475_vm1, %v3640_v29 }
  0x1f   : > { %3312 = vmatprep.subr.bf16.mxu1 %v3571_v27  ;;  %3274 = vmatprep.mubr.msk.bf16.mxu0 %vm345_vm0, %v3779_v28  ;;  %v3883_v61 = vpack.c.bf16 %v3869_v57, %v530_v55  ;;  %v3583_v0 = vld [vmem:[%s4353_s1 + $0xa0] sm:$0xff]   ;;  %v3586_v6 = vld [vmem:[%s4353_s1 + $0xd0] sm:$0xff]   ;;  %v3592_v19 = vld [vmem:[%s4353_s1 + $0x118] sm:$0xff]   ;;  %1485 = vst.msk [vmem:[#allocation2 + $0x50] sm:$0xff] %vm345_vm0, %v3640_v29 }
  0x20   : > { %3290 = vmatprep.mubr.msk.bf16.mxu1 %vm345_vm0, %v3791_v31  ;;  %v3587_v8 = vld [vmem:[%s4353_s1 + $0xf0] sm:$0xff]   ;;  %v2854_v10 = vld [vmem:[%s3713_s18 + $0x81] sm:$0xff]  ;;  %1486 = vst.msk [vmem:[#allocation2 + $0x58] sm:$0x3] %vm1475_vm1, %v3640_v29  ;;  %1488 = vst.msk [vmem:[#allocation2 + $0x68] sm:$0x3] %vm1475_vm1, %v3640_v29 }
  0x21   : > { %3297 = vmatpush3.bf16.msra.mxu0 %v3570_v26  ;;  %v2878_v13 = vld [vmem:[%s3713_s18 + $0x82] sm:$0xff]  ;;  %v796_v15 = vpack.c.bf16 %v2854_v10, %v3785_v30  ;;  %v3593_v21 = vld [vmem:[%s4353_s1 + $0x110] sm:$0xff]   ;;  %1487 = vst.msk [vmem:[#allocation2 + $0x60] sm:$0xff] %vm345_vm0, %v3640_v29  ;;  %1489 = vst.msk [vmem:[#allocation2 + $0x70] sm:$0xff] %vm345_vm0, %v3640_v29 }
  0x22   : > { %3313 = vmatpush3.bf16.msra.mxu1 %v3571_v27  ;;  %3298 = vmatprep.subr.bf16.mxu0 %v3572_v34  ;;  %v3590_v16 = vld [vmem:[%s4353_s1 + $0xc0] sm:$0xff]   ;;  %v926_v17 = vpack.c.bf16 %v2878_v13, %v3869_v57  ;;  %v2902_v23 = vld [vmem:[%s3713_s18 + $0x90] sm:$0xff]  ;;  %v3594_v24 = vld [vmem:[%s4353_s1 + $0x108] sm:$0xff]   ;;  %1490 = vst.msk [vmem:[#allocation2 + $0x78] sm:$0x3] %vm1475_vm1, %v3640_v29 }
  0x23   : > { %3314 = vmatprep.subr.bf16.mxu1 %v3573_v35  ;;  %v3591_v18 = vld [vmem:[%s4353_s1 + $0xe0] sm:$0xff]   ;;  %v2926_v25 = vld [vmem:[%s3713_s18 + $0x91] sm:$0xff]  ;;  %1491 = vst.msk [vmem:[#allocation2 + $0x80] sm:$0xff] %vm345_vm0, %v3640_v29  ;;  %1493 = vst.msk [vmem:[#allocation2 + $0x90] sm:$0xff] %vm345_vm0, %v3640_v29 }
  0x24   : > { %3275 = vmatmul.mubr.msk.bf16.gmra.mxu0 %vm345_vm0, %v3811_v36  ;;  %v3595_v26 = vld [vmem:[%s4353_s1 + $0x100] sm:$0xff]   ;;  %v2950_v27 = vld [vmem:[%s3713_s18 + $0x92] sm:$0xff]  ;;  %1492 = vst.msk [vmem:[#allocation2 + $0x88] sm:$0x3] %vm1475_vm1, %v3640_v29  ;;  %1494 = vst.msk [vmem:[#allocation2 + $0x98] sm:$0x3] %vm1475_vm1, %v3640_v29 }
  0x25   : > { %3291 = vmatmul.mubr.msk.bf16.gmra.mxu1 %vm345_vm0, %v3818_v39  ;;  %3299 = vmatpush3.bf16.msra.mxu0 %v3572_v34  ;;  %v3596_v30 = vld [vmem:[%s4356_s4 + $0x38] sm:$0xff]   ;;  %v3598_v32 = vld [vmem:[%s4356_s4 + $0x30] sm:$0xff]   ;;  %v3600_v34 = vld [vmem:[%s4356_s4 + $0x28] sm:$0xff]  }
  0x26   : > { %3315 = vmatpush3.bf16.msra.mxu1 %v3573_v35  ;;  %3300 = vmatprep.subr.bf16.mxu0 %v3574_v40  ;;  %v3599_v33 = vld [vmem:[%s4356_s4 + $0x10] sm:$0xff]   ;;  %v3601_v35 = vld [vmem:[%s4356_s4 + $0x8] sm:$0xff]   ;;  %v3603_v37 = vld [vmem:[%s4356_s4] sm:$0xff]  }
  0x27   : > { %3316 = vmatprep.subr.bf16.mxu1 %v3575_v41  ;;  %3302 = vmatprep.mubr.msk.bf16.mxu0 %vm345_vm0, %v532_v42  ;;  %v4026_v38 = vld [vmem:[%s4356_s4 + $0x58] sm:$0xff]  }
  0x28   : > { %3318 = vmatprep.mubr.msk.bf16.mxu1 %vm345_vm0, %v663_v43  ;;  %4362 = vst [vmem:[#allocation3_spill] sm:$0xff] %v4026_v38 }
  0x29   : > { %3301 = vmatpush3.bf16.msra.mxu0 %v3574_v40 }
  0x2a   : > { %3317 = vmatpush3.bf16.msra.mxu1 %v3575_v41  ;;  %3326 = vmatprep.subr.bf16.mxu0 %v3576_v46 }
  0x2b   : > { %3342 = vmatprep.subr.bf16.mxu1 %v3577_v47 }
  0x2c   : > { %3303 = vmatmul.mubr.msk.bf16.vlgmr.msra.gmra.mxu0 %vm345_vm0, %v3846_v49 }
  0x2d   : > { %3327 = vmatpush3.bf16.msra.mxu0 %v3576_v46  ;;  %3319 = vmatmul.mubr.msk.bf16.vlgmr.msra.gmra.mxu1 %vm345_vm0, %v664_v51 }
  0x2e   : > { %3343 = vmatpush3.bf16.msra.mxu1 %v3577_v47  ;;  %3328 = vmatprep.subr.bf16.mxu0 %v3578_v52 }
  0x2f   : > { %3344 = vmatprep.subr.bf16.mxu1 %v3579_v53  ;;  %3306 = vmatprep.mubr.msk.bf16.mxu0 %vm345_vm0, %v3861_v54 }
  0x30   : > { %3322 = vmatprep.mubr.msk.bf16.mxu1 %vm345_vm0, %v665_v56 }
  0x31   : > { %3329 = vmatpush3.bf16.msra.mxu0 %v3578_v52 }
  0x32   : > { %3345 = vmatpush3.bf16.msra.mxu1 %v3579_v53  ;;  %3330 = vmatprep.subr.bf16.mxu0 %v3580_v58 }
  0x33   : > { %3346 = vmatprep.subr.bf16.mxu1 %v3581_v60 }
  0x34   : > { %3307 = vmatmul.mubr.msk.bf16.gmra.mxu0 %vm345_vm0, %v3883_v61 }
  0x35   : > { %3331 = vmatpush3.bf16.msra.mxu0 %v3580_v58  ;;  %3323 = vmatmul.mubr.msk.bf16.gmra.mxu1 %vm345_vm0, %v666_v62 }
  0x36   : > { %3347 = vmatpush3.bf16.msra.mxu1 %v3581_v60  ;;  %3332 = vmatprep.subr.bf16.mxu0 %v3582_v63 }
  0x37   : > { %3348 = vmatprep.subr.bf16.mxu1 %v3583_v0  ;;  %3334 = vmatprep.mubr.msk.bf16.mxu0 %vm345_vm0, %v793_v1 }
  0x38   : > { %3350 = vmatprep.mubr.msk.bf16.mxu1 %vm345_vm0, %v923_v2 }
  0x39   : > { %3333 = vmatpush3.bf16.msra.mxu0 %v3582_v63 }
  0x3a   : > { %3349 = vmatpush3.bf16.msra.mxu1 %v3583_v0  ;;  %3358 = vmatprep.subr.bf16.mxu0 %v3584_v3 }
  0x3b   : > { %3374 = vmatprep.subr.bf16.mxu1 %v3585_v4 }
  0x3c   : > { %3335 = vmatmul.mubr.msk.bf16.vlgmr.msra.gmra.mxu0 %vm345_vm0, %v794_v5 }
  0x3d   : > { %3359 = vmatpush3.bf16.msra.mxu0 %v3584_v3  ;;  %3351 = vmatmul.mubr.msk.bf16.vlgmr.msra.gmra.mxu1 %vm345_vm0, %v924_v7 }
  0x3e   : > { %3375 = vmatpush3.bf16.msra.mxu1 %v3585_v4  ;;  %3360 = vmatprep.subr.bf16.mxu0 %v3586_v6 }
  0x3f   : > { %3376 = vmatprep.subr.bf16.mxu1 %v3587_v8  ;;  %3338 = vmatprep.mubr.msk.bf16.mxu0 %vm345_vm0, %v795_v9 }
  0x40   : > { %3354 = vmatprep.mubr.msk.bf16.mxu1 %vm345_vm0, %v925_v12 }
  0x41   : > { %3361 = vmatpush3.bf16.msra.mxu0 %v3586_v6 }
  0x42   : > { %3377 = vmatpush3.bf16.msra.mxu1 %v3587_v8  ;;  %3362 = vmatprep.subr.bf16.mxu0 %v3588_v11 }
  0x43   : > { %3378 = vmatprep.subr.bf16.mxu1 %v3589_v14 }
  0x44   : > { %3339 = vmatmul.mubr.msk.bf16.gmra.mxu0 %vm345_vm0, %v796_v15 }
  0x45   : > { %3363 = vmatpush3.bf16.msra.mxu0 %v3588_v11  ;;  %3355 = vmatmul.mubr.msk.bf16.gmra.mxu1 %vm345_vm0, %v926_v17 }
  0x46   : > { %3379 = vmatpush3.bf16.msra.mxu1 %v3589_v14  ;;  %3364 = vmatprep.subr.bf16.mxu0 %v3590_v16 }
  0x47   : > { %3380 = vmatprep.subr.bf16.mxu1 %v3591_v18  ;;  %3366 = vmatprep.mubr.msk.bf16.mxu0 %vm345_vm0, %v3760_v22  ;;  %v1187_v22 = vpack.c.bf16 %v2926_v25, %v2854_v10 }
  0x48   : > { %3382 = vmatprep.mubr.msk.bf16.mxu1 %vm345_vm0, %v3753_v20  ;;  %v1057_v20 = vpack.c.bf16 %v2902_v23, %v3875_v59 }
  0x49   : > { %3365 = vmatpush3.bf16.msra.mxu0 %v3590_v16 }
  0x4a   : > { %3381 = vmatpush3.bf16.msra.mxu1 %v3591_v18  ;;  %3390 = vmatprep.subr.bf16.mxu0 %v3592_v19 }
  0x4b   : > { %3406 = vmatprep.subr.bf16.mxu1 %v3596_v30 }
  0x4c   : > { %3367 = vmatmul.mubr.msk.bf16.vlgmr.msra.gmra.mxu0 %vm345_vm0, %v3791_v31  ;;  %v3597_v31 = vld [vmem:[%s4356_s4 + $0x18] sm:$0xff]  }
  0x4d   : > { %3391 = vmatpush3.bf16.msra.mxu0 %v3592_v19  ;;  %3383 = vmatmul.mubr.msk.bf16.vlgmr.msra.gmra.mxu1 %vm345_vm0, %v3779_v28  ;;  %v1317_v28 = vpack.c.bf16 %v2950_v27, %v2878_v13 }
  0x4e   : > { %3392 = vmatprep.subr.bf16.mxu0 %v3593_v21  ;;  %3370 = vmatprep.mubr.msk.bf16.mxu0 %vm345_vm0, %v3818_v39  ;;  %v4031_v39 = vld [vmem:[%s4356_s4 + $0x78] sm:$0xff]  }
  0x4f   : > { %3386 = vmatprep.mubr.msk.bf16.mxu1 %vm345_vm0, %v3811_v36  ;;  %3407 = vmatpush3.bf16.msra.mxu1 %v3596_v30  ;;  %v3602_v36 = vld [vmem:[%s4356_s4 + $0x20] sm:$0xff]   ;;  %4363 = vst [vmem:[#allocation4_spill] sm:$0xff] %v4031_v39 }
  0x50   : > { %3408 = vmatprep.subr.bf16.mxu1 %v3598_v32 }
  0x51   : > { %3393 = vmatpush3.bf16.msra.mxu0 %v3593_v21 }
  0x52   : > { %3394 = vmatprep.subr.bf16.mxu0 %v3594_v24 }
  0x53   : > { %3409 = vmatpush3.bf16.msra.mxu1 %v3598_v32 }
  0x54   : > { %3371 = vmatmul.mubr.msk.bf16.gmra.mxu0 %vm345_vm0, %v1057_v20  ;;  %3410 = vmatprep.subr.bf16.mxu1 %v3600_v34 }
  0x55   : > { %3395 = vmatpush3.bf16.msra.mxu0 %v3594_v24  ;;  %3387 = vmatmul.mubr.msk.bf16.gmra.mxu1 %vm345_vm0, %v1187_v22 }
  0x56   : > { %3396 = vmatprep.subr.bf16.mxu0 %v3595_v26  ;;  %3398 = vmatprep.mubr.msk.bf16.mxu0 %vm345_vm0, %v3846_v49 }
  0x57   : > { %3411 = vmatpush3.bf16.msra.mxu1 %v3600_v34 }
  0x58   : > { %3412 = vmatprep.subr.bf16.mxu1 %v3602_v36 }
  0x59   : > { %3397 = vmatpush3.bf16.msra.mxu0 %v3595_v26 }
  0x5a   : > { %3422 = vmatprep.subr.bf16.mxu0 %v3597_v31 }
  0x5b   : > { %3413 = vmatpush3.bf16.msra.mxu1 %v3602_v36 }
  0x5c   : > { %3399 = vmatmul.mubr.msk.bf16.vlgmr.msra.gmra.mxu0 %vm345_vm0, %v3861_v54  ;;  %3438 = vmatprep.subr.bf16.mxu1 %v4026_v38 }
  0x5d   : > { %3402 = vmatprep.mubr.msk.bf16.mxu0 %vm345_vm0, %v3883_v61  ;;  %3423 = vmatpush3.bf16.msra.mxu0 %v3597_v31 }
  0x5e   : > { %3424 = vmatprep.subr.bf16.mxu0 %v3599_v33 }
  0x61   : > { %3425 = vmatpush3.bf16.msra.mxu0 %v3599_v33 }
  0x62   : > { %3426 = vmatprep.subr.bf16.mxu0 %v3601_v35 }
  0x64   : > { %3403 = vmatmul.mubr.msk.bf16.gmra.mxu0 %vm345_vm0, %v1317_v28 }
  0x65   : > { %3427 = vmatpush3.bf16.msra.mxu0 %v3601_v35 }
  0x66   : > { %3428 = vmatprep.subr.bf16.mxu0 %v3603_v37 }
  0x69   : > { %3429 = vmatpush3.bf16.msra.mxu0 %v3603_v37 }
  0x6a   : > { %3454 = vmatprep.subr.bf16.mxu0 %v4031_v39 }
  0xdc   : > { %v3272_v40 = vpop.f32.mrf.mxu0 }
  0xdd   : > { %v3288_v41 = vpop.f32.mrf.mxu1 }
  0xde   : > { %v392_v42 = vpop.f32.mrf.mxu0  ;;  %v502_v23 = vadd.f32 %v3288_v41, %v3272_v40 }
  0xdf   : > { %v493_v43 = vpop.f32.mrf.mxu1 }
  0xe0   : > { %v3273_v44 = vpop.f32.mrf.mxu0  ;;  %v494_v20 = vadd.f32 %v493_v43, %v392_v42 }
  0xe1   : > { %v3289_v45 = vpop.f32.mrf.mxu1 }
  0xe2   : > { %v395_v46 = vpop.f32.mrf.mxu0  ;;  %v505_v28 = vadd.f32 %v3289_v45, %v3273_v44 }
  0xe3   : > { %v496_v47 = vpop.f32.mrf.mxu1 }
  0xe4   : > { %v3276_v48 = vpop.f32.mrf.mxu0  ;;  %v497_v32 = vadd.f32 %v496_v47, %v395_v46 }
  0xe5   : > { %v3292_v49 = vpop.f32.mrf.mxu1 }
  0xe6   : > { %v408_v50 = vpop.f32.mrf.mxu0  ;;  %v518_v36 = vadd.f32 %v3292_v49, %v3276_v48 }
  0xe7   : > { %v509_v51 = vpop.f32.mrf.mxu1 }
  0xe8   : > { %v3277_v52 = vpop.f32.mrf.mxu0 }
  0xe9   : > { %v3293_v53 = vpop.f32.mrf.mxu1 }
  0xea   : > { %v4035_v54 = vpop.f32.mrf.mxu0 }
  0xeb   : > { %v4037_v55 = vpop.f32.mrf.mxu1 }
  0xec   : > { %v3304_v56 = vpop.f32.mrf.mxu0  ;;  %v513_v48 = vadd.f32 %v4037_v55, %v4035_v54 }
  0xed   : > { %v3320_v57 = vpop.f32.mrf.mxu1  ;;  %v648_v22 = vadd.f32 %v3304_v56, %v502_v23 }
  0xee   : > { %v615_v58 = vpop.f32.mrf.mxu0 }
  0xef   : > { %v746_v59 = vpop.f32.mrf.mxu1  ;;  %v646_v29 = vadd.f32 %v615_v58, %v494_v20  ;;  %v779_v33 = vadd.f32 %v3320_v57, %v648_v22 }
  0xf0   : > { %v3305_v60 = vpop.f32.mrf.mxu0 }
  0xf1   : > { %v3321_v61 = vpop.f32.mrf.mxu1  ;;  %v649_v34 = vadd.f32 %v3305_v60, %v505_v28  ;;  %v777_v39 = vadd.f32 %v746_v59, %v646_v29 }
  0xf2   : > { %v618_v62 = vpop.f32.mrf.mxu0 }
  0xf3   : > { %v749_v63 = vpop.f32.mrf.mxu1  ;;  %v647_v40 = vadd.f32 %v618_v62, %v497_v32  ;;  %v780_v56 = vadd.f32 %v3321_v61, %v649_v34 }
  0xf4   : > { %v3308_v0 = vpop.f32.mrf.mxu0 }
  0xf5   : > { %v3324_v1 = vpop.f32.mrf.mxu1  ;;  %v652_v42 = vadd.f32 %v3308_v0, %v518_v36  ;;  %v778_v58 = vadd.f32 %v749_v63, %v647_v40 }
  0xf6   : > { %v631_v2 = vpop.f32.mrf.mxu0 }
  0xf7   : > { %v762_v3 = vpop.f32.mrf.mxu1  ;;  %v783_v49 = vadd.f32 %v3324_v1, %v652_v42 }
  0xf8   : > { %v3309_v4 = vpop.f32.mrf.mxu0 }
  0xf9   : > { %v4039_v5 = vpop.f32.mrf.mxu1 }
  0xfa   : > { %v634_v6 = vpop.f32.mrf.mxu0 }
  0xfb   : > { %v4041_v7 = vpop.f32.mrf.mxu1  ;;  %v651_v0 = vadd.f32 %v634_v6, %v513_v48 }
  0xfc   : > { %v3336_v8 = vpop.f32.mrf.mxu0 }
  0xfd   : > { %v3352_v9 = vpop.f32.mrf.mxu1  ;;  %v909_v41 = vadd.f32 %v3336_v8, %v779_v33  ;;  %v782_v55 = vadd.f32 %v4041_v7, %v651_v0  ;;  %v2968_v7 = vld [vmem:[%s4355_s3] ss:$0 sm:$0xff] }
  0xfe   : > { %v876_v10 = vpop.f32.mrf.mxu0 }
  0xff   : > { %v1006_v11 = vpop.f32.mrf.mxu1  ;;  %v907_v23 = vadd.f32 %v876_v10, %v777_v39  ;;  %v1039_v20 = vadd.f32 %v3352_v9, %v909_v41 }
 0x100   : > { %v3337_v12 = vpop.f32.mrf.mxu0 }
 0x101   : > { %v3353_v13 = vpop.f32.mrf.mxu1  ;;  %v910_v46 = vadd.f32 %v3337_v12, %v780_v56  ;;  %v1037_v60 = vadd.f32 %v1006_v11, %v907_v23 }
 0x102   : > { %v879_v14 = vpop.f32.mrf.mxu0 }
 0x103   : > { %v1009_v15 = vpop.f32.mrf.mxu1  ;;  %v908_v62 = vadd.f32 %v879_v14, %v778_v58 }
 0x104   : > { %v3340_v16 = vpop.f32.mrf.mxu0 }
 0x105   : > { %v3356_v17 = vpop.f32.mrf.mxu1  ;;  %v913_v61 = vadd.f32 %v3340_v16, %v783_v49  ;;  %v1038_v10 = vadd.f32 %v1009_v15, %v908_v62 }
 0x106   : > { %v892_v18 = vpop.f32.mrf.mxu0 }
 0x107   : > { %v4043_v19 = vpop.f32.mrf.mxu1  ;;  %v1043_v1 = vadd.f32 %v3356_v17, %v913_v61 }
 0x108   : > { %v3341_v21 = vpop.f32.mrf.mxu0 }
 0x109   : > { %v4045_v24 = vpop.f32.mrf.mxu1 }
 0x10a   : > { %4364 = vst [vmem:[#allocation5_spill] sm:$0xff] %v4045_v24  ;;  %v895_v25 = vpop.f32.mrf.mxu0  ;;  %v510_v24 = vadd.f32 %v509_v51, %v408_v50 }
 0x10b   : > { %v4047_v26 = vpop.f32.mrf.mxu1 }
 0x10c   : > { %4365 = vst [vmem:[#allocation6_spill] sm:$0xff] %v4047_v26  ;;  %v3368_v27 = vpop.f32.mrf.mxu0  ;;  %v521_v26 = vadd.f32 %v3293_v53, %v3277_v52  ;;  %v650_v44 = vadd.f32 %v631_v2, %v510_v24  ;;  %v1040_v52 = vadd.f32 %v3353_v13, %v910_v46 }
 0x10d   : > { %v3384_v30 = vpop.f32.mrf.mxu1  ;;  %v1170_v50 = vadd.f32 %v3368_v27, %v1039_v20 }
 0x10e   : > { %v1137_v31 = vpop.f32.mrf.mxu0  ;;  %v653_v57 = vadd.f32 %v3309_v4, %v521_v26  ;;  %v781_v51 = vadd.f32 %v762_v3, %v650_v44  ;;  %v4056_v3 = vld [vmem:[%s4354_s2] ss:$0 sm:$0xff] }
 0x10f   : > { %v1267_v35 = vpop.f32.mrf.mxu1  ;;  %v1168_v53 = vadd.f32 %v1137_v31, %v1037_v60  ;;  %v1300_v12 = vadd.f32 %v3384_v30, %v1170_v50 }
 0x110   : > { %v3369_v37 = vpop.f32.mrf.mxu0  ;;  %v784_v63 = vadd.f32 %v4039_v5, %v653_v57  ;;  %v911_v8 = vadd.f32 %v892_v18, %v781_v51  ;;  %v912_v18 = vadd.f32 %v895_v25, %v782_v55 }
 0x111   : > { %v3385_v38 = vpop.f32.mrf.mxu1  ;;  %v1171_v54 = vadd.f32 %v3369_v37, %v1040_v52  ;;  %v1298_v6 = vadd.f32 %v1267_v35, %v1168_v53  ;;  %v4366_v26 = vld [vmem:[#allocation5_spill] sm:$0xff] }
 0x112   : > { %v1140_v43 = vpop.f32.mrf.mxu0  ;;  %v914_v4 = vadd.f32 %v3341_v21, %v784_v63  ;;  %v1041_v5 = vadd.f32 %v4043_v19, %v911_v8 }
 0x113   : > { %v1270_v47 = vpop.f32.mrf.mxu1  ;;  %v1169_v13 = vadd.f32 %v1140_v43, %v1038_v10  ;;  %v1301_v21 = vadd.f32 %v3385_v38, %v1171_v54  ;;  %v4367_v33 = vld [vmem:[#allocation6_spill] sm:$0xff]  ;;  %v1504_v10 = vld [vmem:[#allocation2] sm:$0xff] }
 0x114   : > { %v3372_v45 = vpop.f32.mrf.mxu0  ;;  %v1044_v27 = vadd.f32 %v4366_v26, %v914_v4  ;;  %v1042_v34 = vadd.f32 %v4367_v33, %v912_v18  ;;  %v4368_v26 = vld [vmem:[#allocation3_spill] sm:$0xff] }
 0x115   : > { %v3388_v2 = vpop.f32.mrf.mxu1  ;;  %v1174_v15 = vadd.f32 %v3372_v45, %v1043_v1  ;;  %v1299_v30 = vadd.f32 %v1270_v47, %v1169_v13 }
 0x116   : > { %v1153_v59 = vpop.f32.mrf.mxu0 }
 0x117   : > { %v1283_v14 = vpop.f32.mrf.mxu1  ;;  %v1172_v28 = vadd.f32 %v1153_v59, %v1041_v5  ;;  %v1304_v35 = vadd.f32 %v3388_v2, %v1174_v15 }
 0x118   : > { %v3373_v39 = vpop.f32.mrf.mxu0 }
 0x119   : > { %v3389_v31 = vpop.f32.mrf.mxu1  ;;  %v1175_v36 = vadd.f32 %v3373_v39, %v1044_v27  ;;  %v1302_v43 = vadd.f32 %v1283_v14, %v1172_v28  ;;  %v4369_v27 = vld [vmem:[#allocation4_spill] sm:$0xff] }
 0x11a   : > { %v1156_v9 = vpop.f32.mrf.mxu0 }
 0x11b   : > { %v1173_v56 = vadd.f32 %v1156_v9, %v1042_v34  ;;  %v1286_v44 = vpop.f32.mrf.mxu1  ;;  %v1305_v47 = vadd.f32 %v3389_v31, %v1175_v36  ;;  %v1524_v9 = vld [vmem:[#allocation2 + $0x1] sm:$0xff] }
 0x11c   : > { %v3400_v11 = vpop.f32.mrf.mxu0  ;;  %v1747_v34 = vld [vmem:[#allocation2 + $0x2] sm:$0xff] }
 0x11d   : > { %v1430_v16 = vadd.f32 %v3400_v11, %v1300_v12  ;;  %v1303_v62 = vadd.f32 %v1286_v44, %v1173_v56  ;;  %v3611_v56 = vld [vmem:[%s4356_s4 + $0x60] sm:$0xff]   ;;  %v3612_v44 = vld [vmem:[%s4356_s4 + $0x98] sm:$0xff]  }
 0x11e   : > { %v1397_v17 = vpop.f32.mrf.mxu0 }
 0x11f   : > { %v1445_v24 = vmul.f32 %v4056_v3, %v1430_v16  ;;  %v1428_v22 = vadd.f32 %v1397_v17, %v1298_v6 }
 0x120   : > { %v3401_v29 = vpop.f32.mrf.mxu0 }
 0x121   : > { %v1460_v32 = vadd.f32 %v2968_v7, %v1445_v24  ;;  %v1443_v19 = vmul.f32 %v4056_v3, %v1428_v22  ;;  %v1431_v25 = vadd.f32 %v3401_v29, %v1301_v21  ;;  %v3606_v21 = vld [vmem:[%s4356_s4 + $0x50] sm:$0xff]  }
 0x122   : > { %v1400_v37 = vpop.f32.mrf.mxu0  ;;  %v3607_v24 = vld [vmem:[%s4356_s4 + $0x70] sm:$0xff]  }
 0x123   : > { %v1468_v40 = vmax.f32 %v1460_v32, 0.0  ;;  %v1458_v38 = vadd.f32 %v2968_v7, %v1443_v19  ;;  %v1446_v41 = vmul.f32 %v4056_v3, %v1431_v25  ;;  %v1429_v42 = vadd.f32 %v1400_v37, %v1299_v30  ;;  %v3608_v19 = vld [vmem:[%s4356_s4 + $0x48] sm:$0xff]  }
 0x124   : > { %v3404_v23 = vpop.f32.mrf.mxu0  ;;  %v3609_v25 = vld [vmem:[%s4356_s4 + $0x68] sm:$0xff]  }
 0x125   : > { %1498 = vst.msk [vmem:[#allocation2 + $0x31] sm:$0xff] %vm345_vm0, %v1468_v40  ;;  %v1466_v45 = vmax.f32 %v1458_v38, 0.0  ;;  %v1461_v58 = vadd.f32 %v2968_v7, %v1446_v41  ;;  %v1444_v20 = vmul.f32 %v4056_v3, %v1429_v42  ;;  %v1434_v46 = vadd.f32 %v3404_v23, %v1304_v35 }
 0x126   : > { %v1413_v48 = vpop.f32.mrf.mxu0 }
 0x127   : > { %1496 = vst.msk [vmem:[#allocation2 + $0x11] sm:$0xff] %vm345_vm0, %v1466_v45  ;;  %v1469_v49 = vmax.f32 %v1461_v58, 0.0  ;;  %v1459_v57 = vadd.f32 %v2968_v7, %v1444_v20  ;;  %v1449_v59 = vmul.f32 %v4056_v3, %v1434_v46  ;;  %v1432_v60 = vadd.f32 %v1413_v48, %v1302_v43  ;;  %v3610_v43 = vld [vmem:[%s4356_s4 + $0x40] sm:$0xff]   ;;  %v3613_v58 = vld [vmem:[%s4356_s4 + $0xb8] sm:$0xff]  }
 0x128   : > { %v3405_v50 = vpop.f32.mrf.mxu0 }
 0x129   : > { %1499 = vst.msk [vmem:[#allocation2 + $0x41] sm:$0xff] %vm345_vm0, %v1469_v49  ;;  %v1467_v51 = vmax.f32 %v1459_v57, 0.0  ;;  %v1464_v0 = vadd.f32 %v2968_v7, %v1449_v59  ;;  %v1447_v61 = vmul.f32 %v4056_v3, %v1432_v60  ;;  %v1435_v39 = vadd.f32 %v3405_v50, %v1305_v47  ;;  %v3614_v59 = vld [vmem:[%s4356_s4 + $0x90] sm:$0xff]  }
 0x12a   : > { %v1416_v52 = vpop.f32.mrf.mxu0 }
 0x12b   : > { %1497 = vst.msk [vmem:[#allocation2 + $0x21] sm:$0xff] %vm345_vm0, %v1467_v51  ;;  %v1472_v53 = vmax.f32 %v1464_v0, 0.0  ;;  %v1462_v2 = vadd.f32 %v2968_v7, %v1447_v61  ;;  %v1450_v63 = vmul.f32 %v4056_v3, %v1435_v39  ;;  %v1433_v8 = vadd.f32 %v1416_v52, %v1303_v62  ;;  %v3615_v62 = vld [vmem:[%s4356_s4 + $0xb0] sm:$0xff]   ;;  %v3616_v51 = vld [vmem:[%s4356_s4 + $0x88] sm:$0xff]  }
 0x12c   : > { %v4084_v5 = vld [vmem:[#allocation2 + $0x31] sm:$0xff]  ;;  %v3617_v61 = vld [vmem:[%s4356_s4 + $0xa8] sm:$0xff]  }
 0x12d   : > { %1502 = vst.msk [vmem:[#allocation2 + $0x71] sm:$0xff] %vm345_vm0, %v1472_v53  ;;  %v1470_v12 = vmax.f32 %v1462_v2, 0.0  ;;  %v1465_v54 = vadd.f32 %v2968_v7, %v1450_v63  ;;  %v1448_v55 = vmul.f32 %v4056_v3, %v1433_v8  ;;  %v4088_v15 = vld [vmem:[#allocation2 + $0x30] sm:$0xff]  ;;  %v3618_v63 = vld [vmem:[%s4356_s4 + $0x80] sm:$0xff]  }
 0x12e   : > { %v4077_v1 = vld [vmem:[#allocation2 + $0x11] sm:$0xff] }
 0x12f   : > { %v1505_v4 = vld [vmem:[#allocation2 + $0x10] sm:$0xff]  ;;  %1500 = vst.msk [vmem:[#allocation2 + $0x51] sm:$0xff] %vm345_vm0, %v1470_v12  ;;  %v1473_v11 = vmax.f32 %v1465_v54, 0.0  ;;  %v1463_v6 = vadd.f32 %v2968_v7, %v1448_v55  ;;  %v1532_v13 = vpack.c.bf16 %v4077_v1, %v1524_v9  ;;  %v3619_v9 = vld [vmem:[%s4356_s4 + $0xa0] sm:$0xff]   ;;  %v3621_v12 = vld [vmem:[%s4356_s4 + $0xf8] sm:$0xff]  }
 0x130   : > { %v1512_v14 = vpack.c.bf16 %v1505_v4, %v1504_v10  ;;  %v4108_v22 = vld [vmem:[#allocation2 + $0x41] sm:$0xff]  ;;  %v4132_v35 = vld [vmem:[#allocation2 + $0x12] sm:$0xff] }
 0x131   : > { %1503 = vst.msk [vmem:[#allocation2 + $0x81] sm:$0xff] %vm345_vm0, %v1473_v11  ;;  %v1471_v16 = vmax.f32 %v1463_v6, 0.0  ;;  %3414 = vmatprep.mubr.msk.bf16.mxu1 %vm345_vm0, %v1532_v13  ;;  %v1508_v29 = vld [vmem:[#allocation2 + $0x40] sm:$0xff]  ;;  %v1755_v42 = vpack.c.bf16 %v4132_v35, %v1747_v34  ;;  %v1750_v46 = vld [vmem:[#allocation2 + $0x32] sm:$0xff]  ;;  %v2016_v54 = vpack.c.bf16 %v4108_v22, %v4084_v5 }
 0x132   : > { %3430 = vmatprep.mubr.msk.bf16.mxu0 %vm345_vm0, %v1512_v14  ;;  %v4086_v3 = vld [vmem:[#allocation2 + $0x21] sm:$0xff]  ;;  %v1886_v49 = vpack.c.bf16 %v1508_v29, %v4088_v15  ;;  %v3620_v10 = vld [vmem:[%s4356_s4 + $0xd8] sm:$0xff]   ;;  %v3623_v6 = vld [vmem:[%s4356_s4 + $0xf0] sm:$0xff]  }
 0x133   : > { %v1506_v18 = vld [vmem:[#allocation2 + $0x20] sm:$0xff]  ;;  %1501 = vst.msk [vmem:[#allocation2 + $0x61] sm:$0xff] %vm345_vm0, %v1471_v16  ;;  %v4093_v7 = vpack.c.bf16 %v4084_v5, %v4086_v3  ;;  %v2015_v2 = vpack.c.bf16 %v4086_v3, %v4077_v1  ;;  %v3624_v14 = vld [vmem:[%s4356_s4 + $0xc8] sm:$0xff]  }
 0x134   : > { %v4096_v17 = vpack.c.bf16 %v4088_v15, %v1506_v18  ;;  %v4130_v33 = vld [vmem:[#allocation2 + $0x71] sm:$0xff]  ;;  %v1885_v23 = vpack.c.bf16 %v1506_v18, %v1505_v4  ;;  %v1749_v45 = vld [vmem:[#allocation2 + $0x22] sm:$0xff] }
 0x135   : > { %3415 = vmatmul.mubr.msk.bf16.vlgmr.msra.gmra.mxu1 %vm345_vm0, %v4093_v7  ;;  %v1511_v40 = vld [vmem:[#allocation2 + $0x70] sm:$0xff]  ;;  %v4161_v47 = vpack.c.bf16 %v1750_v46, %v1749_v45  ;;  %v1751_v48 = vld [vmem:[#allocation2 + $0x42] sm:$0xff]  ;;  %v2145_v8 = vpack.c.bf16 %v1749_v45, %v4132_v35 }
 0x136   : > { %3431 = vmatmul.mubr.msk.bf16.vlgmr.msra.gmra.mxu0 %vm345_vm0, %v4096_v17  ;;  %3439 = vmatpush3.bf16.msra.mxu1 %v4368_v26  ;;  %v4112_v28 = vld [vmem:[#allocation2 + $0x51] sm:$0xff]  ;;  %v2146_v55 = vpack.c.bf16 %v1751_v48, %v1750_v46  ;;  %v3625_v5 = vld [vmem:[%s4356_s4 + $0xe8] sm:$0xff]   ;;  %v3626_v15 = vld [vmem:[%s4356_s4 + $0xc0] sm:$0xff]  }
 0x137   : > { %3455 = vmatpush3.bf16.msra.mxu0 %v4369_v27  ;;  %v1509_v30 = vld [vmem:[#allocation2 + $0x50] sm:$0xff]  ;;  %v4116_v31 = vpack.c.bf16 %v4112_v28, %v4108_v22  ;;  %3440 = vmatprep.subr.bf16.mxu1 %v3606_v21 }
 0x138   : > { %v4118_v32 = vpack.c.bf16 %v1509_v30, %v1508_v29  ;;  %3456 = vmatprep.subr.bf16.mxu0 %v3607_v24  ;;  %v1752_v20 = vld [vmem:[#allocation2 + $0x52] sm:$0xff]  ;;  %v4181_v0 = vld [vmem:[#allocation2 + $0x80] sm:$0xff] }
 0x139   : > { %3418 = vmatprep.mubr.msk.bf16.mxu1 %vm345_vm0, %v4116_v31  ;;  %v4164_v57 = vpack.c.bf16 %v1752_v20, %v1751_v48  ;;  %v1754_v39 = vld [vmem:[#allocation2 + $0x72] sm:$0xff]  ;;  %v1888_v53 = vpack.c.bf16 %v4181_v0, %v1511_v40  ;;  %v2014_v13 = vld [vmem:[#allocation2 + $0x81] sm:$0xff] }
 0x13a   : > { %3434 = vmatprep.mubr.msk.bf16.mxu0 %vm345_vm0, %v4118_v32  ;;  %3441 = vmatpush3.bf16.msra.mxu1 %v3606_v21  ;;  %v4134_v36 = vld [vmem:[#allocation2 + $0x61] sm:$0xff]  ;;  %v3622_v4 = vld [vmem:[%s4356_s4 + $0xd0] sm:$0xff]   ;;  %v2018_v3 = vpack.c.bf16 %v2014_v13, %v4130_v33 }
 0x13b   : > { %3457 = vmatpush3.bf16.msra.mxu0 %v3607_v24  ;;  %v1510_v37 = vld [vmem:[#allocation2 + $0x60] sm:$0xff]  ;;  %v4138_v38 = vpack.c.bf16 %v4130_v33, %v4134_v36  ;;  %3442 = vmatprep.subr.bf16.mxu1 %v3608_v19  ;;  %v2017_v1 = vpack.c.bf16 %v4134_v36, %v4112_v28  ;;  %v3628_v24 = vld [vmem:[%s4356_s4 + $0x118] sm:$0xff]   ;;  %v3629_v22 = vld [vmem:[%s4356_s4 + $0x110] sm:$0xff]  }
 0x13c   : > { %v4140_v41 = vpack.c.bf16 %v1511_v40, %v1510_v37  ;;  %3458 = vmatprep.subr.bf16.mxu0 %v3609_v25  ;;  %v1887_v60 = vpack.c.bf16 %v1510_v37, %v1509_v30  ;;  %v1753_v50 = vld [vmem:[#allocation2 + $0x62] sm:$0xff]  ;;  %v2405_v26 = vld [vmem:[#allocation2 + $0x91] sm:$0xff] }
 0x13d   : > { %3419 = vmatmul.mubr.msk.bf16.gmra.mxu1 %vm345_vm0, %v4138_v38  ;;  %v4186_v52 = vpack.c.bf16 %v1754_v39, %v1753_v50  ;;  %v2147_v11 = vpack.c.bf16 %v1753_v50, %v1752_v20  ;;  %v2144_v16 = vld [vmem:[#allocation2 + $0x82] sm:$0xff]  ;;  %v2409_v28 = vpack.c.bf16 %v2405_v26, %v2014_v13  ;;  %v2535_v30 = vld [vmem:[#allocation2 + $0x92] sm:$0xff] }
 0x13e   : > { %3435 = vmatmul.mubr.msk.bf16.gmra.mxu0 %vm345_vm0, %v4140_v41  ;;  %3443 = vmatpush3.bf16.msra.mxu1 %v3608_v19  ;;  %v2148_v18 = vpack.c.bf16 %v2144_v16, %v1754_v39  ;;  %v3627_v21 = vld [vmem:[%s4356_s4 + $0xe0] sm:$0xff]  }
 0x13f   : > { %3446 = vmatprep.mubr.msk.bf16.mxu1 %vm345_vm0, %v1755_v42  ;;  %3459 = vmatpush3.bf16.msra.mxu0 %v3609_v25  ;;  %v3631_v29 = vld [vmem:[%s4356_s4 + $0x100] sm:$0xff]  }
 0x140   : > { %3462 = vmatprep.mubr.msk.bf16.mxu0 %vm345_vm0, %v1885_v23  ;;  %3444 = vmatprep.subr.bf16.mxu1 %v3610_v43 }
 0x141   : > { %3460 = vmatprep.subr.bf16.mxu0 %v3611_v56 }
 0x142   : > { %3445 = vmatpush3.bf16.msra.mxu1 %v3610_v43 }
 0x143   : > { %3461 = vmatpush3.bf16.msra.mxu0 %v3611_v56  ;;  %3470 = vmatprep.subr.bf16.mxu1 %v3612_v44 }
 0x144   : > { %3486 = vmatprep.subr.bf16.mxu0 %v3613_v58 }
 0x145   : > { %3447 = vmatmul.mubr.msk.bf16.vlgmr.msra.gmra.mxu1 %vm345_vm0, %v4161_v47 }
 0x146   : > { %3463 = vmatmul.mubr.msk.bf16.vlgmr.msra.gmra.mxu0 %vm345_vm0, %v1886_v49  ;;  %3450 = vmatprep.mubr.msk.bf16.mxu1 %vm345_vm0, %v4164_v57 }
 0x147   : > { %3466 = vmatprep.mubr.msk.bf16.mxu0 %vm345_vm0, %v1887_v60  ;;  %3471 = vmatpush3.bf16.msra.mxu1 %v3612_v44 }
 0x148   : > { %3487 = vmatpush3.bf16.msra.mxu0 %v3613_v58  ;;  %3472 = vmatprep.subr.bf16.mxu1 %v3614_v59 }
 0x149   : > { %3488 = vmatprep.subr.bf16.mxu0 %v3615_v62 }
 0x14b   : > { %3473 = vmatpush3.bf16.msra.mxu1 %v3614_v59 }
 0x14c   : > { %3489 = vmatpush3.bf16.msra.mxu0 %v3615_v62  ;;  %3474 = vmatprep.subr.bf16.mxu1 %v3616_v51 }
 0x14d   : > { %3451 = vmatmul.mubr.msk.bf16.gmra.mxu1 %vm345_vm0, %v4186_v52  ;;  %3490 = vmatprep.subr.bf16.mxu0 %v3617_v61 }
 0x14e   : > { %3467 = vmatmul.mubr.msk.bf16.gmra.mxu0 %vm345_vm0, %v1888_v53  ;;  %3478 = vmatprep.mubr.msk.bf16.mxu1 %vm345_vm0, %v2015_v2 }
 0x14f   : > { %3475 = vmatpush3.bf16.msra.mxu1 %v3616_v51  ;;  %3494 = vmatprep.mubr.msk.bf16.mxu0 %vm345_vm0, %v2145_v8 }
 0x150   : > { %3491 = vmatpush3.bf16.msra.mxu0 %v3617_v61  ;;  %3476 = vmatprep.subr.bf16.mxu1 %v3618_v63 }
 0x151   : > { %3492 = vmatprep.subr.bf16.mxu0 %v3619_v9 }
 0x153   : > { %3477 = vmatpush3.bf16.msra.mxu1 %v3618_v63 }
 0x154   : > { %3493 = vmatpush3.bf16.msra.mxu0 %v3619_v9  ;;  %3502 = vmatprep.subr.bf16.mxu1 %v3620_v10 }
 0x155   : > { %3518 = vmatprep.subr.bf16.mxu0 %v3621_v12 }
 0x156   : > { %3479 = vmatmul.mubr.msk.bf16.vlgmr.msra.gmra.mxu1 %vm345_vm0, %v2016_v54 }
 0x157   : > { %3495 = vmatmul.mubr.msk.bf16.vlgmr.msra.gmra.mxu0 %vm345_vm0, %v2146_v55  ;;  %3482 = vmatprep.mubr.msk.bf16.mxu1 %vm345_vm0, %v2017_v1 }
 0x158   : > { %3498 = vmatprep.mubr.msk.bf16.mxu0 %vm345_vm0, %v2147_v11  ;;  %3503 = vmatpush3.bf16.msra.mxu1 %v3620_v10 }
 0x159   : > { %3519 = vmatpush3.bf16.msra.mxu0 %v3621_v12  ;;  %3504 = vmatprep.subr.bf16.mxu1 %v3622_v4 }
 0x15a   : > { %3520 = vmatprep.subr.bf16.mxu0 %v3623_v6 }
 0x15c   : > { %3505 = vmatpush3.bf16.msra.mxu1 %v3622_v4 }
 0x15d   : > { %3521 = vmatpush3.bf16.msra.mxu0 %v3623_v6  ;;  %3506 = vmatprep.subr.bf16.mxu1 %v3624_v14 }
 0x15e   : > { %3483 = vmatmul.mubr.msk.bf16.gmra.mxu1 %vm345_vm0, %v2018_v3  ;;  %3522 = vmatprep.subr.bf16.mxu0 %v3625_v5 }
 0x15f   : > { %3499 = vmatmul.mubr.msk.bf16.gmra.mxu0 %vm345_vm0, %v2148_v18  ;;  %3510 = vmatprep.mubr.msk.bf16.mxu1 %vm345_vm0, %v4096_v17  ;;  %v3630_v17 = vld [vmem:[%s4356_s4 + $0x108] sm:$0xff]  }
 0x160   : > { %3507 = vmatpush3.bf16.msra.mxu1 %v3624_v14  ;;  %3526 = vmatprep.mubr.msk.bf16.mxu0 %vm345_vm0, %v4093_v7  ;;  %v2275_v7 = vld [vmem:[#allocation2 + $0x90] sm:$0xff] }
 0x161   : > { %3523 = vmatpush3.bf16.msra.mxu0 %v3625_v5  ;;  %3508 = vmatprep.subr.bf16.mxu1 %v3626_v15  ;;  %v2279_v27 = vpack.c.bf16 %v2275_v7, %v4181_v0 }
 0x162   : > { %3524 = vmatprep.subr.bf16.mxu0 %v3627_v21 }
 0x164   : > { %3509 = vmatpush3.bf16.msra.mxu1 %v3626_v15 }
 0x165   : > { %3525 = vmatpush3.bf16.msra.mxu0 %v3627_v21  ;;  %3534 = vmatprep.subr.bf16.mxu1 %v3628_v24 }
 0x167   : > { %3511 = vmatmul.mubr.msk.bf16.vlgmr.msra.gmra.mxu1 %vm345_vm0, %v4118_v32 }
 0x168   : > { %3527 = vmatmul.mubr.msk.bf16.vlgmr.msra.gmra.mxu0 %vm345_vm0, %v4116_v31  ;;  %3514 = vmatprep.mubr.msk.bf16.mxu1 %vm345_vm0, %v4140_v41  ;;  %v2539_v31 = vpack.c.bf16 %v2535_v30, %v2144_v16 }
 0x169   : > { %3530 = vmatprep.mubr.msk.bf16.mxu0 %vm345_vm0, %v4138_v38  ;;  %3535 = vmatpush3.bf16.msra.mxu1 %v3628_v24 }
 0x16a   : > { %3536 = vmatprep.subr.bf16.mxu1 %v3629_v22 }
 0x16d   : > { %3537 = vmatpush3.bf16.msra.mxu1 %v3629_v22 }
 0x16e   : > { %3538 = vmatprep.subr.bf16.mxu1 %v3630_v17 }
 0x16f   : > { %3515 = vmatmul.mubr.msk.bf16.gmra.mxu1 %vm345_vm0, %v2279_v27 }
 0x170   : > { %3531 = vmatmul.mubr.msk.bf16.gmra.mxu0 %vm345_vm0, %v2409_v28  ;;  %3542 = vmatprep.mubr.msk.bf16.mxu1 %vm345_vm0, %v4161_v47 }
 0x171   : > { %3539 = vmatpush3.bf16.msra.mxu1 %v3630_v17 }
 0x172   : > { %3540 = vmatprep.subr.bf16.mxu1 %v3631_v29 }
 0x175   : > { %3541 = vmatpush3.bf16.msra.mxu1 %v3631_v29 }
 0x178   : > { %3543 = vmatmul.mubr.msk.bf16.vlgmr.msra.gmra.mxu1 %vm345_vm0, %v4164_v57 }
 0x179   : > { %3546 = vmatprep.mubr.msk.bf16.mxu1 %vm345_vm0, %v4186_v52 }
 0x180   : > { %3547 = vmatmul.mubr.msk.bf16.gmra.mxu1 %vm345_vm0, %v2539_v31 }
 0x1f5   : > { %v3416_v32 = vpop.f32.mrf.mxu1 }
 0x1f6   : > { %v3432_v19 = vpop.f32.mrf.mxu0 }
 0x1f7   : > { %v1615_v25 = vpop.f32.mrf.mxu1  ;;  %v1725_v14 = vadd.f32 %v3432_v19, %v3416_v32 }
 0x1f8   : > { %v1716_v33 = vpop.f32.mrf.mxu0 }
 0x1f9   : > { %v3417_v34 = vpop.f32.mrf.mxu1  ;;  %v1717_v5 = vadd.f32 %v1716_v33, %v1615_v25 }
 0x1fa   : > { %v3433_v35 = vpop.f32.mrf.mxu0 }
 0x1fb   : > { %v1618_v36 = vpop.f32.mrf.mxu1  ;;  %v1728_v21 = vadd.f32 %v3433_v35, %v3417_v34 }
 0x1fc   : > { %v1719_v37 = vpop.f32.mrf.mxu0 }
 0x1fd   : > { %v3420_v40 = vpop.f32.mrf.mxu1  ;;  %v1720_v7 = vadd.f32 %v1719_v37, %v1618_v36 }
 0x1fe   : > { %v3436_v38 = vpop.f32.mrf.mxu0 }
 0x1ff   : > { %v1631_v41 = vpop.f32.mrf.mxu1 }
 0x200   : > { %v1732_v42 = vpop.f32.mrf.mxu0 }
 0x201   : > { %v3421_v43 = vpop.f32.mrf.mxu1  ;;  %v1733_v32 = vadd.f32 %v1732_v42, %v1631_v41 }
 0x202   : > { %v3437_v56 = vpop.f32.mrf.mxu0 }
 0x203   : > { %v4272_v23 = vpop.f32.mrf.mxu1 }
 0x204   : > { %v4274_v44 = vpop.f32.mrf.mxu0 }
 0x205   : > { %v3448_v45 = vpop.f32.mrf.mxu1 }
 0x206   : > { %v3464_v58 = vpop.f32.mrf.mxu0  ;;  %v1871_v3 = vadd.f32 %v3448_v45, %v1725_v14  ;;  %v1744_v45 = vadd.f32 %v3437_v56, %v3421_v43 }
 0x207   : > { %v1838_v20 = vpop.f32.mrf.mxu1 }
 0x208   : > { %v1968_v46 = vpop.f32.mrf.mxu0  ;;  %v1869_v24 = vadd.f32 %v1838_v20, %v1717_v5  ;;  %v2001_v17 = vadd.f32 %v3464_v58, %v1871_v3  ;;  %v1736_v58 = vadd.f32 %v4274_v44, %v4272_v23 }
 0x209   : > { %v3449_v47 = vpop.f32.mrf.mxu1 }
 0x20a   : > { %v3465_v48 = vpop.f32.mrf.mxu0  ;;  %v1872_v26 = vadd.f32 %v3449_v47, %v1728_v21  ;;  %v1999_v29 = vadd.f32 %v1968_v46, %v1869_v24 }
 0x20b   : > { %v1841_v49 = vpop.f32.mrf.mxu1 }
 0x20c   : > { %v1971_v57 = vpop.f32.mrf.mxu0  ;;  %v1870_v30 = vadd.f32 %v1841_v49, %v1720_v7  ;;  %v2002_v19 = vadd.f32 %v3465_v48, %v1872_v26 }
 0x20d   : > { %v3452_v59 = vpop.f32.mrf.mxu1 }
 0x20e   : > { %v3468_v60 = vpop.f32.mrf.mxu0  ;;  %v2000_v35 = vadd.f32 %v1971_v57, %v1870_v30 }
 0x20f   : > { %v1854_v62 = vpop.f32.mrf.mxu1 }
 0x210   : > { %v1984_v50 = vpop.f32.mrf.mxu0  ;;  %v1873_v34 = vadd.f32 %v1854_v62, %v1733_v32 }
 0x211   : > { %v3453_v51 = vpop.f32.mrf.mxu1 }
 0x212   : > { %v3469_v0 = vpop.f32.mrf.mxu0  ;;  %v1876_v46 = vadd.f32 %v3453_v51, %v1744_v45  ;;  %v2003_v42 = vadd.f32 %v1984_v50, %v1873_v34 }
 0x213   : > { %v1857_v61 = vpop.f32.mrf.mxu1 }
 0x214   : > { %v4276_v39 = vpop.f32.mrf.mxu0  ;;  %v1874_v48 = vadd.f32 %v1857_v61, %v1736_v58 }
 0x216   : > { %v3480_v52 = vpop.f32.mrf.mxu1  ;;  %v2004_v23 = vadd.f32 %v4276_v39, %v1874_v48  ;;  %v4299_v39 = vld [vmem:[%s4358_s6] ss:$0 sm:$0xff] }
 0x217   : > { %v3496_v53 = vpop.f32.mrf.mxu0  ;;  %v2131_v31 = vadd.f32 %v3480_v52, %v2001_v17 }
 0x218   : > { %v2098_v2 = vpop.f32.mrf.mxu1 }
 0x219   : > { %v2228_v63 = vpop.f32.mrf.mxu0  ;;  %v2261_v20 = vadd.f32 %v3496_v53, %v2131_v31 }
 0x21a   : > { %v3481_v8 = vpop.f32.mrf.mxu1 }
 0x21b   : > { %v3497_v9 = vpop.f32.mrf.mxu0  ;;  %v2132_v36 = vadd.f32 %v3481_v8, %v2002_v19 }
 0x21c   : > { %v2101_v10 = vpop.f32.mrf.mxu1 }
 0x21d   : > { %v2231_v12 = vpop.f32.mrf.mxu0  ;;  %v2130_v49 = vadd.f32 %v2101_v10, %v2000_v35  ;;  %v3110_v35 = vld [vmem:[%s3713_s18 + $0x41] sm:$0xff] }
 0x21e   : > { %v3484_v54 = vpop.f32.mrf.mxu1 }
 0x21f   : > { %v4278_v55 = vpop.f32.mrf.mxu0  ;;  %v2260_v53 = vadd.f32 %v2231_v12, %v2130_v49  ;;  %v3108_v49 = vld [vmem:[%s3713_s18 + $0x21] sm:$0xff] }
 0x220   : > { %v2114_v1 = vpop.f32.mrf.mxu1 }
 0x221   : > { %v4280_v4 = vpop.f32.mrf.mxu0  ;;  %v2133_v62 = vadd.f32 %v2114_v1, %v2003_v42 }
 0x222   : > { %4370 = vst [vmem:[#allocation5_spill] sm:$0xff] %v4280_v4  ;;  %v3485_v11 = vpop.f32.mrf.mxu1  ;;  %v1741_v4 = vadd.f32 %v3436_v38, %v3420_v40 }
 0x223   : > { %v4282_v6 = vpop.f32.mrf.mxu0 }
 0x224   : > { %4371 = vst [vmem:[#allocation6_spill] sm:$0xff] %v4282_v6  ;;  %v2117_v13 = vpop.f32.mrf.mxu1  ;;  %v1875_v14 = vadd.f32 %v3452_v59, %v1741_v4  ;;  %v2006_v59 = vadd.f32 %v3469_v0, %v1876_v46 }
 0x225   : > { %v4284_v16 = vpop.f32.mrf.mxu0  ;;  %v2134_v12 = vadd.f32 %v2117_v13, %v2004_v23  ;;  %v3111_v23 = vld [vmem:[%s3713_s18 + $0x51] sm:$0xff] }
 0x226   : > { %4372 = vst [vmem:[#allocation3_spill] sm:$0xff] %v4284_v16  ;;  %v2129_v16 = vadd.f32 %v2098_v2, %v1999_v29  ;;  %v2005_v41 = vadd.f32 %v3468_v60, %v1875_v14  ;;  %v2262_v2 = vadd.f32 %v3497_v9, %v2132_v36  ;;  %v2136_v44 = vadd.f32 %v3485_v11, %v2006_v59  ;;  %v4292_v60 = vld [vmem:[%s4357_s5] ss:$0 sm:$0xff]  ;;  %v3107_v29 = vld [vmem:[%s3713_s18 + $0x11] sm:$0xff] }
 0x227   : > { %v3512_v18 = vpop.f32.mrf.mxu1 }
 0x228   : > { %v3528_v15 = vpop.f32.mrf.mxu0  ;;  %v2259_v47 = vadd.f32 %v2228_v63, %v2129_v16  ;;  %v2392_v52 = vadd.f32 %v3512_v18, %v2261_v20  ;;  %v2135_v57 = vadd.f32 %v3484_v54, %v2005_v41 }
 0x229   : > { %v2359_v22 = vpop.f32.mrf.mxu1  ;;  %v4373_v9 = vld [vmem:[#allocation5_spill] sm:$0xff] }
 0x22a   : > { %v2489_v27 = vpop.f32.mrf.mxu0  ;;  %v2390_v43 = vadd.f32 %v2359_v22, %v2259_v47  ;;  %v2522_v8 = vadd.f32 %v3528_v15, %v2392_v52  ;;  %v2265_v0 = vadd.f32 %v4278_v55, %v2135_v57  ;;  %v2263_v10 = vadd.f32 %v4373_v9, %v2133_v62  ;;  %v3109_v55 = vld [vmem:[%s3713_s18 + $0x31] sm:$0xff]  ;;  %v3114_v9 = vld [vmem:[%s3713_s18 + $0x81] sm:$0xff] }
 0x22b   : > { %v3513_v28 = vpop.f32.mrf.mxu1 }
 0x22c   : > { %v3529_v25 = vpop.f32.mrf.mxu0  ;;  %v2393_v4 = vadd.f32 %v3513_v28, %v2262_v2  ;;  %v2520_v50 = vadd.f32 %v2489_v27, %v2390_v43 }
 0x22d   : > { %v2362_v6 = vpop.f32.mrf.mxu1  ;;  %v4375_v26 = vld [vmem:[#allocation3_spill] sm:$0xff] }
 0x22e   : > { %v2492_v40 = vpop.f32.mrf.mxu0  ;;  %v2391_v61 = vadd.f32 %v2362_v6, %v2260_v53  ;;  %v2523_v1 = vadd.f32 %v3529_v25, %v2393_v4  ;;  %v4374_v6 = vld [vmem:[#allocation6_spill] sm:$0xff]  ;;  %v2264_v27 = vadd.f32 %v4375_v26, %v2134_v12 }
 0x22f   : > { %v3516_v33 = vpop.f32.mrf.mxu1  ;;  %v2266_v18 = vadd.f32 %v4374_v6, %v2136_v44  ;;  %v3113_v53 = vld [vmem:[%s3713_s18 + $0x71] sm:$0xff] }
 0x230   : > { %v3532_v5 = vpop.f32.mrf.mxu0  ;;  %v2396_v15 = vadd.f32 %v3516_v33, %v2265_v0  ;;  %v2521_v22 = vadd.f32 %v2492_v40, %v2391_v61 }
 0x231   : > { %v2375_v37 = vpop.f32.mrf.mxu1 }
 0x232   : > { %v2505_v11 = vpop.f32.mrf.mxu0  ;;  %v2394_v21 = vadd.f32 %v2375_v37, %v2263_v10  ;;  %v2526_v45 = vadd.f32 %v3532_v5, %v2396_v15 }
 0x233   : > { %v3517_v38 = vpop.f32.mrf.mxu1 }
 0x234   : > { %v2397_v28 = vadd.f32 %v3517_v38, %v2266_v18  ;;  %v3533_v31 = vpop.f32.mrf.mxu0  ;;  %v2524_v14 = vadd.f32 %v2505_v11, %v2394_v21  ;;  %v3112_v11 = vld [vmem:[%s3713_s18 + $0x61] sm:$0xff] }
 0x235   : > { %v2378_v56 = vpop.f32.mrf.mxu1 }
 0x236   : > { %v2395_v34 = vadd.f32 %v2378_v56, %v2264_v27  ;;  %v2527_v47 = vadd.f32 %v3533_v31, %v2397_v28  ;;  %v2508_v38 = vpop.f32.mrf.mxu0 }
 0x238   : > { %v3544_v51 = vpop.f32.mrf.mxu1  ;;  %v2525_v43 = vadd.f32 %v2508_v38, %v2395_v34 }
 0x239   : > { %v2652_v63 = vadd.f32 %v3544_v51, %v2522_v8 }
 0x23a   : > { %v2619_v54 = vpop.f32.mrf.mxu1 }
 0x23b   : > { %v2667_v16 = vmul.f32 %v4292_v60, %v2652_v63  ;;  %v2650_v3 = vadd.f32 %v2619_v54, %v2520_v50 }
 0x23c   : > { %v3545_v24 = vpop.f32.mrf.mxu1 }
 0x23d   : > { %v2682_v13 = vadd.f32 %v4299_v39, %v2667_v16  ;;  %v2665_v7 = vmul.f32 %v4292_v60, %v2650_v3  ;;  %v2653_v17 = vadd.f32 %v3545_v24, %v2523_v1 }
 0x23e   : > { %v2622_v30 = vpop.f32.mrf.mxu1 }
 0x23f   : > { %v2698_v32 = vadd.f32 %v3109_v55, %v2682_v13  ;;  %v2680_v19 = vadd.f32 %v4299_v39, %v2665_v7  ;;  %v2668_v25 = vmul.f32 %v4292_v60, %v2653_v17  ;;  %v2651_v33 = vadd.f32 %v2622_v30, %v2521_v22 }
 0x240   : > { %v3548_v20 = vpop.f32.mrf.mxu1 }
 0x241   : > { %v2706_v36 = vmax.f32 %v2698_v32, 0.0  ;;  %v2696_v37 = vadd.f32 %v3107_v29, %v2680_v19  ;;  %v2683_v58 = vadd.f32 %v4299_v39, %v2668_v25  ;;  %v2666_v46 = vmul.f32 %v4292_v60, %v2651_v33 }
 0x242   : > { %v2656_v52 = vadd.f32 %v3548_v20, %v2526_v45  ;;  %v2635_v40 = vpop.f32.mrf.mxu1 }
 0x243   : > { %2714 = vst.msk [vmem:[%s4314_s21 + $0x10] sm:$0xff] %vm345_vm0, %v2706_v36  ;;  %v2704_v41 = vmax.f32 %v2696_v37, 0.0  ;;  %v2699_v42 = vadd.f32 %v3110_v35, %v2683_v58  ;;  %v2681_v48 = vadd.f32 %v4299_v39, %v2666_v46  ;;  %v2654_v2 = vadd.f32 %v2635_v40, %v2524_v14 }
 0x244   : > { %v2671_v56 = vmul.f32 %v4292_v60, %v2656_v52  ;;  %v3549_v59 = vpop.f32.mrf.mxu1 }
 0x245   : > { %2712 = vst.msk [vmem:[%s4314_s21] sm:$0xff] %vm345_vm0, %v2704_v41  ;;  %v2707_v57 = vmax.f32 %v2699_v42, 0.0  ;;  %v2697_v62 = vadd.f32 %v3108_v49, %v2681_v48  ;;  %v2669_v8 = vmul.f32 %v4292_v60, %v2654_v2  ;;  %v2657_v4 = vadd.f32 %v3549_v59, %v2527_v47 }
 0x246   : > { %v2686_v5 = vadd.f32 %v4299_v39, %v2671_v56  ;;  %v2638_v44 = vpop.f32.mrf.mxu1 }
 0x247   : > { %2715 = vst.msk [vmem:[%s4314_s21 + $0x18] sm:$0xff] %vm345_vm0, %v2707_v57  ;;  %v2705_v51 = vmax.f32 %v2697_v62, 0.0  ;;  %v2684_v50 = vadd.f32 %v4299_v39, %v2669_v8  ;;  %v2672_v61 = vmul.f32 %v4292_v60, %v2657_v4  ;;  %v2655_v63 = vadd.f32 %v2638_v44, %v2525_v43 }
 0x248   : > { %v2702_v0 = vadd.f32 %v3113_v53, %v2686_v5 }
 0x249   : > { %2713 = vst.msk [vmem:[%s4314_s21 + $0x8] sm:$0xff] %vm345_vm0, %v2705_v51  ;;  %v2700_v10 = vadd.f32 %v3111_v23, %v2684_v50  ;;  %v2687_v12 = vadd.f32 %v4299_v39, %v2672_v61  ;;  %v2670_v54 = vmul.f32 %v4292_v60, %v2655_v63 }
 0x24a   : > { %v2710_v1 = vmax.f32 %v2702_v0, 0.0 }
 0x24b   : > { %v2708_v16 = vmax.f32 %v2700_v10, 0.0  ;;  %v2703_v3 = vadd.f32 %v3114_v9, %v2687_v12  ;;  %v2685_v6 = vadd.f32 %v4299_v39, %v2670_v54 }
 0x24c   : > { %2718 = vst.msk [vmem:[%s4314_s21 + $0x30] sm:$0xff] %vm345_vm0, %v2710_v1 }
 0x24d   : > { %2716 = vst.msk [vmem:[%s4314_s21 + $0x20] sm:$0xff] %vm345_vm0, %v2708_v16  ;;  %v2711_v18 = vmax.f32 %v2703_v3, 0.0  ;;  %v2701_v15 = vadd.f32 %v3112_v11, %v2685_v6 }
 0x24f   : > { %2719 = vst.msk [vmem:[%s4314_s21 + $0x38] sm:$0xff] %vm345_vm0, %v2711_v18  ;;  %v2709_v21 = vmax.f32 %v2701_v15, 0.0 }
 0x251   : > { %2717 = vst.msk [vmem:[%s4314_s21 + $0x28] sm:$0xff] %vm345_vm0, %v2709_v21 }
 0x252 PF: > { %s17_s24 = sadd.s32 1, %s3638_s24  }
 0x253   : > { %p14_p4 = scmp.ge.s32.totalorder %s17_s24, 4  }
 0x255   :  { %16 = sbr.rel (!%p14_p4) target bundleno = 1 (0x1), region = 98 }

// kernel: resnet18_lp_forward.8
= control target key start
LH: loop header
LB: loop body
LE: loop exit
PB: predicated region body
PF: predicated region fallthrough
CT: control target
= control target key end

     0   :  { %s1951_s6 = smov 0   ;;  %s5111_s0 = inlined_call_operand.vmem [shape: f32[2,9,2,9,2,64], index: 0, kind: input, shape index: {}]   ;;  %s5112_s1 = inlined_call_operand.vmem [shape: f32[2,8,8,64], index: 1, kind: output, shape index: {}]  }
   0x1 LB: > { %s1465_s7 = sadd.s32 4294967295, %s1939_s6   ;;  %p1469_p0 = scmp.ge.s32.totalorder %s1939_s6, 1  ;;  %s1939_s6 = sphi %s1951_s6, %s11_s6  }
   0x2   : > { %p87_p1 = scmp.lt.s32.totalorder %s1939_s6, 3 }
   0x4   : > { %p88_p2 = pnand %p1469_p0, %p87_p1 }
   0x6   : > { %91 = sbr.rel (%p88_p2) target bundleno = 452 (0x1c4), region = 24 }
   0xb   : > { %p107_p3 = scmp.lt.s32.totalorder %s1465_s7, 1  ;;  %vm1275_vm0 = vcmask 1041409   ;;  %vm1278_vm1 = vcmask 1042434   ;;  %vm1281_vm2 = vcmask 1043459   ;;  %vm1284_vm3 = vcmask 1044484  }
   0xc   : > { %vm1287_vm4 = vcmask 1045509   ;;  %vm1290_vm5 = vcmask 1046534   ;;  %vm1293_vm6 = vcmask 1047559   ;;  %vm1401_vm7 = vcmask 523264  }
   0xd   : > { %s6747_s7 = smov (!%p107_p3, %s1465_s7), 1 }
   0xe   : > { %s1924_s8 = smul.u32 324, %s6747_s7  ;;  %s1923_s12 = sshll.u32 %s6747_s7, 6 }
   0xf   : > { %s116_s15 = scalar_lea.vmem %s5112_s1, %s1923_s12 }
  0x10   : > { %s1965_s11 = scalar_lea.vmem %s5111_s0, %s1924_s8 }
  0x11   : > { %v1968_v0 = vld [vmem:[%s1965_s11] sm:$0x1]  ;;  %v1971_v1 = vld [vmem:[%s1965_s11 + $0x1] sm:$0x1]  ;;  %v1974_v2 = vld [vmem:[%s1965_s11 + $0x2] sm:$0x1] }
  0x12   : > { %v1977_v3 = vld [vmem:[%s1965_s11 + $0x4] sm:$0x1]  ;;  %v1980_v4 = vld [vmem:[%s1965_s11 + $0x6] sm:$0x1]  ;;  %v1983_v5 = vld [vmem:[%s1965_s11 + $0x8] sm:$0x1] }
  0x13   : > { %v1986_v6 = vld [vmem:[%s1965_s11 + $0x3] sm:$0x1]  ;;  %v1989_v7 = vld [vmem:[%s1965_s11 + $0x5] sm:$0x1]  ;;  %v1992_v8 = vld [vmem:[%s1965_s11 + $0x7] sm:$0x1] }
  0x14   : > { %v1995_v9 = vld [vmem:[%s1965_s11 + $0x9] sm:$0x1]  ;;  %v1998_v10 = vld [vmem:[%s1965_s11 + $0xa] sm:$0x1]  ;;  %v2001_v11 = vld [vmem:[%s1965_s11 + $0xc] sm:$0x1] }
  0x15   : > { %5526 = vst [vmem:[#allocation2_spill] sm:$0xff] %v1995_v9  ;;  %5527 = vst [vmem:[#allocation3_spill] sm:$0xff] %v1998_v10  ;;  %v2004_v12 = vld [vmem:[%s1965_s11 + $0xe] sm:$0x1]  ;;  %v2007_v13 = vld [vmem:[%s1965_s11 + $0x24] sm:$0x1] }
  0x16   : > { %5528 = vst [vmem:[#allocation4_spill] sm:$0xff] %v2001_v11  ;;  %5529 = vst [vmem:[#allocation5_spill] sm:$0xff] %v2004_v12  ;;  %v2010_v14 = vld [vmem:[%s1965_s11 + $0xb] sm:$0x1]  ;;  %v2013_v15 = vld [vmem:[%s1965_s11 + $0xd] sm:$0x1] }
  0x17   : > { %5530 = vst [vmem:[#allocation6_spill] sm:$0xff] %v2007_v13  ;;  %5531 = vst [vmem:[#allocation7_spill] sm:$0xff] %v2010_v14  ;;  %v2016_v16 = vld [vmem:[%s1965_s11 + $0xf] sm:$0x1]  ;;  %v2019_v17 = vld [vmem:[%s1965_s11 + $0x25] sm:$0x1] }
  0x18   : > { %5532 = vst [vmem:[#allocation8_spill] sm:$0xff] %v2013_v15  ;;  %5533 = vst [vmem:[#allocation9_spill] sm:$0xff] %v2016_v16  ;;  %v2022_v18 = vld [vmem:[%s1965_s11 + $0x26] sm:$0x1]  ;;  %v2025_v19 = vld [vmem:[%s1965_s11 + $0x28] sm:$0x1] }
  0x19   : > { %5534 = vst [vmem:[#allocation10_spill] sm:$0xff] %v2019_v17  ;;  %5535 = vst [vmem:[#allocation11_spill] sm:$0xff] %v2022_v18  ;;  %v2028_v20 = vld [vmem:[%s1965_s11 + $0x2a] sm:$0x1]  ;;  %v2031_v21 = vld [vmem:[%s1965_s11 + $0x2c] sm:$0x1] }
  0x1a   : > { %5536 = vst [vmem:[#allocation12_spill] sm:$0xff] %v2025_v19  ;;  %5537 = vst [vmem:[#allocation13_spill] sm:$0xff] %v2028_v20  ;;  %v2034_v22 = vld [vmem:[%s1965_s11 + $0x27] sm:$0x1]  ;;  %v2037_v23 = vld [vmem:[%s1965_s11 + $0x29] sm:$0x1] }
  0x1b   : > { %5538 = vst [vmem:[#allocation14_spill] sm:$0xff] %v2031_v21  ;;  %5539 = vst [vmem:[#allocation15_spill] sm:$0xff] %v2034_v22  ;;  %v2040_v24 = vld [vmem:[%s1965_s11 + $0x2b] sm:$0x1]  ;;  %v2043_v25 = vld [vmem:[%s1965_s11 + $0x2d] sm:$0x1] }
  0x1c   : > { %5540 = vst [vmem:[#allocation16_spill] sm:$0xff] %v2037_v23  ;;  %5541 = vst [vmem:[#allocation17_spill] sm:$0xff] %v2040_v24  ;;  %v2046_v26 = vld [vmem:[%s1965_s11 + $0x2e] sm:$0x1]  ;;  %v2049_v27 = vld [vmem:[%s1965_s11 + $0x30] sm:$0x1] }
  0x1d   : > { %5542 = vst [vmem:[#allocation18_spill] sm:$0xff] %v2043_v25  ;;  %5543 = vst [vmem:[#allocation19_spill] sm:$0xff] %v2046_v26  ;;  %v2052_v28 = vld [vmem:[%s1965_s11 + $0x32] sm:$0x1]  ;;  %v2055_v29 = vld [vmem:[%s1965_s11 + $0x48] sm:$0x1] }
  0x1e   : > { %5544 = vst [vmem:[#allocation20_spill] sm:$0xff] %v2049_v27  ;;  %5545 = vst [vmem:[#allocation21_spill] sm:$0xff] %v2052_v28  ;;  %v2058_v30 = vld [vmem:[%s1965_s11 + $0x2f] sm:$0x1]  ;;  %v2061_v31 = vld [vmem:[%s1965_s11 + $0x31] sm:$0x1] }
  0x1f   : > { %5546 = vst [vmem:[#allocation22_spill] sm:$0xff] %v2055_v29  ;;  %5547 = vst [vmem:[#allocation23_spill] sm:$0xff] %v2058_v30  ;;  %v2064_v32 = vld [vmem:[%s1965_s11 + $0x33] sm:$0x1]  ;;  %v2067_v33 = vld [vmem:[%s1965_s11 + $0x49] sm:$0x1] }
  0x20   : > { %5548 = vst [vmem:[#allocation24_spill] sm:$0xff] %v2061_v31  ;;  %5549 = vst [vmem:[#allocation25_spill] sm:$0xff] %v2064_v32  ;;  %v2070_v34 = vld [vmem:[%s1965_s11 + $0x4a] sm:$0x1]  ;;  %v2073_v35 = vld [vmem:[%s1965_s11 + $0x4c] sm:$0x1] }
  0x21   : > { %5550 = vst [vmem:[#allocation26_spill] sm:$0xff] %v2067_v33  ;;  %5551 = vst [vmem:[#allocation27_spill] sm:$0xff] %v2070_v34  ;;  %v2076_v36 = vld [vmem:[%s1965_s11 + $0x4e] sm:$0x1]  ;;  %v2079_v37 = vld [vmem:[%s1965_s11 + $0x50] sm:$0x1] }
  0x22   : > { %5552 = vst [vmem:[#allocation28_spill] sm:$0xff] %v2073_v35  ;;  %5553 = vst [vmem:[#allocation29_spill] sm:$0xff] %v2076_v36  ;;  %v2082_v38 = vld [vmem:[%s1965_s11 + $0x4b] sm:$0x1]  ;;  %v2085_v39 = vld [vmem:[%s1965_s11 + $0x4d] sm:$0x1] }
  0x23   : > { %5554 = vst [vmem:[#allocation30_spill] sm:$0xff] %v2079_v37  ;;  %5555 = vst [vmem:[#allocation31_spill] sm:$0xff] %v2082_v38  ;;  %v2088_v40 = vld [vmem:[%s1965_s11 + $0x4f] sm:$0x1]  ;;  %v2091_v41 = vld [vmem:[%s1965_s11 + $0x51] sm:$0x1] }
  0x24   : > { %5556 = vst [vmem:[#allocation32_spill] sm:$0xff] %v2085_v39  ;;  %5557 = vst [vmem:[#allocation33_spill] sm:$0xff] %v2088_v40  ;;  %v2096_v43 = vld [vmem:[%s1965_s11 + $0x52] sm:$0x1]  ;;  %v2099_v44 = vld [vmem:[%s1965_s11 + $0x54] sm:$0x1] }
  0x25   : > { %5558 = vst [vmem:[#allocation34_spill] sm:$0xff] %v2091_v41  ;;  %5559 = vst [vmem:[#allocation35_spill] sm:$0xff] %v2096_v43  ;;  %v2102_v45 = vld [vmem:[%s1965_s11 + $0x56] sm:$0x1]  ;;  %v2105_v46 = vld [vmem:[%s1965_s11 + $0x6c] sm:$0x1] }
  0x26   : > { %5560 = vst [vmem:[#allocation36_spill] sm:$0xff] %v2099_v44  ;;  %5561 = vst [vmem:[#allocation37_spill] sm:$0xff] %v2102_v45  ;;  %v2108_v47 = vld [vmem:[%s1965_s11 + $0x53] sm:$0x1]  ;;  %v2111_v48 = vld [vmem:[%s1965_s11 + $0x55] sm:$0x1] }
  0x27   : > { %5562 = vst [vmem:[#allocation38_spill] sm:$0xff] %v2105_v46  ;;  %5563 = vst [vmem:[#allocation39_spill] sm:$0xff] %v2108_v47  ;;  %v2114_v49 = vld [vmem:[%s1965_s11 + $0x57] sm:$0x1]  ;;  %v2117_v50 = vld [vmem:[%s1965_s11 + $0x6d] sm:$0x1] }
  0x28   : > { %5564 = vst [vmem:[#allocation40_spill] sm:$0xff] %v2111_v48  ;;  %5565 = vst [vmem:[#allocation41_spill] sm:$0xff] %v2114_v49  ;;  %v2128_v55 = vld [vmem:[%s1965_s11 + $0x6e] sm:$0x1]  ;;  %v2131_v56 = vld [vmem:[%s1965_s11 + $0x70] sm:$0x1] }
  0x29   : > { %5566 = vst [vmem:[#allocation42_spill] sm:$0xff] %v2117_v50  ;;  %5567 = vst [vmem:[#allocation43_spill] sm:$0xff] %v2128_v55  ;;  %v2134_v57 = vld [vmem:[%s1965_s11 + $0x72] sm:$0x1]  ;;  %v2137_v58 = vld [vmem:[%s1965_s11 + $0x74] sm:$0x1] }
  0x2a   : > { %5568 = vst [vmem:[#allocation44_spill] sm:$0xff] %v2131_v56  ;;  %5569 = vst [vmem:[#allocation45_spill] sm:$0xff] %v2134_v57  ;;  %v2140_v59 = vld [vmem:[%s1965_s11 + $0x6f] sm:$0x1]  ;;  %v2143_v60 = vld [vmem:[%s1965_s11 + $0x71] sm:$0x1] }
  0x2b   : > { %5570 = vst [vmem:[#allocation46_spill] sm:$0xff] %v2137_v58  ;;  %5571 = vst [vmem:[#allocation47_spill] sm:$0xff] %v2140_v59  ;;  %v2146_v61 = vld [vmem:[%s1965_s11 + $0x73] sm:$0x1]  ;;  %v2149_v62 = vld [vmem:[%s1965_s11 + $0x75] sm:$0x1] }
  0x2c   : > { %5572 = vst [vmem:[#allocation48_spill] sm:$0xff] %v2143_v60  ;;  %5573 = vst [vmem:[#allocation49_spill] sm:$0xff] %v2146_v61  ;;  %v2160_v51 = vld [vmem:[%s1965_s11 + $0x76] sm:$0x1]  ;;  %v2163_v42 = vld [vmem:[%s1965_s11 + $0x78] sm:$0x1] }
  0x2d   : > { %5574 = vst [vmem:[#allocation50_spill] sm:$0xff] %v2149_v62  ;;  %5575 = vst [vmem:[#allocation51_spill] sm:$0xff] %v2160_v51  ;;  %v2166_v63 = vld [vmem:[%s1965_s11 + $0x7a] sm:$0x1]  ;;  %v2169_v14 = vld [vmem:[%s1965_s11 + $0x90] sm:$0x1] }
  0x2e   : > { %5576 = vst [vmem:[#allocation52_spill] sm:$0xff] %v2163_v42  ;;  %5577 = vst [vmem:[#allocation53_spill] sm:$0xff] %v2166_v63  ;;  %v2172_v54 = vld [vmem:[%s1965_s11 + $0x77] sm:$0x1]  ;;  %v2175_v53 = vld [vmem:[%s1965_s11 + $0x79] sm:$0x1] }
  0x2f   : > { %5578 = vst [vmem:[#allocation54_spill] sm:$0xff] %v2169_v14  ;;  %5579 = vst [vmem:[#allocation55_spill] sm:$0xff] %v2172_v54  ;;  %v2178_v16 = vld [vmem:[%s1965_s11 + $0x7b] sm:$0x1]  ;;  %v2181_v52 = vld [vmem:[%s1965_s11 + $0x91] sm:$0x1] }
  0x30   : > { %5580 = vst [vmem:[#allocation56_spill] sm:$0xff] %v2175_v53  ;;  %5581 = vst [vmem:[#allocation57_spill] sm:$0xff] %v2178_v16  ;;  %v2192_v11 = vld [vmem:[%s1965_s11 + $0x92] sm:$0x1]  ;;  %v2195_v10 = vld [vmem:[%s1965_s11 + $0x94] sm:$0x1] }
  0x31   : > { %5582 = vst [vmem:[#allocation58_spill] sm:$0xff] %v2181_v52  ;;  %5583 = vst [vmem:[#allocation59_spill] sm:$0xff] %v2192_v11  ;;  %v2198_v17 = vld [vmem:[%s1965_s11 + $0x96] sm:$0x1]  ;;  %v2201_v22 = vld [vmem:[%s1965_s11 + $0x98] sm:$0x1] }
  0x32   : > { %5584 = vst [vmem:[#allocation60_spill] sm:$0xff] %v2195_v10  ;;  %5585 = vst [vmem:[#allocation61_spill] sm:$0xff] %v2198_v17  ;;  %v2204_v13 = vld [vmem:[%s1965_s11 + $0x93] sm:$0x1]  ;;  %v2207_v12 = vld [vmem:[%s1965_s11 + $0x95] sm:$0x1]  ;;  %v5624_v17 = vmax.f32 %v1974_v2, %v1986_v6 }
  0x33   : > { %5586 = vst [vmem:[#allocation62_spill] sm:$0xff] %v2201_v22  ;;  %5587 = vst [vmem:[#allocation63_spill] sm:$0xff] %v2204_v13  ;;  %v2210_v24 = vld [vmem:[%s1965_s11 + $0x97] sm:$0x1]  ;;  %v2213_v15 = vld [vmem:[%s1965_s11 + $0x99] sm:$0x1] }
  0x34   : > { %5588 = vst [vmem:[#allocation64_spill] sm:$0xff] %v2207_v12  ;;  %5589 = vst [vmem:[#allocation65_spill] sm:$0xff] %v2210_v24  ;;  %v2224_v19 = vld [vmem:[%s1965_s11 + $0x9a] sm:$0x1]  ;;  %v2227_v18 = vld [vmem:[%s1965_s11 + $0x9c] sm:$0x1] }
  0x35   : > { %5590 = vst [vmem:[#allocation66_spill] sm:$0xff] %v2213_v15  ;;  %v2230_v25 = vld [vmem:[%s1965_s11 + $0x9e] sm:$0x1]  ;;  %v2233_v30 = vld [vmem:[%s1965_s11 + $0xb4] sm:$0x1] }
  0x36   : > { %5591 = vst [vmem:[#allocation67_spill] sm:$0xff] %v2230_v25  ;;  %5592 = vst [vmem:[#allocation68_spill] sm:$0xff] %v2233_v30  ;;  %v2236_v21 = vld [vmem:[%s1965_s11 + $0x9b] sm:$0x1]  ;;  %v2239_v20 = vld [vmem:[%s1965_s11 + $0x9d] sm:$0x1] }
  0x37   : > { %5593 = vst [vmem:[#allocation69_spill] sm:$0xff] %v2236_v21  ;;  %v2242_v32 = vld [vmem:[%s1965_s11 + $0x9f] sm:$0x1]  ;;  %v2245_v23 = vld [vmem:[%s1965_s11 + $0xb5] sm:$0x1] }
  0x38   : > { %5594 = vst [vmem:[#allocation70_spill] sm:$0xff] %v2242_v32  ;;  %5595 = vst [vmem:[#allocation71_spill] sm:$0xff] %v2245_v23  ;;  %v2256_v27 = vld [vmem:[%s1965_s11 + $0xb6] sm:$0x1]  ;;  %v2259_v26 = vld [vmem:[%s1965_s11 + $0xb8] sm:$0x1] }
  0x39   : > { %v2262_v33 = vld [vmem:[%s1965_s11 + $0xba] sm:$0x1]  ;;  %v2265_v38 = vld [vmem:[%s1965_s11 + $0xbc] sm:$0x1]  ;;  %v2268_v29 = vld [vmem:[%s1965_s11 + $0xb7] sm:$0x1] }
  0x3a   : > { %v2271_v28 = vld [vmem:[%s1965_s11 + $0xb9] sm:$0x1]  ;;  %v2274_v40 = vld [vmem:[%s1965_s11 + $0xbb] sm:$0x1]  ;;  %v2277_v31 = vld [vmem:[%s1965_s11 + $0xbd] sm:$0x1] }
  0x3b   : > { %5596 = vst [vmem:[#allocation72_spill] sm:$0xff] %v2271_v28  ;;  %5597 = vst [vmem:[#allocation73_spill] sm:$0xff] %v2274_v40  ;;  %v2288_v35 = vld [vmem:[%s1965_s11 + $0xbe] sm:$0x1]  ;;  %v2291_v34 = vld [vmem:[%s1965_s11 + $0xc0] sm:$0x1] }
  0x3c   : > { %5598 = vst [vmem:[#allocation74_spill] sm:$0xff] %v2277_v31  ;;  %v2294_v41 = vld [vmem:[%s1965_s11 + $0xc2] sm:$0x1]  ;;  %v2297_v47 = vld [vmem:[%s1965_s11 + $0xd8] sm:$0x1] }
  0x3d   : > { %5599 = vst [vmem:[#allocation75_spill] sm:$0xff] %v2294_v41  ;;  %5600 = vst [vmem:[#allocation76_spill] sm:$0xff] %v2297_v47  ;;  %v2300_v37 = vld [vmem:[%s1965_s11 + $0xbf] sm:$0x1]  ;;  %v2303_v36 = vld [vmem:[%s1965_s11 + $0xc1] sm:$0x1] }
  0x3e   : > { %v2306_v49 = vld [vmem:[%s1965_s11 + $0xc3] sm:$0x1]  ;;  %v2309_v39 = vld [vmem:[%s1965_s11 + $0xd9] sm:$0x1]  ;;  %v2320_v44 = vld [vmem:[%s1965_s11 + $0xda] sm:$0x1] }
  0x3f   : > { %5601 = vst [vmem:[#allocation77_spill] sm:$0xff] %v2306_v49  ;;  %5602 = vst [vmem:[#allocation78_spill] sm:$0xff] %v2309_v39  ;;  %v2323_v43 = vld [vmem:[%s1965_s11 + $0xdc] sm:$0x1]  ;;  %v2326_v50 = vld [vmem:[%s1965_s11 + $0xde] sm:$0x1] }
  0x40   : > { %5603 = vst [vmem:[#allocation79_spill] sm:$0xff] %v2326_v50  ;;  %v2329_v59 = vld [vmem:[%s1965_s11 + $0xe0] sm:$0x1]  ;;  %v2332_v46 = vld [vmem:[%s1965_s11 + $0xdb] sm:$0x1] }
  0x41   : > { %5604 = vst [vmem:[#allocation80_spill] sm:$0xff] %v2329_v59  ;;  %v2335_v45 = vld [vmem:[%s1965_s11 + $0xdd] sm:$0x1]  ;;  %v2338_v61 = vld [vmem:[%s1965_s11 + $0xdf] sm:$0x1] }
  0x42   : > { %5605 = vst [vmem:[#allocation81_spill] sm:$0xff] %v2338_v61  ;;  %v2341_v48 = vld [vmem:[%s1965_s11 + $0xe1] sm:$0x1]  ;;  %v2352_v56 = vld [vmem:[%s1965_s11 + $0xe2] sm:$0x1] }
  0x43   : > { %5606 = vst [vmem:[#allocation82_spill] sm:$0xff] %v2341_v48  ;;  %v2355_v55 = vld [vmem:[%s1965_s11 + $0xe4] sm:$0x1]  ;;  %v2358_v62 = vld [vmem:[%s1965_s11 + $0xe6] sm:$0x1] }
  0x44   : > { %5607 = vst [vmem:[#allocation83_spill] sm:$0xff] %v2358_v62  ;;  %v2361_v54 = vld [vmem:[%s1965_s11 + $0xfc] sm:$0x1]  ;;  %v2364_v58 = vld [vmem:[%s1965_s11 + $0xe3] sm:$0x1] }
  0x45   : > { %5608 = vst [vmem:[#allocation84_spill] sm:$0xff] %v2361_v54  ;;  %v2367_v57 = vld [vmem:[%s1965_s11 + $0xe5] sm:$0x1]  ;;  %v2370_v16 = vld [vmem:[%s1965_s11 + $0xe7] sm:$0x1] }
  0x46   : > { %5609 = vst [vmem:[#allocation85_spill] sm:$0xff] %v2370_v16  ;;  %v2373_v60 = vld [vmem:[%s1965_s11 + $0xfd] sm:$0x1]  ;;  %v2384_v42 = vld [vmem:[%s1965_s11 + $0xfe] sm:$0x1] }
  0x47   : > { %5610 = vst [vmem:[#allocation86_spill] sm:$0xff] %v2373_v60  ;;  %v2387_v51 = vld [vmem:[%s1965_s11 + $0x100] sm:$0x1]  ;;  %v2390_v52 = vld [vmem:[%s1965_s11 + $0x102] sm:$0x1] }
  0x48   : > { %5611 = vst [vmem:[#allocation87_spill] sm:$0xff] %v2390_v52  ;;  %v2393_v13 = vld [vmem:[%s1965_s11 + $0x104] sm:$0x1]  ;;  %v2396_v14 = vld [vmem:[%s1965_s11 + $0xff] sm:$0x1]  ;;  %v5622_v52 = vmax.f32 %v1968_v0, %v1971_v1  ;;  %v5628_v0 = vmax.f32 %v1980_v4, %v1992_v8  ;;  %v5637_v4 = vld [vmem:[#allocation4_spill] sm:$0xff] }
  0x49   : > { %5612 = vst [vmem:[#allocation88_spill] sm:$0xff] %v2393_v13  ;;  %v2399_v12 = vld [vmem:[%s1965_s11 + $0x101] sm:$0x1]  ;;  %v2402_v63 = vld [vmem:[%s1965_s11 + $0x103] sm:$0x1]  ;;  %v5638_v8 = vld [vmem:[#allocation8_spill] sm:$0xff] }
  0x4a   : > { %5613 = vst [vmem:[#allocation89_spill] sm:$0xff] %v2399_v12  ;;  %5614 = vst [vmem:[#allocation90_spill] sm:$0xff] %v2402_v63  ;;  %v2405_v24 = vld [vmem:[%s1965_s11 + $0x105] sm:$0x1]  ;;  %v2416_v10 = vld [vmem:[%s1965_s11 + $0x106] sm:$0x1] }
  0x4b   : > { %5615 = vst [vmem:[#allocation91_spill] sm:$0xff] %v2405_v24  ;;  %5616 = vst [vmem:[#allocation92_spill] sm:$0xff] %v2416_v10  ;;  %v2419_v11 = vld [vmem:[%s1965_s11 + $0x108] sm:$0x1]  ;;  %v2422_v9 = vld [vmem:[%s1965_s11 + $0x10a] sm:$0x1] }
  0x4c   : > { %5617 = vst [vmem:[#allocation93_spill] sm:$0xff] %v2419_v11  ;;  %5618 = vst [vmem:[#allocation94_spill] sm:$0xff] %v2422_v9  ;;  %v2425_v53 = vld [vmem:[%s1965_s11 + $0x107] sm:$0x1]  ;;  %v2428_v21 = vld [vmem:[%s1965_s11 + $0x109] sm:$0x1]  ;;  %v5626_v9 = vmax.f32 %v1977_v3, %v1989_v7 }
  0x4d   : > { %5619 = vst [vmem:[#allocation95_spill] sm:$0xff] %v2425_v53  ;;  %5620 = vst [vmem:[#allocation96_spill] sm:$0xff] %v2428_v21  ;;  %v2431_v15 = vld [vmem:[%s1965_s11 + $0x10b] sm:$0x1]  ;;  %v1473_v32 = vld [vmem:[%s1965_s11 + $0x2] sm:$0x1] }
  0x4e   : > { %5621 = vst [vmem:[#allocation97_spill] sm:$0xff] %v2431_v15  ;;  %v1474_v23 = vld [vmem:[%s1965_s11 + $0x4] sm:$0x1]  ;;  %v1475_v40 = vld [vmem:[%s1965_s11 + $0x6] sm:$0x1]  ;;  %v2503_v12 = vmax.f32 %v5622_v52, %v1473_v32  ;;  %v5633_v3 = vld [vmem:[#allocation3_spill] sm:$0xff] }
  0x4f   : > { %v1476_v30 = vld [vmem:[%s1965_s11 + $0x8] sm:$0x1]  ;;  %v1477_v31 = vld [vmem:[%s1965_s11 + $0xa] sm:$0x1]  ;;  %v1478_v39 = vld [vmem:[%s1965_s11 + $0xc] sm:$0x1]  ;;  %v2512_v15 = vmax.f32 %v5624_v17, %v1474_v23  ;;  %v2517_v11 = vmax.f32 %v5626_v9, %v1475_v40 }
  0x50   : > { %v1479_v47 = vld [vmem:[%s1965_s11 + $0xe] sm:$0x1]  ;;  %v1480_v49 = vld [vmem:[%s1965_s11 + $0x10] sm:$0x1]  ;;  %v1481_v41 = vld [vmem:[%s1965_s11 + $0x26] sm:$0x1]  ;;  %v2522_v1 = vmax.f32 %v5628_v0, %v1476_v30  ;;  %v5639_v30 = vmax.f32 %v5637_v4, %v5638_v8 }
  0x51   : > { %v1482_v48 = vld [vmem:[%s1965_s11 + $0x28] sm:$0x1]  ;;  %v1483_v59 = vld [vmem:[%s1965_s11 + $0x2a] sm:$0x1]  ;;  %v1484_v61 = vld [vmem:[%s1965_s11 + $0x2c] sm:$0x1] }
  0x52   : > { %v1485_v50 = vld [vmem:[%s1965_s11 + $0x2e] sm:$0x1]  ;;  %v1486_v60 = vld [vmem:[%s1965_s11 + $0x30] sm:$0x1]  ;;  %v1487_v54 = vld [vmem:[%s1965_s11 + $0x32] sm:$0x1]  ;;  %v2541_v40 = vmax.f32 %v5639_v30, %v1479_v47 }
  0x53   : > { %v1488_v16 = vld [vmem:[%s1965_s11 + $0x34] sm:$0x1]  ;;  %v1489_v62 = vld [vmem:[%s1965_s11 + $0x4a] sm:$0x1]  ;;  %v1490_v63 = vld [vmem:[%s1965_s11 + $0x4c] sm:$0x1] }
  0x54   : > { %v1491_v28 = vld [vmem:[%s1965_s11 + $0x4e] sm:$0x1]  ;;  %v1492_v24 = vld [vmem:[%s1965_s11 + $0x50] sm:$0x1]  ;;  %v1493_v13 = vld [vmem:[%s1965_s11 + $0x52] sm:$0x1] }
  0x55   : > { %5623 = vst [vmem:[#allocation98_spill] sm:$0xff] %v2503_v12  ;;  %v1494_v25 = vld [vmem:[%s1965_s11 + $0x54] sm:$0x1]  ;;  %v1495_v53 = vld [vmem:[%s1965_s11 + $0x56] sm:$0x1]  ;;  %5625 = vst [vmem:[#allocation99_spill] sm:$0xff] %v2512_v15 }
  0x56   : > { %v1496_v22 = vld [vmem:[%s1965_s11 + $0x58] sm:$0x1]  ;;  %v1497_v21 = vld [vmem:[%s1965_s11 + $0x6e] sm:$0x1]  ;;  %5627 = vst [vmem:[#allocation100_spill] sm:$0xff] %v2517_v11  ;;  %5629 = vst [vmem:[#allocation101_spill] sm:$0xff] %v2522_v1 }
  0x57   : > { %v5630_v32 = vld [vmem:[#allocation2_spill] sm:$0xff]  ;;  %v1498_v10 = vld [vmem:[%s1965_s11 + $0x70] sm:$0x1]  ;;  %v1499_v2 = vld [vmem:[%s1965_s11 + $0x72] sm:$0x1] }
  0x58   : > { %v5631_v52 = vmax.f32 %v1983_v5, %v5630_v32  ;;  %v1500_v6 = vld [vmem:[%s1965_s11 + $0x74] sm:$0x1]  ;;  %v1501_v17 = vld [vmem:[%s1965_s11 + $0x76] sm:$0x1]  ;;  %v5634_v7 = vld [vmem:[#allocation7_spill] sm:$0xff] }
  0x59   : > { %v5635_v9 = vmax.f32 %v5633_v3, %v5634_v7  ;;  %5640 = vst [vmem:[#allocation7_spill] sm:$0xff] %v2541_v40  ;;  %v5641_v5 = vld [vmem:[#allocation5_spill] sm:$0xff]  ;;  %v1505_v7 = vld [vmem:[%s1965_s11 + $0x92] sm:$0x1]  ;;  %v5650_v47 = vld [vmem:[#allocation15_spill] sm:$0xff] }
  0x5a   : > { %v2527_v12 = vmax.f32 %v5631_v52, %v1477_v31  ;;  %v5642_v31 = vld [vmem:[#allocation9_spill] sm:$0xff]  ;;  %v5645_v52 = vld [vmem:[#allocation6_spill] sm:$0xff]  ;;  %v5654_v30 = vld [vmem:[#allocation16_spill] sm:$0xff] }
  0x5b   : > { %v2536_v23 = vmax.f32 %v5635_v9, %v1478_v39  ;;  %v5643_v0 = vmax.f32 %v5641_v5, %v5642_v31  ;;  %v1502_v15 = vld [vmem:[%s1965_s11 + $0x78] sm:$0x1]  ;;  %v1503_v3 = vld [vmem:[%s1965_s11 + $0x7a] sm:$0x1]  ;;  %v1504_v39 = vld [vmem:[%s1965_s11 + $0x7c] sm:$0x1] }
  0x5c   : > { %5632 = vst [vmem:[#allocation2_spill] sm:$0xff] %v2527_v12  ;;  %v5646_v12 = vld [vmem:[#allocation10_spill] sm:$0xff]  ;;  %v5649_v9 = vld [vmem:[#allocation11_spill] sm:$0xff] }
  0x5d   : > { %5636 = vst [vmem:[#allocation3_spill] sm:$0xff] %v2536_v23  ;;  %v2546_v32 = vmax.f32 %v5643_v0, %v1480_v49  ;;  %v5647_v1 = vmax.f32 %v5645_v52, %v5646_v12  ;;  %v5651_v4 = vmax.f32 %v5649_v9, %v5650_v47  ;;  %v5653_v49 = vld [vmem:[#allocation12_spill] sm:$0xff]  ;;  %v5657_v12 = vld [vmem:[#allocation13_spill] sm:$0xff]  ;;  %v5661_v52 = vld [vmem:[#allocation14_spill] sm:$0xff] }
  0x5e   : > { %v5655_v5 = vmax.f32 %v5653_v49, %v5654_v30  ;;  %v1506_v23 = vld [vmem:[%s1965_s11 + $0x94] sm:$0x1]  ;;  %v1507_v9 = vld [vmem:[%s1965_s11 + $0x96] sm:$0x1]  ;;  %v1509_v47 = vld [vmem:[%s1965_s11 + $0x9a] sm:$0x1] }
  0x5f   : > { %5644 = vst [vmem:[#allocation4_spill] sm:$0xff] %v2546_v32  ;;  %v2551_v11 = vmax.f32 %v5647_v1, %v1481_v41  ;;  %v2560_v8 = vmax.f32 %v5651_v4, %v1482_v48  ;;  %v5658_v41 = vld [vmem:[#allocation17_spill] sm:$0xff]  ;;  %v5665_v4 = vld [vmem:[#allocation19_spill] sm:$0xff] }
  0x60   : > { %v2565_v31 = vmax.f32 %v5655_v5, %v1483_v59  ;;  %v5659_v1 = vmax.f32 %v5657_v12, %v5658_v41  ;;  %v1508_v48 = vld [vmem:[%s1965_s11 + $0x98] sm:$0x1]  ;;  %v5666_v59 = vld [vmem:[#allocation23_spill] sm:$0xff]  ;;  %v5670_v5 = vld [vmem:[#allocation24_spill] sm:$0xff] }
  0x61   : > { %5648 = vst [vmem:[#allocation8_spill] sm:$0xff] %v2551_v11  ;;  %5652 = vst [vmem:[#allocation5_spill] sm:$0xff] %v2560_v8  ;;  %v5662_v11 = vld [vmem:[#allocation18_spill] sm:$0xff]  ;;  %v5667_v49 = vmax.f32 %v5665_v4, %v5666_v59  ;;  %v1510_v8 = vld [vmem:[%s1965_s11 + $0x9c] sm:$0x1] }
  0x62   : > { %5656 = vst [vmem:[#allocation9_spill] sm:$0xff] %v2565_v31  ;;  %v2570_v0 = vmax.f32 %v5659_v1, %v1484_v61  ;;  %v5663_v32 = vmax.f32 %v5661_v52, %v5662_v11  ;;  %v5669_v61 = vld [vmem:[#allocation20_spill] sm:$0xff]  ;;  %v5673_v11 = vld [vmem:[#allocation21_spill] sm:$0xff]  ;;  %v5677_v52 = vld [vmem:[#allocation22_spill] sm:$0xff] }
  0x63   : > { %v2584_v30 = vmax.f32 %v5667_v49, %v1486_v60  ;;  %v5671_v12 = vmax.f32 %v5669_v61, %v5670_v5  ;;  %v1511_v4 = vld [vmem:[%s1965_s11 + $0x9e] sm:$0x1]  ;;  %v1512_v60 = vld [vmem:[%s1965_s11 + $0xa0] sm:$0x1]  ;;  %v1513_v59 = vld [vmem:[%s1965_s11 + $0xb6] sm:$0x1] }
  0x64   : > { %5660 = vst [vmem:[#allocation6_spill] sm:$0xff] %v2570_v0  ;;  %v2575_v40 = vmax.f32 %v5663_v32, %v1485_v50  ;;  %v5674_v50 = vld [vmem:[#allocation25_spill] sm:$0xff]  ;;  %v5681_v49 = vld [vmem:[#allocation27_spill] sm:$0xff] }
  0x65   : > { %5668 = vst [vmem:[#allocation11_spill] sm:$0xff] %v2584_v30  ;;  %v2589_v41 = vmax.f32 %v5671_v12, %v1487_v54  ;;  %v5675_v32 = vmax.f32 %v5673_v11, %v5674_v50  ;;  %v5682_v54 = vld [vmem:[#allocation31_spill] sm:$0xff]  ;;  %v5686_v12 = vld [vmem:[#allocation32_spill] sm:$0xff]  ;;  %v1514_v30 = vld [vmem:[%s1965_s11 + $0xb8] sm:$0x1] }
  0x66   : > { %5664 = vst [vmem:[#allocation10_spill] sm:$0xff] %v2575_v40  ;;  %v5678_v40 = vld [vmem:[#allocation26_spill] sm:$0xff]  ;;  %v5683_v61 = vmax.f32 %v5681_v49, %v5682_v54  ;;  %v1515_v49 = vld [vmem:[%s1965_s11 + $0xba] sm:$0x1]  ;;  %v1517_v54 = vld [vmem:[%s1965_s11 + $0xbe] sm:$0x1] }
  0x67   : > { %5672 = vst [vmem:[#allocation15_spill] sm:$0xff] %v2589_v41  ;;  %v2594_v1 = vmax.f32 %v5675_v32, %v1488_v16  ;;  %v5679_v0 = vmax.f32 %v5677_v52, %v5678_v40  ;;  %v5685_v16 = vld [vmem:[#allocation28_spill] sm:$0xff]  ;;  %v5690_v40 = vld [vmem:[#allocation33_spill] sm:$0xff]  ;;  %v5693_v52 = vld [vmem:[#allocation30_spill] sm:$0xff] }
  0x68   : > { %v2608_v5 = vmax.f32 %v5683_v61, %v1490_v63  ;;  %v5687_v11 = vmax.f32 %v5685_v16, %v5686_v12  ;;  %v1516_v63 = vld [vmem:[%s1965_s11 + $0xbc] sm:$0x1]  ;;  %v5697_v61 = vld [vmem:[#allocation35_spill] sm:$0xff] }
  0x69   : > { %5676 = vst [vmem:[#allocation12_spill] sm:$0xff] %v2594_v1  ;;  %v2599_v31 = vmax.f32 %v5679_v0, %v1489_v62  ;;  %v5689_v62 = vld [vmem:[#allocation29_spill] sm:$0xff] }
  0x6a   : > { %5684 = vst [vmem:[#allocation13_spill] sm:$0xff] %v2608_v5  ;;  %v2613_v50 = vmax.f32 %v5687_v11, %v1491_v28  ;;  %v5691_v0 = vmax.f32 %v5689_v62, %v5690_v40  ;;  %v5698_v28 = vld [vmem:[#allocation39_spill] sm:$0xff]  ;;  %v5702_v11 = vld [vmem:[#allocation40_spill] sm:$0xff]  ;;  %v1518_v5 = vld [vmem:[%s1965_s11 + $0xc0] sm:$0x1] }
  0x6b   : > { %5680 = vst [vmem:[#allocation16_spill] sm:$0xff] %v2599_v31  ;;  %v5694_v31 = vld [vmem:[#allocation34_spill] sm:$0xff]  ;;  %v5699_v16 = vmax.f32 %v5697_v61, %v5698_v28  ;;  %v1521_v28 = vld [vmem:[%s1965_s11 + $0xda] sm:$0x1] }
  0x6c   : > { %5688 = vst [vmem:[#allocation17_spill] sm:$0xff] %v2613_v50  ;;  %v2618_v32 = vmax.f32 %v5691_v0, %v1492_v24  ;;  %v5695_v1 = vmax.f32 %v5693_v52, %v5694_v31  ;;  %v5701_v24 = vld [vmem:[#allocation36_spill] sm:$0xff]  ;;  %v5706_v31 = vld [vmem:[#allocation41_spill] sm:$0xff]  ;;  %v5709_v52 = vld [vmem:[#allocation38_spill] sm:$0xff] }
  0x6d   : > { %v2632_v12 = vmax.f32 %v5699_v16, %v1494_v25  ;;  %v5703_v62 = vmax.f32 %v5701_v24, %v5702_v11  ;;  %v1519_v61 = vld [vmem:[%s1965_s11 + $0xc2] sm:$0x1]  ;;  %v1520_v25 = vld [vmem:[%s1965_s11 + $0xc4] sm:$0x1]  ;;  %v5713_v16 = vld [vmem:[#allocation43_spill] sm:$0xff] }
  0x6e   : > { %5692 = vst [vmem:[#allocation14_spill] sm:$0xff] %v2618_v32  ;;  %v2623_v41 = vmax.f32 %v5695_v1, %v1493_v13  ;;  %v5705_v13 = vld [vmem:[#allocation37_spill] sm:$0xff] }
  0x6f   : > { %5700 = vst [vmem:[#allocation19_spill] sm:$0xff] %v2632_v12  ;;  %v2637_v40 = vmax.f32 %v5703_v62, %v1495_v53  ;;  %v5707_v1 = vmax.f32 %v5705_v13, %v5706_v31  ;;  %v5714_v53 = vld [vmem:[#allocation47_spill] sm:$0xff]  ;;  %v5718_v62 = vld [vmem:[#allocation48_spill] sm:$0xff]  ;;  %v1522_v12 = vld [vmem:[%s1965_s11 + $0xdc] sm:$0x1] }
  0x70   : > { %5696 = vst [vmem:[#allocation18_spill] sm:$0xff] %v2623_v41  ;;  %v5710_v41 = vld [vmem:[#allocation42_spill] sm:$0xff]  ;;  %v5715_v24 = vmax.f32 %v5713_v16, %v5714_v53  ;;  %v1523_v16 = vld [vmem:[%s1965_s11 + $0xde] sm:$0x1] }
  0x71   : > { %5704 = vst [vmem:[#allocation23_spill] sm:$0xff] %v2637_v40  ;;  %v2642_v0 = vmax.f32 %v5707_v1, %v1496_v22  ;;  %v5711_v32 = vmax.f32 %v5709_v52, %v5710_v41  ;;  %v5717_v22 = vld [vmem:[#allocation44_spill] sm:$0xff]  ;;  %v5722_v41 = vld [vmem:[#allocation49_spill] sm:$0xff]  ;;  %v5725_v52 = vld [vmem:[#allocation46_spill] sm:$0xff] }
  0x72   : > { %v2656_v11 = vmax.f32 %v5715_v24, %v1498_v10  ;;  %v5719_v13 = vmax.f32 %v5717_v22, %v5718_v62  ;;  %v1524_v10 = vld [vmem:[%s1965_s11 + $0xe0] sm:$0x1]  ;;  %v1525_v53 = vld [vmem:[%s1965_s11 + $0xe2] sm:$0x1]  ;;  %v5729_v24 = vld [vmem:[#allocation51_spill] sm:$0xff] }
  0x73   : > { %5708 = vst [vmem:[#allocation20_spill] sm:$0xff] %v2642_v0  ;;  %v2647_v50 = vmax.f32 %v5711_v32, %v1497_v21  ;;  %v5721_v21 = vld [vmem:[#allocation45_spill] sm:$0xff] }
  0x74   : > { %5716 = vst [vmem:[#allocation21_spill] sm:$0xff] %v2656_v11  ;;  %v2661_v31 = vmax.f32 %v5719_v13, %v1499_v2  ;;  %v5723_v32 = vmax.f32 %v5721_v21, %v5722_v41  ;;  %v5730_v2 = vld [vmem:[#allocation55_spill] sm:$0xff]  ;;  %v5734_v13 = vld [vmem:[#allocation56_spill] sm:$0xff]  ;;  %v1526_v11 = vld [vmem:[%s1965_s11 + $0xe4] sm:$0x1] }
  0x75   : > { %5712 = vst [vmem:[#allocation24_spill] sm:$0xff] %v2647_v50  ;;  %v5726_v50 = vld [vmem:[#allocation50_spill] sm:$0xff]  ;;  %v5731_v22 = vmax.f32 %v5729_v24, %v5730_v2  ;;  %v1529_v2 = vld [vmem:[%s1965_s11 + $0xfe] sm:$0x1] }
  0x76   : > { %5720 = vst [vmem:[#allocation25_spill] sm:$0xff] %v2661_v31  ;;  %v2666_v1 = vmax.f32 %v5723_v32, %v1500_v6  ;;  %v5727_v0 = vmax.f32 %v5725_v52, %v5726_v50  ;;  %v5733_v6 = vld [vmem:[#allocation52_spill] sm:$0xff]  ;;  %v5738_v50 = vld [vmem:[#allocation57_spill] sm:$0xff]  ;;  %v5741_v52 = vld [vmem:[#allocation54_spill] sm:$0xff] }
  0x77   : > { %v2680_v62 = vmax.f32 %v5731_v22, %v1502_v15  ;;  %v5735_v21 = vmax.f32 %v5733_v6, %v5734_v13  ;;  %v1527_v24 = vld [vmem:[%s1965_s11 + $0xe6] sm:$0x1]  ;;  %v1528_v15 = vld [vmem:[%s1965_s11 + $0xe8] sm:$0x1] }
  0x78   : > { %5724 = vst [vmem:[#allocation22_spill] sm:$0xff] %v2666_v1  ;;  %v2671_v40 = vmax.f32 %v5727_v0, %v1501_v17  ;;  %v5737_v17 = vld [vmem:[#allocation53_spill] sm:$0xff]  ;;  %v5745_v22 = vld [vmem:[#allocation59_spill] sm:$0xff] }
  0x79   : > { %5732 = vst [vmem:[#allocation27_spill] sm:$0xff] %v2680_v62  ;;  %v2685_v41 = vmax.f32 %v5735_v21, %v1503_v3  ;;  %v5739_v0 = vmax.f32 %v5737_v17, %v5738_v50  ;;  %v5746_v3 = vld [vmem:[#allocation63_spill] sm:$0xff]  ;;  %v5748_v21 = vld [vmem:[#allocation60_spill] sm:$0xff]  ;;  %v1530_v62 = vld [vmem:[%s1965_s11 + $0x100] sm:$0x1] }
  0x7a   : > { %5728 = vst [vmem:[#allocation26_spill] sm:$0xff] %v2671_v40  ;;  %v5742_v40 = vld [vmem:[#allocation58_spill] sm:$0xff]  ;;  %v5747_v6 = vmax.f32 %v5745_v22, %v5746_v3 }
  0x7b   : > { %5736 = vst [vmem:[#allocation31_spill] sm:$0xff] %v2685_v41  ;;  %v2690_v32 = vmax.f32 %v5739_v0, %v1504_v39  ;;  %v5743_v1 = vmax.f32 %v5741_v52, %v5742_v40  ;;  %v5749_v39 = vld [vmem:[#allocation64_spill] sm:$0xff]  ;;  %v5751_v40 = vld [vmem:[#allocation61_spill] sm:$0xff]  ;;  %v5754_v52 = vld [vmem:[#allocation62_spill] sm:$0xff] }
  0x7c   : > { %v2704_v13 = vmax.f32 %v5747_v6, %v1506_v23  ;;  %v5750_v17 = vmax.f32 %v5748_v21, %v5749_v39  ;;  %v1531_v22 = vld [vmem:[%s1965_s11 + $0x102] sm:$0x1]  ;;  %v1532_v23 = vld [vmem:[%s1965_s11 + $0x104] sm:$0x1]  ;;  %v1533_v3 = vld [vmem:[%s1965_s11 + $0x106] sm:$0x1]  ;;  %v5760_v39 = vmax.f32 %v2227_v18, %v2239_v20  ;;  %v5768_v18 = vmax.f32 %v2256_v27, %v2268_v29 }
  0x7d   : > { %5740 = vst [vmem:[#allocation28_spill] sm:$0xff] %v2690_v32  ;;  %v2695_v31 = vmax.f32 %v5743_v1, %v1505_v7  ;;  %v5752_v7 = vld [vmem:[#allocation65_spill] sm:$0xff]  ;;  %v2769_v27 = vld [vmem:[%s1965_s11 + $0x12] sm:$0x1] }
  0x7e   : > { %v2709_v50 = vmax.f32 %v5750_v17, %v1507_v9  ;;  %v5753_v1 = vmax.f32 %v5751_v40, %v5752_v7  ;;  %v5758_v6 = vld [vmem:[#allocation69_spill] sm:$0xff]  ;;  %v5761_v17 = vld [vmem:[#allocation67_spill] sm:$0xff]  ;;  %v5764_v40 = vld [vmem:[#allocation68_spill] sm:$0xff]  ;;  %v2751_v20 = vmax.f32 %v5768_v18, %v1514_v30  ;;  %5775 = vst [vmem:[#allocation30_spill] sm:$0xff] %v2769_v27 }
  0x7f   : > { %5744 = vst [vmem:[#allocation32_spill] sm:$0xff] %v2695_v31  ;;  %v5755_v31 = vld [vmem:[#allocation66_spill] sm:$0xff]  ;;  %v5759_v21 = vmax.f32 %v2224_v19, %v5758_v6  ;;  %v5765_v7 = vld [vmem:[#allocation71_spill] sm:$0xff]  ;;  %v3118_v27 = vld [vmem:[%s1965_s11 + $0x116] sm:$0x1] }
  0x80   : > { %v2714_v0 = vmax.f32 %v5753_v1, %v1508_v48  ;;  %v5756_v32 = vmax.f32 %v5754_v52, %v5755_v31  ;;  %v2733_v48 = vmax.f32 %v5760_v39, %v1511_v4  ;;  %v5762_v31 = vld [vmem:[#allocation70_spill] sm:$0xff]  ;;  %v5766_v1 = vmax.f32 %v5764_v40, %v5765_v7  ;;  %v1534_v19 = vld [vmem:[%s1965_s11 + $0x108] sm:$0x1]  ;;  %v1536_v6 = vld [vmem:[%s1965_s11 + $0x10c] sm:$0x1]  ;;  %5918 = vst [vmem:[#allocation103_spill] sm:$0xff] %v3118_v27 }
  0x81   : > { %v2728_v9 = vmax.f32 %v5759_v21, %v1510_v8  ;;  %v1535_v8 = vld [vmem:[%s1965_s11 + $0x10a] sm:$0x1]  ;;  %v5769_v4 = vld [vmem:[#allocation72_spill] sm:$0xff]  ;;  %v5771_v39 = vld [vmem:[#allocation73_spill] sm:$0xff] }
  0x82   : > { %v2719_v41 = vmax.f32 %v5756_v32, %v1509_v47  ;;  %v5763_v47 = vmax.f32 %v5761_v17, %v5762_v31  ;;  %v2743_v52 = vmax.f32 %v5766_v1, %v1513_v59  ;;  %v5770_v21 = vmax.f32 %v2259_v26, %v5769_v4  ;;  %v5773_v31 = vld [vmem:[#allocation74_spill] sm:$0xff] }
  0x83   : > { %v5772_v17 = vmax.f32 %v2262_v33, %v5771_v39  ;;  %v5776_v26 = vmax.f32 %v2288_v35, %v2300_v37  ;;  %v5777_v33 = vmax.f32 %v2291_v34, %v2303_v36  ;;  %v5783_v1 = vld [vmem:[#allocation78_spill] sm:$0xff]  ;;  %v2795_v35 = vld [vmem:[%s1965_s11 + $0x16] sm:$0x1]  ;;  %v2798_v37 = vld [vmem:[%s1965_s11 + $0x18] sm:$0x1]  ;;  %v5790_v36 = vmax.f32 %v2320_v44, %v2332_v46 }
  0x84   : > { %5757 = vst [vmem:[#allocation29_spill] sm:$0xff] %v2719_v41  ;;  %v2738_v32 = vmax.f32 %v5763_v47, %v1512_v60  ;;  %5767 = vst [vmem:[#allocation33_spill] sm:$0xff] %v2743_v52  ;;  %v2756_v60 = vmax.f32 %v5770_v21, %v1515_v49  ;;  %v5774_v47 = vmax.f32 %v2265_v38, %v5773_v31  ;;  %v5778_v49 = vld [vmem:[#allocation75_spill] sm:$0xff]  ;;  %v2792_v21 = vld [vmem:[%s1965_s11 + $0x14] sm:$0x1] }
  0x85   : > { %v2761_v59 = vmax.f32 %v5772_v17, %v1516_v63  ;;  %v2774_v29 = vmax.f32 %v5776_v26, %v1518_v5  ;;  %v2779_v30 = vmax.f32 %v5777_v33, %v1519_v61  ;;  %v5779_v63 = vld [vmem:[#allocation77_spill] sm:$0xff]  ;;  %5786 = vst [vmem:[#allocation39_spill] sm:$0xff] %v2792_v21  ;;  %5787 = vst [vmem:[#allocation36_spill] sm:$0xff] %v2795_v35  ;;  %v5799_v26 = vld [vmem:[#allocation82_spill] sm:$0xff] }
  0x86   : > { %v2766_v40 = vmax.f32 %v5774_v47, %v1517_v54  ;;  %v5780_v38 = vmax.f32 %v5778_v49, %v5779_v63  ;;  %v5782_v54 = vld [vmem:[#allocation76_spill] sm:$0xff]  ;;  %5788 = vst [vmem:[#allocation40_spill] sm:$0xff] %v2798_v37  ;;  %v2801_v34 = vld [vmem:[%s1965_s11 + $0x1a] sm:$0x1]  ;;  %v2806_v5 = vmax.f32 %v5790_v36, %v1522_v12  ;;  %v5792_v61 = vmax.f32 %v2323_v43, %v2335_v45  ;;  %v2824_v63 = vld [vmem:[%s1965_s11 + $0x1c] sm:$0x1] }
  0x87   : > { %v5784_v18 = vmax.f32 %v5782_v54, %v5783_v1  ;;  %5789 = vst [vmem:[#allocation37_spill] sm:$0xff] %v2801_v34  ;;  %v5795_v39 = vld [vmem:[#allocation81_spill] sm:$0xff]  ;;  %v5798_v47 = vld [vmem:[#allocation80_spill] sm:$0xff]  ;;  %5802 = vst [vmem:[#allocation47_spill] sm:$0xff] %v2824_v63  ;;  %v5806_v45 = vmax.f32 %v2352_v56, %v2364_v58 }
  0x88   : > { %v2784_v7 = vmax.f32 %v5780_v38, %v1520_v25  ;;  %5791 = vst [vmem:[#allocation41_spill] sm:$0xff] %v2806_v5  ;;  %v2811_v25 = vmax.f32 %v5792_v61, %v1523_v16  ;;  %v5800_v33 = vmax.f32 %v5798_v47, %v5799_v26  ;;  %v2827_v44 = vld [vmem:[%s1965_s11 + $0x1e] sm:$0x1]  ;;  %v2830_v46 = vld [vmem:[%s1965_s11 + $0x20] sm:$0x1]  ;;  %v5808_v16 = vmax.f32 %v2355_v55, %v2367_v57 }
  0x89   : > { %v2789_v4 = vmax.f32 %v5784_v18, %v1521_v28  ;;  %v5794_v28 = vld [vmem:[#allocation79_spill] sm:$0xff]  ;;  %5803 = vst [vmem:[#allocation44_spill] sm:$0xff] %v2827_v44  ;;  %5804 = vst [vmem:[#allocation48_spill] sm:$0xff] %v2830_v46  ;;  %v2833_v43 = vld [vmem:[%s1965_s11 + $0x36] sm:$0x1]  ;;  %v2838_v12 = vmax.f32 %v5806_v45, %v1526_v11  ;;  %v5822_v11 = vmax.f32 %v2384_v42, %v2396_v14 }
  0x8a   : > { %5781 = vst [vmem:[#allocation34_spill] sm:$0xff] %v2784_v7  ;;  %5793 = vst [vmem:[#allocation38_spill] sm:$0xff] %v2811_v25  ;;  %v5796_v17 = vmax.f32 %v5794_v28, %v5795_v39  ;;  %v2821_v49 = vmax.f32 %v5800_v33, %v1525_v53  ;;  %v5810_v53 = vld [vmem:[#allocation83_spill] sm:$0xff]  ;;  %v5811_v38 = vld [vmem:[#allocation85_spill] sm:$0xff] }
  0x8b   : > { %5785 = vst [vmem:[#allocation35_spill] sm:$0xff] %v2789_v4  ;;  %5805 = vst [vmem:[#allocation45_spill] sm:$0xff] %v2833_v43  ;;  %v5812_v54 = vmax.f32 %v5810_v53, %v5811_v38  ;;  %v5814_v18 = vld [vmem:[#allocation84_spill] sm:$0xff]  ;;  %v5815_v36 = vld [vmem:[#allocation86_spill] sm:$0xff] }
  0x8c   : > { %v2816_v31 = vmax.f32 %v5796_v17, %v1524_v10  ;;  %5801 = vst [vmem:[#allocation43_spill] sm:$0xff] %v2821_v49  ;;  %5807 = vst [vmem:[#allocation49_spill] sm:$0xff] %v2838_v12  ;;  %v2843_v10 = vmax.f32 %v5808_v16, %v1527_v24  ;;  %v5816_v61 = vmax.f32 %v5814_v18, %v5815_v36  ;;  %v2856_v56 = vld [vmem:[%s1965_s11 + $0x38] sm:$0x1]  ;;  %v2859_v58 = vld [vmem:[%s1965_s11 + $0x3a] sm:$0x1] }
  0x8d   : > { %v2848_v1 = vmax.f32 %v5812_v54, %v1528_v15  ;;  %5818 = vst [vmem:[#allocation55_spill] sm:$0xff] %v2856_v56  ;;  %5819 = vst [vmem:[#allocation52_spill] sm:$0xff] %v2859_v58  ;;  %v2862_v55 = vld [vmem:[%s1965_s11 + $0x3c] sm:$0x1]  ;;  %v2865_v57 = vld [vmem:[%s1965_s11 + $0x3e] sm:$0x1]  ;;  %v2870_v24 = vmax.f32 %v5822_v11, %v1530_v62 }
  0x8e   : > { %5797 = vst [vmem:[#allocation42_spill] sm:$0xff] %v2816_v31  ;;  %5809 = vst [vmem:[#allocation46_spill] sm:$0xff] %v2843_v10  ;;  %v2853_v28 = vmax.f32 %v5816_v61, %v1529_v2  ;;  %v5824_v15 = vld [vmem:[#allocation89_spill] sm:$0xff]  ;;  %v5827_v17 = vld [vmem:[#allocation87_spill] sm:$0xff] }
  0x8f   : > { %5813 = vst [vmem:[#allocation50_spill] sm:$0xff] %v2848_v1  ;;  %5820 = vst [vmem:[#allocation56_spill] sm:$0xff] %v2862_v55  ;;  %v5825_v2 = vmax.f32 %v2387_v51, %v5824_v15  ;;  %v5828_v47 = vld [vmem:[#allocation90_spill] sm:$0xff]  ;;  %v5831_v45 = vld [vmem:[#allocation88_spill] sm:$0xff] }
  0x90   : > { %5817 = vst [vmem:[#allocation51_spill] sm:$0xff] %v2853_v28  ;;  %5821 = vst [vmem:[#allocation53_spill] sm:$0xff] %v2865_v57  ;;  %v5829_v26 = vmax.f32 %v5827_v17, %v5828_v47  ;;  %v5832_v16 = vld [vmem:[#allocation91_spill] sm:$0xff]  ;;  %v2888_v14 = vld [vmem:[%s1965_s11 + $0x40] sm:$0x1] }
  0x91   : > { %5823 = vst [vmem:[#allocation57_spill] sm:$0xff] %v2870_v24  ;;  %v2875_v39 = vmax.f32 %v5825_v2, %v1531_v22  ;;  %v5833_v53 = vmax.f32 %v5831_v45, %v5832_v16  ;;  %5835 = vst [vmem:[#allocation63_spill] sm:$0xff] %v2888_v14  ;;  %v2891_v42 = vld [vmem:[%s1965_s11 + $0x42] sm:$0x1]  ;;  %v2894_v51 = vld [vmem:[%s1965_s11 + $0x44] sm:$0x1] }
  0x92   : > { %v2880_v33 = vmax.f32 %v5829_v26, %v1532_v23  ;;  %5836 = vst [vmem:[#allocation60_spill] sm:$0xff] %v2891_v42  ;;  %5837 = vst [vmem:[#allocation64_spill] sm:$0xff] %v2894_v51  ;;  %v2897_v62 = vld [vmem:[%s1965_s11 + $0x5a] sm:$0x1]  ;;  %v5839_v22 = vld [vmem:[#allocation92_spill] sm:$0xff] }
  0x93   : > { %5826 = vst [vmem:[#allocation54_spill] sm:$0xff] %v2875_v39  ;;  %v2885_v38 = vmax.f32 %v5833_v53, %v1533_v3  ;;  %5838 = vst [vmem:[#allocation61_spill] sm:$0xff] %v2897_v62  ;;  %v5840_v54 = vld [vmem:[#allocation95_spill] sm:$0xff]  ;;  %v5843_v36 = vld [vmem:[#allocation93_spill] sm:$0xff] }
  0x94   : > { %5830 = vst [vmem:[#allocation58_spill] sm:$0xff] %v2880_v33  ;;  %v5841_v18 = vmax.f32 %v5839_v22, %v5840_v54  ;;  %v5844_v61 = vld [vmem:[#allocation96_spill] sm:$0xff]  ;;  %v5847_v15 = vld [vmem:[#allocation94_spill] sm:$0xff]  ;;  %v5848_v2 = vld [vmem:[#allocation97_spill] sm:$0xff] }
  0x95   : > { %5834 = vst [vmem:[#allocation59_spill] sm:$0xff] %v2885_v38  ;;  %v5845_v11 = vmax.f32 %v5843_v36, %v5844_v61  ;;  %v5849_v17 = vmax.f32 %v5847_v15, %v5848_v2  ;;  %v2915_v26 = vld [vmem:[%s1965_s11 + $0x5c] sm:$0x1]  ;;  %v2918_v45 = vld [vmem:[%s1965_s11 + $0x5e] sm:$0x1]  ;;  %v5925_v33 = vld [vmem:[#allocation98_spill] sm:$0xff] }
  0x96   : > { %v2902_v23 = vmax.f32 %v5841_v18, %v1534_v19  ;;  %5851 = vst [vmem:[#allocation69_spill] sm:$0xff] %v2915_v26  ;;  %5852 = vst [vmem:[#allocation67_spill] sm:$0xff] %v2918_v45  ;;  %v2921_v19 = vld [vmem:[%s1965_s11 + $0x60] sm:$0x1]  ;;  %v2924_v16 = vld [vmem:[%s1965_s11 + $0x62] sm:$0x1] }
  0x97   : > { %v2907_v3 = vmax.f32 %v5845_v11, %v1535_v8  ;;  %v2912_v47 = vmax.f32 %v5849_v17, %v1536_v6  ;;  %5853 = vst [vmem:[#allocation70_spill] sm:$0xff] %v2921_v19  ;;  %5854 = vst [vmem:[#allocation68_spill] sm:$0xff] %v2924_v16  ;;  %v2929_v22 = vld [vmem:[%s1965_s11 + $0x64] sm:$0x1]  ;;  %v2932_v54 = vld [vmem:[%s1965_s11 + $0x66] sm:$0x1] }
  0x98   : > { %5842 = vst [vmem:[#allocation65_spill] sm:$0xff] %v2902_v23  ;;  %5856 = vst [vmem:[#allocation71_spill] sm:$0xff] %v2929_v22  ;;  %v2935_v6 = vld [vmem:[%s1965_s11 + $0x68] sm:$0x1]  ;;  %v2938_v18 = vld [vmem:[%s1965_s11 + $0x7e] sm:$0x1] }
  0x99   : > { %5846 = vst [vmem:[#allocation62_spill] sm:$0xff] %v2907_v3  ;;  %5850 = vst [vmem:[#allocation66_spill] sm:$0xff] %v2912_v47  ;;  %v2949_v53 = vld [vmem:[%s1965_s11 + $0x80] sm:$0x1]  ;;  %v2952_v47 = vld [vmem:[%s1965_s11 + $0x82] sm:$0x1] }
  0x9a   : > { %5857 = vst [vmem:[#allocation72_spill] sm:$0xff] %v2932_v54  ;;  %5858 = vst [vmem:[#allocation73_spill] sm:$0xff] %v2935_v6  ;;  %v2955_v3 = vld [vmem:[%s1965_s11 + $0x84] sm:$0x1]  ;;  %v2958_v23 = vld [vmem:[%s1965_s11 + $0x86] sm:$0x1] }
  0x9b   : > { %5859 = vst [vmem:[#allocation74_spill] sm:$0xff] %v2938_v18  ;;  %5864 = vst [vmem:[#allocation75_spill] sm:$0xff] %v2949_v53  ;;  %v2969_v35 = vld [vmem:[%s1965_s11 + $0x88] sm:$0x1]  ;;  %v2972_v11 = vld [vmem:[%s1965_s11 + $0x8a] sm:$0x1] }
  0x9c   : > { %5865 = vst [vmem:[#allocation77_spill] sm:$0xff] %v2952_v47  ;;  %5866 = vst [vmem:[#allocation76_spill] sm:$0xff] %v2955_v3  ;;  %v2975_v21 = vld [vmem:[%s1965_s11 + $0x8c] sm:$0x1]  ;;  %v2978_v36 = vld [vmem:[%s1965_s11 + $0xa2] sm:$0x1] }
  0x9d   : > { %5867 = vst [vmem:[#allocation78_spill] sm:$0xff] %v2958_v23  ;;  %5872 = vst [vmem:[#allocation79_spill] sm:$0xff] %v2975_v21  ;;  %v2989_v44 = vld [vmem:[%s1965_s11 + $0xa4] sm:$0x1]  ;;  %v2992_v17 = vld [vmem:[%s1965_s11 + $0xa6] sm:$0x1] }
  0x9e   : > { %5873 = vst [vmem:[#allocation81_spill] sm:$0xff] %v2978_v36  ;;  %v2995_v63 = vld [vmem:[%s1965_s11 + $0xa8] sm:$0x1]  ;;  %v2998_v61 = vld [vmem:[%s1965_s11 + $0xaa] sm:$0x1]  ;;  %v5926_v39 = vld [vmem:[#allocation30_spill] sm:$0xff] }
  0x9f   : > { %5878 = vst [vmem:[#allocation80_spill] sm:$0xff] %v2995_v63  ;;  %5879 = vst [vmem:[#allocation82_spill] sm:$0xff] %v2998_v61  ;;  %v3009_v58 = vld [vmem:[%s1965_s11 + $0xac] sm:$0x1]  ;;  %v3012_v34 = vld [vmem:[%s1965_s11 + $0xae] sm:$0x1]  ;;  %v5927_v24 = vmax.f32 %v5925_v33, %v5926_v39 }
  0xa0   : > { %v3015_v56 = vld [vmem:[%s1965_s11 + $0xb0] sm:$0x1]  ;;  %v3018_v15 = vld [vmem:[%s1965_s11 + $0xc6] sm:$0x1]  ;;  %v3029_v42 = vld [vmem:[%s1965_s11 + $0xc8] sm:$0x1] }
  0xa1   : > { %5884 = vst [vmem:[#allocation83_spill] sm:$0xff] %v3018_v15  ;;  %v3032_v43 = vld [vmem:[%s1965_s11 + $0xca] sm:$0x1]  ;;  %v3035_v14 = vld [vmem:[%s1965_s11 + $0xcc] sm:$0x1]  ;;  %v5938_v39 = vld [vmem:[#allocation40_spill] sm:$0xff] }
  0xa2   : > { %5889 = vst [vmem:[#allocation85_spill] sm:$0xff] %v3032_v43  ;;  %5890 = vst [vmem:[#allocation84_spill] sm:$0xff] %v3035_v14  ;;  %v3038_v37 = vld [vmem:[%s1965_s11 + $0xce] sm:$0x1]  ;;  %v3049_v45 = vld [vmem:[%s1965_s11 + $0xd0] sm:$0x1] }
  0xa3   : > { %5891 = vst [vmem:[#allocation86_spill] sm:$0xff] %v3038_v37  ;;  %v3052_v57 = vld [vmem:[%s1965_s11 + $0xd2] sm:$0x1]  ;;  %v3055_v26 = vld [vmem:[%s1965_s11 + $0xd4] sm:$0x1]  ;;  %v5907_v19 = vld [vmem:[#allocation27_spill] sm:$0xff] }
  0xa4   : > { %5896 = vst [vmem:[#allocation89_spill] sm:$0xff] %v3052_v57  ;;  %5897 = vst [vmem:[#allocation87_spill] sm:$0xff] %v3055_v26  ;;  %v3058_v46 = vld [vmem:[%s1965_s11 + $0xea] sm:$0x1]  ;;  %v3069_v54 = vld [vmem:[%s1965_s11 + $0xec] sm:$0x1] }
  0xa5   : > { %5898 = vst [vmem:[#allocation90_spill] sm:$0xff] %v3058_v46  ;;  %5903 = vst [vmem:[#allocation88_spill] sm:$0xff] %v3069_v54  ;;  %v3072_v62 = vld [vmem:[%s1965_s11 + $0xee] sm:$0x1]  ;;  %v3075_v22 = vld [vmem:[%s1965_s11 + $0xf0] sm:$0x1] }
  0xa6   : > { %5904 = vst [vmem:[#allocation91_spill] sm:$0xff] %v3072_v62  ;;  %5905 = vst [vmem:[#allocation92_spill] sm:$0xff] %v3075_v22  ;;  %v3078_v55 = vld [vmem:[%s1965_s11 + $0xf2] sm:$0x1]  ;;  %v5908_v18 = vld [vmem:[#allocation31_spill] sm:$0xff] }
  0xa7   : > { %5906 = vst [vmem:[#allocation95_spill] sm:$0xff] %v3078_v55  ;;  %v3089_v47 = vld [vmem:[%s1965_s11 + $0xf4] sm:$0x1]  ;;  %v3092_v16 = vld [vmem:[%s1965_s11 + $0xf6] sm:$0x1]  ;;  %v5930_v23 = vld [vmem:[#allocation39_spill] sm:$0xff] }
  0xa8   : > { %5911 = vst [vmem:[#allocation93_spill] sm:$0xff] %v3089_v47  ;;  %5912 = vst [vmem:[#allocation96_spill] sm:$0xff] %v3092_v16  ;;  %v3095_v53 = vld [vmem:[%s1965_s11 + $0xf8] sm:$0x1]  ;;  %v3098_v51 = vld [vmem:[%s1965_s11 + $0x10e] sm:$0x1] }
  0xa9   : > { %5913 = vst [vmem:[#allocation94_spill] sm:$0xff] %v3095_v53  ;;  %5914 = vst [vmem:[#allocation97_spill] sm:$0xff] %v3098_v51  ;;  %v3109_v36 = vld [vmem:[%s1965_s11 + $0x110] sm:$0x1]  ;;  %v3112_v8 = vld [vmem:[%s1965_s11 + $0x112] sm:$0x1] }
  0xaa   : > { %5915 = vst [vmem:[#allocation27_spill] sm:$0xff] %v3109_v36  ;;  %5916 = vst [vmem:[#allocation31_spill] sm:$0xff] %v3112_v8  ;;  %v3115_v21 = vld [vmem:[%s1965_s11 + $0x114] sm:$0x1]  ;;  %v3129_v61 = vld [vmem:[%s1965_s11 + $0x118] sm:$0x1] }
  0xab   : > { %5917 = vst [vmem:[#allocation102_spill] sm:$0xff] %v3115_v21  ;;  %5919 = vst [vmem:[#allocation104_spill] sm:$0xff] %v3129_v61  ;;  %v3132_v41 = vld [vmem:[%s1965_s11 + $0x11a] sm:$0x1]  ;;  %v3135_v63 = vld [vmem:[%s1965_s11 + $0x11c] sm:$0x1] }
  0xac   : > { %5920 = vst [vmem:[#allocation105_spill] sm:$0xff] %v3132_v41  ;;  %5921 = vst [vmem:[#allocation106_spill] sm:$0xff] %v3135_v63  ;;  %v1601_v15 = vld [vmem:[%s1965_s11 + $0x13] sm:$0x1]  ;;  %v1602_v6 = vld [vmem:[%s1965_s11 + $0x15] sm:$0x1] }
  0xad   : > { %v1603_v14 = vld [vmem:[%s1965_s11 + $0x17] sm:$0x1]  ;;  %v1604_v2 = vld [vmem:[%s1965_s11 + $0x19] sm:$0x1]  ;;  %v1605_v37 = vld [vmem:[%s1965_s11 + $0x1b] sm:$0x1]  ;;  %v3207_v10 = vmax.f32 %v5927_v24, %v1601_v15 }
  0xae   : > { %v1606_v46 = vld [vmem:[%s1965_s11 + $0x1d] sm:$0x1]  ;;  %v1607_v4 = vld [vmem:[%s1965_s11 + $0x1f] sm:$0x1]  ;;  %v1608_v26 = vld [vmem:[%s1965_s11 + $0x21] sm:$0x1] }
  0xaf   : > { %v1609_v7 = vld [vmem:[%s1965_s11 + $0x37] sm:$0x1]  ;;  %v1610_v55 = vld [vmem:[%s1965_s11 + $0x39] sm:$0x1]  ;;  %v1611_v49 = vld [vmem:[%s1965_s11 + $0x3b] sm:$0x1] }
  0xb0   : > { %v1612_v22 = vld [vmem:[%s1965_s11 + $0x3d] sm:$0x1]  ;;  %v1613_v31 = vld [vmem:[%s1965_s11 + $0x3f] sm:$0x1]  ;;  %v1614_v51 = vld [vmem:[%s1965_s11 + $0x41] sm:$0x1] }
  0xb1   : > { %v1615_v28 = vld [vmem:[%s1965_s11 + $0x43] sm:$0x1]  ;;  %v1616_v53 = vld [vmem:[%s1965_s11 + $0x45] sm:$0x1]  ;;  %v1617_v1 = vld [vmem:[%s1965_s11 + $0x5b] sm:$0x1] }
  0xb2   : > { %v1618_v21 = vld [vmem:[%s1965_s11 + $0x5d] sm:$0x1]  ;;  %v1619_v43 = vld [vmem:[%s1965_s11 + $0x5f] sm:$0x1]  ;;  %v1620_v27 = vld [vmem:[%s1965_s11 + $0x61] sm:$0x1] }
  0xb3   : > { %v1621_v38 = vld [vmem:[%s1965_s11 + $0x63] sm:$0x1]  ;;  %5928 = vst [vmem:[#allocation98_spill] sm:$0xff] %v3207_v10  ;;  %v1622_v52 = vld [vmem:[%s1965_s11 + $0x65] sm:$0x1]  ;;  %v5929_v36 = vld [vmem:[#allocation99_spill] sm:$0xff] }
  0xb4   : > { %v1623_v61 = vld [vmem:[%s1965_s11 + $0x67] sm:$0x1]  ;;  %v1624_v3 = vld [vmem:[%s1965_s11 + $0x69] sm:$0x1]  ;;  %v1625_v41 = vld [vmem:[%s1965_s11 + $0x7f] sm:$0x1]  ;;  %v5931_v63 = vmax.f32 %v5929_v36, %v5930_v23 }
  0xb5   : > { %v5933_v16 = vld [vmem:[#allocation100_spill] sm:$0xff]  ;;  %v5937_v24 = vld [vmem:[#allocation101_spill] sm:$0xff]  ;;  %v5941_v10 = vld [vmem:[#allocation2_spill] sm:$0xff] }
  0xb6   : > { %v3216_v8 = vmax.f32 %v5931_v63, %v1602_v6  ;;  %v5934_v47 = vld [vmem:[#allocation36_spill] sm:$0xff]  ;;  %v5939_v33 = vmax.f32 %v5937_v24, %v5938_v39  ;;  %v5942_v25 = vld [vmem:[#allocation37_spill] sm:$0xff]  ;;  %v1626_v57 = vld [vmem:[%s1965_s11 + $0x81] sm:$0x1] }
  0xb7   : > { %v5935_v12 = vmax.f32 %v5933_v16, %v5934_v47  ;;  %v5943_v54 = vmax.f32 %v5941_v10, %v5942_v25  ;;  %v1627_v23 = vld [vmem:[%s1965_s11 + $0x83] sm:$0x1]  ;;  %v1628_v63 = vld [vmem:[%s1965_s11 + $0x85] sm:$0x1]  ;;  %v1629_v6 = vld [vmem:[%s1965_s11 + $0x87] sm:$0x1] }
  0xb8   : > { %5932 = vst [vmem:[#allocation30_spill] sm:$0xff] %v3216_v8  ;;  %v3226_v15 = vmax.f32 %v5939_v33, %v1604_v2  ;;  %v5945_v47 = vld [vmem:[#allocation3_spill] sm:$0xff]  ;;  %v5950_v2 = vld [vmem:[#allocation44_spill] sm:$0xff] }
  0xb9   : > { %v3221_v62 = vmax.f32 %v5935_v12, %v1603_v14  ;;  %v3231_v5 = vmax.f32 %v5943_v54, %v1605_v37  ;;  %v5946_v12 = vld [vmem:[#allocation47_spill] sm:$0xff]  ;;  %v5953_v37 = vld [vmem:[#allocation4_spill] sm:$0xff] }
  0xba   : > { %5940 = vst [vmem:[#allocation39_spill] sm:$0xff] %v3226_v15  ;;  %v5947_v14 = vmax.f32 %v5945_v47, %v5946_v12  ;;  %v5949_v36 = vld [vmem:[#allocation7_spill] sm:$0xff]  ;;  %v5954_v25 = vld [vmem:[#allocation48_spill] sm:$0xff]  ;;  %v1633_v12 = vld [vmem:[%s1965_s11 + $0xa3] sm:$0x1] }
  0xbb   : > { %5936 = vst [vmem:[#allocation99_spill] sm:$0xff] %v3221_v62  ;;  %5944 = vst [vmem:[#allocation100_spill] sm:$0xff] %v3231_v5  ;;  %v5951_v24 = vmax.f32 %v5949_v36, %v5950_v2  ;;  %v5955_v10 = vmax.f32 %v5953_v37, %v5954_v25  ;;  %v5957_v33 = vld [vmem:[#allocation8_spill] sm:$0xff]  ;;  %v5958_v5 = vld [vmem:[#allocation45_spill] sm:$0xff] }
  0xbc   : > { %v3240_v16 = vmax.f32 %v5947_v14, %v1606_v46  ;;  %v5959_v15 = vmax.f32 %v5957_v33, %v5958_v5  ;;  %v1630_v8 = vld [vmem:[%s1965_s11 + $0x89] sm:$0x1]  ;;  %v1631_v47 = vld [vmem:[%s1965_s11 + $0x8b] sm:$0x1]  ;;  %v1632_v46 = vld [vmem:[%s1965_s11 + $0x8d] sm:$0x1] }
  0xbd   : > { %v3245_v39 = vmax.f32 %v5951_v24, %v1607_v4  ;;  %v3250_v54 = vmax.f32 %v5955_v10, %v1608_v26  ;;  %v5961_v14 = vld [vmem:[#allocation5_spill] sm:$0xff]  ;;  %v5962_v4 = vld [vmem:[#allocation55_spill] sm:$0xff]  ;;  %v5966_v24 = vld [vmem:[#allocation52_spill] sm:$0xff] }
  0xbe   : > { %5948 = vst [vmem:[#allocation36_spill] sm:$0xff] %v3240_v16  ;;  %v3255_v62 = vmax.f32 %v5959_v15, %v1609_v7  ;;  %v5963_v36 = vmax.f32 %v5961_v14, %v5962_v4  ;;  %v5965_v26 = vld [vmem:[#allocation9_spill] sm:$0xff]  ;;  %v5969_v7 = vld [vmem:[#allocation6_spill] sm:$0xff]  ;;  %v5970_v5 = vld [vmem:[#allocation56_spill] sm:$0xff] }
  0xbf   : > { %5952 = vst [vmem:[#allocation101_spill] sm:$0xff] %v3245_v39  ;;  %5956 = vst [vmem:[#allocation40_spill] sm:$0xff] %v3250_v54  ;;  %v5967_v37 = vmax.f32 %v5965_v26, %v5966_v24  ;;  %v5971_v15 = vmax.f32 %v5969_v7, %v5970_v5  ;;  %v5973_v33 = vld [vmem:[#allocation10_spill] sm:$0xff]  ;;  %v1637_v4 = vld [vmem:[%s1965_s11 + $0xab] sm:$0x1] }
  0xc0   : > { %5960 = vst [vmem:[#allocation2_spill] sm:$0xff] %v3255_v62  ;;  %v3264_v2 = vmax.f32 %v5963_v36, %v1610_v55  ;;  %v5974_v62 = vld [vmem:[#allocation53_spill] sm:$0xff]  ;;  %v1634_v16 = vld [vmem:[%s1965_s11 + $0xa5] sm:$0x1]  ;;  %v1635_v14 = vld [vmem:[%s1965_s11 + $0xa7] sm:$0x1] }
  0xc1   : > { %v3269_v25 = vmax.f32 %v5967_v37, %v1611_v49  ;;  %v3274_v10 = vmax.f32 %v5971_v15, %v1612_v22  ;;  %v5975_v54 = vmax.f32 %v5973_v33, %v5974_v62  ;;  %v1636_v55 = vld [vmem:[%s1965_s11 + $0xa9] sm:$0x1]  ;;  %v5982_v37 = vld [vmem:[#allocation60_spill] sm:$0xff] }
  0xc2   : > { %5964 = vst [vmem:[#allocation37_spill] sm:$0xff] %v3264_v2  ;;  %v5977_v36 = vld [vmem:[#allocation11_spill] sm:$0xff]  ;;  %v5986_v62 = vld [vmem:[#allocation64_spill] sm:$0xff] }
  0xc3   : > { %5968 = vst [vmem:[#allocation3_spill] sm:$0xff] %v3269_v25  ;;  %5972 = vst [vmem:[#allocation47_spill] sm:$0xff] %v3274_v10  ;;  %v3279_v39 = vmax.f32 %v5975_v54, %v1613_v31  ;;  %v5978_v49 = vld [vmem:[#allocation63_spill] sm:$0xff]  ;;  %v5985_v31 = vld [vmem:[#allocation12_spill] sm:$0xff] }
  0xc4   : > { %v5979_v26 = vmax.f32 %v5977_v36, %v5978_v49  ;;  %v5981_v22 = vld [vmem:[#allocation15_spill] sm:$0xff]  ;;  %v5987_v54 = vmax.f32 %v5985_v31, %v5986_v62  ;;  %v5989_v33 = vld [vmem:[#allocation16_spill] sm:$0xff]  ;;  %v1641_v49 = vld [vmem:[%s1965_s11 + $0xc7] sm:$0x1] }
  0xc5   : > { %5976 = vst [vmem:[#allocation7_spill] sm:$0xff] %v3279_v39  ;;  %v5983_v7 = vmax.f32 %v5981_v22, %v5982_v37  ;;  %v5990_v39 = vld [vmem:[#allocation61_spill] sm:$0xff]  ;;  %v1638_v2 = vld [vmem:[%s1965_s11 + $0xad] sm:$0x1]  ;;  %v1639_v36 = vld [vmem:[%s1965_s11 + $0xaf] sm:$0x1] }
  0xc6   : > { %v3288_v24 = vmax.f32 %v5979_v26, %v1614_v51  ;;  %v3298_v15 = vmax.f32 %v5987_v54, %v1616_v53  ;;  %v5991_v10 = vmax.f32 %v5989_v33, %v5990_v39  ;;  %v1640_v51 = vld [vmem:[%s1965_s11 + $0xb1] sm:$0x1]  ;;  %v5993_v26 = vld [vmem:[#allocation13_spill] sm:$0xff]  ;;  %v6002_v39 = vld [vmem:[#allocation70_spill] sm:$0xff] }
  0xc7   : > { %v3293_v5 = vmax.f32 %v5983_v7, %v1615_v28  ;;  %v5994_v28 = vld [vmem:[#allocation69_spill] sm:$0xff]  ;;  %v5998_v7 = vld [vmem:[#allocation67_spill] sm:$0xff]  ;;  %v6005_v33 = vld [vmem:[#allocation18_spill] sm:$0xff] }
  0xc8   : > { %5980 = vst [vmem:[#allocation44_spill] sm:$0xff] %v3288_v24  ;;  %5988 = vst [vmem:[#allocation48_spill] sm:$0xff] %v3298_v15  ;;  %v3303_v25 = vmax.f32 %v5991_v10, %v1617_v1  ;;  %v5995_v22 = vmax.f32 %v5993_v26, %v5994_v28  ;;  %v5997_v53 = vld [vmem:[#allocation17_spill] sm:$0xff]  ;;  %v6001_v1 = vld [vmem:[#allocation14_spill] sm:$0xff] }
  0xc9   : > { %5984 = vst [vmem:[#allocation4_spill] sm:$0xff] %v3293_v5  ;;  %v5999_v31 = vmax.f32 %v5997_v53, %v5998_v7  ;;  %v6003_v10 = vmax.f32 %v6001_v1, %v6002_v39  ;;  %v1642_v24 = vld [vmem:[%s1965_s11 + $0xc9] sm:$0x1]  ;;  %v1643_v26 = vld [vmem:[%s1965_s11 + $0xcb] sm:$0x1] }
  0xca   : > { %5992 = vst [vmem:[#allocation8_spill] sm:$0xff] %v3303_v25  ;;  %v3312_v37 = vmax.f32 %v5995_v22, %v1618_v21  ;;  %v6006_v25 = vld [vmem:[#allocation68_spill] sm:$0xff]  ;;  %v1644_v21 = vld [vmem:[%s1965_s11 + $0xcd] sm:$0x1]  ;;  %v1645_v28 = vld [vmem:[%s1965_s11 + $0xcf] sm:$0x1] }
  0xcb   : > { %v3317_v62 = vmax.f32 %v5999_v31, %v1619_v43  ;;  %v3322_v54 = vmax.f32 %v6003_v10, %v1620_v27  ;;  %v6007_v15 = vmax.f32 %v6005_v33, %v6006_v25  ;;  %v6009_v22 = vld [vmem:[#allocation19_spill] sm:$0xff]  ;;  %v6014_v31 = vld [vmem:[#allocation72_spill] sm:$0xff]  ;;  %v6018_v25 = vld [vmem:[#allocation73_spill] sm:$0xff] }
  0xcc   : > { %5996 = vst [vmem:[#allocation45_spill] sm:$0xff] %v3312_v37  ;;  %v6010_v43 = vld [vmem:[#allocation71_spill] sm:$0xff]  ;;  %v6021_v33 = vld [vmem:[#allocation24_spill] sm:$0xff] }
  0xcd   : > { %6000 = vst [vmem:[#allocation5_spill] sm:$0xff] %v3317_v62  ;;  %6004 = vst [vmem:[#allocation55_spill] sm:$0xff] %v3322_v54  ;;  %v3327_v5 = vmax.f32 %v6007_v15, %v1621_v38  ;;  %v6011_v53 = vmax.f32 %v6009_v22, %v6010_v43  ;;  %v6013_v27 = vld [vmem:[#allocation23_spill] sm:$0xff]  ;;  %v6017_v38 = vld [vmem:[#allocation20_spill] sm:$0xff] }
  0xce   : > { %v6015_v1 = vmax.f32 %v6013_v27, %v6014_v31  ;;  %v6019_v15 = vmax.f32 %v6017_v38, %v6018_v25  ;;  %v1646_v37 = vld [vmem:[%s1965_s11 + $0xd1] sm:$0x1]  ;;  %v1647_v22 = vld [vmem:[%s1965_s11 + $0xd3] sm:$0x1]  ;;  %v1649_v43 = vld [vmem:[%s1965_s11 + $0xeb] sm:$0x1] }
  0xcf   : > { %6008 = vst [vmem:[#allocation9_spill] sm:$0xff] %v3327_v5  ;;  %v3336_v7 = vmax.f32 %v6011_v53, %v1622_v52  ;;  %v6022_v5 = vld [vmem:[#allocation74_spill] sm:$0xff]  ;;  %v1648_v52 = vld [vmem:[%s1965_s11 + $0xd5] sm:$0x1]  ;;  %v6025_v53 = vld [vmem:[#allocation21_spill] sm:$0xff] }
  0xd0   : > { %v3341_v39 = vmax.f32 %v6015_v1, %v1623_v61  ;;  %v3346_v10 = vmax.f32 %v6019_v15, %v1624_v3  ;;  %v6023_v54 = vmax.f32 %v6021_v33, %v6022_v5  ;;  %v6026_v61 = vld [vmem:[#allocation75_spill] sm:$0xff]  ;;  %v6028_v3 = vld [vmem:[#allocation25_spill] sm:$0xff]  ;;  %v6032_v5 = vld [vmem:[#allocation76_spill] sm:$0xff] }
  0xd1   : > { %6012 = vst [vmem:[#allocation52_spill] sm:$0xff] %v3336_v7  ;;  %v6027_v27 = vmax.f32 %v6025_v53, %v6026_v61  ;;  %v6029_v1 = vld [vmem:[#allocation77_spill] sm:$0xff]  ;;  %v6035_v33 = vld [vmem:[#allocation26_spill] sm:$0xff]  ;;  %v1650_v7 = vld [vmem:[%s1965_s11 + $0xed] sm:$0x1] }
  0xd2   : > { %6016 = vst [vmem:[#allocation6_spill] sm:$0xff] %v3341_v39  ;;  %6020 = vst [vmem:[#allocation56_spill] sm:$0xff] %v3346_v10  ;;  %v3351_v62 = vmax.f32 %v6023_v54, %v1625_v41  ;;  %v6030_v38 = vmax.f32 %v6028_v3, %v6029_v1  ;;  %v6031_v41 = vld [vmem:[#allocation22_spill] sm:$0xff]  ;;  %v1651_v53 = vld [vmem:[%s1965_s11 + $0xef] sm:$0x1] }
  0xd3   : > { %v3360_v31 = vmax.f32 %v6027_v27, %v1626_v57  ;;  %v6033_v54 = vmax.f32 %v6031_v41, %v6032_v5  ;;  %v1652_v57 = vld [vmem:[%s1965_s11 + $0xf1] sm:$0x1]  ;;  %v1653_v61 = vld [vmem:[%s1965_s11 + $0xf3] sm:$0x1]  ;;  %v6046_v41 = vld [vmem:[#allocation81_spill] sm:$0xff] }
  0xd4   : > { %6024 = vst [vmem:[#allocation10_spill] sm:$0xff] %v3351_v62  ;;  %v3365_v25 = vmax.f32 %v6030_v38, %v1627_v23  ;;  %v6036_v62 = vld [vmem:[#allocation78_spill] sm:$0xff]  ;;  %v6039_v23 = vmax.f32 %v5907_v19, %v2969_v35  ;;  %v6045_v38 = vld [vmem:[#allocation32_spill] sm:$0xff]  ;;  %v1656_v19 = vld [vmem:[%s1965_s11 + $0xf9] sm:$0x1] }
  0xd5   : > { %v3370_v15 = vmax.f32 %v6033_v54, %v1628_v63  ;;  %v6037_v10 = vmax.f32 %v6035_v33, %v6036_v62  ;;  %v6040_v63 = vmax.f32 %v5908_v18, %v2972_v11  ;;  %v6042_v62 = vld [vmem:[#allocation79_spill] sm:$0xff]  ;;  %v6047_v5 = vmax.f32 %v6045_v38, %v6046_v41  ;;  %v1654_v33 = vld [vmem:[%s1965_s11 + $0xf5] sm:$0x1]  ;;  %v1655_v35 = vld [vmem:[%s1965_s11 + $0xf7] sm:$0x1] }
  0xd6   : > { %v3384_v27 = vmax.f32 %v6039_v23, %v1630_v8  ;;  %v1657_v8 = vld [vmem:[%s1965_s11 + $0x10f] sm:$0x1]  ;;  %v6049_v18 = vmax.f32 %v2704_v13, %v2989_v44  ;;  %v1658_v41 = vld [vmem:[%s1965_s11 + $0x111] sm:$0x1]  ;;  %v1659_v13 = vld [vmem:[%s1965_s11 + $0x113] sm:$0x1] }
  0xd7   : > { %6034 = vst [vmem:[#allocation53_spill] sm:$0xff] %v3370_v15  ;;  %v3375_v39 = vmax.f32 %v6037_v10, %v1629_v6  ;;  %v3389_v3 = vmax.f32 %v6040_v63, %v1631_v47  ;;  %v6041_v6 = vld [vmem:[#allocation28_spill] sm:$0xff]  ;;  %v3399_v54 = vmax.f32 %v6047_v5, %v1633_v12  ;;  %v6050_v47 = vmax.f32 %v2709_v50, %v2992_v17  ;;  %v6060_v5 = vld [vmem:[#allocation33_spill] sm:$0xff] }
  0xd8   : > { %v6043_v10 = vmax.f32 %v6041_v6, %v6042_v62  ;;  %v3408_v11 = vmax.f32 %v6049_v18, %v1634_v16  ;;  %v6051_v12 = vld [vmem:[#allocation80_spill] sm:$0xff]  ;;  %v6053_v6 = vld [vmem:[#allocation29_spill] sm:$0xff]  ;;  %v6054_v62 = vld [vmem:[#allocation82_spill] sm:$0xff]  ;;  %v6057_v50 = vmax.f32 %v2728_v9, %v3009_v58 }
  0xd9   : > { %6038 = vst [vmem:[#allocation11_spill] sm:$0xff] %v3375_v39  ;;  %6048 = vst [vmem:[#allocation15_spill] sm:$0xff] %v3399_v54  ;;  %v6052_v23 = vmax.f32 %v2714_v0, %v6051_v12  ;;  %v1660_v44 = vld [vmem:[%s1965_s11 + $0x115] sm:$0x1]  ;;  %v1661_v16 = vld [vmem:[%s1965_s11 + $0x117] sm:$0x1]  ;;  %v6058_v0 = vmax.f32 %v2733_v48, %v3012_v34  ;;  %v6064_v48 = vmax.f32 %v2751_v20, %v3029_v42 }
  0xda   : > { %v3394_v1 = vmax.f32 %v6043_v10, %v1632_v46  ;;  %v3413_v46 = vmax.f32 %v6050_v47, %v1635_v14  ;;  %v6055_v10 = vmax.f32 %v6053_v6, %v6054_v62  ;;  %v3432_v17 = vmax.f32 %v6057_v50, %v1638_v2  ;;  %v6061_v18 = vld [vmem:[#allocation83_spill] sm:$0xff]  ;;  %v1662_v9 = vld [vmem:[%s1965_s11 + $0x119] sm:$0x1]  ;;  %v1663_v58 = vld [vmem:[%s1965_s11 + $0x11b] sm:$0x1] }
  0xdb   : > { %v3418_v63 = vmax.f32 %v6052_v23, %v1636_v55  ;;  %v3437_v14 = vmax.f32 %v6058_v0, %v1639_v36  ;;  %v6059_v55 = vmax.f32 %v2738_v32, %v3015_v56  ;;  %v6062_v47 = vmax.f32 %v6060_v5, %v6061_v18  ;;  %v1664_v2 = vld [vmem:[%s1965_s11 + $0x11d] sm:$0x1]  ;;  %v6072_v6 = vld [vmem:[#allocation86_spill] sm:$0xff]  ;;  %v3473_v20 = vld [vmem:[%s1965_s11 + $0x14] sm:$0x1] }
  0xdc   : > { %6044 = vst [vmem:[#allocation63_spill] sm:$0xff] %v3394_v1  ;;  %v3423_v38 = vmax.f32 %v6055_v10, %v1637_v4  ;;  %v3455_v34 = vmax.f32 %v6064_v48, %v1642_v24  ;;  %v6066_v32 = vld [vmem:[#allocation85_spill] sm:$0xff]  ;;  %v6073_v62 = vmax.f32 %v2766_v40, %v6072_v6  ;;  %6075 = vst [vmem:[#allocation69_spill] sm:$0xff] %v3473_v20  ;;  %v6082_v50 = vld [vmem:[#allocation87_spill] sm:$0xff] }
  0xdd   : > { %v3442_v4 = vmax.f32 %v6059_v55, %v1640_v51  ;;  %v3447_v12 = vmax.f32 %v6062_v47, %v1641_v49  ;;  %v6067_v56 = vmax.f32 %v2756_v60, %v6066_v32  ;;  %v6069_v51 = vld [vmem:[#allocation84_spill] sm:$0xff]  ;;  %v6076_v60 = vmax.f32 %v2774_v29, %v3049_v45  ;;  %v6086_v55 = vld [vmem:[#allocation90_spill] sm:$0xff]  ;;  %v3499_v29 = vld [vmem:[%s1965_s11 + $0x18] sm:$0x1] }
  0xde   : > { %6056 = vst [vmem:[#allocation60_spill] sm:$0xff] %v3423_v38  ;;  %6065 = vst [vmem:[#allocation64_spill] sm:$0xff] %v3455_v34  ;;  %v6070_v23 = vmax.f32 %v2761_v59, %v6069_v51  ;;  %v3470_v10 = vmax.f32 %v6073_v62, %v1645_v28  ;;  %v6078_v59 = vld [vmem:[#allocation89_spill] sm:$0xff]  ;;  %v6085_v28 = vld [vmem:[#allocation35_spill] sm:$0xff] }
  0xdf   : > { %6063 = vst [vmem:[#allocation12_spill] sm:$0xff] %v3447_v12  ;;  %v3460_v36 = vmax.f32 %v6067_v56, %v1643_v26  ;;  %v3478_v42 = vmax.f32 %v6076_v60, %v1646_v37  ;;  %v6079_v24 = vmax.f32 %v2779_v30, %v6078_v59  ;;  %v6087_v5 = vmax.f32 %v6085_v28, %v6086_v55  ;;  %v3496_v47 = vld [vmem:[%s1965_s11 + $0x16] sm:$0x1]  ;;  %v3502_v45 = vld [vmem:[%s1965_s11 + $0x1a] sm:$0x1]  ;;  %v6097_v32 = vld [vmem:[#allocation38_spill] sm:$0xff] }
  0xe0   : > { %v3465_v49 = vmax.f32 %v6070_v23, %v1644_v21  ;;  %6074 = vst [vmem:[#allocation13_spill] sm:$0xff] %v3470_v10  ;;  %v6081_v21 = vld [vmem:[#allocation34_spill] sm:$0xff]  ;;  %6089 = vst [vmem:[#allocation18_spill] sm:$0xff] %v3496_v47  ;;  %v3505_v30 = vld [vmem:[%s1965_s11 + $0x1c] sm:$0x1] }
  0xe1   : > { %6068 = vst [vmem:[#allocation16_spill] sm:$0xff] %v3460_v36  ;;  %6077 = vst [vmem:[#allocation17_spill] sm:$0xff] %v3478_v42  ;;  %v3483_v26 = vmax.f32 %v6079_v24, %v1647_v22  ;;  %v6083_v40 = vmax.f32 %v6081_v21, %v6082_v50  ;;  %v3493_v18 = vmax.f32 %v6087_v5, %v1649_v43  ;;  %v6093_v37 = vld [vmem:[#allocation41_spill] sm:$0xff]  ;;  %v6094_v22 = vld [vmem:[#allocation88_spill] sm:$0xff] }
  0xe2   : > { %6071 = vst [vmem:[#allocation61_spill] sm:$0xff] %v3465_v49  ;;  %6090 = vst [vmem:[#allocation68_spill] sm:$0xff] %v3499_v29  ;;  %v6098_v43 = vld [vmem:[#allocation91_spill] sm:$0xff]  ;;  %v6101_v23 = vld [vmem:[#allocation42_spill] sm:$0xff] }
  0xe3   : > { %6080 = vst [vmem:[#allocation67_spill] sm:$0xff] %v3483_v26  ;;  %v3488_v0 = vmax.f32 %v6083_v40, %v1648_v52  ;;  %6088 = vst [vmem:[#allocation70_spill] sm:$0xff] %v3493_v18  ;;  %v6095_v52 = vmax.f32 %v6093_v37, %v6094_v22  ;;  %v6099_v56 = vmax.f32 %v6097_v32, %v6098_v43  ;;  %v6102_v6 = vld [vmem:[#allocation92_spill] sm:$0xff]  ;;  %v6105_v59 = vld [vmem:[#allocation43_spill] sm:$0xff] }
  0xe4   : > { %6091 = vst [vmem:[#allocation19_spill] sm:$0xff] %v3502_v45  ;;  %6092 = vst [vmem:[#allocation71_spill] sm:$0xff] %v3505_v30  ;;  %v6103_v62 = vmax.f32 %v6101_v23, %v6102_v6  ;;  %v6106_v24 = vld [vmem:[#allocation95_spill] sm:$0xff]  ;;  %v3528_v40 = vld [vmem:[%s1965_s11 + $0x1e] sm:$0x1] }
  0xe5   : > { %6084 = vst [vmem:[#allocation14_spill] sm:$0xff] %v3488_v0  ;;  %v3510_v48 = vmax.f32 %v6095_v52, %v1650_v7  ;;  %v3515_v51 = vmax.f32 %v6099_v56, %v1651_v53  ;;  %v6107_v21 = vmax.f32 %v6105_v59, %v6106_v24  ;;  %6109 = vst [vmem:[#allocation24_spill] sm:$0xff] %v3528_v40  ;;  %v3531_v7 = vld [vmem:[%s1965_s11 + $0x20] sm:$0x1]  ;;  %v3534_v28 = vld [vmem:[%s1965_s11 + $0x22] sm:$0x1] }
  0xe6   : > { %v3520_v60 = vmax.f32 %v6103_v62, %v1652_v57  ;;  %6110 = vst [vmem:[#allocation74_spill] sm:$0xff] %v3531_v7  ;;  %6111 = vst [vmem:[#allocation21_spill] sm:$0xff] %v3534_v28  ;;  %v3537_v53 = vld [vmem:[%s1965_s11 + $0x38] sm:$0x1]  ;;  %v6117_v22 = vld [vmem:[#allocation46_spill] sm:$0xff] }
  0xe7   : > { %6096 = vst [vmem:[#allocation23_spill] sm:$0xff] %v3510_v48  ;;  %6100 = vst [vmem:[#allocation72_spill] sm:$0xff] %v3515_v51  ;;  %v3525_v50 = vmax.f32 %v6107_v21, %v1653_v61  ;;  %v6113_v55 = vld [vmem:[#allocation49_spill] sm:$0xff]  ;;  %v6118_v61 = vld [vmem:[#allocation96_spill] sm:$0xff] }
  0xe8   : > { %6104 = vst [vmem:[#allocation20_spill] sm:$0xff] %v3520_v60  ;;  %6112 = vst [vmem:[#allocation75_spill] sm:$0xff] %v3537_v53  ;;  %v6114_v5 = vld [vmem:[#allocation93_spill] sm:$0xff]  ;;  %v6119_v52 = vmax.f32 %v6117_v22, %v6118_v61  ;;  %v6121_v43 = vld [vmem:[#allocation50_spill] sm:$0xff] }
  0xe9   : > { %6108 = vst [vmem:[#allocation73_spill] sm:$0xff] %v3525_v50  ;;  %v6115_v57 = vmax.f32 %v6113_v55, %v6114_v5  ;;  %v6122_v56 = vld [vmem:[#allocation94_spill] sm:$0xff]  ;;  %v6125_v62 = vld [vmem:[#allocation51_spill] sm:$0xff]  ;;  %v6126_v59 = vld [vmem:[#allocation97_spill] sm:$0xff] }
  0xea   : > { %v3547_v32 = vmax.f32 %v6119_v52, %v1655_v35  ;;  %v6123_v23 = vmax.f32 %v6121_v43, %v6122_v56  ;;  %v6127_v24 = vmax.f32 %v6125_v62, %v6126_v59  ;;  %v3560_v55 = vld [vmem:[%s1965_s11 + $0x3a] sm:$0x1]  ;;  %v3566_v5 = vld [vmem:[%s1965_s11 + $0x3e] sm:$0x1]  ;;  %v3569_v35 = vld [vmem:[%s1965_s11 + $0x40] sm:$0x1] }
  0xeb   : > { %v3542_v37 = vmax.f32 %v6115_v57, %v1654_v33  ;;  %6129 = vst [vmem:[#allocation26_spill] sm:$0xff] %v3560_v55  ;;  %v3563_v33 = vld [vmem:[%s1965_s11 + $0x3c] sm:$0x1]  ;;  %6131 = vst [vmem:[#allocation28_spill] sm:$0xff] %v3566_v5  ;;  %v6137_v52 = vld [vmem:[#allocation54_spill] sm:$0xff] }
  0xec   : > { %6120 = vst [vmem:[#allocation77_spill] sm:$0xff] %v3547_v32  ;;  %v3552_v6 = vmax.f32 %v6123_v23, %v1656_v19  ;;  %v3557_v21 = vmax.f32 %v6127_v24, %v1657_v8  ;;  %6130 = vst [vmem:[#allocation78_spill] sm:$0xff] %v3563_v33  ;;  %v6133_v57 = vld [vmem:[#allocation57_spill] sm:$0xff]  ;;  %v6134_v19 = vld [vmem:[#allocation27_spill] sm:$0xff] }
  0xed   : > { %6116 = vst [vmem:[#allocation25_spill] sm:$0xff] %v3542_v37  ;;  %6132 = vst [vmem:[#allocation79_spill] sm:$0xff] %v3569_v35  ;;  %v6135_v22 = vmax.f32 %v6133_v57, %v6134_v19  ;;  %v6138_v8 = vld [vmem:[#allocation31_spill] sm:$0xff]  ;;  %v6141_v23 = vld [vmem:[#allocation58_spill] sm:$0xff] }
  0xee   : > { %6124 = vst [vmem:[#allocation22_spill] sm:$0xff] %v3552_v6  ;;  %6128 = vst [vmem:[#allocation76_spill] sm:$0xff] %v3557_v21  ;;  %v6139_v43 = vmax.f32 %v6137_v52, %v6138_v8  ;;  %v6142_v62 = vld [vmem:[#allocation102_spill] sm:$0xff]  ;;  %v6145_v21 = vld [vmem:[#allocation59_spill] sm:$0xff] }
  0xef   : > { %v3574_v61 = vmax.f32 %v6135_v22, %v1658_v41  ;;  %v6143_v59 = vmax.f32 %v6141_v23, %v6142_v62  ;;  %v6146_v6 = vld [vmem:[#allocation103_spill] sm:$0xff]  ;;  %v3592_v41 = vld [vmem:[%s1965_s11 + $0x42] sm:$0x1]  ;;  %v3595_v57 = vld [vmem:[%s1965_s11 + $0x44] sm:$0x1] }
  0xf0   : > { %v3579_v56 = vmax.f32 %v6139_v43, %v1659_v13  ;;  %v6147_v32 = vmax.f32 %v6145_v21, %v6146_v6  ;;  %6149 = vst [vmem:[#allocation82_spill] sm:$0xff] %v3592_v41  ;;  %6150 = vst [vmem:[#allocation33_spill] sm:$0xff] %v3595_v57  ;;  %v3598_v19 = vld [vmem:[%s1965_s11 + $0x46] sm:$0x1]  ;;  %v3601_v13 = vld [vmem:[%s1965_s11 + $0x5c] sm:$0x1] }
  0xf1   : > { %6136 = vst [vmem:[#allocation32_spill] sm:$0xff] %v3574_v61  ;;  %v3584_v24 = vmax.f32 %v6143_v59, %v1660_v44  ;;  %6151 = vst [vmem:[#allocation83_spill] sm:$0xff] %v3598_v19  ;;  %v6153_v22 = vld [vmem:[#allocation65_spill] sm:$0xff]  ;;  %v6154_v52 = vld [vmem:[#allocation104_spill] sm:$0xff] }
  0xf2   : > { %6140 = vst [vmem:[#allocation81_spill] sm:$0xff] %v3579_v56  ;;  %v3589_v37 = vmax.f32 %v6147_v32, %v1661_v16  ;;  %6152 = vst [vmem:[#allocation85_spill] sm:$0xff] %v3601_v13  ;;  %v6155_v8 = vmax.f32 %v6153_v22, %v6154_v52  ;;  %v6157_v43 = vld [vmem:[#allocation62_spill] sm:$0xff]  ;;  %v6158_v23 = vld [vmem:[#allocation105_spill] sm:$0xff] }
  0xf3   : > { %6144 = vst [vmem:[#allocation80_spill] sm:$0xff] %v3584_v24  ;;  %v6159_v6 = vmax.f32 %v6157_v43, %v6158_v23  ;;  %v6161_v32 = vld [vmem:[#allocation66_spill] sm:$0xff]  ;;  %v3636_v43 = vld [vmem:[%s1965_s11 + $0x68] sm:$0x1]  ;;  %v3673_v29 = vld [vmem:[%s1965_s11 + $0x8a] sm:$0x1] }
  0xf4   : > { %6148 = vst [vmem:[#allocation29_spill] sm:$0xff] %v3589_v37  ;;  %v3606_v44 = vmax.f32 %v6155_v8, %v1662_v9  ;;  %v6162_v21 = vld [vmem:[#allocation106_spill] sm:$0xff]  ;;  %v3619_v37 = vld [vmem:[%s1965_s11 + $0x5e] sm:$0x1]  ;;  %v3662_v61 = vld [vmem:[%s1965_s11 + $0x88] sm:$0x1] }
  0xf5   : > { %v3611_v16 = vmax.f32 %v6159_v6, %v1663_v58  ;;  %v6163_v62 = vmax.f32 %v6161_v32, %v6162_v21  ;;  %6165 = vst [vmem:[#allocation34_spill] sm:$0xff] %v3619_v37  ;;  %v3622_v24 = vld [vmem:[%s1965_s11 + $0x60] sm:$0x1]  ;;  %v3625_v9 = vld [vmem:[%s1965_s11 + $0x62] sm:$0x1]  ;;  %6177 = vst [vmem:[#allocation91_spill] sm:$0xff] %v3662_v61 }
  0xf6   : > { %6156 = vst [vmem:[#allocation84_spill] sm:$0xff] %v3606_v44  ;;  %6166 = vst [vmem:[#allocation87_spill] sm:$0xff] %v3622_v24  ;;  %v3628_v22 = vld [vmem:[%s1965_s11 + $0x64] sm:$0x1]  ;;  %v3633_v8 = vld [vmem:[%s1965_s11 + $0x66] sm:$0x1] }
  0xf7   : > { %6160 = vst [vmem:[#allocation86_spill] sm:$0xff] %v3611_v16  ;;  %v3616_v59 = vmax.f32 %v6163_v62, %v1664_v2  ;;  %6167 = vst [vmem:[#allocation35_spill] sm:$0xff] %v3625_v9  ;;  %v3639_v2 = vld [vmem:[%s1965_s11 + $0x6a] sm:$0x1]  ;;  %v3642_v23 = vld [vmem:[%s1965_s11 + $0x80] sm:$0x1] }
  0xf8   : > { %6168 = vst [vmem:[#allocation90_spill] sm:$0xff] %v3628_v22  ;;  %6170 = vst [vmem:[#allocation41_spill] sm:$0xff] %v3639_v2  ;;  %v3653_v16 = vld [vmem:[%s1965_s11 + $0x82] sm:$0x1]  ;;  %v3656_v44 = vld [vmem:[%s1965_s11 + $0x84] sm:$0x1] }
  0xf9   : > { %6164 = vst [vmem:[#allocation89_spill] sm:$0xff] %v3616_v59  ;;  %6171 = vst [vmem:[#allocation88_spill] sm:$0xff] %v3642_v23  ;;  %v3659_v56 = vld [vmem:[%s1965_s11 + $0x86] sm:$0x1]  ;;  %v3676_v21 = vld [vmem:[%s1965_s11 + $0x8c] sm:$0x1] }
  0xfa   : > { %6176 = vst [vmem:[#allocation38_spill] sm:$0xff] %v3659_v56  ;;  %v3679_v47 = vld [vmem:[%s1965_s11 + $0x8e] sm:$0x1]  ;;  %v3682_v6 = vld [vmem:[%s1965_s11 + $0xa4] sm:$0x1]  ;;  %v6203_v5 = vld [vmem:[#allocation52_spill] sm:$0xff] }
  0xfb   : > { %6182 = vst [vmem:[#allocation42_spill] sm:$0xff] %v3679_v47  ;;  %6183 = vst [vmem:[#allocation92_spill] sm:$0xff] %v3682_v6  ;;  %v3693_v7 = vld [vmem:[%s1965_s11 + $0xa6] sm:$0x1]  ;;  %v3696_v20 = vld [vmem:[%s1965_s11 + $0xa8] sm:$0x1] }
  0xfc   : > { %v3699_v40 = vld [vmem:[%s1965_s11 + $0xaa] sm:$0x1]  ;;  %v3702_v32 = vld [vmem:[%s1965_s11 + $0xac] sm:$0x1]  ;;  %v3713_v33 = vld [vmem:[%s1965_s11 + $0xae] sm:$0x1] }
  0xfd   : > { %6188 = vst [vmem:[#allocation43_spill] sm:$0xff] %v3699_v40  ;;  %6189 = vst [vmem:[#allocation95_spill] sm:$0xff] %v3702_v32  ;;  %v3716_v30 = vld [vmem:[%s1965_s11 + $0xb0] sm:$0x1]  ;;  %v3719_v55 = vld [vmem:[%s1965_s11 + $0xb2] sm:$0x1] }
  0xfe   : > { %v3722_v62 = vld [vmem:[%s1965_s11 + $0xc8] sm:$0x1]  ;;  %v3733_v57 = vld [vmem:[%s1965_s11 + $0xca] sm:$0x1]  ;;  %v3736_v53 = vld [vmem:[%s1965_s11 + $0xcc] sm:$0x1] }
  0xff   : > { %6194 = vst [vmem:[#allocation49_spill] sm:$0xff] %v3722_v62  ;;  %6199 = vst [vmem:[#allocation93_spill] sm:$0xff] %v3733_v57  ;;  %v3739_v41 = vld [vmem:[%s1965_s11 + $0xce] sm:$0x1]  ;;  %v3742_v45 = vld [vmem:[%s1965_s11 + $0xd0] sm:$0x1] }
 0x100   : > { %6200 = vst [vmem:[#allocation46_spill] sm:$0xff] %v3736_v53  ;;  %6201 = vst [vmem:[#allocation96_spill] sm:$0xff] %v3739_v41  ;;  %v6204_v13 = vld [vmem:[#allocation6_spill] sm:$0xff]  ;;  %v3753_v24 = vld [vmem:[%s1965_s11 + $0xd2] sm:$0x1] }
 0x101   : > { %6202 = vst [vmem:[#allocation50_spill] sm:$0xff] %v3742_v45  ;;  %6207 = vst [vmem:[#allocation94_spill] sm:$0xff] %v3753_v24  ;;  %v3756_v35 = vld [vmem:[%s1965_s11 + $0xd4] sm:$0x1]  ;;  %v3759_v37 = vld [vmem:[%s1965_s11 + $0xd6] sm:$0x1] }
 0x102   : > { %6208 = vst [vmem:[#allocation51_spill] sm:$0xff] %v3756_v35  ;;  %6209 = vst [vmem:[#allocation97_spill] sm:$0xff] %v3759_v37  ;;  %v3762_v28 = vld [vmem:[%s1965_s11 + $0xec] sm:$0x1]  ;;  %v3773_v23 = vld [vmem:[%s1965_s11 + $0xee] sm:$0x1] }
 0x103   : > { %6210 = vst [vmem:[#allocation57_spill] sm:$0xff] %v3762_v28  ;;  %6211 = vst [vmem:[#allocation27_spill] sm:$0xff] %v3773_v23  ;;  %v3776_v52 = vld [vmem:[%s1965_s11 + $0xf0] sm:$0x1]  ;;  %v3779_v2 = vld [vmem:[%s1965_s11 + $0xf2] sm:$0x1] }
 0x104   : > { %6212 = vst [vmem:[#allocation54_spill] sm:$0xff] %v3776_v52  ;;  %6213 = vst [vmem:[#allocation31_spill] sm:$0xff] %v3779_v2  ;;  %v3782_v59 = vld [vmem:[%s1965_s11 + $0xf4] sm:$0x1]  ;;  %v3793_v61 = vld [vmem:[%s1965_s11 + $0xf6] sm:$0x1] }
 0x105   : > { %6214 = vst [vmem:[#allocation58_spill] sm:$0xff] %v3782_v59  ;;  %6215 = vst [vmem:[#allocation102_spill] sm:$0xff] %v3793_v61  ;;  %v3796_v39 = vld [vmem:[%s1965_s11 + $0xf8] sm:$0x1]  ;;  %v3799_v56 = vld [vmem:[%s1965_s11 + $0xfa] sm:$0x1] }
 0x106   : > { %6216 = vst [vmem:[#allocation59_spill] sm:$0xff] %v3796_v39  ;;  %6217 = vst [vmem:[#allocation103_spill] sm:$0xff] %v3799_v56  ;;  %v3802_v15 = vld [vmem:[%s1965_s11 + $0x110] sm:$0x1]  ;;  %v3813_v6 = vld [vmem:[%s1965_s11 + $0x112] sm:$0x1] }
 0x107   : > { %6218 = vst [vmem:[#allocation65_spill] sm:$0xff] %v3802_v15  ;;  %6219 = vst [vmem:[#allocation104_spill] sm:$0xff] %v3813_v6  ;;  %v3816_v54 = vld [vmem:[%s1965_s11 + $0x114] sm:$0x1]  ;;  %v3819_v47 = vld [vmem:[%s1965_s11 + $0x116] sm:$0x1] }
 0x108   : > { %6220 = vst [vmem:[#allocation62_spill] sm:$0xff] %v3816_v54  ;;  %6221 = vst [vmem:[#allocation105_spill] sm:$0xff] %v3819_v47  ;;  %v3822_v1 = vld [vmem:[%s1965_s11 + $0x118] sm:$0x1]  ;;  %v3833_v32 = vld [vmem:[%s1965_s11 + $0x11a] sm:$0x1] }
 0x109   : > { %6222 = vst [vmem:[#allocation66_spill] sm:$0xff] %v3822_v1  ;;  %6223 = vst [vmem:[#allocation106_spill] sm:$0xff] %v3833_v32  ;;  %v3836_v38 = vld [vmem:[%s1965_s11 + $0x11c] sm:$0x1]  ;;  %v3839_v40 = vld [vmem:[%s1965_s11 + $0x11e] sm:$0x1] }
 0x10a   : > { %6224 = vst [vmem:[#allocation52_spill] sm:$0xff] %v3836_v38  ;;  %6225 = vst [vmem:[#allocation6_spill] sm:$0xff] %v3839_v40  ;;  %v1729_v62 = vld [vmem:[%s1965_s11 + $0x24] sm:$0x1]  ;;  %v1730_v22 = vld [vmem:[%s1965_s11 + $0x26] sm:$0x1] }
 0x10b   : > { %v1731_v41 = vld [vmem:[%s1965_s11 + $0x28] sm:$0x1]  ;;  %v1732_v9 = vld [vmem:[%s1965_s11 + $0x2a] sm:$0x1]  ;;  %v1733_v45 = vld [vmem:[%s1965_s11 + $0x2c] sm:$0x1] }
 0x10c   : > { %v1734_v28 = vld [vmem:[%s1965_s11 + $0x2e] sm:$0x1]  ;;  %v1735_v18 = vld [vmem:[%s1965_s11 + $0x30] sm:$0x1]  ;;  %v1736_v37 = vld [vmem:[%s1965_s11 + $0x32] sm:$0x1] }
 0x10d   : > { %v1737_v0 = vld [vmem:[%s1965_s11 + $0x48] sm:$0x1]  ;;  %v1738_v59 = vld [vmem:[%s1965_s11 + $0x4a] sm:$0x1]  ;;  %v1739_v50 = vld [vmem:[%s1965_s11 + $0x4c] sm:$0x1] }
 0x10e   : > { %v1740_v60 = vld [vmem:[%s1965_s11 + $0x4e] sm:$0x1]  ;;  %v1741_v51 = vld [vmem:[%s1965_s11 + $0x50] sm:$0x1]  ;;  %v1742_v2 = vld [vmem:[%s1965_s11 + $0x52] sm:$0x1] }
 0x10f   : > { %v1743_v52 = vld [vmem:[%s1965_s11 + $0x54] sm:$0x1]  ;;  %v1744_v39 = vld [vmem:[%s1965_s11 + $0x56] sm:$0x1]  ;;  %v1745_v23 = vld [vmem:[%s1965_s11 + $0x6c] sm:$0x1] }
 0x110   : > { %v1746_v47 = vld [vmem:[%s1965_s11 + $0x6e] sm:$0x1]  ;;  %v1747_v15 = vld [vmem:[%s1965_s11 + $0x70] sm:$0x1]  ;;  %v1748_v1 = vld [vmem:[%s1965_s11 + $0x72] sm:$0x1] }
 0x111   : > { %v1749_v53 = vld [vmem:[%s1965_s11 + $0x74] sm:$0x1]  ;;  %v6237_v19 = vld [vmem:[#allocation98_spill] sm:$0xff]  ;;  %v6238_v61 = vld [vmem:[#allocation69_spill] sm:$0xff] }
 0x112   : > { %v6239_v48 = vmax.f32 %v6237_v19, %v6238_v61  ;;  %v1750_v12 = vld [vmem:[%s1965_s11 + $0x76] sm:$0x1]  ;;  %v1751_v32 = vld [vmem:[%s1965_s11 + $0x78] sm:$0x1]  ;;  %v1752_v58 = vld [vmem:[%s1965_s11 + $0x7a] sm:$0x1] }
 0x113   : > { %v1753_v38 = vld [vmem:[%s1965_s11 + $0x90] sm:$0x1]  ;;  %v6241_v6 = vld [vmem:[#allocation30_spill] sm:$0xff]  ;;  %v6245_v35 = vld [vmem:[#allocation99_spill] sm:$0xff] }
 0x114   : > { %v3911_v26 = vmax.f32 %v6239_v48, %v1729_v62  ;;  %v6242_v56 = vld [vmem:[#allocation18_spill] sm:$0xff]  ;;  %v6246_v24 = vld [vmem:[#allocation68_spill] sm:$0xff]  ;;  %v6249_v48 = vld [vmem:[#allocation39_spill] sm:$0xff] }
 0x115   : > { %v6243_v40 = vmax.f32 %v6241_v6, %v6242_v56  ;;  %v6247_v42 = vmax.f32 %v6245_v35, %v6246_v24  ;;  %v6250_v61 = vld [vmem:[#allocation19_spill] sm:$0xff]  ;;  %v1754_v34 = vld [vmem:[%s1965_s11 + $0x92] sm:$0x1]  ;;  %v1755_v56 = vld [vmem:[%s1965_s11 + $0x94] sm:$0x1] }
 0x116   : > { %6240 = vst [vmem:[#allocation98_spill] sm:$0xff] %v3911_v26  ;;  %v6251_v19 = vmax.f32 %v6249_v48, %v6250_v61  ;;  %v6253_v26 = vld [vmem:[#allocation100_spill] sm:$0xff]  ;;  %v6254_v49 = vld [vmem:[#allocation71_spill] sm:$0xff]  ;;  %v6262_v6 = vld [vmem:[#allocation74_spill] sm:$0xff] }
 0x117   : > { %v3920_v54 = vmax.f32 %v6243_v40, %v1730_v22  ;;  %v3925_v10 = vmax.f32 %v6247_v42, %v1731_v41  ;;  %v6255_v36 = vmax.f32 %v6253_v26, %v6254_v49  ;;  %v1756_v40 = vld [vmem:[%s1965_s11 + $0x96] sm:$0x1]  ;;  %v1757_v22 = vld [vmem:[%s1965_s11 + $0x98] sm:$0x1] }
 0x118   : > { %v3930_v62 = vmax.f32 %v6251_v19, %v1732_v9  ;;  %v6257_v35 = vld [vmem:[#allocation36_spill] sm:$0xff]  ;;  %v6261_v9 = vld [vmem:[#allocation101_spill] sm:$0xff]  ;;  %v6269_v19 = vld [vmem:[#allocation2_spill] sm:$0xff] }
 0x119   : > { %6244 = vst [vmem:[#allocation69_spill] sm:$0xff] %v3920_v54  ;;  %6248 = vst [vmem:[#allocation30_spill] sm:$0xff] %v3925_v10  ;;  %v3935_v57 = vmax.f32 %v6255_v36, %v1733_v45  ;;  %v6258_v42 = vld [vmem:[#allocation24_spill] sm:$0xff]  ;;  %v6263_v48 = vmax.f32 %v6261_v9, %v6262_v6  ;;  %v6266_v49 = vld [vmem:[#allocation21_spill] sm:$0xff] }
 0x11a   : > { %6252 = vst [vmem:[#allocation18_spill] sm:$0xff] %v3930_v62  ;;  %v6259_v24 = vmax.f32 %v6257_v35, %v6258_v42  ;;  %v6265_v36 = vld [vmem:[#allocation40_spill] sm:$0xff]  ;;  %v1758_v54 = vld [vmem:[%s1965_s11 + $0x9a] sm:$0x1]  ;;  %v1759_v35 = vld [vmem:[%s1965_s11 + $0x9c] sm:$0x1] }
 0x11b   : > { %6256 = vst [vmem:[#allocation99_spill] sm:$0xff] %v3935_v57  ;;  %v3949_v61 = vmax.f32 %v6263_v48, %v1735_v18  ;;  %v6267_v26 = vmax.f32 %v6265_v36, %v6266_v49  ;;  %v6270_v57 = vld [vmem:[#allocation75_spill] sm:$0xff]  ;;  %v1761_v42 = vld [vmem:[%s1965_s11 + $0xb4] sm:$0x1]  ;;  %v6274_v18 = vld [vmem:[#allocation26_spill] sm:$0xff] }
 0x11c   : > { %v3944_v41 = vmax.f32 %v6259_v24, %v1734_v28  ;;  %v6271_v62 = vmax.f32 %v6269_v19, %v6270_v57  ;;  %v1760_v28 = vld [vmem:[%s1965_s11 + $0x9e] sm:$0x1]  ;;  %v6278_v48 = vld [vmem:[#allocation78_spill] sm:$0xff]  ;;  %v6282_v57 = vld [vmem:[#allocation28_spill] sm:$0xff] }
 0x11d   : > { %6264 = vst [vmem:[#allocation39_spill] sm:$0xff] %v3949_v61  ;;  %v3954_v45 = vmax.f32 %v6267_v26, %v1736_v37  ;;  %v6273_v24 = vld [vmem:[#allocation37_spill] sm:$0xff]  ;;  %v6277_v37 = vld [vmem:[#allocation3_spill] sm:$0xff] }
 0x11e   : > { %6260 = vst [vmem:[#allocation68_spill] sm:$0xff] %v3944_v41  ;;  %v3959_v10 = vmax.f32 %v6271_v62, %v1737_v0  ;;  %v6275_v9 = vmax.f32 %v6273_v24, %v6274_v18  ;;  %v6279_v36 = vmax.f32 %v6277_v37, %v6278_v48  ;;  %v6281_v0 = vld [vmem:[#allocation47_spill] sm:$0xff]  ;;  %v1762_v41 = vld [vmem:[%s1965_s11 + $0xb6] sm:$0x1]  ;;  %v1763_v24 = vld [vmem:[%s1965_s11 + $0xb8] sm:$0x1] }
 0x11f   : > { %6268 = vst [vmem:[#allocation19_spill] sm:$0xff] %v3954_v45  ;;  %v6283_v62 = vmax.f32 %v6281_v0, %v6282_v57  ;;  %v6285_v19 = vld [vmem:[#allocation7_spill] sm:$0xff]  ;;  %v1765_v18 = vld [vmem:[%s1965_s11 + $0xbc] sm:$0x1] }
 0x120   : > { %6272 = vst [vmem:[#allocation100_spill] sm:$0xff] %v3959_v10  ;;  %v3968_v6 = vmax.f32 %v6275_v9, %v1738_v59  ;;  %v3973_v49 = vmax.f32 %v6279_v36, %v1739_v50  ;;  %v6286_v10 = vld [vmem:[#allocation79_spill] sm:$0xff]  ;;  %v1764_v59 = vld [vmem:[%s1965_s11 + $0xba] sm:$0x1]  ;;  %v6289_v9 = vld [vmem:[#allocation44_spill] sm:$0xff] }
 0x121   : > { %v3978_v26 = vmax.f32 %v6283_v62, %v1740_v60  ;;  %v6287_v45 = vmax.f32 %v6285_v19, %v6286_v10  ;;  %v6290_v50 = vld [vmem:[#allocation82_spill] sm:$0xff]  ;;  %v6293_v60 = vld [vmem:[#allocation4_spill] sm:$0xff]  ;;  %v6294_v36 = vld [vmem:[#allocation33_spill] sm:$0xff] }
 0x122   : > { %6276 = vst [vmem:[#allocation71_spill] sm:$0xff] %v3968_v6  ;;  %6280 = vst [vmem:[#allocation36_spill] sm:$0xff] %v3973_v49  ;;  %v6291_v37 = vmax.f32 %v6289_v9, %v6290_v50  ;;  %v6295_v0 = vmax.f32 %v6293_v60, %v6294_v36  ;;  %v6297_v10 = vld [vmem:[#allocation48_spill] sm:$0xff]  ;;  %v1766_v6 = vld [vmem:[%s1965_s11 + $0xbe] sm:$0x1] }
 0x123   : > { %6284 = vst [vmem:[#allocation24_spill] sm:$0xff] %v3978_v26  ;;  %v3983_v61 = vmax.f32 %v6287_v45, %v1741_v51  ;;  %v6298_v51 = vld [vmem:[#allocation83_spill] sm:$0xff]  ;;  %v6301_v19 = vld [vmem:[#allocation8_spill] sm:$0xff]  ;;  %v1767_v9 = vld [vmem:[%s1965_s11 + $0xc0] sm:$0x1] }
 0x124   : > { %v3992_v48 = vmax.f32 %v6291_v37, %v1742_v2  ;;  %v3997_v57 = vmax.f32 %v6295_v0, %v1743_v52  ;;  %v6299_v45 = vmax.f32 %v6297_v10, %v6298_v51  ;;  %v1768_v2 = vld [vmem:[%s1965_s11 + $0xc2] sm:$0x1]  ;;  %v1769_v50 = vld [vmem:[%s1965_s11 + $0xd8] sm:$0x1]  ;;  %v6309_v0 = vld [vmem:[#allocation87_spill] sm:$0xff] }
 0x125   : > { %6288 = vst [vmem:[#allocation101_spill] sm:$0xff] %v3983_v61  ;;  %v6302_v61 = vld [vmem:[#allocation85_spill] sm:$0xff]  ;;  %v6306_v52 = vld [vmem:[#allocation34_spill] sm:$0xff] }
 0x126   : > { %6292 = vst [vmem:[#allocation74_spill] sm:$0xff] %v3992_v48  ;;  %6296 = vst [vmem:[#allocation40_spill] sm:$0xff] %v3997_v57  ;;  %v4002_v62 = vmax.f32 %v6299_v45, %v1744_v39  ;;  %v6303_v26 = vmax.f32 %v6301_v19, %v6302_v61  ;;  %v6305_v37 = vld [vmem:[#allocation45_spill] sm:$0xff]  ;;  %v6312_v61 = vld [vmem:[#allocation35_spill] sm:$0xff] }
 0x127   : > { %v6307_v60 = vmax.f32 %v6305_v37, %v6306_v52  ;;  %v6308_v39 = vld [vmem:[#allocation5_spill] sm:$0xff]  ;;  %v1773_v52 = vld [vmem:[%s1965_s11 + $0xe0] sm:$0x1] }
 0x128   : > { %6300 = vst [vmem:[#allocation21_spill] sm:$0xff] %v4002_v62  ;;  %v4007_v49 = vmax.f32 %v6303_v26, %v1745_v23  ;;  %v6310_v10 = vmax.f32 %v6308_v39, %v6309_v0  ;;  %v6311_v23 = vld [vmem:[#allocation55_spill] sm:$0xff]  ;;  %v6315_v19 = vld [vmem:[#allocation9_spill] sm:$0xff] }
 0x129   : > { %v4016_v36 = vmax.f32 %v6307_v60, %v1746_v47  ;;  %v6313_v26 = vmax.f32 %v6311_v23, %v6312_v61  ;;  %v1770_v48 = vld [vmem:[%s1965_s11 + $0xda] sm:$0x1]  ;;  %v1771_v37 = vld [vmem:[%s1965_s11 + $0xdc] sm:$0x1]  ;;  %v1772_v47 = vld [vmem:[%s1965_s11 + $0xde] sm:$0x1] }
 0x12a   : > { %6304 = vst [vmem:[#allocation2_spill] sm:$0xff] %v4007_v49  ;;  %v4021_v51 = vmax.f32 %v6310_v10, %v1747_v15  ;;  %v6316_v49 = vld [vmem:[#allocation90_spill] sm:$0xff]  ;;  %v6319_v15 = vmax.f32 %v6203_v5, %v3633_v8  ;;  %v6326_v23 = vld [vmem:[#allocation88_spill] sm:$0xff]  ;;  %v1777_v8 = vld [vmem:[%s1965_s11 + $0xfc] sm:$0x1] }
 0x12b   : > { %v4026_v45 = vmax.f32 %v6313_v26, %v1748_v1  ;;  %v6317_v62 = vmax.f32 %v6315_v19, %v6316_v49  ;;  %v6320_v1 = vmax.f32 %v6204_v13, %v3636_v43  ;;  %v6322_v49 = vld [vmem:[#allocation41_spill] sm:$0xff]  ;;  %v6325_v10 = vld [vmem:[#allocation10_spill] sm:$0xff]  ;;  %v6329_v13 = vmax.f32 %v3360_v31, %v3653_v16 }
 0x12c   : > { %v4040_v60 = vmax.f32 %v6319_v15, %v1750_v12  ;;  %v6327_v61 = vmax.f32 %v6325_v10, %v6326_v23  ;;  %v1774_v19 = vld [vmem:[%s1965_s11 + $0xe2] sm:$0x1]  ;;  %v1775_v5 = vld [vmem:[%s1965_s11 + $0xe4] sm:$0x1]  ;;  %v1776_v12 = vld [vmem:[%s1965_s11 + $0xe6] sm:$0x1] }
 0x12d   : > { %6314 = vst [vmem:[#allocation75_spill] sm:$0xff] %v4026_v45  ;;  %v4031_v57 = vmax.f32 %v6317_v62, %v1749_v53  ;;  %v4045_v39 = vmax.f32 %v6320_v1, %v1751_v32  ;;  %v6321_v53 = vld [vmem:[#allocation56_spill] sm:$0xff]  ;;  %v4064_v43 = vmax.f32 %v6329_v13, %v1754_v34  ;;  %v6332_v15 = vld [vmem:[#allocation38_spill] sm:$0xff]  ;;  %v4466_v45 = vld [vmem:[%s1965_s11 + $0xfd] sm:$0x1] }
 0x12e   : > { %v6323_v62 = vmax.f32 %v6321_v53, %v6322_v49  ;;  %v4055_v26 = vmax.f32 %v6327_v61, %v1753_v38  ;;  %v6331_v38 = vld [vmem:[#allocation53_spill] sm:$0xff]  ;;  %v6335_v49 = vld [vmem:[#allocation11_spill] sm:$0xff]  ;;  %v1779_v31 = vld [vmem:[%s1965_s11 + $0x100] sm:$0x1] }
 0x12f   : > { %6318 = vst [vmem:[#allocation37_spill] sm:$0xff] %v4031_v57  ;;  %v6333_v1 = vmax.f32 %v6331_v38, %v6332_v15  ;;  %v1778_v61 = vld [vmem:[%s1965_s11 + $0xfe] sm:$0x1]  ;;  %v1780_v34 = vld [vmem:[%s1965_s11 + $0x102] sm:$0x1]  ;;  %v6345_v15 = vld [vmem:[#allocation15_spill] sm:$0xff] }
 0x130   : > { %v4050_v0 = vmax.f32 %v6323_v62, %v1752_v58  ;;  %6328 = vst [vmem:[#allocation3_spill] sm:$0xff] %v4055_v26  ;;  %v6330_v58 = vmax.f32 %v3365_v25, %v3656_v44  ;;  %v6336_v62 = vld [vmem:[#allocation91_spill] sm:$0xff]  ;;  %v1781_v16 = vld [vmem:[%s1965_s11 + $0x104] sm:$0x1]  ;;  %v6339_v25 = vmax.f32 %v3384_v27, %v3673_v29  ;;  %v1785_v29 = vld [vmem:[%s1965_s11 + $0x120] sm:$0x1] }
 0x131   : > { %v4074_v53 = vmax.f32 %v6333_v1, %v1756_v40  ;;  %v6337_v10 = vmax.f32 %v6335_v49, %v6336_v62  ;;  %v6342_v13 = vld [vmem:[#allocation42_spill] sm:$0xff]  ;;  %v6346_v1 = vld [vmem:[#allocation92_spill] sm:$0xff]  ;;  %v1783_v27 = vld [vmem:[%s1965_s11 + $0x108] sm:$0x1] }
 0x132   : > { %6324 = vst [vmem:[#allocation26_spill] sm:$0xff] %v4050_v0  ;;  %v4069_v32 = vmax.f32 %v6330_v58, %v1755_v56  ;;  %v4088_v44 = vmax.f32 %v6339_v25, %v1758_v54  ;;  %v6340_v56 = vmax.f32 %v3389_v3, %v3676_v21  ;;  %v6347_v49 = vmax.f32 %v6345_v15, %v6346_v1  ;;  %v1784_v54 = vld [vmem:[%s1965_s11 + $0x10a] sm:$0x1]  ;;  %v1786_v1 = vld [vmem:[%s1965_s11 + $0x122] sm:$0x1] }
 0x133   : > { %6334 = vst [vmem:[#allocation78_spill] sm:$0xff] %v4074_v53  ;;  %v4079_v23 = vmax.f32 %v6337_v10, %v1757_v22  ;;  %v6341_v22 = vld [vmem:[#allocation63_spill] sm:$0xff]  ;;  %v1782_v10 = vld [vmem:[%s1965_s11 + $0x106] sm:$0x1]  ;;  %v6349_v3 = vmax.f32 %v3408_v11, %v3693_v7  ;;  %v1787_v11 = vld [vmem:[%s1965_s11 + $0x124] sm:$0x1] }
 0x134   : > { %v4093_v40 = vmax.f32 %v6340_v56, %v1759_v35  ;;  %v6343_v58 = vmax.f32 %v6341_v22, %v6342_v13  ;;  %v4103_v62 = vmax.f32 %v6347_v49, %v1761_v42  ;;  %v6350_v35 = vmax.f32 %v3413_v46, %v3696_v20  ;;  %v6351_v42 = vld [vmem:[#allocation43_spill] sm:$0xff]  ;;  %v6353_v22 = vld [vmem:[#allocation60_spill] sm:$0xff]  ;;  %v1788_v7 = vld [vmem:[%s1965_s11 + $0x126] sm:$0x1] }
 0x135   : > { %6338 = vst [vmem:[#allocation47_spill] sm:$0xff] %v4079_v23  ;;  %v4112_v21 = vmax.f32 %v6349_v3, %v1762_v41  ;;  %v6352_v25 = vmax.f32 %v3418_v63, %v6351_v42  ;;  %v6354_v13 = vld [vmem:[#allocation95_spill] sm:$0xff]  ;;  %v6357_v46 = vmax.f32 %v3432_v17, %v3713_v33  ;;  %v6358_v63 = vmax.f32 %v3437_v14, %v3716_v30  ;;  %v6362_v49 = vld [vmem:[#allocation12_spill] sm:$0xff]  ;;  %v6363_v3 = vld [vmem:[#allocation49_spill] sm:$0xff] }
 0x136   : > { %v4098_v38 = vmax.f32 %v6343_v58, %v1760_v28  ;;  %6348 = vst [vmem:[#allocation7_spill] sm:$0xff] %v4103_v62  ;;  %v4117_v28 = vmax.f32 %v6350_v35, %v1763_v24  ;;  %v6355_v58 = vmax.f32 %v6353_v22, %v6354_v13  ;;  %v1789_v41 = vld [vmem:[%s1965_s11 + $0x128] sm:$0x1]  ;;  %v6364_v35 = vmax.f32 %v6362_v49, %v6363_v3  ;;  %v1790_v17 = vld [vmem:[%s1965_s11 + $0x12a] sm:$0x1]  ;;  %v6366_v14 = vld [vmem:[#allocation64_spill] sm:$0xff] }
 0x137   : > { %v4122_v56 = vmax.f32 %v6352_v25, %v1764_v59  ;;  %v4136_v20 = vmax.f32 %v6357_v46, %v1766_v6  ;;  %v4141_v24 = vmax.f32 %v6358_v63, %v1767_v9  ;;  %v6360_v59 = vmax.f32 %v3442_v4, %v3719_v55  ;;  %v1791_v33 = vld [vmem:[%s1965_s11 + $0x12c] sm:$0x1]  ;;  %v1792_v6 = vld [vmem:[%s1965_s11 + $0x12e] sm:$0x1]  ;;  %v6367_v30 = vld [vmem:[#allocation93_spill] sm:$0xff] }
 0x138   : > { %6344 = vst [vmem:[#allocation28_spill] sm:$0xff] %v4098_v38  ;;  %v4127_v15 = vmax.f32 %v6355_v58, %v1765_v18  ;;  %v4151_v42 = vmax.f32 %v6364_v35, %v1769_v50  ;;  %v6368_v9 = vmax.f32 %v6366_v14, %v6367_v30  ;;  %v6370_v22 = vld [vmem:[#allocation16_spill] sm:$0xff]  ;;  %v6371_v4 = vld [vmem:[#allocation46_spill] sm:$0xff]  ;;  %v6374_v13 = vld [vmem:[#allocation61_spill] sm:$0xff] }
 0x139   : > { %6359 = vst [vmem:[#allocation44_spill] sm:$0xff] %v4141_v24  ;;  %v4146_v18 = vmax.f32 %v6360_v59, %v1768_v2  ;;  %v6372_v55 = vmax.f32 %v6370_v22, %v6371_v4  ;;  %v6375_v58 = vld [vmem:[#allocation96_spill] sm:$0xff]  ;;  %v6378_v63 = vld [vmem:[#allocation13_spill] sm:$0xff]  ;;  %v6379_v59 = vld [vmem:[#allocation50_spill] sm:$0xff] }
 0x13a   : > { %6356 = vst [vmem:[#allocation79_spill] sm:$0xff] %v4127_v15  ;;  %6365 = vst [vmem:[#allocation4_spill] sm:$0xff] %v4151_v42  ;;  %v4159_v25 = vmax.f32 %v6368_v9, %v1770_v48  ;;  %v6376_v46 = vmax.f32 %v6374_v13, %v6375_v58  ;;  %v6380_v49 = vmax.f32 %v6378_v63, %v6379_v59  ;;  %v4177_v48 = vld [vmem:[%s1965_s11 + $0x25] sm:$0x1]  ;;  %v6383_v35 = vld [vmem:[#allocation17_spill] sm:$0xff] }
 0x13b   : > { %6361 = vst [vmem:[#allocation82_spill] sm:$0xff] %v4146_v18  ;;  %v4164_v2 = vmax.f32 %v6372_v55, %v1771_v37  ;;  %6382 = vst [vmem:[#allocation85_spill] sm:$0xff] %v4177_v48  ;;  %v6384_v14 = vld [vmem:[#allocation94_spill] sm:$0xff]  ;;  %v6387_v9 = vld [vmem:[#allocation67_spill] sm:$0xff] }
 0x13c   : > { %6369 = vst [vmem:[#allocation33_spill] sm:$0xff] %v4159_v25  ;;  %v4169_v50 = vmax.f32 %v6376_v46, %v1772_v47  ;;  %v4174_v3 = vmax.f32 %v6380_v49, %v1773_v52  ;;  %v6385_v30 = vmax.f32 %v6383_v35, %v6384_v14  ;;  %v6388_v22 = vld [vmem:[#allocation51_spill] sm:$0xff]  ;;  %v6391_v55 = vld [vmem:[#allocation14_spill] sm:$0xff]  ;;  %v6392_v13 = vld [vmem:[#allocation97_spill] sm:$0xff] }
 0x13d   : > { %6373 = vst [vmem:[#allocation48_spill] sm:$0xff] %v4164_v2  ;;  %v6389_v4 = vmax.f32 %v6387_v9, %v6388_v22  ;;  %v6393_v58 = vmax.f32 %v6391_v55, %v6392_v13  ;;  %v6395_v52 = vld [vmem:[#allocation70_spill] sm:$0xff]  ;;  %v6396_v63 = vld [vmem:[#allocation57_spill] sm:$0xff]  ;;  %v4206_v35 = vld [vmem:[%s1965_s11 + $0x2b] sm:$0x1] }
 0x13e   : > { %6377 = vst [vmem:[#allocation83_spill] sm:$0xff] %v4169_v50  ;;  %6381 = vst [vmem:[#allocation8_spill] sm:$0xff] %v4174_v3  ;;  %v4182_v37 = vmax.f32 %v6385_v30, %v1774_v19  ;;  %v6397_v59 = vmax.f32 %v6395_v52, %v6396_v63  ;;  %v4200_v3 = vld [vmem:[%s1965_s11 + $0x27] sm:$0x1]  ;;  %v4203_v19 = vld [vmem:[%s1965_s11 + $0x29] sm:$0x1] }
 0x13f   : > { %v4187_v47 = vmax.f32 %v6389_v4, %v1775_v5  ;;  %v4192_v46 = vmax.f32 %v6393_v58, %v1776_v12  ;;  %6399 = vst [vmem:[#allocation55_spill] sm:$0xff] %v4200_v3  ;;  %6400 = vst [vmem:[#allocation35_spill] sm:$0xff] %v4203_v19  ;;  %v4209_v5 = vld [vmem:[%s1965_s11 + $0x2d] sm:$0x1]  ;;  %v6407_v22 = vld [vmem:[#allocation72_spill] sm:$0xff] }
 0x140   : > { %6386 = vst [vmem:[#allocation45_spill] sm:$0xff] %v4182_v37  ;;  %v4197_v49 = vmax.f32 %v6397_v59, %v1777_v8  ;;  %6401 = vst [vmem:[#allocation9_spill] sm:$0xff] %v4206_v35  ;;  %v6403_v14 = vld [vmem:[#allocation23_spill] sm:$0xff]  ;;  %v6408_v8 = vld [vmem:[#allocation54_spill] sm:$0xff] }
 0x141   : > { %6390 = vst [vmem:[#allocation34_spill] sm:$0xff] %v4187_v47  ;;  %6394 = vst [vmem:[#allocation5_spill] sm:$0xff] %v4192_v46  ;;  %v6404_v30 = vld [vmem:[#allocation27_spill] sm:$0xff]  ;;  %v6409_v4 = vmax.f32 %v6407_v22, %v6408_v8  ;;  %v6411_v13 = vld [vmem:[#allocation20_spill] sm:$0xff] }
 0x142   : > { %6398 = vst [vmem:[#allocation87_spill] sm:$0xff] %v4197_v49  ;;  %6402 = vst [vmem:[#allocation90_spill] sm:$0xff] %v4209_v5  ;;  %v6405_v12 = vmax.f32 %v6403_v14, %v6404_v30  ;;  %v6412_v58 = vld [vmem:[#allocation31_spill] sm:$0xff]  ;;  %v6415_v59 = vld [vmem:[#allocation73_spill] sm:$0xff] }
 0x143   : > { %v4219_v55 = vmax.f32 %v6409_v4, %v1779_v31  ;;  %v6413_v52 = vmax.f32 %v6411_v13, %v6412_v58  ;;  %v6416_v49 = vld [vmem:[#allocation58_spill] sm:$0xff]  ;;  %v4232_v37 = vld [vmem:[%s1965_s11 + $0x2f] sm:$0x1]  ;;  %v4238_v14 = vld [vmem:[%s1965_s11 + $0x33] sm:$0x1] }
 0x144   : > { %v4214_v9 = vmax.f32 %v6405_v12, %v1778_v61  ;;  %v6417_v46 = vmax.f32 %v6415_v59, %v6416_v49  ;;  %6419 = vst [vmem:[#allocation53_spill] sm:$0xff] %v4232_v37  ;;  %v4235_v61 = vld [vmem:[%s1965_s11 + $0x31] sm:$0x1]  ;;  %6421 = vst [vmem:[#allocation11_spill] sm:$0xff] %v4238_v14  ;;  %v4241_v31 = vld [vmem:[%s1965_s11 + $0x49] sm:$0x1] }
 0x145   : > { %6410 = vst [vmem:[#allocation41_spill] sm:$0xff] %v4219_v55  ;;  %v4224_v63 = vmax.f32 %v6413_v52, %v1780_v34  ;;  %6420 = vst [vmem:[#allocation38_spill] sm:$0xff] %v4235_v61  ;;  %v6423_v30 = vld [vmem:[#allocation25_spill] sm:$0xff]  ;;  %v6424_v12 = vld [vmem:[#allocation102_spill] sm:$0xff] }
 0x146   : > { %6406 = vst [vmem:[#allocation56_spill] sm:$0xff] %v4214_v9  ;;  %v4229_v47 = vmax.f32 %v6417_v46, %v1781_v16  ;;  %6422 = vst [vmem:[#allocation91_spill] sm:$0xff] %v4241_v31  ;;  %v6425_v34 = vmax.f32 %v6423_v30, %v6424_v12  ;;  %v6427_v49 = vld [vmem:[#allocation77_spill] sm:$0xff]  ;;  %v6428_v16 = vld [vmem:[#allocation59_spill] sm:$0xff] }
 0x147   : > { %6414 = vst [vmem:[#allocation10_spill] sm:$0xff] %v4224_v63  ;;  %v6429_v46 = vmax.f32 %v6427_v49, %v6428_v16  ;;  %v6431_v4 = vld [vmem:[#allocation22_spill] sm:$0xff]  ;;  %v6432_v13 = vld [vmem:[#allocation103_spill] sm:$0xff]  ;;  %v6435_v59 = vld [vmem:[#allocation76_spill] sm:$0xff] }
 0x148   : > { %6418 = vst [vmem:[#allocation88_spill] sm:$0xff] %v4229_v47  ;;  %v4246_v22 = vmax.f32 %v6425_v34, %v1782_v10  ;;  %v6433_v58 = vmax.f32 %v6431_v4, %v6432_v13  ;;  %v6436_v47 = vld [vmem:[#allocation65_spill] sm:$0xff]  ;;  %v4264_v30 = vld [vmem:[%s1965_s11 + $0x4b] sm:$0x1]  ;;  %v4267_v10 = vld [vmem:[%s1965_s11 + $0x4d] sm:$0x1] }
 0x149   : > { %v4251_v8 = vmax.f32 %v6429_v46, %v1783_v27  ;;  %v6437_v63 = vmax.f32 %v6435_v59, %v6436_v47  ;;  %6439 = vst [vmem:[#allocation43_spill] sm:$0xff] %v4264_v30  ;;  %6440 = vst [vmem:[#allocation60_spill] sm:$0xff] %v4267_v10  ;;  %v4270_v12 = vld [vmem:[%s1965_s11 + $0x4f] sm:$0x1]  ;;  %v4273_v27 = vld [vmem:[%s1965_s11 + $0x51] sm:$0x1] }
 0x14a   : > { %6426 = vst [vmem:[#allocation63_spill] sm:$0xff] %v4246_v22  ;;  %v4256_v52 = vmax.f32 %v6433_v58, %v1784_v54  ;;  %6441 = vst [vmem:[#allocation95_spill] sm:$0xff] %v4270_v12  ;;  %v6443_v34 = vld [vmem:[#allocation32_spill] sm:$0xff]  ;;  %v6447_v47 = vld [vmem:[#allocation81_spill] sm:$0xff] }
 0x14b   : > { %6430 = vst [vmem:[#allocation42_spill] sm:$0xff] %v4251_v8  ;;  %v4261_v55 = vmax.f32 %v6437_v63, %v1785_v29  ;;  %6442 = vst [vmem:[#allocation12_spill] sm:$0xff] %v4273_v27  ;;  %v6444_v54 = vld [vmem:[#allocation104_spill] sm:$0xff]  ;;  %v6448_v29 = vld [vmem:[#allocation62_spill] sm:$0xff] }
 0x14c   : > { %6434 = vst [vmem:[#allocation15_spill] sm:$0xff] %v4256_v52  ;;  %v6445_v49 = vmax.f32 %v6443_v34, %v6444_v54  ;;  %v6449_v63 = vmax.f32 %v6447_v47, %v6448_v29  ;;  %v6451_v4 = vld [vmem:[#allocation80_spill] sm:$0xff]  ;;  %v6452_v13 = vld [vmem:[#allocation105_spill] sm:$0xff]  ;;  %v6456_v52 = vld [vmem:[#allocation66_spill] sm:$0xff] }
 0x14d   : > { %6438 = vst [vmem:[#allocation92_spill] sm:$0xff] %v4261_v55  ;;  %v6453_v58 = vmax.f32 %v6451_v4, %v6452_v13  ;;  %v6455_v55 = vld [vmem:[#allocation29_spill] sm:$0xff]  ;;  %v4299_v34 = vld [vmem:[%s1965_s11 + $0x55] sm:$0x1]  ;;  %v4302_v54 = vld [vmem:[%s1965_s11 + $0x57] sm:$0x1] }
 0x14e   : > { %v4278_v16 = vmax.f32 %v6445_v49, %v1786_v1  ;;  %v4283_v46 = vmax.f32 %v6449_v63, %v1787_v11  ;;  %v6457_v8 = vmax.f32 %v6455_v55, %v6456_v52  ;;  %v4296_v1 = vld [vmem:[%s1965_s11 + $0x53] sm:$0x1]  ;;  %6459 = vst [vmem:[#allocation46_spill] sm:$0xff] %v4302_v54  ;;  %v4305_v11 = vld [vmem:[%s1965_s11 + $0x6d] sm:$0x1]  ;;  %v6462_v47 = vld [vmem:[#allocation106_spill] sm:$0xff] }
 0x14f   : > { %v4288_v59 = vmax.f32 %v6453_v58, %v1788_v7  ;;  %6460 = vst [vmem:[#allocation61_spill] sm:$0xff] %v4305_v11  ;;  %v6461_v49 = vld [vmem:[#allocation84_spill] sm:$0xff]  ;;  %v6465_v63 = vld [vmem:[#allocation86_spill] sm:$0xff]  ;;  %v4377_v19 = vld [vmem:[%s1965_s11 + $0x9b] sm:$0x1] }
 0x150   : > { %6446 = vst [vmem:[#allocation49_spill] sm:$0xff] %v4278_v16  ;;  %6450 = vst [vmem:[#allocation64_spill] sm:$0xff] %v4283_v46  ;;  %v4293_v22 = vmax.f32 %v6457_v8, %v1789_v41  ;;  %v6463_v29 = vmax.f32 %v6461_v49, %v6462_v47  ;;  %v6466_v4 = vld [vmem:[#allocation52_spill] sm:$0xff]  ;;  %v6469_v8 = vld [vmem:[#allocation89_spill] sm:$0xff] }
 0x151   : > { %6454 = vst [vmem:[#allocation93_spill] sm:$0xff] %v4288_v59  ;;  %v6467_v55 = vmax.f32 %v6465_v63, %v6466_v4  ;;  %v6470_v52 = vld [vmem:[#allocation6_spill] sm:$0xff]  ;;  %v4326_v59 = vld [vmem:[%s1965_s11 + $0x71] sm:$0x1]  ;;  %v4332_v49 = vld [vmem:[%s1965_s11 + $0x75] sm:$0x1] }
 0x152   : > { %6458 = vst [vmem:[#allocation16_spill] sm:$0xff] %v4293_v22  ;;  %v4310_v7 = vmax.f32 %v6463_v29, %v1790_v17  ;;  %v6471_v13 = vmax.f32 %v6469_v8, %v6470_v52  ;;  %v4323_v22 = vld [vmem:[%s1965_s11 + $0x6f] sm:$0x1]  ;;  %v4329_v17 = vld [vmem:[%s1965_s11 + $0x73] sm:$0x1]  ;;  %6474 = vst [vmem:[#allocation94_spill] sm:$0xff] %v4332_v49 }
 0x153   : > { %v4315_v41 = vmax.f32 %v6467_v55, %v1791_v33  ;;  %6473 = vst [vmem:[#allocation17_spill] sm:$0xff] %v4329_v17  ;;  %v4337_v29 = vld [vmem:[%s1965_s11 + $0x77] sm:$0x1]  ;;  %v4340_v63 = vld [vmem:[%s1965_s11 + $0x79] sm:$0x1]  ;;  %v6496_v35 = vld [vmem:[#allocation74_spill] sm:$0xff] }
 0x154   : > { %6464 = vst [vmem:[#allocation96_spill] sm:$0xff] %v4310_v7  ;;  %v4320_v58 = vmax.f32 %v6471_v13, %v1792_v6  ;;  %v4343_v6 = vld [vmem:[%s1965_s11 + $0x7b] sm:$0x1]  ;;  %v4346_v4 = vld [vmem:[%s1965_s11 + $0x91] sm:$0x1]  ;;  %6510 = vst [vmem:[#allocation22_spill] sm:$0xff] %v4466_v45 }
 0x155   : > { %6468 = vst [vmem:[#allocation13_spill] sm:$0xff] %v4315_v41  ;;  %6476 = vst [vmem:[#allocation67_spill] sm:$0xff] %v4343_v6  ;;  %v4357_v41 = vld [vmem:[%s1965_s11 + $0x93] sm:$0x1]  ;;  %v4360_v7 = vld [vmem:[%s1965_s11 + $0x95] sm:$0x1] }
 0x156   : > { %6472 = vst [vmem:[#allocation50_spill] sm:$0xff] %v4320_v58  ;;  %6477 = vst [vmem:[#allocation51_spill] sm:$0xff] %v4346_v4  ;;  %v4363_v46 = vld [vmem:[%s1965_s11 + $0x97] sm:$0x1]  ;;  %v4366_v16 = vld [vmem:[%s1965_s11 + $0x99] sm:$0x1] }
 0x157   : > { %6482 = vst [vmem:[#allocation14_spill] sm:$0xff] %v4363_v46  ;;  %6483 = vst [vmem:[#allocation97_spill] sm:$0xff] %v4366_v16  ;;  %v4380_v52 = vld [vmem:[%s1965_s11 + $0x9d] sm:$0x1]  ;;  %v4383_v3 = vld [vmem:[%s1965_s11 + $0x9f] sm:$0x1] }
 0x158   : > { %6488 = vst [vmem:[#allocation70_spill] sm:$0xff] %v4383_v3  ;;  %v4386_v55 = vld [vmem:[%s1965_s11 + $0xb5] sm:$0x1]  ;;  %v4397_v61 = vld [vmem:[%s1965_s11 + $0xb7] sm:$0x1]  ;;  %v6550_v9 = vld [vmem:[#allocation55_spill] sm:$0xff] }
 0x159   : > { %6489 = vst [vmem:[#allocation57_spill] sm:$0xff] %v4386_v55  ;;  %v4400_v48 = vld [vmem:[%s1965_s11 + $0xb9] sm:$0x1]  ;;  %v4403_v37 = vld [vmem:[%s1965_s11 + $0xbb] sm:$0x1]  ;;  %v6497_v31 = vld [vmem:[#allocation40_spill] sm:$0xff] }
 0x15a   : > { %6494 = vst [vmem:[#allocation23_spill] sm:$0xff] %v4403_v37  ;;  %v4406_v8 = vld [vmem:[%s1965_s11 + $0xbd] sm:$0x1]  ;;  %v4417_v10 = vld [vmem:[%s1965_s11 + $0xbf] sm:$0x1]  ;;  %v6556_v50 = vld [vmem:[#allocation18_spill] sm:$0xff] }
 0x15b   : > { %6495 = vst [vmem:[#allocation27_spill] sm:$0xff] %v4406_v8  ;;  %v4420_v5 = vld [vmem:[%s1965_s11 + $0xc1] sm:$0x1]  ;;  %v4423_v30 = vld [vmem:[%s1965_s11 + $0xc3] sm:$0x1] }
 0x15c   : > { %6500 = vst [vmem:[#allocation72_spill] sm:$0xff] %v4420_v5  ;;  %6501 = vst [vmem:[#allocation54_spill] sm:$0xff] %v4423_v30  ;;  %v4426_v13 = vld [vmem:[%s1965_s11 + $0xd9] sm:$0x1]  ;;  %v4437_v11 = vld [vmem:[%s1965_s11 + $0xdb] sm:$0x1] }
 0x15d   : > { %6502 = vst [vmem:[#allocation20_spill] sm:$0xff] %v4426_v13  ;;  %6503 = vst [vmem:[#allocation31_spill] sm:$0xff] %v4437_v11  ;;  %v4440_v47 = vld [vmem:[%s1965_s11 + $0xdd] sm:$0x1]  ;;  %v4443_v54 = vld [vmem:[%s1965_s11 + $0xdf] sm:$0x1] }
 0x15e   : > { %6504 = vst [vmem:[#allocation73_spill] sm:$0xff] %v4440_v47  ;;  %6505 = vst [vmem:[#allocation58_spill] sm:$0xff] %v4443_v54  ;;  %v4446_v58 = vld [vmem:[%s1965_s11 + $0xe1] sm:$0x1]  ;;  %v4457_v49 = vld [vmem:[%s1965_s11 + $0xe3] sm:$0x1] }
 0x15f   : > { %6506 = vst [vmem:[#allocation25_spill] sm:$0xff] %v4446_v58  ;;  %6507 = vst [vmem:[#allocation102_spill] sm:$0xff] %v4457_v49  ;;  %v4460_v57 = vld [vmem:[%s1965_s11 + $0xe5] sm:$0x1]  ;;  %v4463_v17 = vld [vmem:[%s1965_s11 + $0xe7] sm:$0x1] }
 0x160   : > { %6508 = vst [vmem:[#allocation77_spill] sm:$0xff] %v4460_v57  ;;  %6509 = vst [vmem:[#allocation59_spill] sm:$0xff] %v4463_v17  ;;  %v4477_v4 = vld [vmem:[%s1965_s11 + $0xff] sm:$0x1]  ;;  %v4480_v26 = vld [vmem:[%s1965_s11 + $0x101] sm:$0x1] }
 0x161   : > { %6511 = vst [vmem:[#allocation103_spill] sm:$0xff] %v4477_v4  ;;  %6512 = vst [vmem:[#allocation76_spill] sm:$0xff] %v4480_v26  ;;  %v4483_v6 = vld [vmem:[%s1965_s11 + $0x103] sm:$0x1]  ;;  %v4486_v0 = vld [vmem:[%s1965_s11 + $0x105] sm:$0x1] }
 0x162   : > { %6513 = vst [vmem:[#allocation65_spill] sm:$0xff] %v4483_v6  ;;  %6514 = vst [vmem:[#allocation32_spill] sm:$0xff] %v4486_v0  ;;  %v4497_v16 = vld [vmem:[%s1965_s11 + $0x107] sm:$0x1]  ;;  %v4500_v23 = vld [vmem:[%s1965_s11 + $0x109] sm:$0x1] }
 0x163   : > { %6515 = vst [vmem:[#allocation104_spill] sm:$0xff] %v4497_v16  ;;  %6516 = vst [vmem:[#allocation81_spill] sm:$0xff] %v4500_v23  ;;  %v4503_v46 = vld [vmem:[%s1965_s11 + $0x10b] sm:$0x1]  ;;  %v4506_v53 = vld [vmem:[%s1965_s11 + $0x121] sm:$0x1] }
 0x164   : > { %6517 = vst [vmem:[#allocation62_spill] sm:$0xff] %v4503_v46  ;;  %6518 = vst [vmem:[#allocation80_spill] sm:$0xff] %v4506_v53  ;;  %v4517_v55 = vld [vmem:[%s1965_s11 + $0x123] sm:$0x1]  ;;  %v4520_v62 = vld [vmem:[%s1965_s11 + $0x125] sm:$0x1] }
 0x165   : > { %6519 = vst [vmem:[#allocation105_spill] sm:$0xff] %v4517_v55  ;;  %6520 = vst [vmem:[#allocation29_spill] sm:$0xff] %v4520_v62  ;;  %v4523_v3 = vld [vmem:[%s1965_s11 + $0x127] sm:$0x1]  ;;  %v4526_v38 = vld [vmem:[%s1965_s11 + $0x129] sm:$0x1] }
 0x166   : > { %6521 = vst [vmem:[#allocation66_spill] sm:$0xff] %v4523_v3  ;;  %6522 = vst [vmem:[#allocation84_spill] sm:$0xff] %v4526_v38  ;;  %v4537_v8 = vld [vmem:[%s1965_s11 + $0x12b] sm:$0x1]  ;;  %v4540_v15 = vld [vmem:[%s1965_s11 + $0x12d] sm:$0x1] }
 0x167   : > { %6523 = vst [vmem:[#allocation106_spill] sm:$0xff] %v4537_v8  ;;  %6524 = vst [vmem:[#allocation86_spill] sm:$0xff] %v4540_v15  ;;  %v4543_v37 = vld [vmem:[%s1965_s11 + $0x12f] sm:$0x1]  ;;  %v1857_v13 = vld [vmem:[%s1965_s11 + $0x26] sm:$0x1] }
 0x168   : > { %6525 = vst [vmem:[#allocation52_spill] sm:$0xff] %v4543_v37  ;;  %v1858_v14 = vld [vmem:[%s1965_s11 + $0x28] sm:$0x1]  ;;  %v1859_v54 = vld [vmem:[%s1965_s11 + $0x2a] sm:$0x1]  ;;  %v6545_v26 = vld [vmem:[#allocation98_spill] sm:$0xff] }
 0x169   : > { %v1860_v33 = vld [vmem:[%s1965_s11 + $0x2c] sm:$0x1]  ;;  %v1861_v58 = vld [vmem:[%s1965_s11 + $0x2e] sm:$0x1]  ;;  %v1862_v45 = vld [vmem:[%s1965_s11 + $0x30] sm:$0x1] }
 0x16a   : > { %v1863_v47 = vld [vmem:[%s1965_s11 + $0x32] sm:$0x1]  ;;  %v1864_v11 = vld [vmem:[%s1965_s11 + $0x34] sm:$0x1]  ;;  %v1865_v5 = vld [vmem:[%s1965_s11 + $0x4a] sm:$0x1] }
 0x16b   : > { %v1866_v0 = vld [vmem:[%s1965_s11 + $0x4c] sm:$0x1]  ;;  %v1867_v17 = vld [vmem:[%s1965_s11 + $0x4e] sm:$0x1]  ;;  %v1868_v6 = vld [vmem:[%s1965_s11 + $0x50] sm:$0x1] }
 0x16c   : > { %v1869_v57 = vld [vmem:[%s1965_s11 + $0x52] sm:$0x1]  ;;  %v1870_v27 = vld [vmem:[%s1965_s11 + $0x54] sm:$0x1]  ;;  %v1871_v12 = vld [vmem:[%s1965_s11 + $0x56] sm:$0x1] }
 0x16d   : > { %v1872_v18 = vld [vmem:[%s1965_s11 + $0x58] sm:$0x1]  ;;  %v1873_v4 = vld [vmem:[%s1965_s11 + $0x6e] sm:$0x1]  ;;  %v1874_v46 = vld [vmem:[%s1965_s11 + $0x70] sm:$0x1] }
 0x16e   : > { %v1875_v3 = vld [vmem:[%s1965_s11 + $0x72] sm:$0x1]  ;;  %v6546_v53 = vld [vmem:[#allocation85_spill] sm:$0xff]  ;;  %v1876_v49 = vld [vmem:[%s1965_s11 + $0x74] sm:$0x1] }
 0x16f   : > { %v6547_v38 = vmax.f32 %v6545_v26, %v6546_v53  ;;  %v1877_v42 = vld [vmem:[%s1965_s11 + $0x76] sm:$0x1]  ;;  %v1878_v8 = vld [vmem:[%s1965_s11 + $0x78] sm:$0x1]  ;;  %v6552_v62 = vld [vmem:[#allocation30_spill] sm:$0xff] }
 0x170   : > { %v6549_v16 = vld [vmem:[#allocation69_spill] sm:$0xff]  ;;  %v6553_v37 = vld [vmem:[#allocation35_spill] sm:$0xff] }
 0x171   : > { %v4613_v2 = vmax.f32 %v6547_v38, %v1857_v13  ;;  %v6551_v55 = vmax.f32 %v6549_v16, %v6550_v9  ;;  %v6554_v23 = vmax.f32 %v6552_v62, %v6553_v37  ;;  %v6557_v26 = vld [vmem:[#allocation9_spill] sm:$0xff]  ;;  %v6560_v13 = vld [vmem:[#allocation99_spill] sm:$0xff]  ;;  %v1881_v16 = vld [vmem:[%s1965_s11 + $0x92] sm:$0x1] }
 0x172   : > { %v6558_v53 = vmax.f32 %v6556_v50, %v6557_v26  ;;  %v1879_v9 = vld [vmem:[%s1965_s11 + $0x7a] sm:$0x1]  ;;  %v6568_v50 = vld [vmem:[#allocation38_spill] sm:$0xff] }
 0x173   : > { %6548 = vst [vmem:[#allocation89_spill] sm:$0xff] %v4613_v2  ;;  %v4621_v15 = vmax.f32 %v6551_v55, %v1858_v14  ;;  %v4626_v30 = vmax.f32 %v6554_v23, %v1859_v54  ;;  %v6561_v2 = vld [vmem:[#allocation90_spill] sm:$0xff]  ;;  %v1880_v14 = vld [vmem:[%s1965_s11 + $0x7c] sm:$0x1]  ;;  %v6564_v55 = vld [vmem:[#allocation68_spill] sm:$0xff] }
 0x174   : > { %v4631_v38 = vmax.f32 %v6558_v53, %v1860_v33  ;;  %v6562_v25 = vmax.f32 %v6560_v13, %v6561_v2  ;;  %v6565_v62 = vld [vmem:[#allocation53_spill] sm:$0xff]  ;;  %v6567_v54 = vld [vmem:[#allocation39_spill] sm:$0xff] }
 0x175   : > { %6555 = vst [vmem:[#allocation6_spill] sm:$0xff] %v4626_v30  ;;  %v6566_v23 = vmax.f32 %v6564_v55, %v6565_v62  ;;  %v6569_v33 = vmax.f32 %v6567_v54, %v6568_v50  ;;  %v6571_v53 = vld [vmem:[#allocation19_spill] sm:$0xff]  ;;  %v1882_v55 = vld [vmem:[%s1965_s11 + $0x94] sm:$0x1]  ;;  %v1884_v62 = vld [vmem:[%s1965_s11 + $0x98] sm:$0x1] }
 0x176   : > { %6559 = vst [vmem:[#allocation74_spill] sm:$0xff] %v4631_v38  ;;  %v4636_v24 = vmax.f32 %v6562_v25, %v1861_v58  ;;  %v6572_v2 = vld [vmem:[#allocation11_spill] sm:$0xff]  ;;  %v6575_v58 = vld [vmem:[#allocation100_spill] sm:$0xff] }
 0x177   : > { %v4644_v37 = vmax.f32 %v6566_v23, %v1862_v45  ;;  %v4649_v26 = vmax.f32 %v6569_v33, %v1863_v47  ;;  %v6573_v13 = vmax.f32 %v6571_v53, %v6572_v2  ;;  %v1883_v45 = vld [vmem:[%s1965_s11 + $0x96] sm:$0x1]  ;;  %v6579_v23 = vld [vmem:[#allocation71_spill] sm:$0xff] }
 0x178   : > { %6563 = vst [vmem:[#allocation40_spill] sm:$0xff] %v4636_v24  ;;  %v6576_v24 = vld [vmem:[#allocation91_spill] sm:$0xff]  ;;  %v6582_v33 = vld [vmem:[#allocation36_spill] sm:$0xff] }
 0x179   : > { %6570 = vst [vmem:[#allocation98_spill] sm:$0xff] %v4649_v26  ;;  %v4654_v25 = vmax.f32 %v6573_v13, %v1864_v11  ;;  %v6577_v38 = vmax.f32 %v6575_v58, %v6576_v24  ;;  %v6580_v54 = vld [vmem:[#allocation43_spill] sm:$0xff]  ;;  %v6583_v53 = vld [vmem:[#allocation60_spill] sm:$0xff] }
 0x17a   : > { %v6581_v47 = vmax.f32 %v6579_v23, %v6580_v54  ;;  %v6584_v11 = vmax.f32 %v6582_v33, %v6583_v53  ;;  %v6585_v13 = vld [vmem:[#allocation24_spill] sm:$0xff]  ;;  %v6586_v24 = vld [vmem:[#allocation95_spill] sm:$0xff]  ;;  %v1885_v23 = vld [vmem:[%s1965_s11 + $0x9a] sm:$0x1] }
 0x17b   : > { %6574 = vst [vmem:[#allocation85_spill] sm:$0xff] %v4654_v25  ;;  %v4659_v30 = vmax.f32 %v6577_v38, %v1865_v5  ;;  %v6587_v58 = vmax.f32 %v6585_v13, %v6586_v24  ;;  %v6588_v38 = vld [vmem:[#allocation101_spill] sm:$0xff] }
 0x17c   : > { %v4667_v50 = vmax.f32 %v6581_v47, %v1866_v0  ;;  %v4672_v2 = vmax.f32 %v6584_v11, %v1867_v17  ;;  %v1886_v0 = vld [vmem:[%s1965_s11 + $0x9c] sm:$0x1]  ;;  %v1887_v54 = vld [vmem:[%s1965_s11 + $0x9e] sm:$0x1]  ;;  %v6591_v17 = vmax.f32 %v6496_v35, %v4296_v1  ;;  %v1888_v35 = vld [vmem:[%s1965_s11 + $0xa0] sm:$0x1] }
 0x17d   : > { %6578 = vst [vmem:[#allocation69_spill] sm:$0xff] %v4659_v30  ;;  %v4677_v5 = vmax.f32 %v6587_v58, %v1868_v6  ;;  %v6589_v30 = vld [vmem:[#allocation12_spill] sm:$0xff]  ;;  %v6592_v6 = vmax.f32 %v6497_v31, %v4299_v34  ;;  %v6593_v53 = vld [vmem:[#allocation21_spill] sm:$0xff]  ;;  %v6599_v31 = vmax.f32 %v4016_v36, %v4323_v22 }
 0x17e   : > { %v6590_v25 = vmax.f32 %v6588_v38, %v6589_v30  ;;  %v4690_v47 = vmax.f32 %v6591_v17, %v1870_v27  ;;  %v6594_v30 = vld [vmem:[#allocation46_spill] sm:$0xff]  ;;  %v6597_v13 = vld [vmem:[#allocation61_spill] sm:$0xff]  ;;  %v1889_v27 = vld [vmem:[%s1965_s11 + $0xb6] sm:$0x1] }
 0x17f   : > { %v4695_v33 = vmax.f32 %v6592_v6, %v1871_v12  ;;  %v6595_v11 = vmax.f32 %v6593_v53, %v6594_v30  ;;  %v1890_v1 = vld [vmem:[%s1965_s11 + $0xb8] sm:$0x1]  ;;  %v4713_v12 = vmax.f32 %v6599_v31, %v1874_v46  ;;  %v6601_v38 = vld [vmem:[#allocation75_spill] sm:$0xff]  ;;  %v6605_v30 = vld [vmem:[#allocation94_spill] sm:$0xff] }
 0x180   : > { %v4682_v26 = vmax.f32 %v6590_v25, %v1869_v57  ;;  %v6596_v25 = vld [vmem:[#allocation2_spill] sm:$0xff]  ;;  %v6602_v17 = vld [vmem:[#allocation17_spill] sm:$0xff] }
 0x181   : > { %v4700_v57 = vmax.f32 %v6595_v11, %v1872_v18  ;;  %v6598_v24 = vmax.f32 %v6596_v25, %v6597_v13  ;;  %v6600_v18 = vmax.f32 %v4021_v51, %v4326_v59  ;;  %v6603_v6 = vmax.f32 %v6601_v38, %v6602_v17  ;;  %v6604_v53 = vld [vmem:[#allocation37_spill] sm:$0xff]  ;;  %v6609_v13 = vld [vmem:[#allocation26_spill] sm:$0xff]  ;;  %v6613_v38 = vld [vmem:[#allocation51_spill] sm:$0xff] }
 0x182   : > { %v6606_v11 = vmax.f32 %v6604_v53, %v6605_v30  ;;  %v1891_v36 = vld [vmem:[%s1965_s11 + $0xba] sm:$0x1]  ;;  %v1892_v22 = vld [vmem:[%s1965_s11 + $0xbc] sm:$0x1]  ;;  %v1893_v46 = vld [vmem:[%s1965_s11 + $0xbe] sm:$0x1]  ;;  %v6607_v51 = vmax.f32 %v4040_v60, %v4337_v29  ;;  %v6608_v59 = vmax.f32 %v4045_v39, %v4340_v63  ;;  %v6615_v39 = vmax.f32 %v4064_v43, %v4357_v41 }
 0x183   : > { %v4705_v58 = vmax.f32 %v6598_v24, %v1873_v4  ;;  %v4718_v34 = vmax.f32 %v6600_v18, %v1875_v3  ;;  %v4723_v4 = vmax.f32 %v6603_v6, %v1876_v49  ;;  %v6610_v24 = vld [vmem:[#allocation67_spill] sm:$0xff]  ;;  %v1894_v60 = vld [vmem:[%s1965_s11 + $0xc0] sm:$0x1]  ;;  %v1895_v29 = vld [vmem:[%s1965_s11 + $0xc2] sm:$0x1] }
 0x184   : > { %v4728_v25 = vmax.f32 %v6606_v11, %v1877_v42  ;;  %v4736_v3 = vmax.f32 %v6607_v51, %v1878_v8  ;;  %v4741_v49 = vmax.f32 %v6608_v59, %v1879_v9  ;;  %v6611_v31 = vmax.f32 %v6609_v13, %v6610_v24  ;;  %v6612_v18 = vld [vmem:[#allocation3_spill] sm:$0xff]  ;;  %v1896_v8 = vld [vmem:[%s1965_s11 + $0xc4] sm:$0x1]  ;;  %v6621_v59 = vld [vmem:[#allocation97_spill] sm:$0xff] }
 0x185   : > { %v6614_v17 = vmax.f32 %v6612_v18, %v6613_v38  ;;  %v4759_v63 = vmax.f32 %v6615_v39, %v1882_v55  ;;  %v6616_v9 = vmax.f32 %v4069_v32, %v4360_v7  ;;  %v6617_v53 = vld [vmem:[#allocation78_spill] sm:$0xff]  ;;  %v6620_v51 = vld [vmem:[#allocation47_spill] sm:$0xff]  ;;  %v1897_v43 = vld [vmem:[%s1965_s11 + $0xda] sm:$0x1]  ;;  %v6623_v32 = vmax.f32 %v4088_v44, %v4377_v19 }
 0x186   : > { %v4746_v42 = vmax.f32 %v6611_v31, %v1880_v14  ;;  %v6618_v30 = vld [vmem:[#allocation14_spill] sm:$0xff]  ;;  %v6622_v13 = vmax.f32 %v6620_v51, %v6621_v59  ;;  %v1898_v41 = vld [vmem:[%s1965_s11 + $0xdc] sm:$0x1]  ;;  %v1899_v55 = vld [vmem:[%s1965_s11 + $0xde] sm:$0x1] }
 0x187   : > { %v4751_v6 = vmax.f32 %v6614_v17, %v1881_v16  ;;  %v4764_v14 = vmax.f32 %v6616_v9, %v1883_v45  ;;  %v6619_v11 = vmax.f32 %v6617_v53, %v6618_v30  ;;  %v4782_v7 = vmax.f32 %v6623_v32, %v1886_v0  ;;  %v6625_v31 = vld [vmem:[#allocation28_spill] sm:$0xff]  ;;  %v6626_v18 = vld [vmem:[#allocation70_spill] sm:$0xff]  ;;  %v6628_v17 = vld [vmem:[#allocation7_spill] sm:$0xff] }
 0x188   : > { %v4774_v24 = vmax.f32 %v6622_v13, %v1885_v23  ;;  %v6624_v45 = vmax.f32 %v4093_v40, %v4380_v52  ;;  %v6627_v38 = vmax.f32 %v6625_v31, %v6626_v18  ;;  %v6629_v39 = vld [vmem:[#allocation57_spill] sm:$0xff]  ;;  %v1900_v44 = vld [vmem:[%s1965_s11 + $0xe0] sm:$0x1]  ;;  %v1901_v19 = vld [vmem:[%s1965_s11 + $0xe2] sm:$0x1]  ;;  %v6631_v40 = vmax.f32 %v4112_v21, %v4397_v61 }
 0x189   : > { %v4769_v16 = vmax.f32 %v6619_v11, %v1884_v62  ;;  %v6630_v9 = vmax.f32 %v6628_v17, %v6629_v39  ;;  %v1902_v0 = vld [vmem:[%s1965_s11 + $0xe4] sm:$0x1]  ;;  %v6633_v30 = vld [vmem:[#allocation23_spill] sm:$0xff]  ;;  %v1903_v21 = vld [vmem:[%s1965_s11 + $0xe6] sm:$0x1] }
 0x18a   : > { %v4787_v62 = vmax.f32 %v6624_v45, %v1887_v54  ;;  %v4792_v23 = vmax.f32 %v6627_v38, %v1888_v35  ;;  %v4805_v52 = vmax.f32 %v6631_v40, %v1890_v1  ;;  %v6632_v54 = vmax.f32 %v4117_v28, %v4400_v48  ;;  %v6635_v51 = vld [vmem:[#allocation79_spill] sm:$0xff]  ;;  %v1905_v1 = vld [vmem:[%s1965_s11 + $0xfe] sm:$0x1]  ;;  %v6642_v31 = vld [vmem:[#allocation82_spill] sm:$0xff] }
 0x18b   : > { %v4797_v53 = vmax.f32 %v6630_v9, %v1889_v27  ;;  %v6634_v11 = vmax.f32 %v4122_v56, %v6633_v30  ;;  %v6636_v59 = vld [vmem:[#allocation27_spill] sm:$0xff]  ;;  %v6638_v28 = vmax.f32 %v4136_v20, %v4417_v10  ;;  %v6640_v56 = vld [vmem:[#allocation72_spill] sm:$0xff]  ;;  %v6643_v18 = vld [vmem:[#allocation54_spill] sm:$0xff] }
 0x18c   : > { %v4810_v35 = vmax.f32 %v6632_v54, %v1891_v36  ;;  %v6637_v13 = vmax.f32 %v6635_v51, %v6636_v59  ;;  %v1904_v61 = vld [vmem:[%s1965_s11 + $0xe8] sm:$0x1]  ;;  %v6639_v36 = vld [vmem:[#allocation44_spill] sm:$0xff]  ;;  %v6644_v38 = vmax.f32 %v6642_v31, %v6643_v18  ;;  %v1906_v20 = vld [vmem:[%s1965_s11 + $0x100] sm:$0x1] }
 0x18d   : > { %v4815_v27 = vmax.f32 %v6634_v11, %v1892_v22  ;;  %v4828_v48 = vmax.f32 %v6638_v28, %v1894_v60  ;;  %v6641_v22 = vmax.f32 %v6639_v36, %v6640_v56  ;;  %v6645_v17 = vld [vmem:[#allocation4_spill] sm:$0xff]  ;;  %v1907_v10 = vld [vmem:[%s1965_s11 + $0x102] sm:$0x1]  ;;  %v1908_v60 = vld [vmem:[%s1965_s11 + $0x104] sm:$0x1] }
 0x18e   : > { %v4820_v32 = vmax.f32 %v6637_v13, %v1893_v46  ;;  %v4838_v46 = vmax.f32 %v6644_v38, %v1896_v8  ;;  %v6646_v39 = vld [vmem:[#allocation20_spill] sm:$0xff]  ;;  %v6649_v54 = vld [vmem:[#allocation33_spill] sm:$0xff]  ;;  %v6650_v30 = vld [vmem:[#allocation31_spill] sm:$0xff] }
 0x18f   : > { %v4833_v45 = vmax.f32 %v6641_v22, %v1895_v29  ;;  %v6647_v9 = vmax.f32 %v6645_v17, %v6646_v39  ;;  %v6651_v29 = vmax.f32 %v6649_v54, %v6650_v30  ;;  %v6652_v51 = vld [vmem:[#allocation48_spill] sm:$0xff]  ;;  %v6653_v59 = vld [vmem:[#allocation73_spill] sm:$0xff]  ;;  %v6655_v28 = vld [vmem:[#allocation83_spill] sm:$0xff] }
 0x190   : > { %v6654_v8 = vmax.f32 %v6652_v51, %v6653_v59  ;;  %v6656_v36 = vld [vmem:[#allocation58_spill] sm:$0xff]  ;;  %v6658_v22 = vld [vmem:[#allocation8_spill] sm:$0xff]  ;;  %v6659_v31 = vld [vmem:[#allocation25_spill] sm:$0xff] }
 0x191   : > { %v4843_v40 = vmax.f32 %v6647_v9, %v1897_v43  ;;  %v4851_v11 = vmax.f32 %v6651_v29, %v1898_v41  ;;  %v6657_v56 = vmax.f32 %v6655_v28, %v6656_v36  ;;  %v6660_v18 = vmax.f32 %v6658_v22, %v6659_v31  ;;  %v1909_v17 = vld [vmem:[%s1965_s11 + $0x106] sm:$0x1]  ;;  %v1910_v41 = vld [vmem:[%s1965_s11 + $0x108] sm:$0x1]  ;;  %v1911_v39 = vld [vmem:[%s1965_s11 + $0x10a] sm:$0x1] }
 0x192   : > { %v4856_v13 = vmax.f32 %v6654_v8, %v1899_v55  ;;  %v6661_v9 = vld [vmem:[#allocation45_spill] sm:$0xff]  ;;  %v6662_v54 = vld [vmem:[#allocation102_spill] sm:$0xff]  ;;  %v6670_v28 = vld [vmem:[#allocation59_spill] sm:$0xff] }
 0x193   : > { %6648 = vst [vmem:[#allocation55_spill] sm:$0xff] %v4843_v40  ;;  %v4861_v43 = vmax.f32 %v6657_v56, %v1900_v44  ;;  %v4866_v38 = vmax.f32 %v6660_v18, %v1901_v19  ;;  %v6663_v55 = vmax.f32 %v6661_v9, %v6662_v54  ;;  %v6665_v29 = vld [vmem:[#allocation34_spill] sm:$0xff]  ;;  %v6666_v51 = vld [vmem:[#allocation77_spill] sm:$0xff]  ;;  %v6673_v56 = vld [vmem:[#allocation87_spill] sm:$0xff] }
 0x194   : > { %v6667_v44 = vmax.f32 %v6665_v29, %v6666_v51  ;;  %v6669_v8 = vld [vmem:[#allocation5_spill] sm:$0xff]  ;;  %v6674_v22 = vld [vmem:[#allocation22_spill] sm:$0xff]  ;;  %v1912_v9 = vld [vmem:[%s1965_s11 + $0x10c] sm:$0x1] }
 0x195   : > { %v4874_v30 = vmax.f32 %v6663_v55, %v1902_v0  ;;  %v6671_v36 = vmax.f32 %v6669_v8, %v6670_v28  ;;  %v6675_v31 = vmax.f32 %v6673_v56, %v6674_v22  ;;  %v1913_v0 = vld [vmem:[%s1965_s11 + $0x122] sm:$0x1]  ;;  %v1914_v54 = vld [vmem:[%s1965_s11 + $0x124] sm:$0x1]  ;;  %v6677_v55 = vld [vmem:[#allocation56_spill] sm:$0xff] }
 0x196   : > { %v4879_v59 = vmax.f32 %v6667_v44, %v1903_v21  ;;  %v6678_v29 = vld [vmem:[#allocation103_spill] sm:$0xff]  ;;  %v6681_v44 = vld [vmem:[#allocation41_spill] sm:$0xff]  ;;  %v6682_v8 = vld [vmem:[#allocation76_spill] sm:$0xff] }
 0x197   : > { %6664 = vst [vmem:[#allocation30_spill] sm:$0xff] %v4874_v30  ;;  %v4884_v19 = vmax.f32 %v6671_v36, %v1904_v61  ;;  %v4889_v18 = vmax.f32 %v6675_v31, %v1905_v1  ;;  %v6679_v21 = vmax.f32 %v6677_v55, %v6678_v29  ;;  %v6683_v61 = vmax.f32 %v6681_v44, %v6682_v8  ;;  %v6684_v36 = vld [vmem:[#allocation10_spill] sm:$0xff]  ;;  %v6685_v56 = vld [vmem:[#allocation65_spill] sm:$0xff]  ;;  %v6688_v31 = vld [vmem:[#allocation88_spill] sm:$0xff] }
 0x198   : > { %6668 = vst [vmem:[#allocation35_spill] sm:$0xff] %v4879_v59  ;;  %v6686_v22 = vmax.f32 %v6684_v36, %v6685_v56  ;;  %v1915_v30 = vld [vmem:[%s1965_s11 + $0x126] sm:$0x1]  ;;  %v1916_v40 = vld [vmem:[%s1965_s11 + $0x128] sm:$0x1]  ;;  %v6693_v29 = vld [vmem:[#allocation104_spill] sm:$0xff] }
 0x199   : > { %6672 = vst [vmem:[#allocation18_spill] sm:$0xff] %v4884_v19  ;;  %6676 = vst [vmem:[#allocation9_spill] sm:$0xff] %v4889_v18  ;;  %v4897_v51 = vmax.f32 %v6679_v21, %v1906_v20  ;;  %v4902_v28 = vmax.f32 %v6683_v61, %v1907_v10  ;;  %v6689_v18 = vld [vmem:[#allocation32_spill] sm:$0xff]  ;;  %v1917_v55 = vld [vmem:[%s1965_s11 + $0x12a] sm:$0x1] }
 0x19a   : > { %v4907_v1 = vmax.f32 %v6686_v22, %v1908_v60  ;;  %v6690_v19 = vmax.f32 %v6688_v31, %v6689_v18  ;;  %v6692_v20 = vld [vmem:[#allocation63_spill] sm:$0xff]  ;;  %v6696_v10 = vld [vmem:[#allocation42_spill] sm:$0xff]  ;;  %v6697_v44 = vld [vmem:[#allocation81_spill] sm:$0xff] }
 0x19b   : > { %6680 = vst [vmem:[#allocation99_spill] sm:$0xff] %v4897_v51  ;;  %v6694_v21 = vmax.f32 %v6692_v20, %v6693_v29  ;;  %v6698_v8 = vmax.f32 %v6696_v10, %v6697_v44  ;;  %v6699_v60 = vld [vmem:[#allocation15_spill] sm:$0xff]  ;;  %v6700_v36 = vld [vmem:[#allocation62_spill] sm:$0xff]  ;;  %v1920_v20 = vld [vmem:[%s1965_s11 + $0x130] sm:$0x1] }
 0x19c   : > { %6687 = vst [vmem:[#allocation90_spill] sm:$0xff] %v4907_v1  ;;  %v4912_v59 = vmax.f32 %v6690_v19, %v1909_v17  ;;  %v6701_v56 = vmax.f32 %v6699_v60, %v6700_v36  ;;  %v6703_v17 = vld [vmem:[#allocation92_spill] sm:$0xff]  ;;  %v1919_v1 = vld [vmem:[%s1965_s11 + $0x12e] sm:$0x1]  ;;  %v6708_v29 = vld [vmem:[#allocation105_spill] sm:$0xff] }
 0x19d   : > { %v4920_v51 = vmax.f32 %v6694_v21, %v1910_v41  ;;  %v4925_v61 = vmax.f32 %v6698_v8, %v1911_v39  ;;  %v6704_v19 = vld [vmem:[#allocation80_spill] sm:$0xff]  ;;  %v6707_v41 = vld [vmem:[#allocation49_spill] sm:$0xff]  ;;  %v6714_v60 = vld [vmem:[#allocation66_spill] sm:$0xff] }
 0x19e   : > { %6691 = vst [vmem:[#allocation68_spill] sm:$0xff] %v4912_v59  ;;  %v4930_v22 = vmax.f32 %v6701_v56, %v1912_v9  ;;  %v6705_v18 = vmax.f32 %v6703_v17, %v6704_v19  ;;  %v1918_v59 = vld [vmem:[%s1965_s11 + $0x12c] sm:$0x1]  ;;  %v6709_v21 = vmax.f32 %v6707_v41, %v6708_v29  ;;  %v6710_v39 = vld [vmem:[#allocation64_spill] sm:$0xff]  ;;  %v6711_v10 = vld [vmem:[#allocation29_spill] sm:$0xff] }
 0x19f   : > { %6695 = vst [vmem:[#allocation53_spill] sm:$0xff] %v4920_v51  ;;  %v6712_v44 = vmax.f32 %v6710_v39, %v6711_v10  ;;  %v6713_v9 = vld [vmem:[#allocation93_spill] sm:$0xff]  ;;  %v6717_v17 = vld [vmem:[#allocation84_spill] sm:$0xff]  ;;  %v6725_v10 = vld [vmem:[#allocation50_spill] sm:$0xff] }
 0x1a0   : > { %6702 = vst [vmem:[#allocation39_spill] sm:$0xff] %v4930_v22  ;;  %v4935_v31 = vmax.f32 %v6705_v18, %v1913_v0  ;;  %v4943_v51 = vmax.f32 %v6709_v21, %v1914_v54  ;;  %v6715_v36 = vmax.f32 %v6713_v9, %v6714_v60  ;;  %v6716_v0 = vld [vmem:[#allocation16_spill] sm:$0xff]  ;;  %v6720_v22 = vld [vmem:[#allocation106_spill] sm:$0xff]  ;;  %v6722_v29 = vld [vmem:[#allocation13_spill] sm:$0xff]  ;;  %v1274_v60 = vrot.slane %v4621_v15, 7 }
 0x1a1   : > { %v4948_v8 = vmax.f32 %v6712_v44, %v1915_v30  ;;  %v6718_v19 = vmax.f32 %v6716_v0, %v6717_v17  ;;  %v6723_v21 = vld [vmem:[#allocation86_spill] sm:$0xff]  ;;  %v6726_v44 = vld [vmem:[#allocation52_spill] sm:$0xff] }
 0x1a2   : > { %6706 = vst [vmem:[#allocation38_spill] sm:$0xff] %v4935_v31  ;;  %v4953_v56 = vmax.f32 %v6715_v36, %v1916_v40  ;;  %v6719_v31 = vld [vmem:[#allocation96_spill] sm:$0xff]  ;;  %v6724_v39 = vmax.f32 %v6722_v29, %v6723_v21  ;;  %v6727_v9 = vmax.f32 %v6725_v10, %v6726_v44  ;;  %v6729_v0 = vld [vmem:[#allocation74_spill] sm:$0xff]  ;;  %v6733_v21 = vld [vmem:[#allocation85_spill] sm:$0xff]  ;;  %v1295_v44 = vrot.slane %v4667_v50, 7 }
 0x1a3   : > { %v4958_v18 = vmax.f32 %v6718_v19, %v1917_v55  ;;  %v6721_v41 = vmax.f32 %v6719_v31, %v6720_v22  ;;  %v6728_v55 = vld [vmem:[#allocation6_spill] sm:$0xff]  ;;  %v1280_v22 = vrot.slane %v6729_v0, 5  ;;  %v6731_v17 = vld [vmem:[#allocation40_spill] sm:$0xff]  ;;  %v1305_v0 = vrot.slane %v4695_v33, 2 }
 0x1a4   : > { %v4968_v30 = vmax.f32 %v6724_v39, %v1919_v1  ;;  %v4973_v40 = vmax.f32 %v6727_v9, %v1920_v20  ;;  %v1277_v36 = vrot.slane %v6728_v55, 6  ;;  %v1283_v1 = vrot.slane %v6731_v17, 4 }
 0x1a5   : > { %v4963_v54 = vmax.f32 %v6721_v41, %v1918_v59  ;;  %v6730_v59 = vld [vmem:[#allocation89_spill] sm:$0xff]  ;;  %v1286_v20 = vrot.slane %v4644_v37, 3  ;;  %v6732_v41 = vld [vmem:[#allocation98_spill] sm:$0xff]  ;;  %v1292_v39 = vrot.slane %v6733_v21, 1  ;;  %v1297_v9 = vrot.slane %v4672_v2, 6 }
 0x1a6   : > { %v1276_v31 = vsel %vm1275_vm0, %v1274_v60, %v6730_v59  ;;  %v1289_v15 = vrot.slane %v6732_v41, 2  ;;  %v1299_v60 = vrot.slane %v4677_v5, 5  ;;  %v1301_v37 = vrot.slane %v4682_v26, 4  ;;  %v6734_v59 = vld [vmem:[#allocation69_spill] sm:$0xff] }
 0x1a7   : > { %v1279_v19 = vsel %vm1278_vm1, %v1277_v36, %v1276_v31  ;;  %v1303_v36 = vrot.slane %v4690_v47, 3  ;;  %v1296_v31 = vsel %vm1275_vm0, %v1295_v44, %v6734_v59  ;;  %v1307_v17 = vrot.slane %v4700_v57, 1 }
 0x1a8   : > { %v1282_v29 = vsel %vm1281_vm2, %v1280_v22, %v1279_v19  ;;  %v1309_v50 = vrot.slane %v4713_v12, 7  ;;  %v1298_v5 = vsel %vm1278_vm1, %v1297_v9, %v1296_v31  ;;  %v1311_v26 = vrot.slane %v4718_v34, 6 }
 0x1a9   : > { %v1285_v10 = vsel %vm1284_vm3, %v1283_v1, %v1282_v29  ;;  %v1313_v47 = vrot.slane %v4723_v4, 5  ;;  %v1300_v33 = vsel %vm1281_vm2, %v1299_v60, %v1298_v5  ;;  %v1315_v19 = vrot.slane %v4728_v25, 4  ;;  %v6736_v5 = vld [vmem:[#allocation30_spill] sm:$0xff] }
 0x1aa   : > { %v1288_v55 = vsel %vm1287_vm4, %v1286_v20, %v1285_v10  ;;  %v1310_v1 = vsel %vm1275_vm0, %v1309_v50, %v4705_v58  ;;  %v1317_v57 = vrot.slane %v4736_v3, 3  ;;  %v1302_v12 = vsel %vm1284_vm3, %v1301_v37, %v1300_v33  ;;  %v6735_v50 = vld [vmem:[#allocation55_spill] sm:$0xff] }
 0x1ab   : > { %v1291_v22 = vsel %vm1290_vm5, %v1289_v15, %v1288_v55  ;;  %v1312_v20 = vsel %vm1278_vm1, %v1311_v26, %v1310_v1  ;;  %v1319_v41 = vrot.slane %v4741_v49, 2  ;;  %v1321_v15 = vrot.slane %v4746_v42, 1  ;;  %v6738_v1 = vld [vmem:[#allocation18_spill] sm:$0xff] }
 0x1ac   : > { %v5000_v2 = vsel %vm1293_vm6, %v1292_v39, %v1291_v22  ;;  %v1304_v34 = vsel %vm1287_vm4, %v1303_v36, %v1302_v12  ;;  %v1314_v4 = vsel %vm1281_vm2, %v1313_v47, %v1312_v20  ;;  %v1323_v29 = vrot.slane %v4759_v63, 7  ;;  %v6737_v47 = vld [vmem:[#allocation35_spill] sm:$0xff] }
 0x1ad   : > { %v1325_v58 = vrot.slane %v4764_v14, 6  ;;  %v1306_v25 = vsel %vm1290_vm5, %v1305_v0, %v1304_v34  ;;  %v1316_v3 = vsel %vm1284_vm3, %v1315_v19, %v1314_v4  ;;  %v1327_v21 = vrot.slane %v4769_v16, 5  ;;  %1402 = vst.msk [vmem:[%s116_s15] sm:$0xff] %vm1401_vm7, %v5000_v2 }
 0x1ae   : > { %v1329_v39 = vrot.slane %v4774_v24, 4  ;;  %v5023_v49 = vsel %vm1293_vm6, %v1307_v17, %v1306_v25  ;;  %v1318_v42 = vsel %vm1287_vm4, %v1317_v57, %v1316_v3  ;;  %v1324_v10 = vsel %vm1275_vm0, %v1323_v29, %v4751_v6  ;;  %v6739_v57 = vld [vmem:[#allocation99_spill] sm:$0xff]  ;;  %v6741_v29 = vld [vmem:[#allocation9_spill] sm:$0xff]  ;;  %v6742_v25 = vld [vmem:[#allocation68_spill] sm:$0xff] }
 0x1af   : > { %v1331_v63 = vrot.slane %v4782_v7, 3  ;;  %v1320_v14 = vsel %vm1290_vm5, %v1319_v41, %v1318_v42  ;;  %v1326_v44 = vsel %vm1278_vm1, %v1325_v58, %v1324_v10  ;;  %v1333_v9 = vrot.slane %v4787_v62, 2  ;;  %v6740_v41 = vld [vmem:[#allocation90_spill] sm:$0xff]  ;;  %v6743_v42 = vld [vmem:[#allocation53_spill] sm:$0xff]  ;;  %1403 = vst.msk [vmem:[%s116_s15 + $0x8] sm:$0xff] %vm1401_vm7, %v5023_v49 }
 0x1b0   : > { %v1335_v16 = vrot.slane %v4792_v23, 1  ;;  %v5034_v24 = vsel %vm1293_vm6, %v1321_v15, %v1320_v14  ;;  %v1328_v60 = vsel %vm1281_vm2, %v1327_v21, %v1326_v44  ;;  %v1337_v55 = vrot.slane %v4805_v52, 7  ;;  %v6744_v44 = vld [vmem:[#allocation39_spill] sm:$0xff] }
 0x1b1   : > { %v1339_v37 = vrot.slane %v4810_v35, 6  ;;  %v1330_v6 = vsel %vm1284_vm3, %v1329_v39, %v1328_v60  ;;  %v1341_v7 = vrot.slane %v4815_v27, 5  ;;  %v1343_v36 = vrot.slane %v4820_v32, 4  ;;  %1404 = vst.msk [vmem:[%s116_s15 + $0x10] sm:$0xff] %vm1401_vm7, %v5034_v24 }
 0x1b2   : > { %v1345_v0 = vrot.slane %v4828_v48, 3  ;;  %v1332_v62 = vsel %vm1287_vm4, %v1331_v63, %v1330_v6  ;;  %v1338_v23 = vsel %vm1275_vm0, %v1337_v55, %v4797_v53  ;;  %v1347_v22 = vrot.slane %v4833_v45, 2 }
 0x1b3   : > { %v1349_v59 = vrot.slane %v4838_v46, 1  ;;  %v1334_v52 = vsel %vm1290_vm5, %v1333_v9, %v1332_v62  ;;  %v1340_v35 = vsel %vm1278_vm1, %v1339_v37, %v1338_v23  ;;  %v1351_v31 = vrot.slane %v4851_v11, 7 }
 0x1b4   : > { %v1353_v27 = vrot.slane %v4856_v13, 6  ;;  %v1336_v32 = vsel %vm1293_vm6, %v1335_v16, %v1334_v52  ;;  %v1342_v48 = vsel %vm1281_vm2, %v1341_v7, %v1340_v35  ;;  %v1355_v17 = vrot.slane %v4861_v43, 5  ;;  %v6745_v7 = vld [vmem:[#allocation38_spill] sm:$0xff] }
 0x1b5   : > { %v1357_v53 = vrot.slane %v4866_v38, 4  ;;  %v1344_v45 = vsel %vm1284_vm3, %v1343_v36, %v1342_v48  ;;  %v1352_v46 = vsel %vm1275_vm0, %v1351_v31, %v6735_v50  ;;  %v1359_v26 = vrot.slane %v6736_v5, 3  ;;  %1405 = vst.msk [vmem:[%s116_s15 + $0x18] sm:$0xff] %vm1401_vm7, %v1336_v32 }
 0x1b6   : > { %v1361_v11 = vrot.slane %v6737_v47, 2  ;;  %v1346_v13 = vsel %vm1287_vm4, %v1345_v0, %v1344_v45  ;;  %v1354_v33 = vsel %vm1278_vm1, %v1353_v27, %v1352_v46  ;;  %v1363_v19 = vrot.slane %v6738_v1, 1 }
 0x1b7   : > { %v1365_v43 = vrot.slane %v6739_v57, 7  ;;  %v1348_v38 = vsel %vm1290_vm5, %v1347_v22, %v1346_v13  ;;  %v1356_v12 = vsel %vm1281_vm2, %v1355_v17, %v1354_v33  ;;  %v1367_v20 = vrot.slane %v4902_v28, 6 }
 0x1b8   : > { %v1369_v15 = vrot.slane %v6740_v41, 5  ;;  %v1350_v34 = vsel %vm1293_vm6, %v1349_v59, %v1348_v38  ;;  %v1358_v4 = vsel %vm1284_vm3, %v1357_v53, %v1356_v12  ;;  %v1371_v3 = vrot.slane %v6742_v25, 4 }
 0x1b9   : > { %v1366_v58 = vsel %vm1275_vm0, %v1365_v43, %v6741_v29  ;;  %v1360_v21 = vsel %vm1287_vm4, %v1359_v26, %v1358_v4  ;;  %v1373_v10 = vrot.slane %v6743_v42, 3  ;;  %v1375_v28 = vrot.slane %v4925_v61, 2  ;;  %1406 = vst.msk [vmem:[%s116_s15 + $0x20] sm:$0xff] %vm1401_vm7, %v1350_v34 }
 0x1ba   : > { %v1368_v39 = vsel %vm1278_vm1, %v1367_v20, %v1366_v58  ;;  %v1362_v63 = vsel %vm1290_vm5, %v1361_v11, %v1360_v21  ;;  %v1377_v9 = vrot.slane %v6744_v44, 1  ;;  %v1379_v16 = vrot.slane %v4943_v51, 7 }
 0x1bb   : > { %v1370_v14 = vsel %vm1281_vm2, %v1369_v15, %v1368_v39  ;;  %v1364_v60 = vsel %vm1293_vm6, %v1363_v19, %v1362_v63  ;;  %v1381_v37 = vrot.slane %v4948_v8, 6  ;;  %v1383_v6 = vrot.slane %v4953_v56, 5 }
 0x1bc   : > { %v1372_v55 = vsel %vm1284_vm3, %v1371_v3, %v1370_v14  ;;  %v1380_v36 = vsel %vm1275_vm0, %v1379_v16, %v6745_v7  ;;  %v1385_v0 = vrot.slane %v4958_v18, 4  ;;  %v1387_v51 = vrot.slane %v4963_v54, 3  ;;  %1407 = vst.msk [vmem:[%s116_s15 + $0x28] sm:$0xff] %vm1401_vm7, %v1364_v60 }
 0x1bd   : > { %v1374_v61 = vsel %vm1287_vm4, %v1373_v10, %v1372_v55  ;;  %v1382_v23 = vsel %vm1278_vm1, %v1381_v37, %v1380_v36  ;;  %v1389_v8 = vrot.slane %v4968_v30, 2  ;;  %v1391_v59 = vrot.slane %v4973_v40, 1 }
 0x1be   : > { %v1376_v62 = vsel %vm1290_vm5, %v1375_v28, %v1374_v61  ;;  %v1384_v22 = vsel %vm1281_vm2, %v1383_v6, %v1382_v23 }
 0x1bf   : > { %v1378_v56 = vsel %vm1293_vm6, %v1377_v9, %v1376_v62  ;;  %v1386_v52 = vsel %vm1284_vm3, %v1385_v0, %v1384_v22 }
 0x1c0   : > { %1408 = vst.msk [vmem:[%s116_s15 + $0x30] sm:$0xff] %vm1401_vm7, %v1378_v56  ;;  %v1388_v18 = vsel %vm1287_vm4, %v1387_v51, %v1386_v52 }
 0x1c1   : > { %v1390_v54 = vsel %vm1290_vm5, %v1389_v8, %v1388_v18 }
 0x1c2   : > { %v1392_v30 = vsel %vm1293_vm6, %v1391_v59, %v1390_v54 }
 0x1c3   : > { %1409 = vst.msk [vmem:[%s116_s15 + $0x38] sm:$0xff] %vm1401_vm7, %v1392_v30 }
 0x1c4 PF: > { %s11_s6 = sadd.s32 1, %s1939_s6  }
 0x1c5   : > { %p8_p4 = scmp.ge.s32.totalorder %s11_s6, 4  }
 0x1c7   :  { %10 = sbr.rel (!%p8_p4) target bundleno = 1 (0x1), region = 59 }

// kernel: resnet18_lp_forward.13
= control target key start
LH: loop header
LB: loop body
LE: loop exit
PB: predicated region body
PF: predicated region fallthrough
CT: control target
= control target key end

     0   :  { %8 = vsyncpa [#allocation3], 0  ;;  %s593_s0 = inlined_call_operand.vmem [shape: f32[2,16,128], index: 0, kind: input, shape index: {}]   ;;  %s594_s1 = inlined_call_operand.hbm [shape: f32[2,1,128], index: 1, kind: output, shape index: {0}]   ;;  %s595_s2 = inlined_call_operand.hbm [shape: f32[2,1,128], index: 2, kind: output, shape index: {1}]  }
   0x1   :  { %10 = vsyncpa [#allocation3 + $0x1], 0 }
   0x2   :  { %11 = vsyncpa [#allocation5], 0 }
   0x3   :  { %13 = vsyncpa [#allocation5 + $0x1], 0  ;;  %s463_s9 = smov 0   ;;  %s465_s10 = smov 0  }
   0x4   :  { %s467_s11 = smov 0   ;;  %s469_s12 = smov 0  }
   0x5 LB: > { %s484_s13 = sadd.s32 4294967295, %s444_s12   ;;  %s297_s14 = sadd.s32 4294967294, %s444_s12   ;;  %s444_s12 = sphi %s469_s12, %s601_s12   ;;  %s440_s11 = sphi %s467_s11, %s600_s11   ;;  %s436_s10 = sphi %s465_s10, %s599_s10   ;;  %s432_s9 = sphi %s463_s9, %s598_s9  }
   0x6   : > { %s488_s15 = sadd.s32 1, %s444_s12   ;;  %s52_s16 = sadd.s32 1, %s440_s11 }
   0x7   : > { %s49_s17 = ssub.s32 %s444_s12, %s488_s15  ;;  %p62_p0 = scmp.ne.s32.totalorder %s440_s11, %s436_s10 }
   0x8   : > { %p50_p1 = scmp.eq.s32.totalorder %s49_s17, 0  ;;  %p63_p2 = scmp.eq.s32.totalorder %s484_s13, 1 }
   0x9   : > { %p68_p3 = scmp.ne.s32.totalorder %s436_s10, %s432_s9  ;;  %p69_p4 = scmp.eq.s32.totalorder %s297_s14, 1 }
   0xa   : > { %s499_s18 = scalar_select %p50_p1, %s440_s11, %s52_s16  }
   0xb   : > { %p501_p5 = por %p63_p2, %p62_p0  ;;  %p505_p6 = por %p69_p4, %p68_p3 }
   0xc   : > { %p300_p7 = scmp.ge.s32.totalorder %s444_s12, 1  ;;  %p121_p8 = scmp.lt.s32.totalorder %s444_s12, 3 }
   0xe   : > { %p122_p9 = pnand %p300_p7, %p121_p8 }
   0xf   : > { %p146_p10 = scmp.lt.s32.totalorder (!%p122_p9), %s484_s13, 1  ;;  %s517_s26 = sand.u32 (!%p122_p9), 1, %s436_s10  }
  0x10   : > { %125 = sbr.rel (%p122_p9) target bundleno = 103 (0x67), region = 24  ;;  %s139_s27 = scalar_lea.vmem (!%p122_p9), [#allocation2], %s517_s26 }
  0x11   : > { %s201_s28 = sshll.u32 (!%p122_p9), %s139_s27, 4  ;;  %s303_s29 = sshll.u32 (!%p122_p9), %s484_s13, 4  ;;  %s521_s28 = int_to_ptr.vmem [resolvable:$true] %s201_s28 }
  0x12   : > { %s528_s4 = scalar_lea.hbm (!%p122_p9), %s594_s1, %s303_s29  ;;  %s185_s5 = scalar_lea.sflag (!%p122_p9), [#allocation3], %s517_s26 }
  0x13   : > { %s354_s6 = scalar_lea.vmem (!%p122_p9), %s521_s28, 16  ;;  %s446_s7 = smov (!%p122_p9), [#allocation2]  }
  0x14   : > { %p355_p11 = scmp.ne.s32.totalorder (!%p122_p9), %s521_s28, %s354_s6  ;;  %s358_s8 = sshll.u32 (!%p122_p9), %s446_s7, 4  ;;  %s359_s8 = int_to_ptr.vmem [resolvable:$false] %s358_s8 }
  0x15   : > { %s147_s21 = scalar_select %p146_p10, %s484_s13, 1 }
  0x16   : > { %p356_p12 = pnand %p355_p11, %p501_p5  ;;  %s360_s14 = scalar_lea.vmem %s359_s8, 32 }
  0x17   : > { %s307_s22 = sshll.u32 %s147_s21, 4  ;;  %p361_p0 = scmp.lt.s32.totalorder %s521_s28, %s359_s8 }
  0x18   : > { %s150_s25 = scalar_lea.vmem %s593_s0, %s307_s22  ;;  %p357_p13 = pneg %p356_p12 }
  0x19   : > { %v151_v0 = vld [vmem:[%s150_s25] sm:$0xff]  ;;  %v152_v1 = vld [vmem:[%s150_s25 + $0x8] sm:$0xff]  ;;  %p362_p1 = scmp.lt.s32.totalorder %s360_s14, %s354_s6 }
  0x1a   : > { %v153_v2 = vadd.f32 %v152_v1, %v151_v0 }
  0x1b   : > { %p363_p2 = por %p362_p1, %p361_p0 }
  0x1c   : > { %v154_v3 = vrot.slane %v153_v2, 4 }
  0x1d   : > { %p364_p3 = pnand %p363_p2, %p357_p13 }
  0x1e   : > { %v155_v4 = vadd.f32 %v154_v3, %v153_v2 }
  0x20   : > { %v156_v5 = vrot.slane %v155_v4, 2 }
  0x22   : > { %v157_v6 = vadd.f32 %v156_v5, %v155_v4 }
  0x24   : > { %v158_v7 = vrot.slane %v157_v6, 1 }
  0x26   : > { %v159_v8 = vadd.f32 %v158_v7, %v157_v6 }
  0x28   : > { %v161_v9 = vmul.f32 0.0625, %v159_v8 }
  0x2a   : > { %v162_v10 = vsub.f32 %v151_v0, %v161_v9  ;;  %v163_v11 = vsub.f32 %v152_v1, %v161_v9  ;;  %175 = vst [vmem:[%s139_s27] sm:$0x1] %v161_v9 }
  0x2b   : > { %367 = shalt.err (!%p364_p3)
}
  0x2c   : > { %s368_s16 = scalar_lea.hbm %s528_s4, 16  ;;  %s372_s22 = scalar_lea.hbm %s594_s1, 32 }
  0x2d   : > { %p369_p4 = scmp.ne.s32.totalorder %s528_s4, %s368_s16  ;;  %p373_p9 = scmp.lt.s32.totalorder %s528_s4, %s594_s1 }
  0x2e   : > { %p374_p10 = scmp.lt.s32.totalorder %s372_s22, %s368_s16 }
  0x2f   : > { %p370_p7 = pnand %p369_p4, %p501_p5 }
  0x30   : > { %p375_p11 = por %p374_p10, %p373_p9 }
  0x31   : > { %p371_p8 = pneg %p370_p7 }
  0x33   : > { %p376_p12 = pnand %p375_p11, %p371_p8 }
  0x35   : > { %379 = shalt.err (!%p376_p12)
}
  0x36   : > { %308 = dma.vmem_to_hbm [thread:$0]  (%p501_p5), %s521_s28, 16, %s528_s4, %s185_s5   ;;  %v164_v12 = vmul.f32 %v162_v10, %v162_v10  ;;  %v165_v13 = vmul.f32 %v163_v11, %v163_v11 }
  0x37   : > { %s145_s25 = scalar_lea.vmem [#allocation4], %s517_s26  ;;  %s212_s3 = scalar_lea.hbm %s595_s2, %s303_s29 }
  0x38   : > { %v166_v14 = vadd.f32 %v165_v13, %v164_v12  ;;  %s214_s27 = sshll.u32 %s145_s25, 4  ;;  %s189_s4 = scalar_lea.sflag [#allocation5], %s517_s26  ;;  %s552_s27 = int_to_ptr.vmem [resolvable:$true] %s214_s27 }
  0x39   : > { %s380_s5 = scalar_lea.vmem %s552_s27, 16  ;;  %s447_s6 = smov [#allocation4]  }
  0x3a   : > { %v167_v15 = vrot.slane %v166_v14, 4  ;;  %p381_p13 = scmp.ne.s32.totalorder %s552_s27, %s380_s5  ;;  %s384_s7 = sshll.u32 %s447_s6, 4  ;;  %s385_s7 = int_to_ptr.vmem [resolvable:$false] %s384_s7 }
  0x3b   : > { %s386_s8 = scalar_lea.vmem %s385_s7, 32  ;;  %p387_p2 = scmp.lt.s32.totalorder %s552_s27, %s385_s7 }
  0x3c   : > { %v168_v16 = vadd.f32 %v167_v15, %v166_v14  ;;  %p382_p0 = pnand %p381_p13, %p501_p5  ;;  %p388_p3 = scmp.lt.s32.totalorder %s386_s8, %s380_s5 }
  0x3e   : > { %v169_v17 = vrot.slane %v168_v16, 2  ;;  %p383_p1 = pneg %p382_p0  ;;  %p389_p4 = por %p388_p3, %p387_p2 }
  0x40   : > { %v170_v18 = vadd.f32 %v169_v17, %v168_v16  ;;  %p390_p7 = pnand %p389_p4, %p383_p1 }
  0x42   : > { %v171_v19 = vrot.slane %v170_v18, 1 }
  0x44   : > { %v172_v20 = vadd.f32 %v171_v19, %v170_v18 }
  0x46   : > { %v174_v21 = vmul.f32 0.06666667, %v172_v20 }
  0x48   : > { %352 = vrsqrt.f32 %v174_v21  ;;  %vm178_vm0 = vcmp.eq.f32.partialorder %v174_v21, inf  ;;  %v181_v23 = vand.u32 2147483648, %v174_v21  ;;  %vm180_vm1 = vcmp.eq.f32.partialorder %v174_v21, 0.0 }
  0x55   : > { %v353_v22 = vpop.eup %352 }
  0x56   : > { %v177_v24 = vmul.f32 %v353_v22, %v174_v21 }
  0x58   : > { %v179_v25 = vsel %vm178_vm0, %v174_v21, %v177_v24 }
  0x59   : > { %v182_v26 = vsel %vm180_vm1, %v181_v23, %v179_v25 }
  0x5a   : > { %183 = vst [vmem:[%s145_s25] sm:$0x1] %v182_v26 }
  0x5b   : > { %393 = shalt.err (!%p390_p7)
}
  0x5c   : > { %s394_s13 = scalar_lea.hbm %s212_s3, 16  ;;  %s398_s14 = scalar_lea.hbm %s595_s2, 32 }
  0x5d   : > { %p395_p8 = scmp.ne.s32.totalorder %s212_s3, %s394_s13  ;;  %p399_p11 = scmp.lt.s32.totalorder %s212_s3, %s595_s2 }
  0x5e   : > { %p400_p12 = scmp.lt.s32.totalorder %s398_s14, %s394_s13 }
  0x5f   : > { %p396_p9 = pnand %p395_p8, %p501_p5 }
  0x60   : > { %p401_p13 = por %p400_p12, %p399_p11 }
  0x61   : > { %p397_p10 = pneg %p396_p9 }
  0x63   : > { %p402_p0 = pnand %p401_p13, %p397_p10 }
  0x65   : > { %405 = shalt.err (!%p402_p0)
}
  0x66   : > { %309 = dma.vmem_to_hbm [thread:$0]  (%p501_p5), %s552_s27, 16, %s212_s3, %s189_s4  }
  0x67 PF: > { %p319_p1 = scmp.ge.s32.totalorder %s444_s12, 2  ;;  %s226_s21 = sand.u32 1, %s432_s9  }
  0x68   : > { %s227_s22 = scalar_lea.sflag [#allocation3], %s226_s21 }
  0x69   : > { %p313_p2 = pnand %p319_p1, %p505_p6 }
  0x6b   : > { %p314_p3 = pneg %p313_p2 }
  0x6d   : > { %423 = dma.done.wait (%p314_p3), %s227_s22, 16  }
  0x6e   : > { %425 = vsyncadd (%p314_p3), %s227_s22, 4294967280  ;;  %s235_s23 = scalar_lea.sflag [#allocation5], %s226_s21 }
  0x6f   : > { %427 = dma.done.wait (%p314_p3), %s235_s23, 16  }
  0x70   : > { %429 = vsyncadd (%p314_p3), %s235_s23, 4294967280  ;;  %p16_p5 = scmp.ge.s32.totalorder %s488_s15, 4   ;;  %s598_s9 = smov %s436_s10 }
  0x71   : > { %s599_s10 = smov %s440_s11  ;;  %s600_s11 = smov %s499_s18 }
  0x72   : > { %s601_s12 = smov %s488_s15  ;;  %18 = sbr.rel (!%p16_p5) target bundleno = 5 (0x5), region = 76 }
  0x77   :  { %239 = vsyncpa [#allocation3], 1 }
  0x78   :  { %241 = vsyncpa [#allocation3 + $0x1], 1 }
  0x79   :  { %242 = vsyncpa [#allocation5], 1 }
  0x7a   :  { %244 = vsyncpa [#allocation5 + $0x1], 1 }

// kernel: resnet18_lp_forward.12
= control target key start
LH: loop header
LB: loop body
LE: loop exit
PB: predicated region body
PF: predicated region fallthrough
CT: control target
= control target key end

     0   :  { %s3787_s24 = smov 0   ;;  %s4464_s0 = inlined_call_operand.vmem [shape: f32[2,6,6,128], index: 0, kind: input, shape index: {}]   ;;  %s4465_s1 = inlined_call_operand.vmem [shape: bf16[9,128,128], index: 1, kind: input, shape index: {}]   ;;  %s4466_s2 = inlined_call_operand.vmem [shape: f32[1,128], index: 2, kind: input, shape index: {}]   ;;  %s4467_s3 = inlined_call_operand.vmem [shape: f32[1,128], index: 3, kind: input, shape index: {}]   ;;  %s4468_s4 = inlined_call_operand.vmem [shape: bf16[9,128,128], index: 4, kind: input, shape index: {}]   ;;  %s4469_s5 = inlined_call_operand.vmem [shape: f32[1,128], index: 5, kind: input, shape index: {}]   ;;  %s4470_s6 = inlined_call_operand.vmem [shape: f32[1,128], index: 6, kind: input, shape index: {}]   ;;  %s4471_s7 = inlined_call_operand.vmem [shape: f32[2,16,128], index: 7, kind: output, shape index: {}]  }
   0x1 LB: > { %s2579_s25 = sadd.s32 4294967295, %s3743_s24   ;;  %p2583_p0 = scmp.ge.s32.totalorder %s3743_s24, 1  ;;  %s3743_s24 = sphi %s3787_s24, %s17_s24  }
   0x2   : > { %p237_p1 = scmp.lt.s32.totalorder %s3743_s24, 3 }
   0x4   : > { %p238_p2 = pnand %p2583_p0, %p237_p1 }
   0x5   : > { %p269_p3 = scmp.lt.s32.totalorder (!%p238_p2), %s2579_s25, 1 }
   0x6   : > { %241 = sbr.rel (%p238_p2) target bundleno = 723 (0x2d3), region = 48 }
   0xb   : > { %v3555_v0 = vld [vmem:[%s4465_s1 + $0x78] sm:$0xff]   ;;  %v3745_v1 = vmov 0.0   ;;  %v3557_v3 = vld [vmem:[%s4465_s1 + $0x70] sm:$0xff]   ;;  %vm3746_vm0 = vmmov 0   ;;  %v3559_v5 = vld [vmem:[%s4465_s1 + $0x68] sm:$0xff]   ;;  %s4473_s25 = smov (!%p269_p3, %s2579_s25), 1 }
   0xc   : > { %3184 = vmatprep.subr.bf16.mxu0 %v3745_v1  ;;  %1386 = vst [vmem:[#allocation2] sm:$0x3f] %v3745_v1  ;;  %1387 = vst [vmem:[#allocation2 + $0x8] sm:$0x3f] %v3745_v1  ;;  %3204 = vmatprep.subr.bf16.mxu1 %v3745_v1  ;;  %v3556_v2 = vld [vmem:[%s4465_s1 + $0x38] sm:$0xff]   ;;  %v3558_v4 = vld [vmem:[%s4465_s1 + $0x30] sm:$0xff]  }
   0xd   : > { %1388 = vst [vmem:[#allocation2 + $0x10] sm:$0x3f] %v3745_v1  ;;  %1389 = vst [vmem:[#allocation2 + $0x18] sm:$0x3f] %v3745_v1  ;;  %3185 = vmatpush3.bf16.msra.mxu0 %v3555_v0  ;;  %3200 = vmatprep.mubr.msk.bf16.mxu0 %vm3746_vm0, %v3745_v1  ;;  %v3560_v6 = vld [vmem:[%s4465_s1 + $0x28] sm:$0xff]   ;;  %v3561_v7 = vld [vmem:[%s4465_s1 + $0x60] sm:$0xff]  }
   0xe   : > { %1390 = vst [vmem:[#allocation2 + $0x20] sm:$0x3f] %v3745_v1  ;;  %1391 = vst [vmem:[#allocation2 + $0x28] sm:$0x3f] %v3745_v1  ;;  %3205 = vmatpush3.bf16.msra.mxu1 %v3556_v2  ;;  %3186 = vmatprep.subr.bf16.mxu0 %v3745_v1  ;;  %v3562_v8 = vld [vmem:[%s4465_s1 + $0x20] sm:$0xff]   ;;  %s3544_s19 = smul.u32 48, %s4473_s25 }
   0xf   : > { %3206 = vmatprep.subr.bf16.mxu1 %v3745_v1  ;;  %3220 = vmatprep.mubr.msk.bf16.mxu1 %vm3746_vm0, %v3745_v1  ;;  %v3563_v9 = vld [vmem:[%s4465_s1 + $0x58] sm:$0xff]   ;;  %v3565_v11 = vld [vmem:[%s4465_s1 + $0x50] sm:$0xff]   ;;  %v3567_v13 = vld [vmem:[%s4465_s1 + $0x48] sm:$0xff]   ;;  %s3021_s22 = sshll.u32 %s4473_s25, 4 }
  0x10   : > { %v3564_v10 = vld [vmem:[%s4465_s1 + $0x18] sm:$0xff]   ;;  %s3854_s28 = scalar_lea.vmem %s4464_s0, %s3544_s19  ;;  %v3566_v12 = vld [vmem:[%s4465_s1 + $0x10] sm:$0xff]   ;;  %v3568_v14 = vld [vmem:[%s4465_s1 + $0x8] sm:$0xff]   ;;  %s278_s27 = scalar_lea.vmem %s4471_s7, %s3021_s22 }
  0x11   : > { %3187 = vmatpush3.bf16.msra.mxu0 %v3557_v3  ;;  %v3571_v15 = vld [vmem:[%s3854_s28 + $0x1] ss:$8 sps:$4 sm:$0xff]   ;;  %v3572_v17 = vld [vmem:[%s3854_s28 + $0x11] ss:$8 sps:$4 sm:$0xff]  }
  0x12   : > { %3207 = vmatpush3.bf16.msra.mxu1 %v3558_v4  ;;  %3188 = vmatprep.subr.bf16.mxu0 %v3745_v1  ;;  %v3569_v16 = vld [vmem:[%s4465_s1 + $0x40] sm:$0xff]   ;;  %v3574_v19 = vld [vmem:[%s3854_s28 + $0x10] ss:$8 sps:$4 sm:$0xff]   ;;  %v321_v21 = vpack.c.bf16 %v3572_v17, %v3571_v15  ;;  %v3579_v27 = vld [vmem:[%s4465_s1 + $0xa8] sm:$0xff]  }
  0x13   : > { %3208 = vmatprep.subr.bf16.mxu1 %v3745_v1  ;;  %v3573_v18 = vld [vmem:[%s3854_s28] ss:$8 sps:$4 sm:$0xff]   ;;  %v3575_v23 = vld [vmem:[%s4465_s1 + $0xb8] sm:$0xff]   ;;  %v3577_v25 = vld [vmem:[%s4465_s1 + $0xb0] sm:$0xff]  }
  0x14   : > { %v3570_v20 = vld [vmem:[%s4465_s1] sm:$0xff]   ;;  %v292_v22 = vpack.c.bf16 %v3574_v19, %v3573_v18  ;;  %v3576_v24 = vld [vmem:[%s4465_s1 + $0xf8] sm:$0xff]   ;;  %v3578_v26 = vld [vmem:[%s4465_s1 + $0xf0] sm:$0xff]  }
  0x15   : > { %3189 = vmatpush3.bf16.msra.mxu0 %v3559_v5  ;;  %v3580_v28 = vld [vmem:[%s4465_s1 + $0xe8] sm:$0xff]   ;;  %v3581_v29 = vld [vmem:[%s4465_s1 + $0xa0] sm:$0xff]   ;;  %v3583_v31 = vld [vmem:[%s4465_s1 + $0x98] sm:$0xff]  }
  0x16   : > { %3209 = vmatpush3.bf16.msra.mxu1 %v3560_v6  ;;  %3190 = vmatprep.subr.bf16.mxu0 %v3745_v1  ;;  %v3582_v30 = vld [vmem:[%s4465_s1 + $0xe0] sm:$0xff]   ;;  %v3584_v32 = vld [vmem:[%s4465_s1 + $0xd8] sm:$0xff]   ;;  %v3585_v33 = vld [vmem:[%s4465_s1 + $0x90] sm:$0xff]  }
  0x17   : > { %3210 = vmatprep.subr.bf16.mxu1 %v3745_v1  ;;  %v3586_v34 = vld [vmem:[%s4465_s1 + $0xd0] sm:$0xff]   ;;  %v3587_v35 = vld [vmem:[%s4465_s1 + $0x88] sm:$0xff]   ;;  %v3589_v38 = vld [vmem:[%s4465_s1 + $0x80] sm:$0xff]  }
  0x18   : > { %v3588_v36 = vld [vmem:[%s4465_s1 + $0xc8] sm:$0xff]   ;;  %v3590_v39 = vld [vmem:[%s4465_s1 + $0xc0] sm:$0xff]   ;;  %v3592_v40 = vld [vmem:[%s3854_s28 + $0x12] ss:$8 sps:$4 sm:$0xff]  }
  0x19   : > { %3191 = vmatpush3.bf16.msra.mxu0 %v3561_v7  ;;  %v3591_v37 = vld [vmem:[%s3854_s28 + $0x2] ss:$8 sps:$4 sm:$0xff]   ;;  %v3593_v44 = vld [vmem:[%s4465_s1 + $0x138] sm:$0xff]   ;;  %v3597_v47 = vld [vmem:[%s4465_s1 + $0x130] sm:$0xff]  }
  0x1a   : > { %3211 = vmatpush3.bf16.msra.mxu1 %v3562_v8  ;;  %3192 = vmatprep.subr.bf16.mxu0 %v3745_v1  ;;  %v3594_v41 = vld [vmem:[%s3854_s28 + $0x8] ss:$8 sps:$4 sm:$0xff]   ;;  %v3595_v42 = vld [vmem:[%s3854_s28 + $0x18] ss:$8 sps:$4 sm:$0xff]   ;;  %v529_v43 = vpack.c.bf16 %v3592_v40, %v3591_v37 }
  0x1b   : > { %3212 = vmatprep.subr.bf16.mxu1 %v3745_v1  ;;  %v651_v45 = vpack.c.bf16 %v3595_v42, %v3594_v41  ;;  %v3596_v46 = vld [vmem:[%s4465_s1 + $0x178] sm:$0xff]   ;;  %v3598_v48 = vld [vmem:[%s4465_s1 + $0x170] sm:$0xff]   ;;  %v3599_v49 = vld [vmem:[%s4465_s1 + $0x128] sm:$0xff]  }
  0x1c   : > { %v3600_v50 = vld [vmem:[%s4465_s1 + $0x168] sm:$0xff]   ;;  %v3601_v51 = vld [vmem:[%s4465_s1 + $0x120] sm:$0xff]   ;;  %v3603_v53 = vld [vmem:[%s4465_s1 + $0x118] sm:$0xff]  }
  0x1d   : > { %3193 = vmatpush3.bf16.msra.mxu0 %v3563_v9  ;;  %v3602_v52 = vld [vmem:[%s4465_s1 + $0x160] sm:$0xff]   ;;  %v3604_v54 = vld [vmem:[%s4465_s1 + $0x158] sm:$0xff]   ;;  %v3605_v55 = vld [vmem:[%s4465_s1 + $0x110] sm:$0xff]  }
  0x1e   : > { %3213 = vmatpush3.bf16.msra.mxu1 %v3564_v10  ;;  %3194 = vmatprep.subr.bf16.mxu0 %v3745_v1  ;;  %v3606_v56 = vld [vmem:[%s4465_s1 + $0x150] sm:$0xff]   ;;  %v3607_v57 = vld [vmem:[%s4465_s1 + $0x108] sm:$0xff]   ;;  %v3612_v60 = vld [vmem:[%s3854_s28 + $0x19] ss:$8 sps:$4 sm:$0xff]  }
  0x1f   : > { %3214 = vmatprep.subr.bf16.mxu1 %v3745_v1  ;;  %v3608_v58 = vld [vmem:[%s4465_s1 + $0x148] sm:$0xff]   ;;  %v3609_v61 = vld [vmem:[%s4465_s1 + $0x100] sm:$0xff]   ;;  %v3613_v2 = vld [vmem:[%s4465_s1 + $0x1b8] sm:$0xff]  }
  0x20   : > { %v3611_v59 = vld [vmem:[%s3854_s28 + $0x9] ss:$8 sps:$4 sm:$0xff]   ;;  %v3610_v62 = vld [vmem:[%s4465_s1 + $0x140] sm:$0xff]   ;;  %v3616_v4 = vld [vmem:[%s4465_s1 + $0x1f8] sm:$0xff]  }
  0x21   : > { %3195 = vmatpush3.bf16.msra.mxu0 %v3565_v11  ;;  %v3614_v63 = vld [vmem:[%s3854_s28 + $0xa] ss:$8 sps:$4 sm:$0xff]   ;;  %v3615_v0 = vld [vmem:[%s3854_s28 + $0x1a] ss:$8 sps:$4 sm:$0xff]   ;;  %v772_v3 = vpack.c.bf16 %v3612_v60, %v3611_v59 }
  0x22   : > { %3215 = vmatpush3.bf16.msra.mxu1 %v3566_v12  ;;  %3196 = vmatprep.subr.bf16.mxu0 %v3745_v1  ;;  %v893_v5 = vpack.c.bf16 %v3615_v0, %v3614_v63  ;;  %v3617_v6 = vld [vmem:[%s4465_s1 + $0x1b0] sm:$0xff]   ;;  %v3619_v8 = vld [vmem:[%s4465_s1 + $0x1a8] sm:$0xff]   ;;  %v3621_v10 = vld [vmem:[%s4465_s1 + $0x1a0] sm:$0xff]  }
  0x23   : > { %3216 = vmatprep.subr.bf16.mxu1 %v3745_v1  ;;  %v3618_v7 = vld [vmem:[%s4465_s1 + $0x1f0] sm:$0xff]   ;;  %v3620_v9 = vld [vmem:[%s4465_s1 + $0x1e8] sm:$0xff]   ;;  %v3622_v11 = vld [vmem:[%s4465_s1 + $0x1e0] sm:$0xff]  }
  0x24   : > { %v3623_v12 = vld [vmem:[%s4465_s1 + $0x198] sm:$0xff]   ;;  %v3626_v15 = vld [vmem:[%s4465_s1 + $0x1d0] sm:$0xff]   ;;  %v3628_v17 = vld [vmem:[%s4465_s1 + $0x1c8] sm:$0xff]  }
  0x25   : > { %3197 = vmatpush3.bf16.msra.mxu0 %v3567_v13  ;;  %v3624_v13 = vld [vmem:[%s4465_s1 + $0x1d8] sm:$0xff]   ;;  %v3632_v19 = vld [vmem:[%s3854_s28 + $0x20] ss:$8 sps:$4 sm:$0xff]   ;;  %v3648_v40 = vld [vmem:[%s4468_s4 + $0x30] sm:$0xff]  }
  0x26   : > { %3217 = vmatpush3.bf16.msra.mxu1 %v3568_v14  ;;  %3198 = vmatprep.subr.bf16.mxu0 %v3745_v1  ;;  %v3625_v14 = vld [vmem:[%s4465_s1 + $0x190] sm:$0xff]   ;;  %v3645_v37 = vld [vmem:[%s4468_s4 + $0x78] sm:$0xff]   ;;  %v3649_v41 = vld [vmem:[%s4468_s4 + $0x68] sm:$0xff]  }
  0x27   : > { %3218 = vmatprep.subr.bf16.mxu1 %v3745_v1  ;;  %v3631_v18 = vld [vmem:[%s3854_s28 + $0x10] ss:$8 sps:$4 sm:$0xff]   ;;  %v3650_v42 = vld [vmem:[%s4468_s4 + $0x28] sm:$0xff]  }
  0x28   : > { %v3657_v59 = vld [vmem:[%s4468_s4 + $0x48] sm:$0xff]  }
  0x29   : > { %3199 = vmatpush3.bf16.msra.mxu0 %v3569_v16  ;;  %v3627_v16 = vld [vmem:[%s4465_s1 + $0x188] sm:$0xff]  }
  0x2a   : > { %3219 = vmatpush3.bf16.msra.mxu1 %v3570_v20  ;;  %3224 = vmatprep.subr.bf16.mxu0 %v3745_v1  ;;  %v3629_v20 = vld [vmem:[%s4465_s1 + $0x180] sm:$0xff]   ;;  %v3658_v60 = vld [vmem:[%s4468_s4 + $0x8] sm:$0xff]  }
  0x2b   : > { %3244 = vmatprep.subr.bf16.mxu1 %v3745_v1 }
  0x2c   : > { %3201 = vmatmul.mubr.bf16.vlgmr.msra.gmra.mxu0 %v321_v21  ;;  %v3634_v21 = vld [vmem:[%s3854_s28 + $0x11] ss:$8 sps:$4 sm:$0xff]  }
  0x2d   : > { %3221 = vmatmul.mubr.bf16.vlgmr.msra.gmra.mxu1 %v292_v22  ;;  %3225 = vmatpush3.bf16.msra.mxu0 %v3575_v23  ;;  %v3635_v22 = vld [vmem:[%s3854_s28 + $0x21] ss:$8 sps:$4 sm:$0xff]  }
  0x2e   : > { %3245 = vmatpush3.bf16.msra.mxu1 %v3576_v24  ;;  %3226 = vmatprep.subr.bf16.mxu0 %v3745_v1  ;;  %v3630_v23 = vld [vmem:[%s4465_s1 + $0x1c0] sm:$0xff]   ;;  %v3633_v24 = vld [vmem:[%s4465_s1 + $0x238] sm:$0xff]  }
  0x2f   : > { %3246 = vmatprep.subr.bf16.mxu1 %v3745_v1  ;;  %3240 = vmatprep.mubr.msk.bf16.mxu0 %vm3746_vm0, %v3745_v1 }
  0x30   : > { %3260 = vmatprep.mubr.msk.bf16.mxu1 %vm3746_vm0, %v3745_v1 }
  0x31   : > { %3227 = vmatpush3.bf16.msra.mxu0 %v3577_v25  ;;  %v1015_v25 = vpack.c.bf16 %v3632_v19, %v3631_v18 }
  0x32   : > { %3247 = vmatpush3.bf16.msra.mxu1 %v3578_v26  ;;  %3228 = vmatprep.subr.bf16.mxu0 %v3745_v1  ;;  %v1136_v26 = vpack.c.bf16 %v3635_v22, %v3634_v21 }
  0x33   : > { %3248 = vmatprep.subr.bf16.mxu1 %v3745_v1 }
  0x35   : > { %3229 = vmatpush3.bf16.msra.mxu0 %v3579_v27  ;;  %v3636_v27 = vld [vmem:[%s4465_s1 + $0x230] sm:$0xff]  }
  0x36   : > { %3249 = vmatpush3.bf16.msra.mxu1 %v3580_v28  ;;  %3230 = vmatprep.subr.bf16.mxu0 %v3745_v1  ;;  %v3637_v28 = vld [vmem:[%s4465_s1 + $0x228] sm:$0xff]  }
  0x37   : > { %3250 = vmatprep.subr.bf16.mxu1 %v3745_v1 }
  0x39   : > { %3231 = vmatpush3.bf16.msra.mxu0 %v3581_v29  ;;  %v3638_v29 = vld [vmem:[%s4465_s1 + $0x220] sm:$0xff]  }
  0x3a   : > { %3251 = vmatpush3.bf16.msra.mxu1 %v3582_v30  ;;  %3232 = vmatprep.subr.bf16.mxu0 %v3745_v1  ;;  %v3639_v30 = vld [vmem:[%s4465_s1 + $0x218] sm:$0xff]  }
  0x3b   : > { %3252 = vmatprep.subr.bf16.mxu1 %v3745_v1 }
  0x3d   : > { %3233 = vmatpush3.bf16.msra.mxu0 %v3583_v31  ;;  %v3640_v31 = vld [vmem:[%s4465_s1 + $0x210] sm:$0xff]  }
  0x3e   : > { %3253 = vmatpush3.bf16.msra.mxu1 %v3584_v32  ;;  %3234 = vmatprep.subr.bf16.mxu0 %v3745_v1  ;;  %v3641_v32 = vld [vmem:[%s4465_s1 + $0x208] sm:$0xff]  }
  0x3f   : > { %3254 = vmatprep.subr.bf16.mxu1 %v3745_v1 }
  0x41   : > { %3235 = vmatpush3.bf16.msra.mxu0 %v3585_v33  ;;  %v3643_v33 = vld [vmem:[%s3854_s28 + $0x12] ss:$8 sps:$4 sm:$0xff]  }
  0x42   : > { %3255 = vmatpush3.bf16.msra.mxu1 %v3586_v34  ;;  %3236 = vmatprep.subr.bf16.mxu0 %v3745_v1  ;;  %v3644_v34 = vld [vmem:[%s3854_s28 + $0x22] ss:$8 sps:$4 sm:$0xff]  }
  0x43   : > { %3256 = vmatprep.subr.bf16.mxu1 %v3745_v1 }
  0x45   : > { %3237 = vmatpush3.bf16.msra.mxu0 %v3587_v35  ;;  %v3642_v35 = vld [vmem:[%s4465_s1 + $0x200] sm:$0xff]  }
  0x46   : > { %3257 = vmatpush3.bf16.msra.mxu1 %v3588_v36  ;;  %3238 = vmatprep.subr.bf16.mxu0 %v3745_v1  ;;  %v1257_v36 = vpack.c.bf16 %v3644_v34, %v3643_v33 }
  0x47   : > { %3258 = vmatprep.subr.bf16.mxu1 %v3745_v1 }
  0x49   : > { %3239 = vmatpush3.bf16.msra.mxu0 %v3589_v38  ;;  %v3646_v38 = vld [vmem:[%s4468_s4 + $0x38] sm:$0xff]  }
  0x4a   : > { %3259 = vmatpush3.bf16.msra.mxu1 %v3590_v39  ;;  %3264 = vmatprep.subr.bf16.mxu0 %v3745_v1  ;;  %v3647_v39 = vld [vmem:[%s4468_s4 + $0x70] sm:$0xff]  }
  0x4b   : > { %3284 = vmatprep.subr.bf16.mxu1 %v3745_v1 }
  0x4c   : > { %3241 = vmatmul.mubr.bf16.vlgmr.msra.gmra.mxu0 %v529_v43 }
  0x4d   : > { %3265 = vmatpush3.bf16.msra.mxu0 %v3593_v44  ;;  %3261 = vmatmul.mubr.bf16.vlgmr.msra.gmra.mxu1 %v651_v45 }
  0x4e   : > { %3285 = vmatpush3.bf16.msra.mxu1 %v3596_v46  ;;  %3266 = vmatprep.subr.bf16.mxu0 %v3745_v1 }
  0x4f   : > { %3286 = vmatprep.subr.bf16.mxu1 %v3745_v1  ;;  %3280 = vmatprep.mubr.msk.bf16.mxu0 %vm3746_vm0, %v3745_v1 }
  0x50   : > { %3300 = vmatprep.mubr.msk.bf16.mxu1 %vm3746_vm0, %v3745_v1 }
  0x51   : > { %3267 = vmatpush3.bf16.msra.mxu0 %v3597_v47 }
  0x52   : > { %3287 = vmatpush3.bf16.msra.mxu1 %v3598_v48  ;;  %3268 = vmatprep.subr.bf16.mxu0 %v3745_v1  ;;  %v3651_v48 = vld [vmem:[%s4468_s4 + $0x60] sm:$0xff]  }
  0x53   : > { %3288 = vmatprep.subr.bf16.mxu1 %v3745_v1 }
  0x55   : > { %3269 = vmatpush3.bf16.msra.mxu0 %v3599_v49  ;;  %v3652_v49 = vld [vmem:[%s4468_s4 + $0x20] sm:$0xff]  }
  0x56   : > { %3289 = vmatpush3.bf16.msra.mxu1 %v3600_v50  ;;  %3270 = vmatprep.subr.bf16.mxu0 %v3745_v1 }
  0x57   : > { %3290 = vmatprep.subr.bf16.mxu1 %v3745_v1 }
  0x59   : > { %3271 = vmatpush3.bf16.msra.mxu0 %v3601_v51 }
  0x5a   : > { %3291 = vmatpush3.bf16.msra.mxu1 %v3602_v52  ;;  %3272 = vmatprep.subr.bf16.mxu0 %v3745_v1 }
  0x5b   : > { %3292 = vmatprep.subr.bf16.mxu1 %v3745_v1 }
  0x5d   : > { %3273 = vmatpush3.bf16.msra.mxu0 %v3603_v53 }
  0x5e   : > { %3293 = vmatpush3.bf16.msra.mxu1 %v3604_v54  ;;  %3274 = vmatprep.subr.bf16.mxu0 %v3745_v1 }
  0x5f   : > { %3294 = vmatprep.subr.bf16.mxu1 %v3745_v1 }
  0x61   : > { %3275 = vmatpush3.bf16.msra.mxu0 %v3605_v55  ;;  %v3653_v55 = vld [vmem:[%s4468_s4 + $0x58] sm:$0xff]  }
  0x62   : > { %3295 = vmatpush3.bf16.msra.mxu1 %v3606_v56  ;;  %3276 = vmatprep.subr.bf16.mxu0 %v3745_v1  ;;  %v3654_v56 = vld [vmem:[%s4468_s4 + $0x18] sm:$0xff]  }
  0x63   : > { %3296 = vmatprep.subr.bf16.mxu1 %v3745_v1 }
  0x65   : > { %3277 = vmatpush3.bf16.msra.mxu0 %v3607_v57  ;;  %v3655_v57 = vld [vmem:[%s4468_s4 + $0x50] sm:$0xff]  }
  0x66   : > { %3297 = vmatpush3.bf16.msra.mxu1 %v3608_v58  ;;  %3278 = vmatprep.subr.bf16.mxu0 %v3745_v1  ;;  %v3656_v58 = vld [vmem:[%s4468_s4 + $0x10] sm:$0xff]  }
  0x67   : > { %3298 = vmatprep.subr.bf16.mxu1 %v3745_v1 }
  0x69   : > { %3279 = vmatpush3.bf16.msra.mxu0 %v3609_v61  ;;  %v3659_v61 = vld [vmem:[%s4468_s4 + $0x40] sm:$0xff]  }
  0x6a   : > { %3299 = vmatpush3.bf16.msra.mxu1 %v3610_v62  ;;  %3304 = vmatprep.subr.bf16.mxu0 %v3745_v1  ;;  %v3660_v62 = vld [vmem:[%s4468_s4] sm:$0xff]  }
  0x6b   : > { %3324 = vmatprep.subr.bf16.mxu1 %v3745_v1 }
  0x6c   : > { %3281 = vmatmul.mubr.bf16.vlgmr.msra.gmra.mxu0 %v772_v3 }
  0x6d   : > { %3305 = vmatpush3.bf16.msra.mxu0 %v3613_v2  ;;  %3301 = vmatmul.mubr.bf16.vlgmr.msra.gmra.mxu1 %v893_v5 }
  0x6e   : > { %3325 = vmatpush3.bf16.msra.mxu1 %v3616_v4  ;;  %3306 = vmatprep.subr.bf16.mxu0 %v3745_v1 }
  0x6f   : > { %3326 = vmatprep.subr.bf16.mxu1 %v3745_v1  ;;  %3320 = vmatprep.mubr.msk.bf16.mxu0 %vm3746_vm0, %v3745_v1 }
  0x70   : > { %3340 = vmatprep.mubr.msk.bf16.mxu1 %vm3746_vm0, %v3745_v1 }
  0x71   : > { %3307 = vmatpush3.bf16.msra.mxu0 %v3617_v6 }
  0x72   : > { %3327 = vmatpush3.bf16.msra.mxu1 %v3618_v7  ;;  %3308 = vmatprep.subr.bf16.mxu0 %v3745_v1 }
  0x73   : > { %3328 = vmatprep.subr.bf16.mxu1 %v3745_v1 }
  0x75   : > { %3309 = vmatpush3.bf16.msra.mxu0 %v3619_v8 }
  0x76   : > { %3329 = vmatpush3.bf16.msra.mxu1 %v3620_v9  ;;  %3310 = vmatprep.subr.bf16.mxu0 %v3745_v1 }
  0x77   : > { %3330 = vmatprep.subr.bf16.mxu1 %v3745_v1 }
  0x79   : > { %3311 = vmatpush3.bf16.msra.mxu0 %v3621_v10 }
  0x7a   : > { %3331 = vmatpush3.bf16.msra.mxu1 %v3622_v11  ;;  %3312 = vmatprep.subr.bf16.mxu0 %v3745_v1 }
  0x7b   : > { %3332 = vmatprep.subr.bf16.mxu1 %v3745_v1 }
  0x7d   : > { %3313 = vmatpush3.bf16.msra.mxu0 %v3623_v12 }
  0x7e   : > { %3333 = vmatpush3.bf16.msra.mxu1 %v3624_v13  ;;  %3314 = vmatprep.subr.bf16.mxu0 %v3745_v1 }
  0x7f   : > { %3334 = vmatprep.subr.bf16.mxu1 %v3745_v1 }
  0x81   : > { %3315 = vmatpush3.bf16.msra.mxu0 %v3625_v14 }
  0x82   : > { %3335 = vmatpush3.bf16.msra.mxu1 %v3626_v15  ;;  %3316 = vmatprep.subr.bf16.mxu0 %v3745_v1 }
  0x83   : > { %3336 = vmatprep.subr.bf16.mxu1 %v3745_v1 }
  0x85   : > { %3317 = vmatpush3.bf16.msra.mxu0 %v3627_v16 }
  0x86   : > { %3337 = vmatpush3.bf16.msra.mxu1 %v3628_v17  ;;  %3318 = vmatprep.subr.bf16.mxu0 %v3745_v1 }
  0x87   : > { %3338 = vmatprep.subr.bf16.mxu1 %v3745_v1 }
  0x89   : > { %3319 = vmatpush3.bf16.msra.mxu0 %v3629_v20 }
  0x8a   : > { %3339 = vmatpush3.bf16.msra.mxu1 %v3630_v23  ;;  %3344 = vmatprep.subr.bf16.mxu0 %v3745_v1 }
  0x8b   : > { %3364 = vmatprep.subr.bf16.mxu1 %v3745_v1 }
  0x8c   : > { %3321 = vmatmul.mubr.bf16.vlgmr.msra.gmra.mxu0 %v1015_v25 }
  0x8d   : > { %3345 = vmatpush3.bf16.msra.mxu0 %v3633_v24  ;;  %3341 = vmatmul.mubr.bf16.vlgmr.msra.gmra.mxu1 %v1136_v26 }
  0x8e   : > { %3346 = vmatprep.subr.bf16.mxu0 %v3745_v1  ;;  %3360 = vmatprep.mubr.msk.bf16.mxu0 %vm3746_vm0, %v3745_v1 }
  0x8f   : > { %3380 = vmatprep.mubr.msk.bf16.mxu1 %vm3746_vm0, %v3745_v1  ;;  %3365 = vmatpush3.bf16.msra.mxu1 %v3645_v37 }
  0x90   : > { %3366 = vmatprep.subr.bf16.mxu1 %v3745_v1 }
  0x91   : > { %3347 = vmatpush3.bf16.msra.mxu0 %v3636_v27 }
  0x92   : > { %3348 = vmatprep.subr.bf16.mxu0 %v3745_v1 }
  0x93   : > { %3367 = vmatpush3.bf16.msra.mxu1 %v3647_v39 }
  0x94   : > { %3368 = vmatprep.subr.bf16.mxu1 %v3745_v1 }
  0x95   : > { %3349 = vmatpush3.bf16.msra.mxu0 %v3637_v28 }
  0x96   : > { %3350 = vmatprep.subr.bf16.mxu0 %v3745_v1 }
  0x97   : > { %3369 = vmatpush3.bf16.msra.mxu1 %v3649_v41 }
  0x98   : > { %3370 = vmatprep.subr.bf16.mxu1 %v3745_v1 }
  0x99   : > { %3351 = vmatpush3.bf16.msra.mxu0 %v3638_v29 }
  0x9a   : > { %3352 = vmatprep.subr.bf16.mxu0 %v3745_v1 }
  0x9b   : > { %3371 = vmatpush3.bf16.msra.mxu1 %v3651_v48 }
  0x9c   : > { %3372 = vmatprep.subr.bf16.mxu1 %v3745_v1 }
  0x9d   : > { %3353 = vmatpush3.bf16.msra.mxu0 %v3639_v30 }
  0x9e   : > { %3354 = vmatprep.subr.bf16.mxu0 %v3745_v1 }
  0x9f   : > { %3373 = vmatpush3.bf16.msra.mxu1 %v3653_v55 }
  0xa0   : > { %3374 = vmatprep.subr.bf16.mxu1 %v3745_v1 }
  0xa1   : > { %3355 = vmatpush3.bf16.msra.mxu0 %v3640_v31 }
  0xa2   : > { %3356 = vmatprep.subr.bf16.mxu0 %v3745_v1 }
  0xa3   : > { %3375 = vmatpush3.bf16.msra.mxu1 %v3655_v57 }
  0xa4   : > { %3376 = vmatprep.subr.bf16.mxu1 %v3745_v1 }
  0xa5   : > { %3357 = vmatpush3.bf16.msra.mxu0 %v3641_v32 }
  0xa6   : > { %3358 = vmatprep.subr.bf16.mxu0 %v3745_v1 }
  0xa7   : > { %3377 = vmatpush3.bf16.msra.mxu1 %v3657_v59 }
  0xa8   : > { %3378 = vmatprep.subr.bf16.mxu1 %v3745_v1 }
  0xa9   : > { %3359 = vmatpush3.bf16.msra.mxu0 %v3642_v35 }
  0xaa   : > { %3384 = vmatprep.subr.bf16.mxu0 %v3745_v1 }
  0xab   : > { %3379 = vmatpush3.bf16.msra.mxu1 %v3659_v61  ;;  %v3668_v61 = vld [vmem:[%s4468_s4 + $0xf0] sm:$0xff]  }
  0xac   : > { %3361 = vmatmul.mubr.bf16.vlgmr.msra.gmra.mxu0 %v1257_v36  ;;  %3404 = vmatprep.subr.bf16.mxu1 %v3745_v1  ;;  %v2811_v36 = vld [vmem:[%s4466_s2] ss:$0 sm:$0xff] }
  0xad   : > { %3400 = vmatprep.mubr.msk.bf16.mxu0 %vm3746_vm0, %v3745_v1  ;;  %3385 = vmatpush3.bf16.msra.mxu0 %v3646_v38  ;;  %v2812_v38 = vld [vmem:[%s4467_s3] ss:$0 sm:$0xff] }
  0xae   : > { %3386 = vmatprep.subr.bf16.mxu0 %v3745_v1 }
  0xb1   : > { %3387 = vmatpush3.bf16.msra.mxu0 %v3648_v40 }
  0xb2   : > { %3388 = vmatprep.subr.bf16.mxu0 %v3745_v1 }
  0xb5   : > { %3389 = vmatpush3.bf16.msra.mxu0 %v3650_v42 }
  0xb6   : > { %3390 = vmatprep.subr.bf16.mxu0 %v3745_v1 }
  0xb9   : > { %3391 = vmatpush3.bf16.msra.mxu0 %v3652_v49 }
  0xba   : > { %3392 = vmatprep.subr.bf16.mxu0 %v3745_v1 }
  0xbd   : > { %3393 = vmatpush3.bf16.msra.mxu0 %v3654_v56 }
  0xbe   : > { %3394 = vmatprep.subr.bf16.mxu0 %v3745_v1 }
  0xc1   : > { %3395 = vmatpush3.bf16.msra.mxu0 %v3656_v58  ;;  %v3666_v58 = vld [vmem:[%s4468_s4 + $0xf8] sm:$0xff]  }
  0xc2   : > { %3396 = vmatprep.subr.bf16.mxu0 %v3745_v1 }
  0xc5   : > { %3397 = vmatpush3.bf16.msra.mxu0 %v3658_v60  ;;  %v3667_v60 = vld [vmem:[%s4468_s4 + $0xb0] sm:$0xff]  }
  0xc6   : > { %3398 = vmatprep.subr.bf16.mxu0 %v3745_v1 }
  0xc9   : > { %3399 = vmatpush3.bf16.msra.mxu0 %v3660_v62  ;;  %v3669_v62 = vld [vmem:[%s4468_s4 + $0xa8] sm:$0xff]  }
  0xca   : > { %3424 = vmatprep.subr.bf16.mxu0 %v3745_v1 }
  0xec   : > { %v421_v43 = vpop.f32.mrf.mxu0 }
  0xed   : > { %v510_v44 = vpop.f32.mrf.mxu1 }
  0xee   : > { %v511_v45 = vadd.f32 %v510_v44, %v421_v43  ;;  %v3202_v46 = vpop.f32.mrf.mxu0 }
  0xef   : > { %v3222_v47 = vpop.f32.mrf.mxu1 }
  0xf0   : > { %v424_v50 = vpop.f32.mrf.mxu0 }
  0xf1   : > { %v513_v51 = vpop.f32.mrf.mxu1 }
  0xf2   : > { %v514_v52 = vadd.f32 %v513_v51, %v424_v50  ;;  %v3203_v53 = vpop.f32.mrf.mxu0 }
  0xf3   : > { %v3223_v54 = vpop.f32.mrf.mxu1  ;;  %v3665_v53 = vld [vmem:[%s4468_s4 + $0xb8] sm:$0xff]  }
 0x10c   : > { %v629_v63 = vpop.f32.mrf.mxu0 }
 0x10d   : > { %v636_v0 = vadd.f32 %v629_v63, %v511_v45  ;;  %v751_v2 = vpop.f32.mrf.mxu1  ;;  %v3670_v63 = vld [vmem:[%s4468_s4 + $0xe8] sm:$0xff]  }
 0x10e   : > { %v3242_v3 = vpop.f32.mrf.mxu0 }
 0x10f   : > { %v758_v4 = vadd.f32 %v751_v2, %v636_v0  ;;  %v3262_v5 = vpop.f32.mrf.mxu1  ;;  %v3671_v0 = vld [vmem:[%s4468_s4 + $0xa0] sm:$0xff]   ;;  %v3673_v3 = vld [vmem:[%s4468_s4 + $0x98] sm:$0xff]  }
 0x110   : > { %v632_v6 = vpop.f32.mrf.mxu0  ;;  %v3672_v2 = vld [vmem:[%s4468_s4 + $0xe0] sm:$0xff]   ;;  %v3675_v5 = vld [vmem:[%s4468_s4 + $0x90] sm:$0xff]  }
 0x111   : > { %v637_v7 = vadd.f32 %v632_v6, %v514_v52  ;;  %v754_v8 = vpop.f32.mrf.mxu1  ;;  %v3676_v6 = vld [vmem:[%s4468_s4 + $0xd0] sm:$0xff]  }
 0x112   : > { %v3243_v9 = vpop.f32.mrf.mxu0 }
 0x113   : > { %v759_v10 = vadd.f32 %v754_v8, %v637_v7  ;;  %v3263_v11 = vpop.f32.mrf.mxu1  ;;  %v3677_v7 = vld [vmem:[%s4468_s4 + $0x88] sm:$0xff]   ;;  %v3679_v9 = vld [vmem:[%s4468_s4 + $0x80] sm:$0xff]  }
 0x114   : > { %v3678_v8 = vld [vmem:[%s4468_s4 + $0xc8] sm:$0xff]  }
 0x12c   : > { %v872_v12 = vpop.f32.mrf.mxu0 }
 0x12d   : > { %v993_v13 = vpop.f32.mrf.mxu1  ;;  %v879_v28 = vadd.f32 %v872_v12, %v758_v4  ;;  %v3674_v4 = vld [vmem:[%s4468_s4 + $0xd8] sm:$0xff]  }
 0x12e   : > { %v3282_v14 = vpop.f32.mrf.mxu0 }
 0x12f   : > { %v3302_v15 = vpop.f32.mrf.mxu1  ;;  %v1000_v29 = vadd.f32 %v993_v13, %v879_v28  ;;  %v3696_v28 = vld [vmem:[%s4468_s4 + $0x150] sm:$0xff]  }
 0x130   : > { %v875_v16 = vpop.f32.mrf.mxu0  ;;  %v3685_v15 = vld [vmem:[%s4468_s4 + $0x138] sm:$0xff]  }
 0x131   : > { %v996_v17 = vpop.f32.mrf.mxu1  ;;  %v880_v30 = vadd.f32 %v875_v16, %v759_v10  ;;  %v3680_v10 = vld [vmem:[%s4468_s4 + $0xc0] sm:$0xff]  }
 0x132   : > { %v3283_v18 = vpop.f32.mrf.mxu0 }
 0x133   : > { %v3303_v19 = vpop.f32.mrf.mxu1  ;;  %v1001_v32 = vadd.f32 %v996_v17, %v880_v30  ;;  %v3686_v17 = vld [vmem:[%s4468_s4 + $0x178] sm:$0xff]   ;;  %v3698_v30 = vld [vmem:[%s4468_s4 + $0x148] sm:$0xff]  }
 0x134   : > { %v3687_v19 = vld [vmem:[%s4468_s4 + $0x130] sm:$0xff]  }
 0x14c   : > { %v1115_v20 = vpop.f32.mrf.mxu0 }
 0x14d   : > { %v1236_v21 = vpop.f32.mrf.mxu1  ;;  %v1122_v31 = vadd.f32 %v1115_v20, %v1000_v29  ;;  %v3688_v20 = vld [vmem:[%s4468_s4 + $0x170] sm:$0xff]   ;;  %v3697_v29 = vld [vmem:[%s4468_s4 + $0x108] sm:$0xff]  }
 0x14e   : > { %v3322_v22 = vpop.f32.mrf.mxu0 }
 0x14f   : > { %v3342_v23 = vpop.f32.mrf.mxu1  ;;  %v1243_v33 = vadd.f32 %v1236_v21, %v1122_v31  ;;  %v3689_v21 = vld [vmem:[%s4468_s4 + $0x128] sm:$0xff]   ;;  %v3699_v31 = vld [vmem:[%s4468_s4 + $0x100] sm:$0xff]  }
 0x150   : > { %v1118_v24 = vpop.f32.mrf.mxu0  ;;  %v3690_v22 = vld [vmem:[%s4468_s4 + $0x168] sm:$0xff]   ;;  %v3691_v23 = vld [vmem:[%s4468_s4 + $0x120] sm:$0xff]  }
 0x151   : > { %v1239_v25 = vpop.f32.mrf.mxu1  ;;  %v1123_v34 = vadd.f32 %v1118_v24, %v1001_v32  ;;  %v3692_v24 = vld [vmem:[%s4468_s4 + $0x160] sm:$0xff]  }
 0x152   : > { %v3323_v26 = vpop.f32.mrf.mxu0  ;;  %v3700_v32 = vld [vmem:[%s4468_s4 + $0x140] sm:$0xff]  }
 0x153   : > { %v3343_v27 = vpop.f32.mrf.mxu1  ;;  %v1244_v40 = vadd.f32 %v1239_v25, %v1123_v34  ;;  %v3693_v25 = vld [vmem:[%s4468_s4 + $0x118] sm:$0xff]  }
 0x154   : > { %v3694_v26 = vld [vmem:[%s4468_s4 + $0x158] sm:$0xff]   ;;  %v3695_v27 = vld [vmem:[%s4468_s4 + $0x110] sm:$0xff]  }
 0x16c   : > { %v1357_v35 = vpop.f32.mrf.mxu0 }
 0x16d   : > { %v1364_v37 = vadd.f32 %v1357_v35, %v1243_v33 }
 0x16e   : > { %v3362_v39 = vpop.f32.mrf.mxu0 }
 0x16f   : > { %v1373_v41 = vmul.f32 %v2811_v36, %v1364_v37  ;;  %v3705_v37 = vld [vmem:[%s4468_s4 + $0x1b8] sm:$0xff]  }
 0x170   : > { %v1360_v42 = vpop.f32.mrf.mxu0  ;;  %v3706_v39 = vld [vmem:[%s4468_s4 + $0x1f8] sm:$0xff]  }
 0x171   : > { %v1382_v43 = vadd.f32 %v2812_v38, %v1373_v41  ;;  %v1365_v44 = vadd.f32 %v1360_v42, %v1244_v40  ;;  %v3707_v41 = vld [vmem:[%s4468_s4 + $0x1b0] sm:$0xff]  }
 0x172   : > { %v3363_v45 = vpop.f32.mrf.mxu0  ;;  %v3708_v42 = vld [vmem:[%s4468_s4 + $0x1f0] sm:$0xff]  }
 0x173   : > { %v1384_v46 = vmax.f32 %v1382_v43, 0.0  ;;  %v1374_v47 = vmul.f32 %v2811_v36, %v1365_v44  ;;  %v3709_v43 = vld [vmem:[%s4468_s4 + $0x1a8] sm:$0xff]   ;;  %v3711_v45 = vld [vmem:[%s4468_s4 + $0x1a0] sm:$0xff]  }
 0x174   : > { %v3710_v44 = vld [vmem:[%s4468_s4 + $0x1e8] sm:$0xff]  }
 0x175   : > { %v1394_v48 = vcombine.high %v1384_v46, %v1384_v46  ;;  %1399 = vst [vmem:[#allocation2 + $0x9] sm:$0xf] %v1384_v46  ;;  %v1383_v49 = vadd.f32 %v2812_v38, %v1374_v47  ;;  %v3712_v46 = vld [vmem:[%s4468_s4 + $0x1e0] sm:$0xff]   ;;  %v3713_v47 = vld [vmem:[%s4468_s4 + $0x198] sm:$0xff]  }
 0x177   : > { %1400 = vst [vmem:[#allocation2 + $0x11] sm:$0xf] %v1394_v48  ;;  %v1385_v50 = vmax.f32 %v1383_v49, 0.0  ;;  %v3714_v48 = vld [vmem:[%s4468_s4 + $0x1d8] sm:$0xff]   ;;  %v3715_v49 = vld [vmem:[%s4468_s4 + $0x190] sm:$0xff]  }
 0x179   : > { %v1395_v51 = vcombine.high %v1385_v50, %v1385_v50  ;;  %1401 = vst [vmem:[#allocation2 + $0x19] sm:$0xf] %v1385_v50  ;;  %v3716_v50 = vld [vmem:[%s4468_s4 + $0x1d0] sm:$0xff]  }
 0x17b   : > { %1402 = vst [vmem:[#allocation2 + $0x21] sm:$0xf] %v1395_v51  ;;  %v3717_v51 = vld [vmem:[%s4468_s4 + $0x188] sm:$0xff]  }
 0x17c   : > { %v3661_v52 = vld [vmem:[#allocation2 + $0x1] ss:$8 sps:$4 sm:$0xff]  }
 0x17d   : > { %v3663_v55 = vld [vmem:[#allocation2] ss:$8 sps:$4 sm:$0xff]  }
 0x17e   : > { %v3681_v13 = vld [vmem:[#allocation2 + $0x2] ss:$8 sps:$4 sm:$0xff]  }
 0x17f   : > { %v3683_v14 = vld [vmem:[#allocation2 + $0x8] ss:$8 sps:$4 sm:$0xff]  }
 0x180   : > { %v3662_v54 = vld [vmem:[#allocation2 + $0x11] ss:$8 sps:$4 sm:$0xff]  }
 0x181   : > { %v3664_v56 = vld [vmem:[#allocation2 + $0x10] ss:$8 sps:$4 sm:$0xff]   ;;  %v1444_v57 = vpack.c.bf16 %v3662_v54, %v3661_v52  ;;  %v3718_v52 = vld [vmem:[%s4468_s4 + $0x1c8] sm:$0xff]   ;;  %v3720_v54 = vld [vmem:[%s4468_s4 + $0x1c0] sm:$0xff]  }
 0x182   : > { %v1415_v59 = vpack.c.bf16 %v3664_v56, %v3663_v55  ;;  %v3682_v11 = vld [vmem:[#allocation2 + $0x12] ss:$8 sps:$4 sm:$0xff]   ;;  %v3722_v55 = vld [vmem:[#allocation2 + $0x20] ss:$8 sps:$4 sm:$0xff]  }
 0x183   : > { %3381 = vmatmul.mubr.bf16.vlgmr.msra.gmra.mxu1 %v1444_v57  ;;  %v3684_v12 = vld [vmem:[#allocation2 + $0x18] ss:$8 sps:$4 sm:$0xff]   ;;  %v1652_v16 = vpack.c.bf16 %v3682_v11, %v3681_v13  ;;  %v3701_v35 = vld [vmem:[#allocation2 + $0x9] ss:$8 sps:$4 sm:$0xff]  }
 0x184   : > { %3401 = vmatmul.mubr.bf16.vlgmr.msra.gmra.mxu0 %v1415_v59  ;;  %3405 = vmatpush3.bf16.msra.mxu1 %v3665_v53  ;;  %v1773_v18 = vpack.c.bf16 %v3684_v12, %v3683_v14  ;;  %v3702_v33 = vld [vmem:[#allocation2 + $0x19] ss:$8 sps:$4 sm:$0xff]   ;;  %v3703_v36 = vld [vmem:[#allocation2 + $0xa] ss:$8 sps:$4 sm:$0xff]  }
 0x185   : > { %3425 = vmatpush3.bf16.msra.mxu0 %v3666_v58  ;;  %3406 = vmatprep.subr.bf16.mxu1 %v3745_v1  ;;  %v3704_v34 = vld [vmem:[#allocation2 + $0x1a] ss:$8 sps:$4 sm:$0xff]   ;;  %v1894_v38 = vpack.c.bf16 %v3702_v33, %v3701_v35 }
 0x186   : > { %3426 = vmatprep.subr.bf16.mxu0 %v3745_v1  ;;  %3420 = vmatprep.mubr.msk.bf16.mxu1 %vm3746_vm0, %v3745_v1  ;;  %v2015_v40 = vpack.c.bf16 %v3704_v34, %v3703_v36  ;;  %v3719_v53 = vld [vmem:[%s4468_s4 + $0x180] sm:$0xff]   ;;  %v3721_v57 = vld [vmem:[#allocation2 + $0x10] ss:$8 sps:$4 sm:$0xff]  }
 0x187   : > { %3440 = vmatprep.mubr.msk.bf16.mxu0 %vm3746_vm0, %v3745_v1  ;;  %v3724_v56 = vld [vmem:[#allocation2 + $0x21] ss:$8 sps:$4 sm:$0xff]   ;;  %v3723_v58 = vld [vmem:[#allocation2 + $0x11] ss:$8 sps:$4 sm:$0xff]  }
 0x188   : > { %3407 = vmatpush3.bf16.msra.mxu1 %v3667_v60  ;;  %v3725_v59 = vld [vmem:[%s4468_s4 + $0x238] sm:$0xff]   ;;  %v2137_v60 = vpack.c.bf16 %v3722_v55, %v3721_v57 }
 0x189   : > { %3427 = vmatpush3.bf16.msra.mxu0 %v3668_v61  ;;  %3408 = vmatprep.subr.bf16.mxu1 %v3745_v1  ;;  %v2258_v61 = vpack.c.bf16 %v3724_v56, %v3723_v58  ;;  %v3014_v56 = vld [vmem:[%s4470_s6] ss:$0 sm:$0xff] }
 0x18a   : > { %3428 = vmatprep.subr.bf16.mxu0 %v3745_v1 }
 0x18c   : > { %3409 = vmatpush3.bf16.msra.mxu1 %v3669_v62  ;;  %v3726_v62 = vld [vmem:[%s4468_s4 + $0x230] sm:$0xff]  }
 0x18d   : > { %3429 = vmatpush3.bf16.msra.mxu0 %v3670_v63  ;;  %3410 = vmatprep.subr.bf16.mxu1 %v3745_v1  ;;  %v3727_v63 = vld [vmem:[%s4468_s4 + $0x228] sm:$0xff]  }
 0x18e   : > { %3430 = vmatprep.subr.bf16.mxu0 %v3745_v1 }
 0x190   : > { %3411 = vmatpush3.bf16.msra.mxu1 %v3671_v0  ;;  %v3728_v0 = vld [vmem:[%s4468_s4 + $0x220] sm:$0xff]  }
 0x191   : > { %3431 = vmatpush3.bf16.msra.mxu0 %v3672_v2  ;;  %3412 = vmatprep.subr.bf16.mxu1 %v3745_v1  ;;  %v3729_v2 = vld [vmem:[%s4468_s4 + $0x218] sm:$0xff]  }
 0x192   : > { %3432 = vmatprep.subr.bf16.mxu0 %v3745_v1 }
 0x194   : > { %3413 = vmatpush3.bf16.msra.mxu1 %v3673_v3  ;;  %v3730_v3 = vld [vmem:[%s4468_s4 + $0x210] sm:$0xff]  }
 0x195   : > { %3433 = vmatpush3.bf16.msra.mxu0 %v3674_v4  ;;  %3414 = vmatprep.subr.bf16.mxu1 %v3745_v1  ;;  %v3731_v4 = vld [vmem:[%s4468_s4 + $0x208] sm:$0xff]  }
 0x196   : > { %3434 = vmatprep.subr.bf16.mxu0 %v3745_v1 }
 0x198   : > { %3415 = vmatpush3.bf16.msra.mxu1 %v3675_v5  ;;  %v3732_v5 = vld [vmem:[%s4468_s4 + $0x200] sm:$0xff]  }
 0x199   : > { %3435 = vmatpush3.bf16.msra.mxu0 %v3676_v6  ;;  %3416 = vmatprep.subr.bf16.mxu1 %v3745_v1  ;;  %v3734_v6 = vld [vmem:[#allocation2 + $0x22] ss:$8 sps:$4 sm:$0xff]  }
 0x19a   : > { %3436 = vmatprep.subr.bf16.mxu0 %v3745_v1 }
 0x19c   : > { %3417 = vmatpush3.bf16.msra.mxu1 %v3677_v7  ;;  %v3733_v7 = vld [vmem:[#allocation2 + $0x12] ss:$8 sps:$4 sm:$0xff]  }
 0x19d   : > { %3437 = vmatpush3.bf16.msra.mxu0 %v3678_v8  ;;  %3418 = vmatprep.subr.bf16.mxu1 %v3745_v1  ;;  %v2379_v8 = vpack.c.bf16 %v3734_v6, %v3733_v7 }
 0x19e   : > { %3438 = vmatprep.subr.bf16.mxu0 %v3745_v1 }
 0x1a0   : > { %3419 = vmatpush3.bf16.msra.mxu1 %v3679_v9 }
 0x1a1   : > { %3439 = vmatpush3.bf16.msra.mxu0 %v3680_v10  ;;  %3444 = vmatprep.subr.bf16.mxu1 %v3745_v1 }
 0x1a2   : > { %3464 = vmatprep.subr.bf16.mxu0 %v3745_v1 }
 0x1a3   : > { %3421 = vmatmul.mubr.bf16.vlgmr.msra.gmra.mxu1 %v1652_v16 }
 0x1a4   : > { %3441 = vmatmul.mubr.bf16.vlgmr.msra.gmra.mxu0 %v1773_v18  ;;  %3445 = vmatpush3.bf16.msra.mxu1 %v3685_v15 }
 0x1a5   : > { %3465 = vmatpush3.bf16.msra.mxu0 %v3686_v17  ;;  %3446 = vmatprep.subr.bf16.mxu1 %v3745_v1 }
 0x1a6   : > { %3466 = vmatprep.subr.bf16.mxu0 %v3745_v1  ;;  %3460 = vmatprep.mubr.msk.bf16.mxu1 %vm3746_vm0, %v3745_v1 }
 0x1a7   : > { %3480 = vmatprep.mubr.msk.bf16.mxu0 %vm3746_vm0, %v3745_v1 }
 0x1a8   : > { %3447 = vmatpush3.bf16.msra.mxu1 %v3687_v19 }
 0x1a9   : > { %3467 = vmatpush3.bf16.msra.mxu0 %v3688_v20  ;;  %3448 = vmatprep.subr.bf16.mxu1 %v3745_v1 }
 0x1aa   : > { %3468 = vmatprep.subr.bf16.mxu0 %v3745_v1 }
 0x1ac   : > { %3449 = vmatpush3.bf16.msra.mxu1 %v3689_v21 }
 0x1ad   : > { %3469 = vmatpush3.bf16.msra.mxu0 %v3690_v22  ;;  %3450 = vmatprep.subr.bf16.mxu1 %v3745_v1 }
 0x1ae   : > { %3470 = vmatprep.subr.bf16.mxu0 %v3745_v1 }
 0x1b0   : > { %3451 = vmatpush3.bf16.msra.mxu1 %v3691_v23 }
 0x1b1   : > { %3471 = vmatpush3.bf16.msra.mxu0 %v3692_v24  ;;  %3452 = vmatprep.subr.bf16.mxu1 %v3745_v1 }
 0x1b2   : > { %3472 = vmatprep.subr.bf16.mxu0 %v3745_v1 }
 0x1b4   : > { %3453 = vmatpush3.bf16.msra.mxu1 %v3693_v25 }
 0x1b5   : > { %3473 = vmatpush3.bf16.msra.mxu0 %v3694_v26  ;;  %3454 = vmatprep.subr.bf16.mxu1 %v3745_v1 }
 0x1b6   : > { %3474 = vmatprep.subr.bf16.mxu0 %v3745_v1 }
 0x1b8   : > { %3455 = vmatpush3.bf16.msra.mxu1 %v3695_v27 }
 0x1b9   : > { %3475 = vmatpush3.bf16.msra.mxu0 %v3696_v28  ;;  %3456 = vmatprep.subr.bf16.mxu1 %v3745_v1 }
 0x1ba   : > { %3476 = vmatprep.subr.bf16.mxu0 %v3745_v1 }
 0x1bc   : > { %3457 = vmatpush3.bf16.msra.mxu1 %v3697_v29 }
 0x1bd   : > { %3477 = vmatpush3.bf16.msra.mxu0 %v3698_v30  ;;  %3458 = vmatprep.subr.bf16.mxu1 %v3745_v1 }
 0x1be   : > { %3478 = vmatprep.subr.bf16.mxu0 %v3745_v1 }
 0x1c0   : > { %3459 = vmatpush3.bf16.msra.mxu1 %v3699_v31 }
 0x1c1   : > { %3479 = vmatpush3.bf16.msra.mxu0 %v3700_v32  ;;  %3484 = vmatprep.subr.bf16.mxu1 %v3745_v1 }
 0x1c2   : > { %3504 = vmatprep.subr.bf16.mxu0 %v3745_v1 }
 0x1c3   : > { %3461 = vmatmul.mubr.bf16.vlgmr.msra.gmra.mxu1 %v1894_v38 }
 0x1c4   : > { %3481 = vmatmul.mubr.bf16.vlgmr.msra.gmra.mxu0 %v2015_v40  ;;  %3485 = vmatpush3.bf16.msra.mxu1 %v3705_v37 }
 0x1c5   : > { %3505 = vmatpush3.bf16.msra.mxu0 %v3706_v39  ;;  %3486 = vmatprep.subr.bf16.mxu1 %v3745_v1 }
 0x1c6   : > { %3506 = vmatprep.subr.bf16.mxu0 %v3745_v1  ;;  %3500 = vmatprep.mubr.msk.bf16.mxu1 %vm3746_vm0, %v3745_v1 }
 0x1c7   : > { %3520 = vmatprep.mubr.msk.bf16.mxu0 %vm3746_vm0, %v3745_v1 }
 0x1c8   : > { %3487 = vmatpush3.bf16.msra.mxu1 %v3707_v41 }
 0x1c9   : > { %3507 = vmatpush3.bf16.msra.mxu0 %v3708_v42  ;;  %3488 = vmatprep.subr.bf16.mxu1 %v3745_v1 }
 0x1ca   : > { %3508 = vmatprep.subr.bf16.mxu0 %v3745_v1 }
 0x1cc   : > { %3489 = vmatpush3.bf16.msra.mxu1 %v3709_v43 }
 0x1cd   : > { %3509 = vmatpush3.bf16.msra.mxu0 %v3710_v44  ;;  %3490 = vmatprep.subr.bf16.mxu1 %v3745_v1 }
 0x1ce   : > { %3510 = vmatprep.subr.bf16.mxu0 %v3745_v1 }
 0x1d0   : > { %3491 = vmatpush3.bf16.msra.mxu1 %v3711_v45 }
 0x1d1   : > { %3511 = vmatpush3.bf16.msra.mxu0 %v3712_v46  ;;  %3492 = vmatprep.subr.bf16.mxu1 %v3745_v1 }
 0x1d2   : > { %3512 = vmatprep.subr.bf16.mxu0 %v3745_v1 }
 0x1d4   : > { %3493 = vmatpush3.bf16.msra.mxu1 %v3713_v47 }
 0x1d5   : > { %3513 = vmatpush3.bf16.msra.mxu0 %v3714_v48  ;;  %3494 = vmatprep.subr.bf16.mxu1 %v3745_v1 }
 0x1d6   : > { %3514 = vmatprep.subr.bf16.mxu0 %v3745_v1 }
 0x1d8   : > { %3495 = vmatpush3.bf16.msra.mxu1 %v3715_v49 }
 0x1d9   : > { %3515 = vmatpush3.bf16.msra.mxu0 %v3716_v50  ;;  %3496 = vmatprep.subr.bf16.mxu1 %v3745_v1 }
 0x1da   : > { %3516 = vmatprep.subr.bf16.mxu0 %v3745_v1 }
 0x1dc   : > { %3497 = vmatpush3.bf16.msra.mxu1 %v3717_v51 }
 0x1dd   : > { %3517 = vmatpush3.bf16.msra.mxu0 %v3718_v52  ;;  %3498 = vmatprep.subr.bf16.mxu1 %v3745_v1 }
 0x1de   : > { %3518 = vmatprep.subr.bf16.mxu0 %v3745_v1 }
 0x1e0   : > { %3499 = vmatpush3.bf16.msra.mxu1 %v3719_v53 }
 0x1e1   : > { %3519 = vmatpush3.bf16.msra.mxu0 %v3720_v54  ;;  %3524 = vmatprep.subr.bf16.mxu1 %v3745_v1  ;;  %v3013_v54 = vld [vmem:[%s4469_s5] ss:$0 sm:$0xff] }
 0x1e3   : > { %3501 = vmatmul.mubr.bf16.vlgmr.msra.gmra.mxu1 %v2137_v60  ;;  %v3735_v60 = vld [vmem:[%s3854_s28 + $0x9] ss:$8 sps:$4 sm:$0xff]  }
 0x1e4   : > { %3521 = vmatmul.mubr.bf16.vlgmr.msra.gmra.mxu0 %v2258_v61  ;;  %3525 = vmatpush3.bf16.msra.mxu1 %v3725_v59 }
 0x1e5   : > { %3526 = vmatprep.subr.bf16.mxu1 %v3745_v1  ;;  %3540 = vmatprep.mubr.msk.bf16.mxu1 %vm3746_vm0, %v3745_v1 }
 0x1e8   : > { %3527 = vmatpush3.bf16.msra.mxu1 %v3726_v62 }
 0x1e9   : > { %3528 = vmatprep.subr.bf16.mxu1 %v3745_v1 }
 0x1ec   : > { %3529 = vmatpush3.bf16.msra.mxu1 %v3727_v63 }
 0x1ed   : > { %3530 = vmatprep.subr.bf16.mxu1 %v3745_v1 }
 0x1f0   : > { %3531 = vmatpush3.bf16.msra.mxu1 %v3728_v0 }
 0x1f1   : > { %3532 = vmatprep.subr.bf16.mxu1 %v3745_v1 }
 0x1f4   : > { %3533 = vmatpush3.bf16.msra.mxu1 %v3729_v2 }
 0x1f5   : > { %3534 = vmatprep.subr.bf16.mxu1 %v3745_v1 }
 0x1f8   : > { %3535 = vmatpush3.bf16.msra.mxu1 %v3730_v3 }
 0x1f9   : > { %3536 = vmatprep.subr.bf16.mxu1 %v3745_v1 }
 0x1fc   : > { %3537 = vmatpush3.bf16.msra.mxu1 %v3731_v4  ;;  %v3736_v4 = vld [vmem:[%s3854_s28 + $0x19] ss:$8 sps:$4 sm:$0xff]  }
 0x1fd   : > { %3538 = vmatprep.subr.bf16.mxu1 %v3745_v1 }
 0x200   : > { %3539 = vmatpush3.bf16.msra.mxu1 %v3732_v5 }
 0x203   : > { %3541 = vmatmul.mubr.bf16.vlgmr.msra.gmra.mxu1 %v2379_v8 }
 0x243   : > { %v1544_v9 = vpop.f32.mrf.mxu1 }
 0x244   : > { %v1633_v10 = vpop.f32.mrf.mxu0 }
 0x245   : > { %v1634_v11 = vadd.f32 %v1633_v10, %v1544_v9  ;;  %v3382_v12 = vpop.f32.mrf.mxu1 }
 0x246   : > { %v3402_v13 = vpop.f32.mrf.mxu0 }
 0x247   : > { %v1547_v14 = vpop.f32.mrf.mxu1 }
 0x248   : > { %v1636_v15 = vpop.f32.mrf.mxu0 }
 0x249   : > { %v1637_v16 = vadd.f32 %v1636_v15, %v1547_v14  ;;  %v3383_v17 = vpop.f32.mrf.mxu1 }
 0x24a   : > { %v3403_v18 = vpop.f32.mrf.mxu0 }
 0x263   : > { %v1752_v19 = vpop.f32.mrf.mxu1 }
 0x264   : > { %v1759_v20 = vadd.f32 %v1752_v19, %v1634_v11  ;;  %v1873_v21 = vpop.f32.mrf.mxu0 }
 0x265   : > { %v3422_v22 = vpop.f32.mrf.mxu1 }
 0x266   : > { %v1880_v1 = vadd.f32 %v1873_v21, %v1759_v20  ;;  %v3442_v23 = vpop.f32.mrf.mxu0 }
 0x267   : > { %v1755_v24 = vpop.f32.mrf.mxu1 }
 0x268   : > { %v1760_v25 = vadd.f32 %v1755_v24, %v1637_v16  ;;  %v1876_v26 = vpop.f32.mrf.mxu0 }
 0x269   : > { %v3423_v27 = vpop.f32.mrf.mxu1 }
 0x26a   : > { %v1881_v28 = vadd.f32 %v1876_v26, %v1760_v25  ;;  %v3443_v29 = vpop.f32.mrf.mxu0 }
 0x283   : > { %v1994_v30 = vpop.f32.mrf.mxu1 }
 0x284   : > { %v2115_v31 = vpop.f32.mrf.mxu0  ;;  %v2001_v46 = vadd.f32 %v1994_v30, %v1880_v1 }
 0x285   : > { %v3462_v32 = vpop.f32.mrf.mxu1 }
 0x286   : > { %v3482_v33 = vpop.f32.mrf.mxu0  ;;  %v2122_v47 = vadd.f32 %v2115_v31, %v2001_v46 }
 0x287   : > { %v1997_v34 = vpop.f32.mrf.mxu1 }
 0x288   : > { %v2118_v35 = vpop.f32.mrf.mxu0  ;;  %v2002_v48 = vadd.f32 %v1997_v34, %v1881_v28 }
 0x289   : > { %v3463_v36 = vpop.f32.mrf.mxu1 }
 0x28a   : > { %v3483_v37 = vpop.f32.mrf.mxu0  ;;  %v2123_v50 = vadd.f32 %v2118_v35, %v2002_v48 }
 0x2a3   : > { %v2237_v38 = vpop.f32.mrf.mxu1 }
 0x2a4   : > { %v2358_v39 = vpop.f32.mrf.mxu0  ;;  %v2244_v49 = vadd.f32 %v2237_v38, %v2122_v47 }
 0x2a5   : > { %v3502_v40 = vpop.f32.mrf.mxu1 }
 0x2a6   : > { %v3522_v41 = vpop.f32.mrf.mxu0  ;;  %v2365_v51 = vadd.f32 %v2358_v39, %v2244_v49 }
 0x2a7   : > { %v2240_v42 = vpop.f32.mrf.mxu1 }
 0x2a8   : > { %v2361_v43 = vpop.f32.mrf.mxu0  ;;  %v2245_v52 = vadd.f32 %v2240_v42, %v2123_v50 }
 0x2a9   : > { %v3503_v44 = vpop.f32.mrf.mxu1 }
 0x2aa   : > { %v3523_v45 = vpop.f32.mrf.mxu0  ;;  %v2366_v58 = vadd.f32 %v2361_v43, %v2245_v52 }
 0x2c3   : > { %v2479_v53 = vpop.f32.mrf.mxu1 }
 0x2c4   : > { %v2486_v55 = vadd.f32 %v2479_v53, %v2365_v51 }
 0x2c5   : > { %v3542_v57 = vpop.f32.mrf.mxu1 }
 0x2c6   : > { %v2495_v59 = vmul.f32 %v3013_v54, %v2486_v55 }
 0x2c7   : > { %v2482_v61 = vpop.f32.mrf.mxu1 }
 0x2c8   : > { %v2504_v62 = vadd.f32 %v3014_v56, %v2495_v59  ;;  %v2487_v63 = vadd.f32 %v2482_v61, %v2366_v58 }
 0x2c9   : > { %v3543_v0 = vpop.f32.mrf.mxu1 }
 0x2ca   : > { %v2518_v2 = vadd.f32 %v3735_v60, %v2504_v62  ;;  %v2496_v3 = vmul.f32 %v3013_v54, %v2487_v63 }
 0x2cc   : > { %v2520_v5 = vmax.f32 %v2518_v2, 0.0  ;;  %v2505_v6 = vadd.f32 %v3014_v56, %v2496_v3 }
 0x2ce   : > { %2522 = vst [vmem:[%s278_s27] sm:$0xff] %v2520_v5  ;;  %v2519_v7 = vadd.f32 %v3736_v4, %v2505_v6 }
 0x2d0   : > { %v2521_v8 = vmax.f32 %v2519_v7, 0.0 }
 0x2d2   : > { %2523 = vst [vmem:[%s278_s27 + $0x8] sm:$0xff] %v2521_v8 }
 0x2d3 PF: > { %s17_s24 = sadd.s32 1, %s3743_s24  }
 0x2d4   : > { %p14_p4 = scmp.ge.s32.totalorder %s17_s24, 4  }
 0x2d6   :  { %16 = sbr.rel (!%p14_p4) target bundleno = 1 (0x1), region = 98 }

// kernel: resnet18_lp_forward.11
= control target key start
LH: loop header
LB: loop body
LE: loop exit
PB: predicated region body
PF: predicated region fallthrough
CT: control target
= control target key end

     0   :  { %s4401_s13 = smov 0   ;;  %s5386_s0 = inlined_call_operand.vmem [shape: f32[2,5,2,5,2,64], index: 0, kind: input, shape index: {}]   ;;  %s5387_s1 = inlined_call_operand.vmem [shape: bf16[9,64,128], index: 1, kind: input, shape index: {}]   ;;  %s5388_s2 = inlined_call_operand.vmem [shape: f32[1,128], index: 2, kind: input, shape index: {}]   ;;  %s5389_s3 = inlined_call_operand.vmem [shape: f32[1,128], index: 3, kind: input, shape index: {}]   ;;  %s5390_s4 = inlined_call_operand.vmem [shape: bf16[9,128,128], index: 4, kind: input, shape index: {}]   ;;  %s5391_s5 = inlined_call_operand.vmem [shape: f32[1,128], index: 5, kind: input, shape index: {}]   ;;  %s5392_s6 = inlined_call_operand.vmem [shape: f32[1,128], index: 6, kind: input, shape index: {}]   ;;  %s5393_s7 = inlined_call_operand.vmem [shape: bf16[64,128], index: 7, kind: input, shape index: {}]   ;;  %s5394_s8 = inlined_call_operand.vmem [shape: f32[1,128], index: 8, kind: input, shape index: {}]   ;;  %s5395_s9 = inlined_call_operand.vmem [shape: f32[1,128], index: 9, kind: input, shape index: {}]   ;;  %s5396_s10 = inlined_call_operand.vmem [shape: f32[2,16,128], index: 10, kind: output, shape index: {}]  }
   0x1 LB: > { %s3305_s14 = sadd.s32 4294967295, %s4342_s13   ;;  %p3309_p0 = scmp.ge.s32.totalorder %s4342_s13, 1  ;;  %s4342_s13 = sphi %s4401_s13, %s20_s13  }
   0x2   : > { %p312_p1 = scmp.lt.s32.totalorder %s4342_s13, 3 }
   0x4   : > { %p313_p2 = pnand %p3309_p0, %p312_p1 }
   0x5   : > { %p350_p3 = scmp.lt.s32.totalorder (!%p313_p2), %s3305_s14, 1 }
   0x6   : > { %316 = sbr.rel (%p313_p2) target bundleno = 711 (0x2c7), region = 60 }
   0xb   : > { %v4206_v0 = vld [vmem:[%s5387_s1 + $0x38] sm:$0xff]   ;;  %v4344_v1 = vmov 0.0   ;;  %v4208_v3 = vld [vmem:[%s5387_s1 + $0x30] sm:$0xff]   ;;  %vm4345_vm0 = vmmov 0   ;;  %s5398_s14 = smov (!%p350_p3, %s3305_s14), 1  ;;  %v4210_v5 = vld [vmem:[%s5387_s1 + $0x28] sm:$0xff]  }
   0xc   : > { %3895 = vmatprep.subr.bf16.mxu0 %v4344_v1  ;;  %1937 = vst [vmem:[#allocation2] sm:$0x3f] %v4344_v1  ;;  %1938 = vst [vmem:[#allocation2 + $0x8] sm:$0x3f] %v4344_v1  ;;  %3907 = vmatprep.subr.bf16.mxu1 %v4344_v1  ;;  %v4207_v2 = vld [vmem:[%s5387_s1 + $0x18] sm:$0xff]   ;;  %v4209_v4 = vld [vmem:[%s5387_s1 + $0x10] sm:$0xff]  }
   0xd   : > { %1939 = vst [vmem:[#allocation2 + $0x10] sm:$0x3f] %v4344_v1  ;;  %1940 = vst [vmem:[#allocation2 + $0x18] sm:$0x3f] %v4344_v1  ;;  %3896 = vmatpush3.bf16.msra.mxu0 %v4206_v0  ;;  %3903 = vmatprep.mubr.msk.bf16.mxu0 %vm4345_vm0, %v4344_v1  ;;  %s4195_s25 = smul.u32 100, %s5398_s14  ;;  %v4211_v6 = vld [vmem:[%s5387_s1 + $0x8] sm:$0xff]  }
   0xe   : > { %1941 = vst [vmem:[#allocation2 + $0x20] sm:$0x3f] %v4344_v1  ;;  %1942 = vst [vmem:[#allocation2 + $0x28] sm:$0x3f] %v4344_v1  ;;  %3908 = vmatpush3.bf16.msra.mxu1 %v4207_v2  ;;  %3897 = vmatprep.subr.bf16.mxu0 %v4344_v1  ;;  %v4212_v7 = vld [vmem:[%s5387_s1 + $0x20] sm:$0xff]   ;;  %vm475_vm1 = vcmask 1041409  }
   0xf   : > { %3909 = vmatprep.subr.bf16.mxu1 %v4344_v1  ;;  %3915 = vmatprep.mubr.msk.bf16.mxu1 %vm4345_vm0, %v4344_v1  ;;  %s4452_s12 = scalar_lea.vmem %s5386_s0, %s4195_s25  ;;  %v4213_v8 = vld [vmem:[%s5387_s1] sm:$0xff]   ;;  %vm478_vm2 = vcmask 1042434   ;;  %vm481_vm3 = vcmask 1043459   ;;  %vm484_vm4 = vcmask 1044484   ;;  %vm487_vm5 = vcmask 1045509   ;;  %s3763_s11 = sshll.u32 %s5398_s14, 4 }
  0x10   : > { %v401_v9 = vld [vmem:[%s4452_s12 + $0x1] sm:$0x1]  ;;  %v402_v10 = vld [vmem:[%s4452_s12 + $0x3] sm:$0x1]  ;;  %v403_v11 = vld [vmem:[%s4452_s12 + $0x5] sm:$0x1]  ;;  %s359_s17 = scalar_lea.vmem %s5396_s10, %s3763_s11 }
  0x11   : > { %3898 = vmatpush3.bf16.msra.mxu0 %v4208_v3  ;;  %v404_v12 = vld [vmem:[%s4452_s12 + $0x7] sm:$0x1]  ;;  %v405_v13 = vld [vmem:[%s4452_s12 + $0x15] sm:$0x1]  ;;  %v406_v14 = vld [vmem:[%s4452_s12 + $0x17] sm:$0x1]  ;;  %v417_v15 = vpack.c.bf16 %v401_v9, %v401_v9  ;;  %v418_v16 = vpack.c.bf16 %v402_v10, %v402_v10  ;;  %v419_v17 = vpack.c.bf16 %v403_v11, %v403_v11 }
  0x12   : > { %3910 = vmatpush3.bf16.msra.mxu1 %v4209_v4  ;;  %3899 = vmatprep.subr.bf16.mxu0 %v4344_v1  ;;  %v407_v18 = vld [vmem:[%s4452_s12 + $0x19] sm:$0x1]  ;;  %v408_v19 = vld [vmem:[%s4452_s12 + $0x1b] sm:$0x1]  ;;  %v409_v20 = vld [vmem:[%s4452_s12 + $0x29] sm:$0x1]  ;;  %v420_v21 = vpack.c.bf16 %v404_v12, %v404_v12  ;;  %v421_v22 = vpack.c.bf16 %v405_v13, %v405_v13  ;;  %v422_v23 = vpack.c.bf16 %v406_v14, %v406_v14 }
  0x13   : > { %3911 = vmatprep.subr.bf16.mxu1 %v4344_v1  ;;  %v410_v24 = vld [vmem:[%s4452_s12 + $0x2b] sm:$0x1]  ;;  %v411_v25 = vld [vmem:[%s4452_s12 + $0x2d] sm:$0x1]  ;;  %v412_v26 = vld [vmem:[%s4452_s12 + $0x2f] sm:$0x1]  ;;  %v423_v27 = vpack.c.bf16 %v407_v18, %v407_v18  ;;  %v424_v28 = vpack.c.bf16 %v408_v19, %v408_v19  ;;  %v425_v29 = vpack.c.bf16 %v409_v20, %v409_v20  ;;  %v458_v30 = vunpack.c.l.b16 %v417_v15 }
  0x14   : > { %v413_v31 = vld [vmem:[%s4452_s12 + $0x3d] sm:$0x1]  ;;  %v414_v32 = vld [vmem:[%s4452_s12 + $0x3f] sm:$0x1]  ;;  %v415_v33 = vld [vmem:[%s4452_s12 + $0x41] sm:$0x1]  ;;  %v426_v34 = vpack.c.bf16 %v410_v24, %v410_v24  ;;  %v427_v35 = vpack.c.bf16 %v411_v25, %v411_v25  ;;  %v428_v36 = vpack.c.bf16 %v412_v26, %v412_v26  ;;  %v459_v37 = vunpack.c.l.b16 %v418_v16 }
  0x15   : > { %3900 = vmatpush3.bf16.msra.mxu0 %v4210_v5  ;;  %v416_v38 = vld [vmem:[%s4452_s12 + $0x43] sm:$0x1]  ;;  %v429_v39 = vpack.c.bf16 %v413_v31, %v413_v31  ;;  %v430_v40 = vpack.c.bf16 %v414_v32, %v414_v32  ;;  %v431_v41 = vpack.c.bf16 %v415_v33, %v415_v33  ;;  %v460_v42 = vunpack.c.l.b16 %v419_v17  ;;  %v361_v59 = vld [vmem:[%s4452_s12] sm:$0x1]  ;;  %v362_v0 = vld [vmem:[%s4452_s12 + $0x2] sm:$0x1] }
  0x16   : > { %3912 = vmatpush3.bf16.msra.mxu1 %v4211_v6  ;;  %3901 = vmatprep.subr.bf16.mxu0 %v4344_v1  ;;  %vm490_vm6 = vcmask 1046534   ;;  %v432_v43 = vpack.c.bf16 %v416_v38, %v416_v38  ;;  %v461_v44 = vunpack.c.l.b16 %v420_v21  ;;  %v462_v45 = vunpack.c.l.b16 %v421_v22  ;;  %v363_v2 = vld [vmem:[%s4452_s12 + $0x4] sm:$0x1]  ;;  %v366_v13 = vld [vmem:[%s4452_s12 + $0x16] sm:$0x1] }
  0x17   : > { %3913 = vmatprep.subr.bf16.mxu1 %v4344_v1  ;;  %v463_v46 = vunpack.c.l.b16 %v422_v23  ;;  %vm493_vm7 = vcmask 1047559   ;;  %v464_v47 = vunpack.c.l.b16 %v423_v27  ;;  %v465_v48 = vunpack.c.l.b16 %v424_v28  ;;  %v367_v14 = vld [vmem:[%s4452_s12 + $0x18] sm:$0x1]  ;;  %v368_v19 = vld [vmem:[%s4452_s12 + $0x1a] sm:$0x1] }
  0x18   : > { %v466_v49 = vunpack.c.l.b16 %v425_v29  ;;  %v467_v50 = vunpack.c.l.b16 %v426_v34  ;;  %v468_v51 = vunpack.c.l.b16 %v427_v35  ;;  %v469_v52 = vunpack.c.l.b16 %v428_v36  ;;  %v369_v20 = vld [vmem:[%s4452_s12 + $0x28] sm:$0x1]  ;;  %v370_v21 = vld [vmem:[%s4452_s12 + $0x2a] sm:$0x1]  ;;  %v371_v24 = vld [vmem:[%s4452_s12 + $0x2c] sm:$0x1] }
  0x19   : > { %3902 = vmatpush3.bf16.msra.mxu0 %v4212_v7  ;;  %v470_v53 = vunpack.c.l.b16 %v429_v39  ;;  %v471_v54 = vunpack.c.l.b16 %v430_v40  ;;  %v472_v55 = vunpack.c.l.b16 %v431_v41  ;;  %v473_v56 = vunpack.c.l.b16 %v432_v43  ;;  %v364_v7 = vld [vmem:[%s4452_s12 + $0x6] sm:$0x1]  ;;  %v372_v25 = vld [vmem:[%s4452_s12 + $0x2e] sm:$0x1]  ;;  %v373_v26 = vld [vmem:[%s4452_s12 + $0x3c] sm:$0x1] }
  0x1a   : > { %3914 = vmatpush3.bf16.msra.mxu1 %v4213_v8  ;;  %3919 = vmatprep.subr.bf16.mxu0 %v4344_v1  ;;  %v474_v57 = vrot.slane %v459_v37, 7  ;;  %v477_v58 = vrot.slane %v460_v42, 6  ;;  %v480_v60 = vrot.slane %v461_v44, 5  ;;  %v483_v61 = vrot.slane %v462_v45, 4  ;;  %v365_v8 = vld [vmem:[%s4452_s12 + $0x14] sm:$0x1] }
  0x1b   : > { %3931 = vmatprep.subr.bf16.mxu1 %v4344_v1  ;;  %v486_v62 = vrot.slane %v463_v46, 3  ;;  %v489_v63 = vrot.slane %v464_v47, 2  ;;  %v492_v4 = vrot.slane %v465_v48, 1  ;;  %v495_v5 = vrot.slane %v467_v50, 7  ;;  %v375_v35 = vld [vmem:[%s4452_s12 + $0x40] sm:$0x1] }
  0x1c   : > { %v476_v3 = vsel %vm475_vm1, %v474_v57, %v458_v30  ;;  %v497_v6 = vrot.slane %v468_v51, 6  ;;  %v499_v10 = vrot.slane %v469_v52, 5  ;;  %v501_v11 = vrot.slane %v470_v53, 4  ;;  %v374_v30 = vld [vmem:[%s4452_s12 + $0x3e] sm:$0x1] }
  0x1d   : > { %v479_v9 = vsel %vm478_vm2, %v477_v58, %v476_v3  ;;  %v503_v12 = vrot.slane %v471_v54, 3  ;;  %v496_v16 = vsel %vm475_vm1, %v495_v5, %v466_v49  ;;  %v505_v17 = vrot.slane %v472_v55, 2  ;;  %v376_v40 = vld [vmem:[%s4452_s12 + $0x42] sm:$0x1]  ;;  %v4214_v51 = vld [vmem:[%s5387_s1 + $0x58] sm:$0xff]   ;;  %v4216_v5 = vld [vmem:[%s5387_s1 + $0x50] sm:$0xff]  }
  0x1e   : > { %v482_v15 = vsel %vm481_vm3, %v480_v60, %v479_v9  ;;  %v507_v18 = vrot.slane %v473_v56, 1  ;;  %v498_v23 = vsel %vm478_vm2, %v497_v6, %v496_v16  ;;  %vm534_vm8 = vcmask 523264   ;;  %v4526_v16 = vld [vmem:[%s4452_s12 + $0x6] sm:$0x1] }
  0x1f   : > { %v485_v22 = vsel %vm484_vm4, %v483_v61, %v482_v15  ;;  %v377_v27 = vpack.c.bf16 %v361_v59, %v361_v59  ;;  %v500_v29 = vsel %vm481_vm3, %v499_v10, %v498_v23  ;;  %v378_v31 = vpack.c.bf16 %v362_v0, %v362_v0  ;;  %v4520_v10 = vld [vmem:[%s4452_s12 + $0x2] sm:$0x1]  ;;  %v4523_v15 = vld [vmem:[%s4452_s12 + $0x4] sm:$0x1] }
  0x20   : > { %v488_v28 = vsel %vm487_vm5, %v486_v62, %v485_v22  ;;  %v379_v32 = vpack.c.bf16 %v363_v2, %v363_v2  ;;  %v502_v34 = vsel %vm484_vm4, %v501_v11, %v500_v29  ;;  %v380_v36 = vpack.c.bf16 %v364_v7, %v364_v7 }
  0x21   : > { %v491_v33 = vsel %vm490_vm6, %v489_v63, %v488_v28  ;;  %v381_v37 = vpack.c.bf16 %v365_v8, %v365_v8  ;;  %v504_v39 = vsel %vm487_vm5, %v503_v12, %v502_v34  ;;  %v382_v41 = vpack.c.bf16 %v366_v13, %v366_v13 }
  0x22   : > { %v494_v38 = vsel %vm493_vm7, %v492_v4, %v491_v33  ;;  %v383_v42 = vpack.c.bf16 %v367_v14, %v367_v14  ;;  %v506_v43 = vsel %vm490_vm6, %v505_v17, %v504_v39  ;;  %v384_v44 = vpack.c.bf16 %v368_v19, %v368_v19 }
  0x23   : > { %v385_v45 = vpack.c.bf16 %v369_v20, %v369_v20  ;;  %v386_v46 = vpack.c.bf16 %v370_v21, %v370_v21  ;;  %v508_v47 = vsel %vm493_vm7, %v507_v18, %v506_v43  ;;  %v387_v48 = vpack.c.bf16 %v371_v24, %v371_v24  ;;  %v4530_v21 = vld [vmem:[%s4452_s12 + $0x8] sm:$0x1] }
  0x24   : > { %v388_v49 = vpack.c.bf16 %v372_v25, %v372_v25  ;;  %v389_v50 = vpack.c.bf16 %v373_v26, %v373_v26  ;;  %v509_v52 = vpack.c.b16 %v508_v47, %v494_v38  ;;  %v390_v53 = vpack.c.bf16 %v374_v30, %v374_v30  ;;  %v4218_v26 = vld [vmem:[%s5387_s1 + $0x48] sm:$0xff]  }
  0x25   : > { %v391_v54 = vpack.c.bf16 %v375_v35, %v375_v35  ;;  %v392_v55 = vpack.c.bf16 %v376_v40, %v376_v40  ;;  %v595_v56 = vunpack.c.l.b16 %v377_v27  ;;  %v596_v57 = vunpack.c.l.b16 %v378_v31  ;;  %v3335_v31 = vld [vmem:[%s4452_s12 + $0x16] sm:$0x1]  ;;  %v3336_v35 = vld [vmem:[%s4452_s12 + $0x18] sm:$0x1]  ;;  %v4220_v40 = vld [vmem:[%s5387_s1 + $0x40] sm:$0xff]  }
  0x26   : > { %v597_v58 = vunpack.c.l.b16 %v379_v32  ;;  %v598_v59 = vunpack.c.l.b16 %v380_v36  ;;  %3904 = vmatmul.mubr.msk.bf16.vlgmr.msra.gmra.mxu0 %vm534_vm8, %v509_v52  ;;  %v599_v60 = vunpack.c.l.b16 %v381_v37  ;;  %v600_v61 = vunpack.c.l.b16 %v382_v41  ;;  %v3337_v36 = vld [vmem:[%s4452_s12 + $0x1a] sm:$0x1]  ;;  %v3338_v41 = vld [vmem:[%s4452_s12 + $0x1c] sm:$0x1]  ;;  %v3340_v47 = vld [vmem:[%s4452_s12 + $0x2c] sm:$0x1] }
  0x27   : > { %v601_v62 = vunpack.c.l.b16 %v383_v42  ;;  %v4511_v63 = vunpack.c.l.b16 %v384_v44  ;;  %v603_v0 = vunpack.c.l.b16 %v385_v45  ;;  %v604_v2 = vunpack.c.l.b16 %v386_v46  ;;  %3920 = vmatpush3.bf16.msra.mxu0 %v4214_v51  ;;  %3927 = vmatprep.mubr.msk.bf16.mxu0 %vm4345_vm0, %v4344_v1  ;;  %v3339_v42 = vld [vmem:[%s4452_s12 + $0x2a] sm:$0x1] }
  0x28   : > { %v605_v3 = vunpack.c.l.b16 %v387_v48  ;;  %v606_v4 = vunpack.c.l.b16 %v388_v49  ;;  %v607_v6 = vunpack.c.l.b16 %v389_v50  ;;  %v608_v7 = vunpack.c.l.b16 %v390_v53  ;;  %3921 = vmatprep.subr.bf16.mxu0 %v4344_v1  ;;  %v3341_v48 = vld [vmem:[%s4452_s12 + $0x2e] sm:$0x1]  ;;  %v3342_v49 = vld [vmem:[%s4452_s12 + $0x30] sm:$0x1] }
  0x29   : > { %v609_v8 = vunpack.c.l.b16 %v391_v54  ;;  %v610_v9 = vunpack.c.l.b16 %v392_v55  ;;  %v611_v11 = vrot.slane %v596_v57, 7  ;;  %v613_v12 = vrot.slane %v597_v58, 6  ;;  %v3343_v54 = vld [vmem:[%s4452_s12 + $0x3e] sm:$0x1]  ;;  %v3344_v55 = vld [vmem:[%s4452_s12 + $0x40] sm:$0x1] }
  0x2a   : > { %v615_v13 = vrot.slane %v598_v59, 5  ;;  %v617_v14 = vrot.slane %v599_v60, 4  ;;  %v619_v17 = vrot.slane %v600_v61, 3  ;;  %v621_v18 = vrot.slane %v601_v62, 2  ;;  %v3346_v61 = vld [vmem:[%s4452_s12 + $0x44] sm:$0x1] }
  0x2b   : > { %v623_v19 = vrot.slane %v4511_v63, 1  ;;  %v625_v20 = vrot.slane %v604_v2, 7  ;;  %v612_v22 = vsel %vm475_vm1, %v611_v11, %v595_v56  ;;  %v627_v23 = vrot.slane %v605_v3, 6  ;;  %3922 = vmatpush3.bf16.msra.mxu0 %v4216_v5  ;;  %v3345_v56 = vld [vmem:[%s4452_s12 + $0x42] sm:$0x1]  ;;  %v4215_v2 = vld [vmem:[%s5387_s1 + $0x78] sm:$0xff]  }
  0x2c   : > { %v629_v24 = vrot.slane %v606_v4, 5  ;;  %v631_v25 = vrot.slane %v607_v6, 4  ;;  %v614_v27 = vsel %vm478_vm2, %v613_v12, %v612_v22  ;;  %v633_v29 = vrot.slane %v608_v7, 3  ;;  %3923 = vmatprep.subr.bf16.mxu0 %v4344_v1 }
  0x2d   : > { %v626_v28 = vsel %vm475_vm1, %v625_v20, %v603_v0  ;;  %v635_v30 = vrot.slane %v609_v8, 2  ;;  %v616_v32 = vsel %vm481_vm3, %v615_v13, %v614_v27  ;;  %v637_v34 = vrot.slane %v610_v9, 1  ;;  %v4588_v27 = vld [vmem:[%s4452_s12 + $0xa] sm:$0x1] }
  0x2e   : > { %v628_v33 = vsel %vm478_vm2, %v627_v23, %v626_v28  ;;  %v725_v37 = vpack.c.bf16 %v4520_v10, %v4520_v10  ;;  %v618_v38 = vsel %vm484_vm4, %v617_v14, %v616_v32  ;;  %v726_v43 = vpack.c.bf16 %v4523_v15, %v4523_v15  ;;  %v4593_v32 = vld [vmem:[%s4452_s12 + $0xc] sm:$0x1] }
  0x2f   : > { %v630_v39 = vsel %vm481_vm3, %v629_v24, %v628_v33  ;;  %v727_v44 = vpack.c.bf16 %v4526_v16, %v4526_v16  ;;  %v620_v45 = vsel %vm487_vm5, %v619_v17, %v618_v38  ;;  %3924 = vmatpush3.bf16.msra.mxu0 %v4218_v26  ;;  %v728_v50 = vpack.c.bf16 %v4530_v21, %v4530_v21  ;;  %v4596_v33 = vld [vmem:[%s4452_s12 + $0xe] sm:$0x1] }
  0x30   : > { %v632_v46 = vsel %vm484_vm4, %v631_v25, %v630_v39  ;;  %v729_v51 = vpack.c.bf16 %v3335_v31, %v3335_v31  ;;  %v622_v52 = vsel %vm490_vm6, %v621_v18, %v620_v45  ;;  %3925 = vmatprep.subr.bf16.mxu0 %v4344_v1  ;;  %v730_v57 = vpack.c.bf16 %v3336_v35, %v3336_v35  ;;  %v4217_v18 = vld [vmem:[%s5387_s1 + $0x70] sm:$0xff]   ;;  %v4219_v38 = vld [vmem:[%s5387_s1 + $0x68] sm:$0xff]  }
  0x31   : > { %v634_v53 = vsel %vm487_vm5, %v633_v29, %v632_v46  ;;  %v731_v58 = vpack.c.bf16 %v3337_v36, %v3337_v36  ;;  %v624_v59 = vsel %vm493_vm7, %v623_v19, %v622_v52  ;;  %v732_v62 = vpack.c.bf16 %v3338_v41, %v3338_v41  ;;  %v3365_v52 = vld [vmem:[%s4452_s12 + $0x20] sm:$0x1] }
  0x32   : > { %v636_v60 = vsel %vm490_vm6, %v635_v30, %v634_v53  ;;  %v733_v63 = vpack.c.bf16 %v3339_v42, %v3339_v42  ;;  %v734_v3 = vpack.c.bf16 %v3340_v47, %v3340_v47  ;;  %v735_v4 = vpack.c.bf16 %v3341_v48, %v3341_v48  ;;  %v3364_v48 = vld [vmem:[%s4452_s12 + $0x1e] sm:$0x1]  ;;  %v3366_v53 = vld [vmem:[%s4452_s12 + $0x22] sm:$0x1] }
  0x33   : > { %v638_v0 = vsel %vm493_vm7, %v637_v34, %v636_v60  ;;  %v736_v5 = vpack.c.bf16 %v3342_v49, %v3342_v49  ;;  %3926 = vmatpush3.bf16.msra.mxu0 %v4220_v40  ;;  %v737_v7 = vpack.c.bf16 %v3343_v54, %v3343_v54  ;;  %v738_v8 = vpack.c.bf16 %v3344_v55, %v3344_v55  ;;  %v4221_v55 = vld [vmem:[%s5387_s1 + $0x60] sm:$0xff]  }
  0x34   : > { %v639_v6 = vpack.c.b16 %v638_v0, %v624_v59  ;;  %v739_v9 = vpack.c.bf16 %v3345_v56, %v3345_v56  ;;  %v740_v10 = vpack.c.bf16 %v3346_v61, %v3346_v61  ;;  %v766_v11 = vunpack.c.l.b16 %v725_v37  ;;  %3943 = vmatprep.subr.bf16.mxu0 %v4344_v1  ;;  %v3368_v59 = vld [vmem:[%s4452_s12 + $0x32] sm:$0x1]  ;;  %v3369_v0 = vld [vmem:[%s4452_s12 + $0x34] sm:$0x1] }
  0x35   : > { %v767_v12 = vunpack.c.l.b16 %v726_v43  ;;  %v768_v13 = vunpack.c.l.b16 %v727_v44  ;;  %v769_v14 = vunpack.c.l.b16 %v728_v50  ;;  %v770_v15 = vunpack.c.l.b16 %v729_v51  ;;  %v3363_v43 = vld [vmem:[%s4452_s12 + $0x10] sm:$0x1] }
  0x36   : > { %3916 = vmatmul.mubr.msk.bf16.vlgmr.msra.gmra.mxu1 %vm534_vm8, %v639_v6  ;;  %v771_v16 = vunpack.c.l.b16 %v730_v57  ;;  %v772_v17 = vunpack.c.l.b16 %v731_v58  ;;  %v4582_v19 = vunpack.c.l.b16 %v732_v62  ;;  %v774_v20 = vunpack.c.l.b16 %v733_v63  ;;  %v3367_v58 = vld [vmem:[%s4452_s12 + $0x24] sm:$0x1] }
  0x37   : > { %3932 = vmatpush3.bf16.msra.mxu1 %v4215_v2  ;;  %v775_v21 = vunpack.c.l.b16 %v734_v3  ;;  %v776_v22 = vunpack.c.l.b16 %v735_v4  ;;  %3939 = vmatprep.mubr.msk.bf16.mxu1 %vm4345_vm0, %v4344_v1  ;;  %v777_v23 = vunpack.c.l.b16 %v736_v5  ;;  %v778_v24 = vunpack.c.l.b16 %v737_v7  ;;  %v3370_v2 = vld [vmem:[%s4452_s12 + $0x36] sm:$0x1]  ;;  %v3371_v3 = vld [vmem:[%s4452_s12 + $0x38] sm:$0x1] }
  0x38   : > { %3933 = vmatprep.subr.bf16.mxu1 %v4344_v1  ;;  %v779_v25 = vunpack.c.l.b16 %v738_v8  ;;  %v780_v26 = vunpack.c.l.b16 %v739_v9  ;;  %v4590_v28 = vunpack.c.l.b16 %v740_v10  ;;  %v782_v29 = vrot.slane %v767_v12, 7  ;;  %v3372_v8 = vld [vmem:[%s4452_s12 + $0x46] sm:$0x1]  ;;  %v3373_v9 = vld [vmem:[%s4452_s12 + $0x48] sm:$0x1] }
  0x39   : > { %v784_v30 = vrot.slane %v768_v13, 6  ;;  %v786_v31 = vrot.slane %v769_v14, 5  ;;  %v788_v34 = vrot.slane %v770_v15, 4  ;;  %v790_v35 = vrot.slane %v771_v16, 3  ;;  %v3374_v10 = vld [vmem:[%s4452_s12 + $0x4a] sm:$0x1] }
  0x3a   : > { %v792_v36 = vrot.slane %v772_v17, 2  ;;  %v794_v37 = vrot.slane %v4582_v19, 1  ;;  %v783_v39 = vsel %vm475_vm1, %v782_v29, %v766_v11  ;;  %v796_v40 = vrot.slane %v775_v21, 7  ;;  %v3375_v15 = vld [vmem:[%s4452_s12 + $0x4c] sm:$0x1] }
  0x3b   : > { %3934 = vmatpush3.bf16.msra.mxu1 %v4217_v18  ;;  %v798_v41 = vrot.slane %v776_v22, 6  ;;  %v800_v42 = vrot.slane %v777_v23, 5  ;;  %v785_v44 = vsel %vm478_vm2, %v784_v30, %v783_v39  ;;  %v802_v45 = vrot.slane %v778_v24, 4  ;;  %v4222_v23 = vld [vmem:[%s5387_s1 + $0x98] sm:$0xff]  }
  0x3c   : > { %3935 = vmatprep.subr.bf16.mxu1 %v4344_v1  ;;  %v804_v46 = vrot.slane %v779_v25, 3  ;;  %v806_v47 = vrot.slane %v780_v26, 2  ;;  %v787_v49 = vsel %vm481_vm3, %v786_v31, %v785_v44  ;;  %v797_v50 = vsel %vm475_vm1, %v796_v40, %v774_v20 }
  0x3d   : > { %v808_v51 = vrot.slane %v4590_v28, 1  ;;  %v898_v54 = vpack.c.bf16 %v4588_v27, %v4588_v27  ;;  %v789_v56 = vsel %vm484_vm4, %v788_v34, %v787_v49  ;;  %v799_v57 = vsel %vm478_vm2, %v798_v41, %v797_v50  ;;  %v4660_v49 = vld [vmem:[%s4452_s12 + $0xd] sm:$0x1] }
  0x3e   : > { %v899_v60 = vpack.c.bf16 %v4593_v32, %v4593_v32  ;;  %v900_v61 = vpack.c.bf16 %v4596_v33, %v4596_v33  ;;  %v791_v62 = vsel %vm487_vm5, %v790_v35, %v789_v56  ;;  %v801_v63 = vsel %vm481_vm3, %v800_v42, %v799_v57 }
  0x3f   : > { %3936 = vmatpush3.bf16.msra.mxu1 %v4219_v38  ;;  %v901_v4 = vpack.c.bf16 %v3363_v43, %v3363_v43  ;;  %v902_v5 = vpack.c.bf16 %v3364_v48, %v3364_v48  ;;  %v793_v6 = vsel %vm490_vm6, %v792_v36, %v791_v62  ;;  %v803_v7 = vsel %vm484_vm4, %v802_v45, %v801_v63  ;;  %v4224_v43 = vld [vmem:[%s5387_s1 + $0x90] sm:$0xff]   ;;  %v4657_v48 = vld [vmem:[%s4452_s12 + $0xb] sm:$0x1] }
  0x40   : > { %3937 = vmatprep.subr.bf16.mxu1 %v4344_v1  ;;  %v903_v11 = vpack.c.bf16 %v3365_v52, %v3365_v52  ;;  %v904_v12 = vpack.c.bf16 %v3366_v53, %v3366_v53  ;;  %v795_v13 = vsel %vm493_vm7, %v794_v37, %v793_v6  ;;  %v805_v14 = vsel %vm487_vm5, %v804_v46, %v803_v7 }
  0x41   : > { %v905_v16 = vpack.c.bf16 %v3367_v58, %v3367_v58  ;;  %v906_v17 = vpack.c.bf16 %v3368_v59, %v3368_v59  ;;  %v807_v18 = vsel %vm490_vm6, %v806_v47, %v805_v14  ;;  %v907_v19 = vpack.c.bf16 %v3369_v0, %v3369_v0 }
  0x42   : > { %v908_v20 = vpack.c.bf16 %v3370_v2, %v3370_v2  ;;  %v909_v21 = vpack.c.bf16 %v3371_v3, %v3371_v3  ;;  %v809_v22 = vsel %vm493_vm7, %v808_v51, %v807_v18  ;;  %v910_v24 = vpack.c.bf16 %v3372_v8, %v3372_v8  ;;  %v4226_v3 = vld [vmem:[%s5387_s1 + $0x88] sm:$0xff]  }
  0x43   : > { %3938 = vmatpush3.bf16.msra.mxu1 %v4221_v55  ;;  %v911_v25 = vpack.c.bf16 %v3373_v9, %v3373_v9  ;;  %v912_v26 = vpack.c.bf16 %v3374_v10, %v3374_v10  ;;  %v810_v27 = vpack.c.b16 %v809_v22, %v795_v13  ;;  %v913_v28 = vpack.c.bf16 %v3375_v15, %v3375_v15  ;;  %v4666_v55 = vld [vmem:[%s4452_s12 + $0x11] sm:$0x1]  ;;  %v3397_v10 = vld [vmem:[%s4452_s12 + $0x33] sm:$0x1]  ;;  %v4228_v15 = vld [vmem:[%s5387_s1 + $0x80] sm:$0xff]  }
  0x44   : > { %v939_v29 = vunpack.c.l.b16 %v898_v54  ;;  %v940_v30 = vunpack.c.l.b16 %v899_v60  ;;  %3955 = vmatprep.subr.bf16.mxu1 %v4344_v1  ;;  %v941_v31 = vunpack.c.l.b16 %v900_v61  ;;  %v942_v32 = vunpack.c.l.b16 %v901_v4  ;;  %v4663_v54 = vld [vmem:[%s4452_s12 + $0xf] sm:$0x1]  ;;  %v3393_v60 = vld [vmem:[%s4452_s12 + $0x1f] sm:$0x1]  ;;  %v3394_v61 = vld [vmem:[%s4452_s12 + $0x21] sm:$0x1] }
  0x45   : > { %v943_v33 = vunpack.c.l.b16 %v902_v5  ;;  %v944_v34 = vunpack.c.l.b16 %v903_v11  ;;  %3928 = vmatmul.mubr.msk.bf16.vlgmr.msra.gmra.mxu0 %vm534_vm8, %v810_v27  ;;  %v945_v35 = vunpack.c.l.b16 %v904_v12  ;;  %v4646_v36 = vunpack.c.l.b16 %v905_v16  ;;  %v3395_v4 = vld [vmem:[%s4452_s12 + $0x23] sm:$0x1]  ;;  %v3396_v5 = vld [vmem:[%s4452_s12 + $0x25] sm:$0x1]  ;;  %v3398_v11 = vld [vmem:[%s4452_s12 + $0x35] sm:$0x1] }
  0x46   : > { %v947_v37 = vunpack.c.l.b16 %v906_v17  ;;  %v948_v38 = vunpack.c.l.b16 %v907_v19  ;;  %3944 = vmatpush3.bf16.msra.mxu0 %v4222_v23  ;;  %v949_v39 = vunpack.c.l.b16 %v908_v20  ;;  %v950_v40 = vunpack.c.l.b16 %v909_v21  ;;  %3951 = vmatprep.mubr.msk.bf16.mxu0 %vm4345_vm0, %v4344_v1  ;;  %v3399_v12 = vld [vmem:[%s4452_s12 + $0x37] sm:$0x1]  ;;  %v3400_v16 = vld [vmem:[%s4452_s12 + $0x39] sm:$0x1]  ;;  %v3401_v21 = vld [vmem:[%s4452_s12 + $0x47] sm:$0x1] }
  0x47   : > { %v951_v41 = vunpack.c.l.b16 %v910_v24  ;;  %v952_v42 = vunpack.c.l.b16 %v911_v25  ;;  %v953_v44 = vunpack.c.l.b16 %v912_v26  ;;  %v4653_v45 = vunpack.c.l.b16 %v913_v28  ;;  %3945 = vmatprep.subr.bf16.mxu0 %v4344_v1  ;;  %v3402_v26 = vld [vmem:[%s4452_s12 + $0x49] sm:$0x1] }
  0x48   : > { %v955_v46 = vrot.slane %v940_v30, 7  ;;  %v957_v47 = vrot.slane %v941_v31, 6  ;;  %v959_v50 = vrot.slane %v942_v32, 5  ;;  %v961_v51 = vrot.slane %v943_v33, 4  ;;  %v3403_v31 = vld [vmem:[%s4452_s12 + $0x4b] sm:$0x1] }
  0x49   : > { %v963_v52 = vrot.slane %v944_v34, 3  ;;  %v965_v53 = vrot.slane %v945_v35, 2  ;;  %v967_v57 = vrot.slane %v4646_v36, 1  ;;  %v969_v58 = vrot.slane %v948_v38, 7  ;;  %v3404_v32 = vld [vmem:[%s4452_s12 + $0x4d] sm:$0x1] }
  0x4a   : > { %v956_v56 = vsel %vm475_vm1, %v955_v46, %v939_v29  ;;  %v971_v59 = vrot.slane %v949_v39, 6  ;;  %v973_v63 = vrot.slane %v950_v40, 5  ;;  %v975_v0 = vrot.slane %v951_v41, 4  ;;  %3946 = vmatpush3.bf16.msra.mxu0 %v4224_v43  ;;  %v4223_v40 = vld [vmem:[%s5387_s1 + $0xb8] sm:$0xff]  }
  0x4b   : > { %v958_v62 = vsel %vm478_vm2, %v957_v47, %v956_v56  ;;  %v977_v2 = vrot.slane %v952_v42, 3  ;;  %v970_v7 = vsel %vm475_vm1, %v969_v58, %v947_v37  ;;  %v979_v8 = vrot.slane %v953_v44, 2  ;;  %3947 = vmatprep.subr.bf16.mxu0 %v4344_v1  ;;  %v4225_v56 = vld [vmem:[%s5387_s1 + $0xb0] sm:$0xff]  }
  0x4c   : > { %v960_v6 = vsel %vm481_vm3, %v959_v50, %v958_v62  ;;  %v981_v9 = vrot.slane %v4653_v45, 1  ;;  %v972_v14 = vsel %vm478_vm2, %v971_v59, %v970_v7  ;;  %v1070_v17 = vpack.c.bf16 %v4657_v48, %v4657_v48  ;;  %v4729_v7 = vld [vmem:[%s4452_s12 + $0xe] sm:$0x1] }
  0x4d   : > { %v962_v13 = vsel %vm484_vm4, %v961_v51, %v960_v6  ;;  %v1071_v18 = vpack.c.bf16 %v4660_v49, %v4660_v49  ;;  %v974_v20 = vsel %vm481_vm3, %v973_v63, %v972_v14  ;;  %v1072_v22 = vpack.c.bf16 %v4663_v54, %v4663_v54  ;;  %v3422_v14 = vld [vmem:[%s4452_s12 + $0x20] sm:$0x1] }
  0x4e   : > { %v964_v19 = vsel %vm487_vm5, %v963_v52, %v962_v13  ;;  %v1073_v23 = vpack.c.bf16 %v4666_v55, %v4666_v55  ;;  %v976_v25 = vsel %vm484_vm4, %v975_v0, %v974_v20  ;;  %3948 = vmatpush3.bf16.msra.mxu0 %v4226_v3  ;;  %v1074_v27 = vpack.c.bf16 %v3393_v60, %v3393_v60  ;;  %v3421_v13 = vld [vmem:[%s4452_s12 + $0x12] sm:$0x1]  ;;  %v3423_v20 = vld [vmem:[%s4452_s12 + $0x22] sm:$0x1] }
  0x4f   : > { %v966_v24 = vsel %vm490_vm6, %v965_v53, %v964_v19  ;;  %v1075_v28 = vpack.c.bf16 %v3394_v61, %v3394_v61  ;;  %v978_v30 = vsel %vm487_vm5, %v977_v2, %v976_v25  ;;  %3949 = vmatprep.subr.bf16.mxu0 %v4344_v1  ;;  %v1076_v33 = vpack.c.bf16 %v3395_v4, %v3395_v4  ;;  %v4726_v2 = vld [vmem:[%s4452_s12 + $0xc] sm:$0x1]  ;;  %v3424_v25 = vld [vmem:[%s4452_s12 + $0x24] sm:$0x1] }
  0x50   : > { %v968_v29 = vsel %vm493_vm7, %v967_v57, %v966_v24  ;;  %v1077_v34 = vpack.c.bf16 %v3396_v5, %v3396_v5  ;;  %v980_v35 = vsel %vm490_vm6, %v979_v8, %v978_v30  ;;  %v1078_v36 = vpack.c.bf16 %v3397_v10, %v3397_v10  ;;  %v4732_v8 = vld [vmem:[%s4452_s12 + $0x10] sm:$0x1] }
  0x51   : > { %v1079_v37 = vpack.c.bf16 %v3398_v11, %v3398_v11  ;;  %v1080_v38 = vpack.c.bf16 %v3399_v12, %v3399_v12  ;;  %v982_v39 = vsel %vm493_vm7, %v981_v9, %v980_v35  ;;  %v1081_v41 = vpack.c.bf16 %v3400_v16, %v3400_v16 }
  0x52   : > { %v1082_v42 = vpack.c.bf16 %v3401_v21, %v3401_v21  ;;  %v1083_v43 = vpack.c.bf16 %v3402_v26, %v3402_v26  ;;  %v983_v44 = vpack.c.b16 %v982_v39, %v968_v29  ;;  %3950 = vmatpush3.bf16.msra.mxu0 %v4228_v15  ;;  %v1084_v45 = vpack.c.bf16 %v3403_v31, %v3403_v31  ;;  %v4227_v15 = vld [vmem:[%s5387_s1 + $0xa8] sm:$0xff]   ;;  %v3425_v26 = vld [vmem:[%s4452_s12 + $0x26] sm:$0x1]  ;;  %v3426_v31 = vld [vmem:[%s4452_s12 + $0x34] sm:$0x1] }
  0x53   : > { %v1085_v46 = vpack.c.bf16 %v3404_v32, %v3404_v32  ;;  %v1111_v47 = vunpack.c.l.b16 %v1070_v17  ;;  %v1112_v48 = vunpack.c.l.b16 %v1071_v18  ;;  %v1113_v49 = vunpack.c.l.b16 %v1072_v22  ;;  %3967 = vmatprep.subr.bf16.mxu0 %v4344_v1  ;;  %v3427_v32 = vld [vmem:[%s4452_s12 + $0x36] sm:$0x1] }
  0x54   : > { %v1114_v50 = vunpack.c.l.b16 %v1073_v23  ;;  %v1115_v51 = vunpack.c.l.b16 %v1074_v27  ;;  %3940 = vmatmul.mubr.msk.bf16.vlgmr.msra.gmra.mxu1 %vm534_vm8, %v983_v44  ;;  %v1116_v52 = vunpack.c.l.b16 %v1075_v28  ;;  %v1117_v53 = vunpack.c.l.b16 %v1076_v33  ;;  %v4229_v27 = vld [vmem:[%s5387_s1 + $0xa0] sm:$0xff]   ;;  %v3432_v44 = vld [vmem:[%s4452_s12 + $0x4c] sm:$0x1] }
  0x55   : > { %v4717_v54 = vunpack.c.l.b16 %v1077_v34  ;;  %v1119_v55 = vunpack.c.l.b16 %v1078_v36  ;;  %3956 = vmatpush3.bf16.msra.mxu1 %v4223_v40  ;;  %v1120_v57 = vunpack.c.l.b16 %v1079_v37  ;;  %v1121_v58 = vunpack.c.l.b16 %v1080_v38  ;;  %3963 = vmatprep.mubr.msk.bf16.mxu1 %vm4345_vm0, %v4344_v1  ;;  %v3428_v36 = vld [vmem:[%s4452_s12 + $0x38] sm:$0x1]  ;;  %v3429_v37 = vld [vmem:[%s4452_s12 + $0x3a] sm:$0x1]  ;;  %v3430_v38 = vld [vmem:[%s4452_s12 + $0x48] sm:$0x1] }
  0x56   : > { %v1122_v59 = vunpack.c.l.b16 %v1081_v41  ;;  %v1123_v60 = vunpack.c.l.b16 %v1082_v42  ;;  %3957 = vmatprep.subr.bf16.mxu1 %v4344_v1  ;;  %v1124_v61 = vunpack.c.l.b16 %v1083_v43  ;;  %v1125_v62 = vunpack.c.l.b16 %v1084_v45  ;;  %v3431_v43 = vld [vmem:[%s4452_s12 + $0x4a] sm:$0x1]  ;;  %v3433_v45 = vld [vmem:[%s4452_s12 + $0x4e] sm:$0x1] }
  0x57   : > { %v1126_v63 = vunpack.c.l.b16 %v1085_v46  ;;  %v1127_v0 = vrot.slane %v1112_v48, 7  ;;  %v1129_v3 = vrot.slane %v1113_v49, 6  ;;  %v1131_v4 = vrot.slane %v1114_v50, 5 }
  0x58   : > { %v1133_v5 = vrot.slane %v1115_v51, 4  ;;  %v1135_v6 = vrot.slane %v1116_v52, 3  ;;  %v1137_v10 = vrot.slane %v1117_v53, 2  ;;  %v1139_v11 = vrot.slane %v4717_v54, 1 }
  0x59   : > { %v1128_v9 = vsel %vm475_vm1, %v1127_v0, %v1111_v47  ;;  %v1141_v12 = vrot.slane %v1120_v57, 7  ;;  %3958 = vmatpush3.bf16.msra.mxu1 %v4225_v56  ;;  %v1143_v17 = vrot.slane %v1121_v58, 6  ;;  %v1145_v18 = vrot.slane %v1122_v59, 5  ;;  %v4230_v57 = vld [vmem:[%s5387_s1 + $0xd8] sm:$0xff]  }
  0x5a   : > { %v1130_v16 = vsel %vm478_vm2, %v1129_v3, %v1128_v9  ;;  %v1147_v19 = vrot.slane %v1123_v60, 4  ;;  %3959 = vmatprep.subr.bf16.mxu1 %v4344_v1  ;;  %v1149_v23 = vrot.slane %v1124_v61, 3  ;;  %v1151_v24 = vrot.slane %v1125_v62, 2 }
  0x5b   : > { %v1132_v21 = vsel %vm481_vm3, %v1131_v4, %v1130_v16  ;;  %v1142_v22 = vsel %vm475_vm1, %v1141_v12, %v1119_v55  ;;  %v1153_v30 = vrot.slane %v1126_v63, 1  ;;  %v1243_v33 = vpack.c.bf16 %v4726_v2, %v4726_v2 }
  0x5c   : > { %v1134_v28 = vsel %vm484_vm4, %v1133_v5, %v1132_v21  ;;  %v1144_v29 = vsel %vm478_vm2, %v1143_v17, %v1142_v22  ;;  %v1244_v39 = vpack.c.bf16 %v4729_v7, %v4729_v7  ;;  %v1245_v40 = vpack.c.bf16 %v4732_v8, %v4732_v8 }
  0x5d   : > { %v1136_v34 = vsel %vm487_vm5, %v1135_v6, %v1134_v28  ;;  %v1146_v35 = vsel %vm481_vm3, %v1145_v18, %v1144_v29  ;;  %3960 = vmatpush3.bf16.msra.mxu1 %v4227_v15  ;;  %v1246_v46 = vpack.c.bf16 %v3421_v13, %v3421_v13  ;;  %v1247_v47 = vpack.c.bf16 %v3422_v14, %v3422_v14  ;;  %v4232_v14 = vld [vmem:[%s5387_s1 + $0xd0] sm:$0xff]  }
  0x5e   : > { %v1138_v41 = vsel %vm490_vm6, %v1137_v10, %v1136_v34  ;;  %v1148_v42 = vsel %vm484_vm4, %v1147_v19, %v1146_v35  ;;  %3961 = vmatprep.subr.bf16.mxu1 %v4344_v1  ;;  %v1248_v50 = vpack.c.bf16 %v3423_v20, %v3423_v20  ;;  %v1249_v51 = vpack.c.bf16 %v3424_v25, %v3424_v25  ;;  %v4794_v19 = vld [vmem:[%s4452_s12 + $0x14] sm:$0x1]  ;;  %v4800_v25 = vld [vmem:[%s4452_s12 + $0x18] sm:$0x1] }
  0x5f   : > { %v1140_v48 = vsel %vm493_vm7, %v1139_v11, %v1138_v41  ;;  %v1150_v49 = vsel %vm487_vm5, %v1149_v23, %v1148_v42  ;;  %v1250_v53 = vpack.c.bf16 %v3425_v26, %v3425_v26  ;;  %v1251_v54 = vpack.c.bf16 %v3426_v31, %v3426_v31  ;;  %v4808_v31 = vld [vmem:[%s4452_s12 + $0x28] sm:$0x1] }
  0x60   : > { %v1152_v52 = vsel %vm490_vm6, %v1151_v24, %v1150_v49  ;;  %v1252_v55 = vpack.c.bf16 %v3427_v32, %v3427_v32  ;;  %v1253_v58 = vpack.c.bf16 %v3428_v36, %v3428_v36  ;;  %v1254_v59 = vpack.c.bf16 %v3429_v37, %v3429_v37  ;;  %v4797_v24 = vld [vmem:[%s4452_s12 + $0x16] sm:$0x1]  ;;  %v4234_v36 = vld [vmem:[%s5387_s1 + $0xc8] sm:$0xff]   ;;  %v3456_v49 = vld [vmem:[%s4452_s12 + $0x3e] sm:$0x1] }
  0x61   : > { %v1154_v56 = vsel %vm493_vm7, %v1153_v30, %v1152_v52  ;;  %v1255_v60 = vpack.c.bf16 %v3430_v38, %v3430_v38  ;;  %3962 = vmatpush3.bf16.msra.mxu1 %v4229_v27  ;;  %v1256_v62 = vpack.c.bf16 %v3431_v43, %v3431_v43  ;;  %v1257_v63 = vpack.c.bf16 %v3432_v44, %v3432_v44  ;;  %v4805_v30 = vld [vmem:[%s4452_s12 + $0x1a] sm:$0x1]  ;;  %v3452_v37 = vld [vmem:[%s4452_s12 + $0x2a] sm:$0x1]  ;;  %v3453_v38 = vld [vmem:[%s4452_s12 + $0x2c] sm:$0x1] }
  0x62   : > { %v1155_v61 = vpack.c.b16 %v1154_v56, %v1140_v48  ;;  %v1258_v0 = vpack.c.bf16 %v3433_v45, %v3433_v45  ;;  %v1284_v2 = vunpack.c.l.b16 %v1243_v33  ;;  %v1285_v3 = vunpack.c.l.b16 %v1244_v39  ;;  %3979 = vmatprep.subr.bf16.mxu1 %v4344_v1  ;;  %v3454_v43 = vld [vmem:[%s4452_s12 + $0x2e] sm:$0x1]  ;;  %v3455_v44 = vld [vmem:[%s4452_s12 + $0x3c] sm:$0x1]  ;;  %v4236_v48 = vld [vmem:[%s5387_s1 + $0xc0] sm:$0xff]  }
  0x63   : > { %v1286_v4 = vunpack.c.l.b16 %v1245_v40  ;;  %v1287_v5 = vunpack.c.l.b16 %v1246_v46  ;;  %v1288_v6 = vunpack.c.l.b16 %v1247_v47  ;;  %v1289_v7 = vunpack.c.l.b16 %v1248_v50  ;;  %v3457_v50 = vld [vmem:[%s4452_s12 + $0x40] sm:$0x1]  ;;  %v3460_v56 = vld [vmem:[%s4452_s12 + $0x52] sm:$0x1] }
  0x64   : > { %3952 = vmatmul.mubr.msk.bf16.vlgmr.msra.gmra.mxu0 %vm534_vm8, %v1155_v61  ;;  %v4781_v8 = vunpack.c.l.b16 %v1249_v51  ;;  %v4783_v9 = vunpack.c.l.b16 %v1250_v53  ;;  %v1292_v10 = vunpack.c.l.b16 %v1251_v54  ;;  %v1293_v11 = vunpack.c.l.b16 %v1252_v55  ;;  %v3458_v51 = vld [vmem:[%s4452_s12 + $0x42] sm:$0x1]  ;;  %v3459_v55 = vld [vmem:[%s4452_s12 + $0x50] sm:$0x1] }
  0x65   : > { %3968 = vmatpush3.bf16.msra.mxu0 %v4230_v57  ;;  %v1294_v12 = vunpack.c.l.b16 %v1253_v58  ;;  %v1295_v13 = vunpack.c.l.b16 %v1254_v59  ;;  %3975 = vmatprep.mubr.msk.bf16.mxu0 %vm4345_vm0, %v4344_v1  ;;  %v1296_v15 = vunpack.c.l.b16 %v1255_v60  ;;  %v1297_v16 = vunpack.c.l.b16 %v1256_v62  ;;  %v3461_v57 = vld [vmem:[%s4452_s12 + $0x54] sm:$0x1]  ;;  %v3462_v62 = vld [vmem:[%s4452_s12 + $0x56] sm:$0x1] }
  0x66   : > { %v1298_v17 = vunpack.c.l.b16 %v1257_v63  ;;  %v4790_v18 = vunpack.c.l.b16 %v1258_v0  ;;  %3969 = vmatprep.subr.bf16.mxu0 %v4344_v1  ;;  %v1300_v20 = vrot.slane %v1285_v3, 7  ;;  %v1302_v21 = vrot.slane %v1286_v4, 6  ;;  %v4231_v4 = vld [vmem:[%s5387_s1 + $0xf8] sm:$0xff]  }
  0x67   : > { %v1304_v22 = vrot.slane %v1287_v5, 5  ;;  %v1306_v23 = vrot.slane %v1288_v6, 4  ;;  %v1308_v26 = vrot.slane %v1289_v7, 3  ;;  %v1310_v27 = vrot.slane %v4781_v8, 2 }
  0x68   : > { %v1312_v28 = vrot.slane %v4783_v9, 1  ;;  %v1314_v29 = vrot.slane %v1293_v11, 7  ;;  %v1301_v32 = vsel %vm475_vm1, %v1300_v20, %v1284_v2  ;;  %v1316_v33 = vrot.slane %v1294_v12, 6 }
  0x69   : > { %v1318_v34 = vrot.slane %v1295_v13, 5  ;;  %v1320_v35 = vrot.slane %v1296_v15, 4  ;;  %3970 = vmatpush3.bf16.msra.mxu0 %v4232_v14  ;;  %v1303_v39 = vsel %vm478_vm2, %v1302_v21, %v1301_v32  ;;  %v1322_v41 = vrot.slane %v1297_v16, 3 }
  0x6a   : > { %v1315_v40 = vsel %vm475_vm1, %v1314_v29, %v1292_v10  ;;  %v1324_v42 = vrot.slane %v1298_v17, 2  ;;  %3971 = vmatprep.subr.bf16.mxu0 %v4344_v1  ;;  %v1305_v45 = vsel %vm481_vm3, %v1304_v22, %v1303_v39  ;;  %v1326_v47 = vrot.slane %v4790_v18, 1 }
  0x6b   : > { %v1317_v46 = vsel %vm478_vm2, %v1316_v33, %v1315_v40  ;;  %v1416_v52 = vpack.c.bf16 %v4794_v19, %v4794_v19  ;;  %v1307_v53 = vsel %vm484_vm4, %v1306_v23, %v1305_v45  ;;  %v1417_v58 = vpack.c.bf16 %v4797_v24, %v4797_v24  ;;  %v4233_v19 = vld [vmem:[%s5387_s1 + $0xf0] sm:$0xff]  }
  0x6c   : > { %v1319_v54 = vsel %vm481_vm3, %v1318_v34, %v1317_v46  ;;  %v1418_v59 = vpack.c.bf16 %v4800_v25, %v4800_v25  ;;  %v1309_v60 = vsel %vm487_vm5, %v1308_v26, %v1307_v53  ;;  %v1419_v63 = vpack.c.bf16 %v4805_v30, %v4805_v30 }
  0x6d   : > { %v1321_v61 = vsel %vm484_vm4, %v1320_v35, %v1319_v54  ;;  %3972 = vmatpush3.bf16.msra.mxu0 %v4234_v36  ;;  %v1420_v0 = vpack.c.bf16 %v4808_v31, %v4808_v31  ;;  %v1311_v2 = vsel %vm490_vm6, %v1310_v27, %v1309_v60  ;;  %v1421_v5 = vpack.c.bf16 %v3452_v37, %v3452_v37  ;;  %v4870_v36 = vld [vmem:[%s4452_s12 + $0x15] sm:$0x1]  ;;  %v3481_v54 = vld [vmem:[%s4452_s12 + $0x2b] sm:$0x1]  ;;  %v3483_v60 = vld [vmem:[%s4452_s12 + $0x2f] sm:$0x1] }
  0x6e   : > { %v1323_v3 = vsel %vm487_vm5, %v1322_v41, %v1321_v61  ;;  %3973 = vmatprep.subr.bf16.mxu0 %v4344_v1  ;;  %v1422_v6 = vpack.c.bf16 %v3453_v38, %v3453_v38  ;;  %v1313_v7 = vsel %vm493_vm7, %v1312_v28, %v1311_v2  ;;  %v1423_v9 = vpack.c.bf16 %v3454_v43, %v3454_v43  ;;  %v4875_v41 = vld [vmem:[%s4452_s12 + $0x17] sm:$0x1]  ;;  %v3484_v61 = vld [vmem:[%s4452_s12 + $0x3d] sm:$0x1] }
  0x6f   : > { %v1325_v8 = vsel %vm490_vm6, %v1324_v42, %v1323_v3  ;;  %v1424_v10 = vpack.c.bf16 %v3455_v44, %v3455_v44  ;;  %v1425_v12 = vpack.c.bf16 %v3456_v49, %v3456_v49  ;;  %v1426_v13 = vpack.c.bf16 %v3457_v50, %v3457_v50  ;;  %v4878_v42 = vld [vmem:[%s4452_s12 + $0x19] sm:$0x1]  ;;  %v4235_v49 = vld [vmem:[%s5387_s1 + $0xe8] sm:$0xff]   ;;  %v3485_v3 = vld [vmem:[%s4452_s12 + $0x3f] sm:$0x1] }
  0x70   : > { %v1327_v11 = vsel %vm493_vm7, %v1326_v47, %v1325_v8  ;;  %v1427_v14 = vpack.c.bf16 %v3458_v51, %v3458_v51  ;;  %v1428_v16 = vpack.c.bf16 %v3459_v55, %v3459_v55  ;;  %v1429_v17 = vpack.c.bf16 %v3460_v56, %v3460_v56  ;;  %v4883_v47 = vld [vmem:[%s4452_s12 + $0x1b] sm:$0x1]  ;;  %v3482_v55 = vld [vmem:[%s4452_s12 + $0x2d] sm:$0x1] }
  0x71   : > { %v1328_v15 = vpack.c.b16 %v1327_v11, %v1313_v7  ;;  %3974 = vmatpush3.bf16.msra.mxu0 %v4236_v48  ;;  %v1430_v18 = vpack.c.bf16 %v3461_v57, %v3461_v57  ;;  %v1431_v20 = vpack.c.bf16 %v3462_v62, %v3462_v62  ;;  %v1457_v21 = vunpack.c.l.b16 %v1416_v52  ;;  %v4886_v48 = vld [vmem:[%s4452_s12 + $0x29] sm:$0x1]  ;;  %v4237_v62 = vld [vmem:[%s5387_s1 + $0xe0] sm:$0xff]   ;;  %v3490_v11 = vld [vmem:[%s4452_s12 + $0x55] sm:$0x1] }
  0x72   : > { %v1458_v22 = vunpack.c.l.b16 %v1417_v58  ;;  %v1459_v23 = vunpack.c.l.b16 %v1418_v59  ;;  %3991 = vmatprep.subr.bf16.mxu0 %v4344_v1  ;;  %v1460_v24 = vunpack.c.l.b16 %v1419_v63  ;;  %v1461_v25 = vunpack.c.l.b16 %v1420_v0 }
  0x73   : > { %3964 = vmatmul.mubr.msk.bf16.vlgmr.msra.gmra.mxu1 %vm534_vm8, %v1328_v15  ;;  %v1462_v26 = vunpack.c.l.b16 %v1421_v5  ;;  %v4862_v27 = vunpack.c.l.b16 %v1422_v6  ;;  %v4864_v28 = vunpack.c.l.b16 %v1423_v9  ;;  %v1465_v29 = vunpack.c.l.b16 %v1424_v10  ;;  %v3487_v5 = vld [vmem:[%s4452_s12 + $0x43] sm:$0x1]  ;;  %v3488_v9 = vld [vmem:[%s4452_s12 + $0x51] sm:$0x1]  ;;  %v3489_v10 = vld [vmem:[%s4452_s12 + $0x53] sm:$0x1] }
  0x74   : > { %3980 = vmatpush3.bf16.msra.mxu1 %v4231_v4  ;;  %v1466_v30 = vunpack.c.l.b16 %v1425_v12  ;;  %v1467_v31 = vunpack.c.l.b16 %v1426_v13  ;;  %3987 = vmatprep.mubr.msk.bf16.mxu1 %vm4345_vm0, %v4344_v1  ;;  %v1468_v32 = vunpack.c.l.b16 %v1427_v14  ;;  %v1469_v33 = vunpack.c.l.b16 %v1428_v16  ;;  %v3486_v4 = vld [vmem:[%s4452_s12 + $0x41] sm:$0x1]  ;;  %v3491_v16 = vld [vmem:[%s4452_s12 + $0x57] sm:$0x1] }
  0x75   : > { %3981 = vmatprep.subr.bf16.mxu1 %v4344_v1  ;;  %v1470_v34 = vunpack.c.l.b16 %v1429_v17  ;;  %v1471_v35 = vunpack.c.l.b16 %v1430_v18  ;;  %v4872_v37 = vunpack.c.l.b16 %v1431_v20  ;;  %v1473_v38 = vrot.slane %v1458_v22, 7 }
  0x76   : > { %v1475_v39 = vrot.slane %v1459_v23, 6  ;;  %v1477_v40 = vrot.slane %v1460_v24, 5  ;;  %v1479_v43 = vrot.slane %v1461_v25, 4  ;;  %v1481_v44 = vrot.slane %v1462_v26, 3  ;;  %v4238_v25 = vld [vmem:[%s5387_s1 + $0x118] sm:$0xff]  }
  0x77   : > { %v1483_v45 = vrot.slane %v4862_v27, 2  ;;  %v1485_v46 = vrot.slane %v4864_v28, 1  ;;  %v1474_v50 = vsel %vm475_vm1, %v1473_v38, %v1457_v21  ;;  %v1487_v51 = vrot.slane %v1466_v30, 7 }
  0x78   : > { %3982 = vmatpush3.bf16.msra.mxu1 %v4233_v19  ;;  %v1489_v52 = vrot.slane %v1467_v31, 6  ;;  %v1491_v53 = vrot.slane %v1468_v32, 5  ;;  %v1476_v56 = vsel %vm478_vm2, %v1475_v39, %v1474_v50  ;;  %v1493_v57 = vrot.slane %v1469_v33, 4 }
  0x79   : > { %3983 = vmatprep.subr.bf16.mxu1 %v4344_v1  ;;  %v1495_v58 = vrot.slane %v1470_v34, 3  ;;  %v1497_v59 = vrot.slane %v1471_v35, 2  ;;  %v1478_v63 = vsel %vm481_vm3, %v1477_v40, %v1476_v56  ;;  %v1488_v0 = vsel %vm475_vm1, %v1487_v51, %v1465_v29 }
  0x7a   : > { %v1499_v2 = vrot.slane %v4872_v37, 1  ;;  %v1588_v6 = vpack.c.bf16 %v4870_v36, %v4870_v36  ;;  %v1480_v7 = vsel %vm484_vm4, %v1479_v43, %v1478_v63  ;;  %v1490_v8 = vsel %vm478_vm2, %v1489_v52, %v1488_v0  ;;  %v3507_v63 = vld [vmem:[%s4452_s12 + $0x1a] sm:$0x1] }
  0x7b   : > { %v1589_v12 = vpack.c.bf16 %v4875_v41, %v4875_v41  ;;  %v1590_v13 = vpack.c.bf16 %v4878_v42, %v4878_v42  ;;  %v1482_v14 = vsel %vm487_vm5, %v1481_v44, %v1480_v7  ;;  %v1492_v15 = vsel %vm481_vm3, %v1491_v53, %v1490_v8  ;;  %v4239_v44 = vld [vmem:[%s5387_s1 + $0x110] sm:$0xff]  }
  0x7c   : > { %3984 = vmatpush3.bf16.msra.mxu1 %v4235_v49  ;;  %v1591_v17 = vpack.c.bf16 %v4883_v47, %v4883_v47  ;;  %v1592_v18 = vpack.c.bf16 %v4886_v48, %v4886_v48  ;;  %v1484_v19 = vsel %vm490_vm6, %v1483_v45, %v1482_v14  ;;  %v1494_v20 = vsel %vm484_vm4, %v1493_v57, %v1492_v15  ;;  %v4948_v57 = vld [vmem:[%s4452_s12 + $0x16] sm:$0x1] }
  0x7d   : > { %3985 = vmatprep.subr.bf16.mxu1 %v4344_v1  ;;  %v1593_v21 = vpack.c.bf16 %v3481_v54, %v3481_v54  ;;  %v1594_v22 = vpack.c.bf16 %v3482_v55, %v3482_v55  ;;  %v1486_v23 = vsel %vm493_vm7, %v1485_v46, %v1484_v19  ;;  %v1496_v24 = vsel %vm487_vm5, %v1495_v58, %v1494_v20  ;;  %v3513_v19 = vld [vmem:[%s4452_s12 + $0x3e] sm:$0x1]  ;;  %v3514_v20 = vld [vmem:[%s4452_s12 + $0x40] sm:$0x1] }
  0x7e   : > { %v1595_v26 = vpack.c.bf16 %v3483_v60, %v3483_v60  ;;  %v1596_v27 = vpack.c.bf16 %v3484_v61, %v3484_v61  ;;  %v1498_v28 = vsel %vm490_vm6, %v1497_v59, %v1496_v24  ;;  %v1597_v29 = vpack.c.bf16 %v3485_v3, %v3485_v3  ;;  %v3515_v24 = vld [vmem:[%s4452_s12 + $0x42] sm:$0x1] }
  0x7f   : > { %v1598_v30 = vpack.c.bf16 %v3486_v4, %v3486_v4  ;;  %v1599_v31 = vpack.c.bf16 %v3487_v5, %v3487_v5  ;;  %v1500_v32 = vsel %vm493_vm7, %v1499_v2, %v1498_v28  ;;  %v1600_v33 = vpack.c.bf16 %v3488_v9, %v3488_v9  ;;  %v3508_v5 = vld [vmem:[%s4452_s12 + $0x1c] sm:$0x1] }
  0x80   : > { %3986 = vmatpush3.bf16.msra.mxu1 %v4237_v62  ;;  %v1601_v34 = vpack.c.bf16 %v3489_v10, %v3489_v10  ;;  %v1602_v35 = vpack.c.bf16 %v3490_v11, %v3490_v11  ;;  %v1501_v36 = vpack.c.b16 %v1500_v32, %v1486_v23  ;;  %v1603_v37 = vpack.c.bf16 %v3491_v16, %v3491_v16  ;;  %v3506_v62 = vld [vmem:[%s4452_s12 + $0x18] sm:$0x1]  ;;  %v4240_v11 = vld [vmem:[%s5387_s1 + $0x108] sm:$0xff]   ;;  %v4241_v23 = vld [vmem:[%s5387_s1 + $0x100] sm:$0xff]  }
  0x81   : > { %v1629_v38 = vunpack.c.l.b16 %v1588_v6  ;;  %v1630_v39 = vunpack.c.l.b16 %v1589_v12  ;;  %4003 = vmatprep.subr.bf16.mxu1 %v4344_v1  ;;  %v1631_v40 = vunpack.c.l.b16 %v1590_v13  ;;  %v1632_v41 = vunpack.c.l.b16 %v1591_v17  ;;  %v3509_v6 = vld [vmem:[%s4452_s12 + $0x2a] sm:$0x1]  ;;  %v3510_v12 = vld [vmem:[%s4452_s12 + $0x2c] sm:$0x1]  ;;  %v3511_v13 = vld [vmem:[%s4452_s12 + $0x2e] sm:$0x1] }
  0x82   : > { %v1633_v42 = vunpack.c.l.b16 %v1592_v18  ;;  %v1634_v43 = vunpack.c.l.b16 %v1593_v21  ;;  %3976 = vmatmul.mubr.msk.bf16.vlgmr.msra.gmra.mxu0 %vm534_vm8, %v1501_v36  ;;  %v1635_v45 = vunpack.c.l.b16 %v1594_v22  ;;  %v4940_v46 = vunpack.c.l.b16 %v1595_v26  ;;  %v3512_v18 = vld [vmem:[%s4452_s12 + $0x30] sm:$0x1]  ;;  %v3517_v26 = vld [vmem:[%s4452_s12 + $0x52] sm:$0x1]  ;;  %v3520_v32 = vld [vmem:[%s4452_s12 + $0x58] sm:$0x1] }
  0x83   : > { %v1637_v47 = vunpack.c.l.b16 %v1596_v27  ;;  %v1638_v48 = vunpack.c.l.b16 %v1597_v29  ;;  %3992 = vmatpush3.bf16.msra.mxu0 %v4238_v25  ;;  %v1639_v49 = vunpack.c.l.b16 %v1598_v30  ;;  %v1640_v50 = vunpack.c.l.b16 %v1599_v31  ;;  %3999 = vmatprep.mubr.msk.bf16.mxu0 %vm4345_vm0, %v4344_v1  ;;  %v3516_v25 = vld [vmem:[%s4452_s12 + $0x44] sm:$0x1]  ;;  %v3518_v30 = vld [vmem:[%s4452_s12 + $0x54] sm:$0x1]  ;;  %v3519_v31 = vld [vmem:[%s4452_s12 + $0x56] sm:$0x1] }
  0x84   : > { %v1641_v51 = vunpack.c.l.b16 %v1600_v33  ;;  %v1642_v52 = vunpack.c.l.b16 %v1601_v34  ;;  %v1643_v53 = vunpack.c.l.b16 %v1602_v35  ;;  %v4944_v54 = vunpack.c.l.b16 %v1603_v37  ;;  %3993 = vmatprep.subr.bf16.mxu0 %v4344_v1 }
  0x85   : > { %v1645_v55 = vrot.slane %v1630_v39, 7  ;;  %v1647_v56 = vrot.slane %v1631_v40, 6  ;;  %v1649_v58 = vrot.slane %v1632_v41, 5  ;;  %v1651_v59 = vrot.slane %v1633_v42, 4 }
  0x86   : > { %v1653_v60 = vrot.slane %v1634_v43, 3  ;;  %v1655_v61 = vrot.slane %v1635_v45, 2  ;;  %v1657_v2 = vrot.slane %v4940_v46, 1  ;;  %v1659_v3 = vrot.slane %v1638_v48, 7 }
  0x87   : > { %v1646_v0 = vsel %vm475_vm1, %v1645_v55, %v1629_v38  ;;  %v1661_v4 = vrot.slane %v1639_v49, 6  ;;  %v1663_v8 = vrot.slane %v1640_v50, 5  ;;  %v1665_v9 = vrot.slane %v1641_v51, 4  ;;  %3994 = vmatpush3.bf16.msra.mxu0 %v4239_v44 }
  0x88   : > { %v1648_v7 = vsel %vm478_vm2, %v1647_v56, %v1646_v0  ;;  %v1667_v10 = vrot.slane %v1642_v52, 3  ;;  %v1660_v15 = vsel %vm475_vm1, %v1659_v3, %v1637_v47  ;;  %v1669_v16 = vrot.slane %v1643_v53, 2  ;;  %3995 = vmatprep.subr.bf16.mxu0 %v4344_v1 }
  0x89   : > { %v1650_v14 = vsel %vm481_vm3, %v1649_v58, %v1648_v7  ;;  %v1671_v17 = vrot.slane %v4944_v54, 1  ;;  %v1662_v22 = vsel %vm478_vm2, %v1661_v4, %v1660_v15  ;;  %v1761_v27 = vpack.c.bf16 %v4948_v57, %v4948_v57 }
  0x8a   : > { %v1652_v21 = vsel %vm484_vm4, %v1651_v59, %v1650_v14  ;;  %v1664_v29 = vsel %vm481_vm3, %v1663_v8, %v1662_v22  ;;  %v1762_v33 = vpack.c.bf16 %v3506_v62, %v3506_v62  ;;  %v1763_v34 = vpack.c.bf16 %v3507_v63, %v3507_v63 }
  0x8b   : > { %v1654_v28 = vsel %vm487_vm5, %v1653_v60, %v1652_v21  ;;  %v1666_v36 = vsel %vm484_vm4, %v1665_v9, %v1664_v29  ;;  %3996 = vmatpush3.bf16.msra.mxu0 %v4240_v11  ;;  %v1764_v37 = vpack.c.bf16 %v3508_v5, %v3508_v5  ;;  %v1765_v38 = vpack.c.bf16 %v3509_v6, %v3509_v6 }
  0x8c   : > { %v1656_v35 = vsel %vm490_vm6, %v1655_v61, %v1654_v28  ;;  %v1668_v40 = vsel %vm487_vm5, %v1667_v10, %v1666_v36  ;;  %3997 = vmatprep.subr.bf16.mxu0 %v4344_v1  ;;  %v1766_v41 = vpack.c.bf16 %v3510_v12, %v3510_v12  ;;  %v1767_v42 = vpack.c.bf16 %v3511_v13, %v3511_v13 }
  0x8d   : > { %v1658_v39 = vsel %vm493_vm7, %v1657_v2, %v1656_v35  ;;  %v1670_v43 = vsel %vm490_vm6, %v1669_v16, %v1668_v40  ;;  %v1768_v44 = vpack.c.bf16 %v3512_v18, %v3512_v18  ;;  %v1769_v45 = vpack.c.bf16 %v3513_v19, %v3513_v19  ;;  %v4245_v40 = vld [vmem:[%s5390_s4 + $0x30] sm:$0xff]  }
  0x8e   : > { %v1770_v46 = vpack.c.bf16 %v3514_v20, %v3514_v20  ;;  %v1672_v47 = vsel %vm493_vm7, %v1671_v17, %v1670_v43  ;;  %v1771_v48 = vpack.c.bf16 %v3515_v24, %v3515_v24  ;;  %v1772_v49 = vpack.c.bf16 %v3516_v25, %v3516_v25  ;;  %v4248_v43 = vld [vmem:[%s5390_s4 + $0x60] sm:$0xff]  }
  0x8f   : > { %v1773_v50 = vpack.c.bf16 %v3517_v26, %v3517_v26  ;;  %v1673_v51 = vpack.c.b16 %v1672_v47, %v1658_v39  ;;  %3998 = vmatpush3.bf16.msra.mxu0 %v4241_v23  ;;  %v1774_v52 = vpack.c.bf16 %v3518_v30, %v3518_v30  ;;  %v1775_v53 = vpack.c.bf16 %v3519_v31, %v3519_v31  ;;  %v4244_v39 = vld [vmem:[%s5390_s4 + $0x70] sm:$0xff]   ;;  %v4251_v47 = vld [vmem:[%s5390_s4 + $0x18] sm:$0xff]  }
  0x90   : > { %v1776_v54 = vpack.c.bf16 %v3520_v32, %v3520_v32  ;;  %v1803_v55 = vunpack.c.l.b16 %v1762_v33  ;;  %v1804_v56 = vunpack.c.l.b16 %v1763_v34  ;;  %v1805_v57 = vunpack.c.l.b16 %v1764_v37  ;;  %4023 = vmatprep.subr.bf16.mxu0 %v4344_v1  ;;  %v4242_v37 = vld [vmem:[%s5390_s4 + $0x78] sm:$0xff]  }
  0x91   : > { %v1806_v58 = vunpack.c.l.b16 %v1765_v38  ;;  %3988 = vmatmul.mubr.msk.bf16.vlgmr.msra.gmra.mxu1 %vm534_vm8, %v1673_v51  ;;  %v1802_v59 = vunpack.c.l.b16 %v1761_v27  ;;  %v1807_v60 = vunpack.c.l.b16 %v1766_v41  ;;  %v1808_v61 = vunpack.c.l.b16 %v1767_v42  ;;  %v4243_v38 = vld [vmem:[%s5390_s4 + $0x38] sm:$0xff]   ;;  %v4246_v41 = vld [vmem:[%s5390_s4 + $0x68] sm:$0xff]   ;;  %v4253_v51 = vld [vmem:[%s5390_s4 + $0x10] sm:$0xff]  }
  0x92   : > { %v1809_v62 = vunpack.c.l.b16 %v1768_v44  ;;  %v1811_v63 = vunpack.c.l.b16 %v1770_v46  ;;  %v1812_v0 = vunpack.c.l.b16 %v1771_v48  ;;  %v1813_v2 = vunpack.c.l.b16 %v1772_v49  ;;  %4019 = vmatprep.mubr.msk.bf16.mxu1 %vm4345_vm0, %v4344_v1  ;;  %4004 = vmatpush3.bf16.msra.mxu1 %v4242_v37  ;;  %v4247_v42 = vld [vmem:[%s5390_s4 + $0x28] sm:$0xff]   ;;  %v4249_v44 = vld [vmem:[%s5390_s4 + $0x20] sm:$0xff]   ;;  %v4250_v46 = vld [vmem:[%s5390_s4 + $0x58] sm:$0xff]  }
  0x93   : > { %v1814_v3 = vunpack.c.l.b16 %v1773_v50  ;;  %v1810_v4 = vunpack.c.l.b16 %v1769_v45  ;;  %v1815_v5 = vunpack.c.l.b16 %v1774_v52  ;;  %v1816_v6 = vunpack.c.l.b16 %v1775_v53  ;;  %4005 = vmatprep.subr.bf16.mxu1 %v4344_v1  ;;  %v4252_v50 = vld [vmem:[%s5390_s4 + $0x50] sm:$0xff]   ;;  %v4254_v53 = vld [vmem:[%s5390_s4 + $0x48] sm:$0xff]  }
  0x94   : > { %v1818_v7 = vrot.slane %v1803_v55, 7  ;;  %v1817_v8 = vunpack.c.l.b16 %v1776_v54  ;;  %v1820_v9 = vrot.slane %v1804_v56, 6  ;;  %v1822_v10 = vrot.slane %v1805_v57, 5  ;;  %v4255_v54 = vld [vmem:[%s5390_s4 + $0x8] sm:$0xff]   ;;  %v4256_v55 = vld [vmem:[%s5390_s4 + $0x40] sm:$0xff]  }
  0x95   : > { %v1824_v11 = vrot.slane %v1806_v58, 4  ;;  %v1826_v13 = vrot.slane %v1807_v60, 3  ;;  %v1828_v14 = vrot.slane %v1808_v61, 2  ;;  %v1832_v15 = vrot.slane %v1811_v63, 7  ;;  %v4257_v56 = vld [vmem:[%s5390_s4] sm:$0xff]  }
  0x96   : > { %v1819_v12 = vsel %vm475_vm1, %v1818_v7, %v1802_v59  ;;  %v1834_v17 = vrot.slane %v1812_v0, 6  ;;  %v1836_v18 = vrot.slane %v1813_v2, 5  ;;  %v1838_v19 = vrot.slane %v1814_v3, 4  ;;  %4006 = vmatpush3.bf16.msra.mxu1 %v4244_v39 }
  0x97   : > { %v1821_v16 = vsel %vm478_vm2, %v1820_v9, %v1819_v12  ;;  %v1830_v21 = vrot.slane %v1809_v62, 1  ;;  %v1833_v22 = vsel %vm475_vm1, %v1832_v15, %v1810_v4  ;;  %v1840_v23 = vrot.slane %v1815_v5, 3  ;;  %4007 = vmatprep.subr.bf16.mxu1 %v4344_v1 }
  0x98   : > { %v1823_v20 = vsel %vm481_vm3, %v1822_v10, %v1821_v16  ;;  %v1835_v25 = vsel %vm478_vm2, %v1834_v17, %v1833_v22  ;;  %v1842_v26 = vrot.slane %v1816_v6, 2  ;;  %v1844_v27 = vrot.slane %v1817_v8, 1 }
  0x99   : > { %v1825_v24 = vsel %vm484_vm4, %v1824_v11, %v1823_v20  ;;  %v1837_v29 = vsel %vm481_vm3, %v1836_v18, %v1835_v25 }
  0x9a   : > { %v1827_v28 = vsel %vm487_vm5, %v1826_v13, %v1825_v24  ;;  %v1839_v31 = vsel %vm484_vm4, %v1838_v19, %v1837_v29  ;;  %4008 = vmatpush3.bf16.msra.mxu1 %v4246_v41 }
  0x9b   : > { %v1829_v30 = vsel %vm490_vm6, %v1828_v14, %v1827_v28  ;;  %v1841_v33 = vsel %vm487_vm5, %v1840_v23, %v1839_v31  ;;  %4009 = vmatprep.subr.bf16.mxu1 %v4344_v1 }
  0x9c   : > { %v1831_v32 = vsel %vm493_vm7, %v1830_v21, %v1829_v30  ;;  %v1843_v34 = vsel %vm490_vm6, %v1842_v26, %v1841_v33 }
  0x9d   : > { %v1845_v35 = vsel %vm493_vm7, %v1844_v27, %v1843_v34 }
  0x9e   : > { %v1846_v36 = vpack.c.b16 %v1845_v35, %v1831_v32  ;;  %4010 = vmatpush3.bf16.msra.mxu1 %v4248_v43 }
  0x9f   : > { %4011 = vmatprep.subr.bf16.mxu1 %v4344_v1 }
  0xa0   : > { %4000 = vmatmul.mubr.msk.bf16.vlgmr.msra.gmra.mxu0 %vm534_vm8, %v1846_v36  ;;  %v3534_v36 = vld [vmem:[%s5388_s2] ss:$0 sm:$0xff] }
  0xa1   : > { %4039 = vmatprep.mubr.msk.bf16.mxu0 %vm4345_vm0, %v4344_v1  ;;  %4024 = vmatpush3.bf16.msra.mxu0 %v4243_v38  ;;  %v3535_v38 = vld [vmem:[%s5389_s3] ss:$0 sm:$0xff] }
  0xa2   : > { %4025 = vmatprep.subr.bf16.mxu0 %v4344_v1  ;;  %4012 = vmatpush3.bf16.msra.mxu1 %v4250_v46 }
  0xa3   : > { %4013 = vmatprep.subr.bf16.mxu1 %v4344_v1 }
  0xa5   : > { %4026 = vmatpush3.bf16.msra.mxu0 %v4245_v40 }
  0xa6   : > { %4027 = vmatprep.subr.bf16.mxu0 %v4344_v1  ;;  %4014 = vmatpush3.bf16.msra.mxu1 %v4252_v50 }
  0xa7   : > { %4015 = vmatprep.subr.bf16.mxu1 %v4344_v1 }
  0xa9   : > { %4028 = vmatpush3.bf16.msra.mxu0 %v4247_v42 }
  0xaa   : > { %4029 = vmatprep.subr.bf16.mxu0 %v4344_v1  ;;  %4016 = vmatpush3.bf16.msra.mxu1 %v4254_v53  ;;  %v4262_v53 = vld [vmem:[%s5390_s4 + $0xb8] sm:$0xff]  }
  0xab   : > { %4017 = vmatprep.subr.bf16.mxu1 %v4344_v1 }
  0xad   : > { %4030 = vmatpush3.bf16.msra.mxu0 %v4249_v44 }
  0xae   : > { %4031 = vmatprep.subr.bf16.mxu0 %v4344_v1  ;;  %4018 = vmatpush3.bf16.msra.mxu1 %v4256_v55 }
  0xaf   : > { %4043 = vmatprep.subr.bf16.mxu1 %v4344_v1 }
  0xb1   : > { %4032 = vmatpush3.bf16.msra.mxu0 %v4251_v47 }
  0xb2   : > { %4033 = vmatprep.subr.bf16.mxu0 %v4344_v1 }
  0xb5   : > { %4034 = vmatpush3.bf16.msra.mxu0 %v4253_v51 }
  0xb6   : > { %4035 = vmatprep.subr.bf16.mxu0 %v4344_v1 }
  0xb9   : > { %4036 = vmatpush3.bf16.msra.mxu0 %v4255_v54 }
  0xba   : > { %4037 = vmatprep.subr.bf16.mxu0 %v4344_v1 }
  0xbd   : > { %4038 = vmatpush3.bf16.msra.mxu0 %v4257_v56 }
  0xbe   : > { %4063 = vmatprep.subr.bf16.mxu0 %v4344_v1 }
  0xe6   : > { %v572_v45 = vpop.f32.mrf.mxu0 }
  0xe8   : > { %v3905_v48 = vpop.f32.mrf.mxu0 }
  0xea   : > { %v575_v49 = vpop.f32.mrf.mxu0 }
  0xec   : > { %v3906_v52 = vpop.f32.mrf.mxu0 }
  0xf6   : > { %v701_v57 = vpop.f32.mrf.mxu1 }
  0xf7   : > { %v702_v58 = vadd.f32 %v701_v57, %v572_v45 }
  0xf8   : > { %v3917_v59 = vpop.f32.mrf.mxu1 }
  0xfa   : > { %v704_v60 = vpop.f32.mrf.mxu1 }
  0xfb   : > { %v705_v61 = vadd.f32 %v704_v60, %v575_v49  ;;  %v4264_v60 = vld [vmem:[%s5390_s4 + $0xb0] sm:$0xff]  }
  0xfc   : > { %v3918_v62 = vpop.f32.mrf.mxu1 }
  0xfd   : > { %v4266_v62 = vld [vmem:[%s5390_s4 + $0xa8] sm:$0xff]  }
 0x105   : > { %v872_v63 = vpop.f32.mrf.mxu0 }
 0x106   : > { %v879_v0 = vadd.f32 %v872_v63, %v702_v58  ;;  %v4263_v58 = vld [vmem:[%s5390_s4 + $0xf8] sm:$0xff]   ;;  %v4267_v63 = vld [vmem:[%s5390_s4 + $0xe8] sm:$0xff]  }
 0x107   : > { %v3929_v2 = vpop.f32.mrf.mxu0 }
 0x108   : > { %v4269_v2 = vld [vmem:[%s5390_s4 + $0xe0] sm:$0xff]  }
 0x109   : > { %v875_v3 = vpop.f32.mrf.mxu0 }
 0x10a   : > { %v880_v4 = vadd.f32 %v875_v3, %v705_v61  ;;  %v4265_v61 = vld [vmem:[%s5390_s4 + $0xf0] sm:$0xff]   ;;  %v4270_v3 = vld [vmem:[%s5390_s4 + $0x98] sm:$0xff]  }
 0x10b   : > { %v3930_v5 = vpop.f32.mrf.mxu0 }
 0x10c   : > { %v4272_v5 = vld [vmem:[%s5390_s4 + $0x90] sm:$0xff]  }
 0x114   : > { %v1045_v6 = vpop.f32.mrf.mxu1 }
 0x115   : > { %v1052_v7 = vadd.f32 %v1045_v6, %v879_v0  ;;  %v4268_v0 = vld [vmem:[%s5390_s4 + $0xa0] sm:$0xff]   ;;  %v4273_v6 = vld [vmem:[%s5390_s4 + $0xd0] sm:$0xff]  }
 0x116   : > { %v3941_v8 = vpop.f32.mrf.mxu1 }
 0x117   : > { %v4275_v8 = vld [vmem:[%s5390_s4 + $0xc8] sm:$0xff]  }
 0x118   : > { %v1048_v9 = vpop.f32.mrf.mxu1 }
 0x119   : > { %v1053_v10 = vadd.f32 %v1048_v9, %v880_v4  ;;  %v4271_v4 = vld [vmem:[%s5390_s4 + $0xd8] sm:$0xff]   ;;  %v4276_v9 = vld [vmem:[%s5390_s4 + $0x80] sm:$0xff]  }
 0x11a   : > { %v3942_v11 = vpop.f32.mrf.mxu1 }
 0x124   : > { %v1217_v12 = vpop.f32.mrf.mxu0 }
 0x125   : > { %v1224_v26 = vadd.f32 %v1217_v12, %v1052_v7  ;;  %v4274_v7 = vld [vmem:[%s5390_s4 + $0x88] sm:$0xff]  }
 0x126   : > { %v3953_v13 = vpop.f32.mrf.mxu0 }
 0x128   : > { %v1220_v14 = vpop.f32.mrf.mxu0 }
 0x129   : > { %v1225_v30 = vadd.f32 %v1220_v14, %v1053_v10  ;;  %v4277_v10 = vld [vmem:[%s5390_s4 + $0xc0] sm:$0xff]  }
 0x12a   : > { %v3954_v15 = vpop.f32.mrf.mxu0 }
 0x12b   : > { %v4282_v15 = vld [vmem:[%s5390_s4 + $0x138] sm:$0xff]  }
 0x133   : > { %v1390_v16 = vpop.f32.mrf.mxu1 }
 0x134   : > { %v1397_v29 = vadd.f32 %v1390_v16, %v1224_v26  ;;  %v4291_v26 = vld [vmem:[%s5390_s4 + $0x158] sm:$0xff]  }
 0x135   : > { %v3965_v17 = vpop.f32.mrf.mxu1 }
 0x136   : > { %v4283_v17 = vld [vmem:[%s5390_s4 + $0x178] sm:$0xff]  }
 0x137   : > { %v1393_v18 = vpop.f32.mrf.mxu1 }
 0x138   : > { %v1398_v32 = vadd.f32 %v1393_v18, %v1225_v30  ;;  %v4295_v30 = vld [vmem:[%s5390_s4 + $0x148] sm:$0xff]  }
 0x139   : > { %v3966_v19 = vpop.f32.mrf.mxu1 }
 0x13a   : > { %v4284_v19 = vld [vmem:[%s5390_s4 + $0x130] sm:$0xff]  }
 0x142   : > { %v1563_v20 = vpop.f32.mrf.mxu0 }
 0x143   : > { %v1570_v31 = vadd.f32 %v1563_v20, %v1397_v29  ;;  %v4285_v20 = vld [vmem:[%s5390_s4 + $0x170] sm:$0xff]   ;;  %v4294_v29 = vld [vmem:[%s5390_s4 + $0x108] sm:$0xff]  }
 0x144   : > { %v3977_v21 = vpop.f32.mrf.mxu0 }
 0x145   : > { %v4286_v21 = vld [vmem:[%s5390_s4 + $0x128] sm:$0xff]  }
 0x146   : > { %v1566_v22 = vpop.f32.mrf.mxu0 }
 0x147   : > { %v1571_v34 = vadd.f32 %v1566_v22, %v1398_v32  ;;  %v4287_v22 = vld [vmem:[%s5390_s4 + $0x168] sm:$0xff]   ;;  %v4297_v32 = vld [vmem:[%s5390_s4 + $0x140] sm:$0xff]  }
 0x148   : > { %v3978_v23 = vpop.f32.mrf.mxu0 }
 0x149   : > { %v4288_v23 = vld [vmem:[%s5390_s4 + $0x120] sm:$0xff]  }
 0x151   : > { %v1735_v24 = vpop.f32.mrf.mxu1 }
 0x152   : > { %v1742_v33 = vadd.f32 %v1735_v24, %v1570_v31  ;;  %v4289_v24 = vld [vmem:[%s5390_s4 + $0x160] sm:$0xff]  }
 0x153   : > { %v3989_v25 = vpop.f32.mrf.mxu1  ;;  %v4296_v31 = vld [vmem:[%s5390_s4 + $0x100] sm:$0xff]  }
 0x154   : > { %v4290_v25 = vld [vmem:[%s5390_s4 + $0x118] sm:$0xff]  }
 0x155   : > { %v1738_v27 = vpop.f32.mrf.mxu1 }
 0x156   : > { %v1743_v40 = vadd.f32 %v1738_v27, %v1571_v34  ;;  %v4292_v27 = vld [vmem:[%s5390_s4 + $0x110] sm:$0xff]  }
 0x157   : > { %v3990_v28 = vpop.f32.mrf.mxu1 }
 0x158   : > { %v4293_v28 = vld [vmem:[%s5390_s4 + $0x150] sm:$0xff]  }
 0x160   : > { %v1908_v35 = vpop.f32.mrf.mxu0 }
 0x161   : > { %v1915_v37 = vadd.f32 %v1908_v35, %v1742_v33 }
 0x162   : > { %v4001_v39 = vpop.f32.mrf.mxu0 }
 0x163   : > { %v1924_v41 = vmul.f32 %v3534_v36, %v1915_v37  ;;  %v4302_v37 = vld [vmem:[%s5390_s4 + $0x1b8] sm:$0xff]  }
 0x164   : > { %v1911_v42 = vpop.f32.mrf.mxu0  ;;  %v4303_v39 = vld [vmem:[%s5390_s4 + $0x1f8] sm:$0xff]  }
 0x165   : > { %v1933_v43 = vadd.f32 %v3535_v38, %v1924_v41  ;;  %v1916_v44 = vadd.f32 %v1911_v42, %v1743_v40  ;;  %v4304_v41 = vld [vmem:[%s5390_s4 + $0x1b0] sm:$0xff]  }
 0x166   : > { %v4002_v45 = vpop.f32.mrf.mxu0  ;;  %v4305_v42 = vld [vmem:[%s5390_s4 + $0x1f0] sm:$0xff]  }
 0x167   : > { %v1935_v46 = vmax.f32 %v1933_v43, 0.0  ;;  %v1925_v47 = vmul.f32 %v3534_v36, %v1916_v44  ;;  %v4306_v43 = vld [vmem:[%s5390_s4 + $0x1a8] sm:$0xff]   ;;  %v4308_v45 = vld [vmem:[%s5390_s4 + $0x1a0] sm:$0xff]  }
 0x168   : > { %v4307_v44 = vld [vmem:[%s5390_s4 + $0x1e8] sm:$0xff]  }
 0x169   : > { %v1945_v48 = vcombine.high %v1935_v46, %v1935_v46  ;;  %1950 = vst [vmem:[#allocation2 + $0x9] sm:$0xf] %v1935_v46  ;;  %v1934_v49 = vadd.f32 %v3535_v38, %v1925_v47  ;;  %v3739_v46 = vld [vmem:[%s4452_s12 + $0xd] sm:$0x1]  ;;  %v3747_v47 = vld [vmem:[%s4452_s12 + $0x35] sm:$0x1] }
 0x16b   : > { %1951 = vst [vmem:[#allocation2 + $0x11] sm:$0xf] %v1945_v48  ;;  %v1936_v50 = vmax.f32 %v1934_v49, 0.0  ;;  %v4309_v48 = vld [vmem:[%s5390_s4 + $0x1e0] sm:$0xff]   ;;  %v3740_v49 = vld [vmem:[%s4452_s12 + $0xf] sm:$0x1] }
 0x16d   : > { %v1946_v51 = vcombine.high %v1936_v50, %v1936_v50  ;;  %1952 = vst [vmem:[#allocation2 + $0x19] sm:$0xf] %v1936_v50  ;;  %v3748_v50 = vld [vmem:[%s4452_s12 + $0x37] sm:$0x1] }
 0x16f   : > { %1953 = vst [vmem:[#allocation2 + $0x21] sm:$0xf] %v1946_v51  ;;  %v3074_v51 = vpack.c.bf16 %v3739_v46, %v3739_v46 }
 0x170   : > { %v4258_v52 = vld [vmem:[#allocation2 + $0x1] ss:$8 sps:$4 sm:$0xff]  }
 0x171   : > { %v4260_v55 = vld [vmem:[#allocation2] ss:$8 sps:$4 sm:$0xff]  }
 0x172   : > { %v4278_v13 = vld [vmem:[#allocation2 + $0x2] ss:$8 sps:$4 sm:$0xff]  }
 0x173   : > { %v4280_v14 = vld [vmem:[#allocation2 + $0x8] ss:$8 sps:$4 sm:$0xff]  }
 0x174   : > { %v4259_v54 = vld [vmem:[#allocation2 + $0x11] ss:$8 sps:$4 sm:$0xff]  }
 0x175   : > { %v4261_v56 = vld [vmem:[#allocation2 + $0x10] ss:$8 sps:$4 sm:$0xff]   ;;  %v1995_v57 = vpack.c.bf16 %v4259_v54, %v4258_v52  ;;  %v3082_v52 = vpack.c.bf16 %v3747_v47, %v3747_v47  ;;  %v3738_v54 = vld [vmem:[%s4452_s12 + $0xb] sm:$0x1] }
 0x176   : > { %v1966_v59 = vpack.c.bf16 %v4261_v56, %v4260_v55  ;;  %v4279_v11 = vld [vmem:[#allocation2 + $0x12] ss:$8 sps:$4 sm:$0xff]  }
 0x177   : > { %4020 = vmatmul.mubr.bf16.vlgmr.msra.gmra.mxu1 %v1995_v57  ;;  %v4281_v12 = vld [vmem:[#allocation2 + $0x18] ss:$8 sps:$4 sm:$0xff]   ;;  %v2203_v16 = vpack.c.bf16 %v4279_v11, %v4278_v13  ;;  %v4298_v35 = vld [vmem:[#allocation2 + $0x9] ss:$8 sps:$4 sm:$0xff]  }
 0x178   : > { %4040 = vmatmul.mubr.bf16.vlgmr.msra.gmra.mxu0 %v1966_v59  ;;  %4044 = vmatpush3.bf16.msra.mxu1 %v4262_v53  ;;  %v2324_v18 = vpack.c.bf16 %v4281_v12, %v4280_v14  ;;  %v4299_v33 = vld [vmem:[#allocation2 + $0x19] ss:$8 sps:$4 sm:$0xff]   ;;  %v4300_v36 = vld [vmem:[#allocation2 + $0xa] ss:$8 sps:$4 sm:$0xff]   ;;  %v3741_v57 = vld [vmem:[%s4452_s12 + $0x11] sm:$0x1]  ;;  %v3075_v59 = vpack.c.bf16 %v3740_v49, %v3740_v49 }
 0x179   : > { %4064 = vmatpush3.bf16.msra.mxu0 %v4263_v58  ;;  %4045 = vmatprep.subr.bf16.mxu1 %v4344_v1  ;;  %v4301_v34 = vld [vmem:[#allocation2 + $0x1a] ss:$8 sps:$4 sm:$0xff]   ;;  %v2445_v38 = vpack.c.bf16 %v4299_v33, %v4298_v35  ;;  %v3746_v55 = vld [vmem:[%s4452_s12 + $0x33] sm:$0x1]  ;;  %v3749_v58 = vld [vmem:[%s4452_s12 + $0x39] sm:$0x1] }
 0x17a   : > { %4065 = vmatprep.subr.bf16.mxu0 %v4344_v1  ;;  %4059 = vmatprep.mubr.msk.bf16.mxu1 %vm4345_vm0, %v4344_v1  ;;  %v2566_v40 = vpack.c.bf16 %v4301_v34, %v4300_v36  ;;  %v4310_v53 = vld [vmem:[%s5390_s4 + $0x198] sm:$0xff]   ;;  %v4314_v14 = vld [vmem:[%s5390_s4 + $0x188] sm:$0xff]   ;;  %v4317_v34 = vld [vmem:[%s5390_s4 + $0x1c0] sm:$0xff]  }
 0x17b   : > { %4079 = vmatprep.mubr.msk.bf16.mxu0 %vm4345_vm0, %v4344_v1  ;;  %v4311_v56 = vld [vmem:[%s5390_s4 + $0x1d8] sm:$0xff]   ;;  %v3745_v35 = vld [vmem:[%s4452_s12 + $0x25] sm:$0x1] }
 0x17c   : > { %4046 = vmatpush3.bf16.msra.mxu1 %v4264_v60  ;;  %v3083_v60 = vpack.c.bf16 %v3748_v50, %v3748_v50  ;;  %v4322_v49 = vld [vmem:[%s5390_s4 + $0x238] sm:$0xff]   ;;  %v3080_v50 = vpack.c.bf16 %v3745_v35, %v3745_v35 }
 0x17d   : > { %4066 = vmatpush3.bf16.msra.mxu0 %v4265_v61  ;;  %4047 = vmatprep.subr.bf16.mxu1 %v4344_v1  ;;  %v3073_v61 = vpack.c.bf16 %v3738_v54, %v3738_v54 }
 0x17e   : > { %4067 = vmatprep.subr.bf16.mxu0 %v4344_v1 }
 0x180   : > { %4048 = vmatpush3.bf16.msra.mxu1 %v4266_v62  ;;  %v3081_v62 = vpack.c.bf16 %v3746_v55, %v3746_v55 }
 0x181   : > { %4068 = vmatpush3.bf16.msra.mxu0 %v4267_v63  ;;  %4049 = vmatprep.subr.bf16.mxu1 %v4344_v1  ;;  %v3114_v63 = vunpack.c.l.b16 %v3074_v51 }
 0x182   : > { %4069 = vmatprep.subr.bf16.mxu0 %v4344_v1  ;;  %v3121_v11 = vunpack.c.l.b16 %v3081_v62  ;;  %v4323_v62 = vld [vmem:[%s5390_s4 + $0x230] sm:$0xff]  }
 0x183   : > { %v3129_v12 = vrot.slane %v3114_v63, 7 }
 0x184   : > { %4050 = vmatpush3.bf16.msra.mxu1 %v4268_v0  ;;  %v3122_v0 = vunpack.c.l.b16 %v3082_v52 }
 0x185   : > { %4070 = vmatpush3.bf16.msra.mxu0 %v4269_v2  ;;  %4051 = vmatprep.subr.bf16.mxu1 %v4344_v1  ;;  %v4312_v2 = vld [vmem:[%s5390_s4 + $0x190] sm:$0xff]  }
 0x186   : > { %4071 = vmatprep.subr.bf16.mxu0 %v4344_v1  ;;  %v3143_v13 = vrot.slane %v3122_v0, 7 }
 0x188   : > { %4052 = vmatpush3.bf16.msra.mxu1 %v4270_v3  ;;  %v4313_v3 = vld [vmem:[%s5390_s4 + $0x1d0] sm:$0xff]  }
 0x189   : > { %4072 = vmatpush3.bf16.msra.mxu0 %v4271_v4  ;;  %4053 = vmatprep.subr.bf16.mxu1 %v4344_v1  ;;  %v3742_v4 = vld [vmem:[%s4452_s12 + $0x1f] sm:$0x1] }
 0x18a   : > { %4073 = vmatprep.subr.bf16.mxu0 %v4344_v1 }
 0x18c   : > { %4054 = vmatpush3.bf16.msra.mxu1 %v4272_v5  ;;  %v3750_v5 = vld [vmem:[%s4452_s12 + $0x47] sm:$0x1] }
 0x18d   : > { %4074 = vmatpush3.bf16.msra.mxu0 %v4273_v6  ;;  %4055 = vmatprep.subr.bf16.mxu1 %v4344_v1  ;;  %v3076_v6 = vpack.c.bf16 %v3741_v57, %v3741_v57 }
 0x18e   : > { %4075 = vmatprep.subr.bf16.mxu0 %v4344_v1 }
 0x190   : > { %4056 = vmatpush3.bf16.msra.mxu1 %v4274_v7  ;;  %v3084_v7 = vpack.c.bf16 %v3749_v58, %v3749_v58 }
 0x191   : > { %4076 = vmatpush3.bf16.msra.mxu0 %v4275_v8  ;;  %4057 = vmatprep.subr.bf16.mxu1 %v4344_v1  ;;  %v3115_v8 = vunpack.c.l.b16 %v3075_v59 }
 0x192   : > { %4077 = vmatprep.subr.bf16.mxu0 %v4344_v1 }
 0x194   : > { %4058 = vmatpush3.bf16.msra.mxu1 %v4276_v9  ;;  %v3123_v9 = vunpack.c.l.b16 %v3083_v60 }
 0x195   : > { %4078 = vmatpush3.bf16.msra.mxu0 %v4277_v10  ;;  %4083 = vmatprep.subr.bf16.mxu1 %v4344_v1  ;;  %v3113_v10 = vunpack.c.l.b16 %v3073_v61 }
 0x196   : > { %4103 = vmatprep.subr.bf16.mxu0 %v4344_v1 }
 0x197   : > { %4060 = vmatmul.mubr.bf16.vlgmr.msra.gmra.mxu1 %v2203_v16  ;;  %v3751_v16 = vld [vmem:[%s4452_s12 + $0x49] sm:$0x1] }
 0x198   : > { %4080 = vmatmul.mubr.bf16.vlgmr.msra.gmra.mxu0 %v2324_v18  ;;  %4084 = vmatpush3.bf16.msra.mxu1 %v4282_v15  ;;  %v3743_v15 = vld [vmem:[%s4452_s12 + $0x21] sm:$0x1]  ;;  %v3085_v18 = vpack.c.bf16 %v3750_v5, %v3750_v5 }
 0x199   : > { %4104 = vmatpush3.bf16.msra.mxu0 %v4283_v17  ;;  %4085 = vmatprep.subr.bf16.mxu1 %v4344_v1  ;;  %v3077_v17 = vpack.c.bf16 %v3742_v4, %v3742_v4 }
 0x19a   : > { %4105 = vmatprep.subr.bf16.mxu0 %v4344_v1  ;;  %4099 = vmatprep.mubr.msk.bf16.mxu1 %vm4345_vm0, %v4344_v1  ;;  %v3125_v33 = vunpack.c.l.b16 %v3085_v18 }
 0x19b   : > { %4119 = vmatprep.mubr.msk.bf16.mxu0 %vm4345_vm0, %v4344_v1 }
 0x19c   : > { %4086 = vmatpush3.bf16.msra.mxu1 %v4284_v19  ;;  %v4315_v19 = vld [vmem:[%s5390_s4 + $0x1c8] sm:$0xff]   ;;  %v3149_v52 = vrot.slane %v3125_v33, 4 }
 0x19d   : > { %4106 = vmatpush3.bf16.msra.mxu0 %v4285_v20  ;;  %4087 = vmatprep.subr.bf16.mxu1 %v4344_v1  ;;  %v3116_v20 = vunpack.c.l.b16 %v3076_v6 }
 0x19e   : > { %4107 = vmatprep.subr.bf16.mxu0 %v4344_v1 }
 0x19f   : > { %v3133_v36 = vrot.slane %v3116_v20, 5 }
 0x1a0   : > { %4088 = vmatpush3.bf16.msra.mxu1 %v4286_v21  ;;  %v3124_v21 = vunpack.c.l.b16 %v3084_v7 }
 0x1a1   : > { %4108 = vmatpush3.bf16.msra.mxu0 %v4287_v22  ;;  %4089 = vmatprep.subr.bf16.mxu1 %v4344_v1  ;;  %v3131_v22 = vrot.slane %v3115_v8, 6 }
 0x1a2   : > { %4109 = vmatprep.subr.bf16.mxu0 %v4344_v1 }
 0x1a4   : > { %4090 = vmatpush3.bf16.msra.mxu1 %v4288_v23  ;;  %v3145_v23 = vrot.slane %v3123_v9, 6  ;;  %v4324_v9 = vld [vmem:[%s5390_s4 + $0x228] sm:$0xff]  }
 0x1a5   : > { %4110 = vmatpush3.bf16.msra.mxu0 %v4289_v24  ;;  %4091 = vmatprep.subr.bf16.mxu1 %v4344_v1  ;;  %v3744_v24 = vld [vmem:[%s4452_s12 + $0x23] sm:$0x1] }
 0x1a6   : > { %4111 = vmatprep.subr.bf16.mxu0 %v4344_v1 }
 0x1a8   : > { %4092 = vmatpush3.bf16.msra.mxu1 %v4290_v25  ;;  %v3752_v25 = vld [vmem:[%s4452_s12 + $0x4b] sm:$0x1] }
 0x1a9   : > { %4112 = vmatpush3.bf16.msra.mxu0 %v4291_v26  ;;  %4093 = vmatprep.subr.bf16.mxu1 %v4344_v1  ;;  %v3078_v26 = vpack.c.bf16 %v3743_v15, %v3743_v15  ;;  %v4325_v15 = vld [vmem:[%s5390_s4 + $0x220] sm:$0xff]  }
 0x1aa   : > { %4113 = vmatprep.subr.bf16.mxu0 %v4344_v1 }
 0x1ac   : > { %4094 = vmatpush3.bf16.msra.mxu1 %v4292_v27  ;;  %v3086_v27 = vpack.c.bf16 %v3751_v16, %v3751_v16  ;;  %v4332_v16 = vld [vmem:[%s5393_s7] sm:$0xff]  }
 0x1ad   : > { %4114 = vmatpush3.bf16.msra.mxu0 %v4293_v28  ;;  %4095 = vmatprep.subr.bf16.mxu1 %v4344_v1  ;;  %v3130_v28 = vsel %vm475_vm1, %v3129_v12, %v3113_v10  ;;  %v4330_v10 = vld [vmem:[%s5393_s7 + $0x8] sm:$0xff]  }
 0x1ae   : > { %4115 = vmatprep.subr.bf16.mxu0 %v4344_v1  ;;  %v3126_v46 = vunpack.c.l.b16 %v3086_v27 }
 0x1b0   : > { %4096 = vmatpush3.bf16.msra.mxu1 %v4294_v29  ;;  %v3144_v29 = vsel %vm475_vm1, %v3143_v13, %v3121_v11  ;;  %v3151_v61 = vrot.slane %v3126_v46, 3 }
 0x1b1   : > { %4116 = vmatpush3.bf16.msra.mxu0 %v4295_v30  ;;  %4097 = vmatprep.subr.bf16.mxu1 %v4344_v1  ;;  %v4316_v30 = vld [vmem:[%s5390_s4 + $0x180] sm:$0xff]  }
 0x1b2   : > { %4117 = vmatprep.subr.bf16.mxu0 %v4344_v1 }
 0x1b4   : > { %4098 = vmatpush3.bf16.msra.mxu1 %v4296_v31  ;;  %v4319_v31 = vld [vmem:[#allocation2 + $0x20] ss:$8 sps:$4 sm:$0xff]  }
 0x1b5   : > { %4118 = vmatpush3.bf16.msra.mxu0 %v4297_v32  ;;  %4123 = vmatprep.subr.bf16.mxu1 %v4344_v1  ;;  %v3117_v32 = vunpack.c.l.b16 %v3077_v17 }
 0x1b6   : > { %4143 = vmatprep.subr.bf16.mxu0 %v4344_v1 }
 0x1b7   : > { %4100 = vmatmul.mubr.bf16.vlgmr.msra.gmra.mxu1 %v2445_v38  ;;  %v4318_v38 = vld [vmem:[#allocation2 + $0x10] ss:$8 sps:$4 sm:$0xff]   ;;  %v3135_v51 = vrot.slane %v3117_v32, 4 }
 0x1b8   : > { %4120 = vmatmul.mubr.bf16.vlgmr.msra.gmra.mxu0 %v2566_v40  ;;  %4124 = vmatpush3.bf16.msra.mxu1 %v4302_v37  ;;  %v3147_v37 = vrot.slane %v3124_v21, 5  ;;  %v3753_v40 = vld [vmem:[%s4452_s12 + $0x4d] sm:$0x1]  ;;  %v2688_v47 = vpack.c.bf16 %v4319_v31, %v4318_v38  ;;  %v4329_v21 = vld [vmem:[%s5390_s4 + $0x210] sm:$0xff]  }
 0x1b9   : > { %4144 = vmatpush3.bf16.msra.mxu0 %v4303_v39  ;;  %4125 = vmatprep.subr.bf16.mxu1 %v4344_v1  ;;  %v4321_v39 = vld [vmem:[#allocation2 + $0x21] ss:$8 sps:$4 sm:$0xff]   ;;  %v3088_v54 = vpack.c.bf16 %v3753_v40, %v3753_v40 }
 0x1ba   : > { %4145 = vmatprep.subr.bf16.mxu0 %v4344_v1  ;;  %4139 = vmatprep.mubr.msk.bf16.mxu1 %vm4345_vm0, %v4344_v1 }
 0x1bb   : > { %4159 = vmatprep.mubr.msk.bf16.mxu0 %vm4345_vm0, %v4344_v1  ;;  %v3128_v4 = vunpack.c.l.b16 %v3088_v54 }
 0x1bc   : > { %4126 = vmatpush3.bf16.msra.mxu1 %v4304_v41  ;;  %v3079_v41 = vpack.c.bf16 %v3744_v24, %v3744_v24  ;;  %v4335_v24 = vld [vmem:[#allocation2 + $0x22] ss:$8 sps:$4 sm:$0xff]  }
 0x1bd   : > { %4146 = vmatpush3.bf16.msra.mxu0 %v4305_v42  ;;  %4127 = vmatprep.subr.bf16.mxu1 %v4344_v1  ;;  %v3087_v42 = vpack.c.bf16 %v3752_v25, %v3752_v25  ;;  %v3155_v12 = vrot.slane %v3128_v4, 1  ;;  %v4334_v25 = vld [vmem:[#allocation2 + $0x12] ss:$8 sps:$4 sm:$0xff]  }
 0x1be   : > { %4147 = vmatprep.subr.bf16.mxu0 %v4344_v1  ;;  %v3119_v58 = vunpack.c.l.b16 %v3079_v41 }
 0x1bf   : > { %v3127_v59 = vunpack.c.l.b16 %v3087_v42 }
 0x1c0   : > { %4128 = vmatpush3.bf16.msra.mxu1 %v4306_v43  ;;  %v3132_v43 = vsel %vm478_vm2, %v3131_v22, %v3130_v28  ;;  %v3139_v5 = vrot.slane %v3119_v58, 2  ;;  %v4331_v22 = vld [vmem:[%s5390_s4 + $0x208] sm:$0xff]  }
 0x1c1   : > { %4148 = vmatpush3.bf16.msra.mxu0 %v4307_v44  ;;  %4129 = vmatprep.subr.bf16.mxu1 %v4344_v1  ;;  %v3146_v44 = vsel %vm478_vm2, %v3145_v23, %v3144_v29  ;;  %v3134_v55 = vsel %vm481_vm3, %v3133_v36, %v3132_v43  ;;  %v3153_v6 = vrot.slane %v3127_v59, 2  ;;  %v4333_v23 = vld [vmem:[%s5390_s4 + $0x200] sm:$0xff]  }
 0x1c2   : > { %4149 = vmatprep.subr.bf16.mxu0 %v4344_v1  ;;  %v3136_v63 = vsel %vm484_vm4, %v3135_v51, %v3134_v55 }
 0x1c4   : > { %4130 = vmatpush3.bf16.msra.mxu1 %v4308_v45  ;;  %v3118_v45 = vunpack.c.l.b16 %v3078_v26  ;;  %v2930_v26 = vpack.c.bf16 %v4335_v24, %v4334_v25 }
 0x1c5   : > { %4150 = vmatpush3.bf16.msra.mxu0 %v4309_v48  ;;  %4131 = vmatprep.subr.bf16.mxu1 %v4344_v1  ;;  %v4320_v48 = vld [vmem:[#allocation2 + $0x11] ss:$8 sps:$4 sm:$0xff]  }
 0x1c6   : > { %4151 = vmatprep.subr.bf16.mxu0 %v4344_v1  ;;  %v2809_v57 = vpack.c.bf16 %v4321_v39, %v4320_v48  ;;  %v3137_v60 = vrot.slane %v3118_v45, 3 }
 0x1c8   : > { %4132 = vmatpush3.bf16.msra.mxu1 %v4310_v53  ;;  %v4326_v53 = vld [vmem:[%s5393_s7 + $0x18] sm:$0xff]   ;;  %v3138_v7 = vsel %vm487_vm5, %v3137_v60, %v3136_v63 }
 0x1c9   : > { %4152 = vmatpush3.bf16.msra.mxu0 %v4311_v56  ;;  %4133 = vmatprep.subr.bf16.mxu1 %v4344_v1  ;;  %v3148_v56 = vsel %vm481_vm3, %v3147_v37, %v3146_v44  ;;  %v3140_v13 = vsel %vm490_vm6, %v3139_v5, %v3138_v7 }
 0x1ca   : > { %4153 = vmatprep.subr.bf16.mxu0 %v4344_v1  ;;  %v3150_v0 = vsel %vm484_vm4, %v3149_v52, %v3148_v56 }
 0x1cb   : > { %v3152_v8 = vsel %vm487_vm5, %v3151_v61, %v3150_v0 }
 0x1cc   : > { %4134 = vmatpush3.bf16.msra.mxu1 %v4312_v2  ;;  %v4328_v2 = vld [vmem:[%s5393_s7 + $0x10] sm:$0xff]  }
 0x1cd   : > { %4154 = vmatpush3.bf16.msra.mxu0 %v4313_v3  ;;  %4135 = vmatprep.subr.bf16.mxu1 %v4344_v1  ;;  %v3120_v3 = vunpack.c.l.b16 %v3080_v50 }
 0x1ce   : > { %4155 = vmatprep.subr.bf16.mxu0 %v4344_v1 }
 0x1cf   : > { %v3141_v11 = vrot.slane %v3120_v3, 1 }
 0x1d0   : > { %4136 = vmatpush3.bf16.msra.mxu1 %v4314_v14  ;;  %v3154_v14 = vsel %vm490_vm6, %v3153_v6, %v3152_v8 }
 0x1d1   : > { %4156 = vmatpush3.bf16.msra.mxu0 %v4315_v19  ;;  %4137 = vmatprep.subr.bf16.mxu1 %v4344_v1  ;;  %v3142_v17 = vsel %vm493_vm7, %v3141_v11, %v3140_v13  ;;  %v3156_v18 = vsel %vm493_vm7, %v3155_v12, %v3154_v14  ;;  %v4327_v19 = vld [vmem:[%s5390_s4 + $0x218] sm:$0xff]   ;;  %v3760_v14 = vld [vmem:[%s5395_s9] ss:$0 sm:$0xff] }
 0x1d2   : > { %4157 = vmatprep.subr.bf16.mxu0 %v4344_v1  ;;  %v3157_v20 = vpack.c.b16 %v3156_v18, %v3142_v17  ;;  %v3737_v18 = vld [vmem:[%s5392_s6] ss:$0 sm:$0xff] }
 0x1d4   : > { %4138 = vmatpush3.bf16.msra.mxu1 %v4316_v30 }
 0x1d5   : > { %4158 = vmatpush3.bf16.msra.mxu0 %v4317_v34  ;;  %4163 = vmatprep.subr.bf16.mxu1 %v4344_v1 }
 0x1d6   : > { %4183 = vmatprep.subr.bf16.mxu0 %v4344_v1 }
 0x1d7   : > { %4140 = vmatmul.mubr.bf16.vlgmr.msra.gmra.mxu1 %v2688_v47 }
 0x1d8   : > { %4160 = vmatmul.mubr.bf16.vlgmr.msra.gmra.mxu0 %v2809_v57  ;;  %4164 = vmatpush3.bf16.msra.mxu1 %v4322_v49 }
 0x1d9   : > { %4165 = vmatprep.subr.bf16.mxu1 %v4344_v1  ;;  %4184 = vmatpush3.bf16.msra.mxu0 %v4326_v53 }
 0x1da   : > { %4185 = vmatprep.subr.bf16.mxu0 %v4344_v1  ;;  %4191 = vmatprep.mubr.msk.bf16.mxu0 %vm4345_vm0, %v4344_v1 }
 0x1db   : > { %4179 = vmatprep.mubr.msk.bf16.mxu1 %vm4345_vm0, %v4344_v1 }
 0x1dc   : > { %4166 = vmatpush3.bf16.msra.mxu1 %v4323_v62 }
 0x1dd   : > { %4167 = vmatprep.subr.bf16.mxu1 %v4344_v1  ;;  %4186 = vmatpush3.bf16.msra.mxu0 %v4328_v2 }
 0x1de   : > { %4187 = vmatprep.subr.bf16.mxu0 %v4344_v1 }
 0x1e0   : > { %4168 = vmatpush3.bf16.msra.mxu1 %v4324_v9  ;;  %v3759_v9 = vld [vmem:[%s5394_s8] ss:$0 sm:$0xff] }
 0x1e1   : > { %4169 = vmatprep.subr.bf16.mxu1 %v4344_v1  ;;  %4188 = vmatpush3.bf16.msra.mxu0 %v4330_v10 }
 0x1e2   : > { %4189 = vmatprep.subr.bf16.mxu0 %v4344_v1 }
 0x1e4   : > { %4170 = vmatpush3.bf16.msra.mxu1 %v4325_v15 }
 0x1e5   : > { %4171 = vmatprep.subr.bf16.mxu1 %v4344_v1  ;;  %4190 = vmatpush3.bf16.msra.mxu0 %v4332_v16  ;;  %v3736_v16 = vld [vmem:[%s5391_s5] ss:$0 sm:$0xff] }
 0x1e8   : > { %4172 = vmatpush3.bf16.msra.mxu1 %v4327_v19  ;;  %4192 = vmatmul.mubr.msk.bf16.vlgmr.msra.gmra.mxu0 %vm534_vm8, %v3157_v20 }
 0x1e9   : > { %4173 = vmatprep.subr.bf16.mxu1 %v4344_v1 }
 0x1ec   : > { %4174 = vmatpush3.bf16.msra.mxu1 %v4329_v21 }
 0x1ed   : > { %4175 = vmatprep.subr.bf16.mxu1 %v4344_v1 }
 0x1f0   : > { %4176 = vmatpush3.bf16.msra.mxu1 %v4331_v22 }
 0x1f1   : > { %4177 = vmatprep.subr.bf16.mxu1 %v4344_v1 }
 0x1f4   : > { %4178 = vmatpush3.bf16.msra.mxu1 %v4333_v23 }
 0x1f7   : > { %4180 = vmatmul.mubr.bf16.vlgmr.msra.gmra.mxu1 %v2930_v26 }
 0x237   : > { %v2095_v27 = vpop.f32.mrf.mxu1 }
 0x238   : > { %v2184_v28 = vpop.f32.mrf.mxu0 }
 0x239   : > { %v2185_v29 = vadd.f32 %v2184_v28, %v2095_v27  ;;  %v4021_v30 = vpop.f32.mrf.mxu1 }
 0x23a   : > { %v4041_v31 = vpop.f32.mrf.mxu0 }
 0x23b   : > { %v2098_v32 = vpop.f32.mrf.mxu1 }
 0x23c   : > { %v2187_v33 = vpop.f32.mrf.mxu0 }
 0x23d   : > { %v2188_v34 = vadd.f32 %v2187_v33, %v2098_v32  ;;  %v4022_v35 = vpop.f32.mrf.mxu1 }
 0x23e   : > { %v4042_v36 = vpop.f32.mrf.mxu0 }
 0x257   : > { %v2303_v37 = vpop.f32.mrf.mxu1 }
 0x258   : > { %v2310_v38 = vadd.f32 %v2303_v37, %v2185_v29  ;;  %v2424_v39 = vpop.f32.mrf.mxu0 }
 0x259   : > { %v4061_v40 = vpop.f32.mrf.mxu1 }
 0x25a   : > { %v2431_v1 = vadd.f32 %v2424_v39, %v2310_v38  ;;  %v4081_v41 = vpop.f32.mrf.mxu0 }
 0x25b   : > { %v2306_v42 = vpop.f32.mrf.mxu1 }
 0x25c   : > { %v2311_v43 = vadd.f32 %v2306_v42, %v2188_v34  ;;  %v2427_v44 = vpop.f32.mrf.mxu0 }
 0x25d   : > { %v4062_v45 = vpop.f32.mrf.mxu1 }
 0x25e   : > { %v2432_v46 = vadd.f32 %v2427_v44, %v2311_v43  ;;  %v4082_v47 = vpop.f32.mrf.mxu0 }
 0x277   : > { %v2545_v48 = vpop.f32.mrf.mxu1 }
 0x278   : > { %v2666_v49 = vpop.f32.mrf.mxu0  ;;  %v2552_v3 = vadd.f32 %v2545_v48, %v2431_v1 }
 0x279   : > { %v4101_v50 = vpop.f32.mrf.mxu1 }
 0x27a   : > { %v4121_v51 = vpop.f32.mrf.mxu0  ;;  %v2673_v6 = vadd.f32 %v2666_v49, %v2552_v3 }
 0x27b   : > { %v2548_v52 = vpop.f32.mrf.mxu1 }
 0x27c   : > { %v2669_v53 = vpop.f32.mrf.mxu0  ;;  %v2553_v7 = vadd.f32 %v2548_v52, %v2432_v46 }
 0x27d   : > { %v4102_v54 = vpop.f32.mrf.mxu1 }
 0x27e   : > { %v4122_v55 = vpop.f32.mrf.mxu0  ;;  %v2674_v10 = vadd.f32 %v2669_v53, %v2553_v7 }
 0x297   : > { %v2788_v56 = vpop.f32.mrf.mxu1 }
 0x298   : > { %v2909_v57 = vpop.f32.mrf.mxu0  ;;  %v2795_v8 = vadd.f32 %v2788_v56, %v2673_v6 }
 0x299   : > { %v4141_v58 = vpop.f32.mrf.mxu1 }
 0x29a   : > { %v4161_v59 = vpop.f32.mrf.mxu0  ;;  %v2916_v11 = vadd.f32 %v2909_v57, %v2795_v8 }
 0x29b   : > { %v2791_v60 = vpop.f32.mrf.mxu1 }
 0x29c   : > { %v2912_v61 = vpop.f32.mrf.mxu0  ;;  %v2796_v12 = vadd.f32 %v2791_v60, %v2674_v10 }
 0x29d   : > { %v4142_v62 = vpop.f32.mrf.mxu1 }
 0x29e   : > { %v4162_v63 = vpop.f32.mrf.mxu0  ;;  %v2917_v20 = vadd.f32 %v2912_v61, %v2796_v12 }
 0x2a8   : > { %v3219_v0 = vpop.f32.mrf.mxu0 }
 0x2a9   : > { %v3233_v13 = vmul.f32 %v3759_v9, %v3219_v0 }
 0x2aa   : > { %v4193_v2 = vpop.f32.mrf.mxu0 }
 0x2ab   : > { %v3242_v21 = vadd.f32 %v3760_v14, %v3233_v13 }
 0x2ac   : > { %v3222_v4 = vpop.f32.mrf.mxu0 }
 0x2ad   : > { %v3234_v25 = vmul.f32 %v3759_v9, %v3222_v4 }
 0x2ae   : > { %v4194_v5 = vpop.f32.mrf.mxu0 }
 0x2af   : > { %v3243_v31 = vadd.f32 %v3760_v14, %v3234_v25 }
 0x2b7   : > { %v3030_v15 = vpop.f32.mrf.mxu1 }
 0x2b8   : > { %v3037_v17 = vadd.f32 %v3030_v15, %v2916_v11 }
 0x2b9   : > { %v4181_v19 = vpop.f32.mrf.mxu1 }
 0x2ba   : > { %v3046_v22 = vmul.f32 %v3736_v16, %v3037_v17 }
 0x2bb   : > { %v3033_v23 = vpop.f32.mrf.mxu1 }
 0x2bc   : > { %v3055_v24 = vadd.f32 %v3737_v18, %v3046_v22  ;;  %v3038_v26 = vadd.f32 %v3033_v23, %v2917_v20 }
 0x2bd   : > { %v4182_v27 = vpop.f32.mrf.mxu1 }
 0x2be   : > { %v3244_v28 = vadd.f32 %v3242_v21, %v3055_v24  ;;  %v3047_v29 = vmul.f32 %v3736_v16, %v3038_v26 }
 0x2c0   : > { %v3246_v30 = vmax.f32 %v3244_v28, 0.0  ;;  %v3056_v32 = vadd.f32 %v3737_v18, %v3047_v29 }
 0x2c2   : > { %3248 = vst [vmem:[%s359_s17] sm:$0xff] %v3246_v30  ;;  %v3245_v33 = vadd.f32 %v3243_v31, %v3056_v32 }
 0x2c4   : > { %v3247_v34 = vmax.f32 %v3245_v33, 0.0 }
 0x2c6   : > { %3249 = vst [vmem:[%s359_s17 + $0x8] sm:$0xff] %v3247_v34 }
 0x2c7 PF: > { %s20_s13 = sadd.s32 1, %s4342_s13  }
 0x2c8   : > { %p17_p4 = scmp.ge.s32.totalorder %s20_s13, 4  }
 0x2ca   :  { %19 = sbr.rel (!%p17_p4) target bundleno = 1 (0x1), region = 113 }

</bundles_post_ra>
